<compile_context>
chip_gen: v6e
topology: v6e:2x2x1
jax: 0.10.0
libtpu: 0.0.40
codegen_flags: <defaults>
</compile_context>

<pallas_src>
import numpy as np
import jax
import jax.numpy as jnp
from jax import lax
from jax.experimental import pallas as pl
from jax.experimental.pallas import tpu as pltpu


# ---------------------------------------------------------------------------
# helpers
# ---------------------------------------------------------------------------
def _round_up(x, m):
    return (x + m - 1) // m * m


def _pad_to(x, shape):
    pads = [(0, s - d) for d, s in zip(x.shape, shape)]
    return jnp.pad(x, pads)


def _pad_gate_cols(w, H, Hp):
    """Pad the last (4*H) axis to (4*Hp) preserving the [i|f|g|o] gate layout."""
    lead = w.shape[:-1]
    w4 = w.reshape(*lead, 4, H)
    w4 = jnp.pad(w4, [(0, 0)] * len(lead) + [(0, 0), (0, Hp - H)])
    return w4.reshape(*lead, 4 * Hp)


# ---------------------------------------------------------------------------
# tiled matmul + bias kernel (vocab projection on only the packed rows)
# ---------------------------------------------------------------------------
def matmul_bias_kernel(a_ref, b_ref, bias_ref, o_ref, acc_ref):
    k = pl.program_id(2)

    @pl.when(k == 0)
    def _():
        acc_ref[...] = jnp.zeros_like(acc_ref)

    acc_ref[...] += jnp.dot(a_ref[...], b_ref[...],
                            preferred_element_type=jnp.float32)

    @pl.when(k == pl.num_programs(2) - 1)
    def _():
        o_ref[...] = (acc_ref[...]
                      + bias_ref[...].astype(jnp.float32)).astype(o_ref.dtype)


def matmul_bias(a, b, bias, out_dtype=jnp.float32, tm=512, tn=512, tk=512):
    """out = a @ b + bias, tiled for the MXU.  Pads all dims internally.

    512-wide default tiles (clamped to the problem) cut the number of full
    passes over the (K, N) weight from HBM; all tiles are 128-multiples so
    they are also fine for v5e's 128-wide MXU.
    """
    M, K = a.shape
    _, N = b.shape
    tm = min(tm, _round_up(M, 16))     # 16: sublane multiple for bf16 operands
    tn = min(tn, _round_up(N, 128))
    tk = min(tk, _round_up(K, 128))
    Mp, Kp, Np = _round_up(M, tm), _round_up(K, tk), _round_up(N, tn)

    a_p = _pad_to(a, (Mp, Kp))
    b_p = _pad_to(b, (Kp, Np))
    bias_p = _pad_to(bias.astype(jnp.float32), (1, Np))

    # Working set: double-buffered in/out tiles + f32 accumulator (+ headroom).
    est = (2 * tm * tk * np.dtype(a.dtype).itemsize
           + 2 * tk * tn * np.dtype(b.dtype).itemsize
           + 2 * tn * 4
           + 2 * tm * tn * np.dtype(out_dtype).itemsize
           + tm * tn * 4)
    vmem_limit = int(min(max(32 << 20, 2 * est), 64 << 20))

    out = pl.pallas_call(
        matmul_bias_kernel,
        out_shape=jax.ShapeDtypeStruct((Mp, Np), out_dtype),
        grid_spec=pltpu.PrefetchScalarGridSpec(
            num_scalar_prefetch=0,
            grid=(Mp // tm, Np // tn, Kp // tk),
            in_specs=[
                pl.BlockSpec((tm, tk), lambda i, j, k: (i, k)),
                pl.BlockSpec((tk, tn), lambda i, j, k: (k, j)),
                pl.BlockSpec((1, tn), lambda i, j, k: (0, j)),
            ],
            out_specs=pl.BlockSpec((tm, tn), lambda i, j, k: (i, j)),
            scratch_shapes=[pltpu.VMEM((tm, tn), jnp.float32)],
        ),
        compiler_params=pltpu.CompilerParams(
            dimension_semantics=("parallel", "parallel", "arbitrary"),
            vmem_limit_bytes=vmem_limit),
    )(a_p, b_p, bias_p)
    return out[:M, :N]


# ---------------------------------------------------------------------------
# fused LSTM recurrence kernel.
#   x        : (Tt, Bt, Ep) bf16   embedded inputs for this (batch, time) block
#   W_ih     : (Ep, 4*Hp)   bf16   loop-invariant (single-buffered if possible)
#   W_hh     : (Hp, 4*Hp)   bf16   loop-invariant
#   b        : (1, 4*Hp)    f32    b_ih + b_hh
#   features : (Bt, Hp)     f32    h0 == c0 (the module passes features as both)
#   hiddens  : (Tt, Bt, Hp) bf16   per-step hidden states (vocab proj. hoisted out)
# Matmuls use bf16 operands with f32 accumulation; gate math and the carried
# (h, c) state stay f32 (v5e-safe).  Hp / Ep are 128-multiples so the four gate
# slices are lane-aligned vreg views (no masked stores / XLU shuffles).
# ---------------------------------------------------------------------------
def lstm_recurrence_kernel(x_ref, wih_ref, whh_ref, b_ref, feat_ref, hid_ref,
                           h_sc, c_sc):
    t_blk = pl.program_id(1)            # grid = (batch blocks, time blocks)

    # New batch block: (re)initialize the state from features (h0 == c0).
    @pl.when(t_blk == 0)
    def _():
        f0 = feat_ref[...]
        h_sc[...] = f0
        c_sc[...] = f0

    Tt, Bt, _ = x_ref.shape
    Hp = h_sc.shape[-1]

    wih = wih_ref[...]                  # bf16, resident across the time grid
    whh = whh_ref[...]
    # Hoist the bias broadcast out of the loop (JAX does not CSE broadcasts).
    bias = jnp.broadcast_to(b_ref[...].astype(jnp.float32), (Bt, 4 * Hp))

    def step(tt, carry):
        h, c = carry                    # f32 (Bt, Hp)
        # x @ W_ih has no serial dependence on h; with the loop unrolled the
        # scheduler can issue it ahead of / alongside h @ W_hh.
        gates = (jnp.dot(x_ref[tt], wih, preferred_element_type=jnp.float32)
                 + jnp.dot(h.astype(whh.dtype), whh,
                           preferred_element_type=jnp.float32)
                 + bias)
        # PyTorch LSTM gate order: input, forget, cell(g), output.
        i = jax.nn.sigmoid(gates[:, 0:Hp])
        f = jax.nn.sigmoid(gates[:, Hp:2 * Hp])
        g = jnp.tanh(gates[:, 2 * Hp:3 * Hp])
        o = jax.nn.sigmoid(gates[:, 3 * Hp:4 * Hp])
        c = f * c + i * g
        h = o * jnp.tanh(c)
        hid_ref[tt] = h.astype(hid_ref.dtype)
        return (h, c)

    h, c = lax.fori_loop(0, Tt, step, (h_sc[...], c_sc[...]), unroll=True)
    h_sc[...] = h
    c_sc[...] = c


_RECURRENCE_VMEM_BUDGET = 40 << 20      # keep tiles well inside v7x's 64 MiB


def _recurrence_vmem_bytes(Tt, Bt, Ep, Hp):
    """Conservative VMEM estimate (assumes double-buffered weights)."""
    return (2 * Tt * Bt * Ep * 2              # x blocks (bf16, double-buffered)
            + 2 * Tt * Bt * Hp * 2            # hiddens blocks (bf16, dbl-buffered)
            + 2 * (Ep + Hp) * 4 * Hp * 2      # W_ih + W_hh (bf16)
            + 2 * 4 * Hp * 4                  # bias (f32)
            + 2 * Bt * Hp * 4                 # features (f32)
            + 2 * Bt * Hp * 4                 # h / c scratch (f32)
            + 8 * Bt * Hp * 4)                # headroom: in-flight f32 gates


def _run_recurrence(x, w_ih, w_hh, b_lstm, feat, *, Bt, Tt, use_buffered,
                    vmem_limit_bytes):
    Tp, Bp, Ep = x.shape
    Hp = feat.shape[-1]
    nb, nt = Bp // Bt, Tp // Tt

    def inv_spec(shape):
        # Loop-invariant input: constant block index.  With pl.Buffered(1) it is
        # single-buffered (halves its VMEM footprint -- matters on v7x).
        imap = lambda b, t, _n=len(shape): (0,) * _n
        if use_buffered and hasattr(pl, "Buffered"):
            return pl.BlockSpec(shape, imap, pipeline_mode=pl.Buffered(1))
        return pl.BlockSpec(shape, imap)

    # Megacore: only mark the batch axis "parallel" when it actually has >= 2
    # blocks, so each v7x TensorCore gets whole batch blocks.
    batch_sem = "parallel" if nb >= 2 else "arbitrary"

    return pl.pallas_call(
        lstm_recurrence_kernel,
        out_shape=jax.ShapeDtypeStruct((Tp, Bp, Hp), jnp.bfloat16),
        grid_spec=pltpu.PrefetchScalarGridSpec(
            num_scalar_prefetch=0,
            grid=(nb, nt),
            in_specs=[
                pl.BlockSpec((Tt, Bt, Ep), lambda b, t: (t, b, 0)),   # x
                inv_spec((Ep, 4 * Hp)),                               # W_ih
                inv_spec((Hp, 4 * Hp)),                               # W_hh
                inv_spec((1, 4 * Hp)),                                # b_ih + b_hh
                pl.BlockSpec((Bt, Hp), lambda b, t: (b, 0)),          # features
            ],
            out_specs=pl.BlockSpec((Tt, Bt, Hp), lambda b, t: (t, b, 0)),
            scratch_shapes=[
                pltpu.VMEM((Bt, Hp), jnp.float32),                    # h state
                pltpu.VMEM((Bt, Hp), jnp.float32),                    # c state
            ],
        ),
        compiler_params=pltpu.CompilerParams(
            dimension_semantics=(batch_sem, "arbitrary"),
            vmem_limit_bytes=vmem_limit_bytes),
    )(x, w_ih, w_hh, b_lstm, feat)


# ---------------------------------------------------------------------------
# forward pass wrapper (replicates decoderRNN.forward)
# ---------------------------------------------------------------------------
def decoder_rnn_forward(params, features, encoded_captions, lengths,
                        *, time_block=8, batch_tile_cap=128):
    """features (B,H) f32, encoded_captions (B,T) int32, lengths static and
    sorted descending.  Returns (sum(lengths), V) f32, matching
    linear(pack_padded_sequence(lstm(embed(captions), (features, features)))[0])."""
    lengths = np.asarray(lengths)
    B, T = encoded_captions.shape
    assert lengths.shape == (B,), "one length per sequence"
    assert np.all(lengths[:-1] >= lengths[1:]), \
        "lengths must be sorted descending (pack_padded_sequence contract)"
    assert np.all((lengths >= 1) & (lengths <= T))

    # Embedding lookup (data-dependent gather) -- plain JAX glue.
    emb = params["embedding"][encoded_captions]                     # (B, T, E)
    E = emb.shape[-1]
    H = features.shape[-1]
    V = params["w_lin"].shape[-1]

    Hp = _round_up(H, 128)                 # lane-aligned gate slices
    Ep = _round_up(E, 128)

    # Batch tile: whole 16-aligned padded batch, capped (128 fills the v5e MXU;
    # raise the cap to 256 on v6e/v7x).  When Bp exceeds the cap we get >= 2
    # batch blocks, which also lets v7x megacore split the batch axis.
    Bp = _round_up(B, 16)
    if Bp <= batch_tile_cap:
        Bt = Bp
    else:
        Bt = batch_tile_cap
        Bp = _round_up(Bp, Bt)

    # Time block: amortizes per-grid-step overhead (~0.35us) and enlarges DMAs;
    # clamped so the recurrence working set also fits v7x's smaller VMEM.
    Tt = max(1, min(time_block, T))
    while Tt > 1 and _recurrence_vmem_bytes(Tt, Bt, Ep, Hp) > _RECURRENCE_VMEM_BUDGET:
        Tt //= 2
    Tp = _round_up(T, Tt)

    # --- pad / restructure parameters.  Gate layout is preserved; padded gate
    #     columns / rows, padded bias and padded feature lanes are all ZERO so
    #     the padded h/c lanes stay exactly 0 throughout the recurrence
    #     (sigmoid(0)=0.5 never contaminates real lanes).  Keep it that way. ---
    w_ih = _pad_to(_pad_gate_cols(params["w_ih"], H, Hp), (Ep, 4 * Hp))
    w_hh = _pad_to(_pad_gate_cols(params["w_hh"], H, Hp), (Hp, 4 * Hp))
    b_lstm = _pad_gate_cols(params["b_lstm"], H, Hp)                # (1, 4Hp)
    feat = _pad_to(features, (Bp, Hp)).astype(jnp.float32)          # (Bp, Hp)
    w_lin = _pad_to(params["w_lin"], (Hp, V))                       # (Hp, V)

    # Time-major bf16 inputs for the fused recurrence (the x @ W_ih projection
    # runs inside the kernel, so no (Tp, Bp, 4Hp) gx ever hits HBM).
    x = jnp.transpose(emb, (1, 0, 2))                               # (T, B, E)
    x = _pad_to(x, (Tp, Bp, Ep)).astype(jnp.bfloat16)

    vmem_limit = int(min(max(32 << 20,
                             _recurrence_vmem_bytes(Tt, Bt, Ep, Hp) + (16 << 20)),
                         56 << 20))
    rec_kwargs = dict(Bt=Bt, Tt=Tt, vmem_limit_bytes=vmem_limit)
    try:
        hiddens = _run_recurrence(x, w_ih.astype(jnp.bfloat16),
                                  w_hh.astype(jnp.bfloat16), b_lstm, feat,
                                  use_buffered=True, **rec_kwargs)
    except Exception:
        # pl.Buffered(1) on the loop-invariant weights is a pure VMEM-footprint
        # optimization; fall back cleanly if this jax/Mosaic build rejects
        # pipeline_mode on a top-level pallas_call BlockSpec.
        hiddens = _run_recurrence(x, w_ih.astype(jnp.bfloat16),
                                  w_hh.astype(jnp.bfloat16), b_lstm, feat,
                                  use_buffered=False, **rec_kwargs)

    # pack_padded_sequence ordering: time-major, the first batch_sizes[t]
    # sequences at step t (lengths sorted descending).  Static gather on the
    # bf16 hiddens.
    # TODO(synk): fuse this static row gather into the vocab projection
    # (scalar-prefetched row indices + pl.Element row index_map) to avoid the
    # (L, Hp) HBM round trip.
    t_idx, b_idx = [], []
    for t in range(T):
        for b in range(B):
            if lengths[b] > t:
                t_idx.append(t)
                b_idx.append(b)
    packed_h = hiddens[jnp.asarray(t_idx, jnp.int32),
                       jnp.asarray(b_idx, jnp.int32)]               # (L, Hp) bf16

    # Vocab projection on only the packed (valid) rows.
    logits = matmul_bias(packed_h, w_lin.astype(jnp.bfloat16),
                         params["b_lin"], out_dtype=jnp.float32)    # (L, V)
    return logits


# ---------------------------------------------------------------------------
# pure-JAX reference (mirrors the bf16-operand / f32-accum math) for validation
# ---------------------------------------------------------------------------
def reference_forward(params, features, encoded_captions, lengths):
    emb = params["embedding"][encoded_captions]                     # (B, T, E)
    xs = jnp.transpose(emb, (1, 0, 2))                              # (T, B, E)
    H = features.shape[-1]
    w_ih = params["w_ih"].astype(jnp.bfloat16)
    w_hh = params["w_hh"].astype(jnp.bfloat16)

    def step(carry, x_t):
        h, c = carry
        gates = (jnp.dot(x_t.astype(jnp.bfloat16), w_ih,
                         preferred_element_type=jnp.float32)
                 + jnp.dot(h.astype(jnp.bfloat16), w_hh,
                           preferred_element_type=jnp.float32)
                 + params["b_lstm"][0])
        i = jax.nn.sigmoid(gates[:, 0:H])
        f = jax.nn.sigmoid(gates[:, H:2 * H])
        g = jnp.tanh(gates[:, 2 * H:3 * H])
        o = jax.nn.sigmoid(gates[:, 3 * H:4 * H])
        c = f * c + i * g
        h = o * jnp.tanh(c)
        return (h, c), h

    _, hs = lax.scan(step, (features, features), xs)                # (T, B, H)
    logits = (jnp.dot(hs.astype(jnp.bfloat16),
                      params["w_lin"].astype(jnp.bfloat16),
                      preferred_element_type=jnp.float32)
              + params["b_lin"][0])                                 # (T, B, V)

    lengths = np.asarray(lengths)
    rows = [logits[t, b] for t in range(xs.shape[0])
            for b in range(xs.shape[1]) if lengths[b] > t]
    return jnp.stack(rows)


def init_params(key, vocab_size, embed_size, hidden_size):
    ks = jax.random.split(key, 7)
    s = 0.1
    emb = s * jax.random.normal(ks[0], (vocab_size, embed_size), jnp.float32)
    emb = emb.at[0].set(0.0)                                        # padding_idx=0
    return {
        "embedding": emb,
        "w_ih": s * jax.random.normal(ks[1], (embed_size, 4 * hidden_size), jnp.float32),
        "w_hh": s * jax.random.normal(ks[2], (hidden_size, 4 * hidden_size), jnp.float32),
        "b_lstm": s * jax.random.normal(ks[3], (1, 4 * hidden_size), jnp.float32),  # b_ih+b_hh
        "w_lin": s * jax.random.normal(ks[4], (hidden_size, vocab_size), jnp.float32),
        "b_lin": s * jax.random.normal(ks[5], (1, vocab_size), jnp.float32),
    }


if __name__ == "__main__":
    # Small shapes consistent with the module (num_layers=1, implied by
    # features.unsqueeze(0) in the reference forward; h0 == c0 == features).
    B, T, E, H, VOCAB = 4, 8, 32, 32, 16
    lengths = [8, 6, 5, 3]                                          # sorted descending

    key = jax.random.PRNGKey(0)
    kp, kf, kc = jax.random.split(key, 3)
    params = init_params(kp, VOCAB, E, H)
    features = 0.1 * jax.random.normal(kf, (B, H), jnp.float32)
    captions = jax.random.randint(kc, (B, T), 0, VOCAB, jnp.int32)

    out = decoder_rnn_forward(params, features, captions, lengths)
    out = jax.block_until_ready(out)

    ref = reference_forward(params, features, captions, lengths)
    assert out.shape == (int(np.sum(lengths)), VOCAB), out.shape
    np.testing.assert_allclose(np.asarray(out), np.asarray(ref), rtol=5e-3, atol=5e-3)

    # TODO(synk): lengths must be static (Python/NumPy); a traced `lengths`
    # would require a scalar-prefetch-driven packing kernel instead.
    print("KERNEL_OK")
</pallas_src>

<mosaic_0001>
module attributes {stable_mosaic.version = 11 : i64} {
  func.func @lstm_recurrence_kernel(%arg0: i32, %arg1: i32, %arg2: memref<8x16x128xbf16, #tpu.memory_space<vmem>>, %arg3: memref<128x512xbf16, #tpu.memory_space<vmem>>, %arg4: memref<128x512xbf16, #tpu.memory_space<vmem>>, %arg5: memref<1x512xf32, #tpu.memory_space<vmem>>, %arg6: memref<16x128xf32, #tpu.memory_space<vmem>>, %arg7: memref<8x16x128xbf16, #tpu.memory_space<vmem>>, %arg8: memref<16x128xf32, #tpu.memory_space<vmem>>, %arg9: memref<16x128xf32, #tpu.memory_space<vmem>>) attributes {dimension_semantics = [#tpu.dimension_semantics<arbitrary>, #tpu.dimension_semantics<arbitrary>], iteration_bounds = array<i64: 1, 1>, scalar_prefetch = 0 : i64, scratch_operands = 2 : i64, tpu.core_type = #tpu.core_type<tc>, window_params = [{transform_indices = @transform_0, window_bounds = array<i64: 8, 16, 128>}, {pipeline_mode = #tpu.pipeline_mode<synchronous>, transform_indices = @transform_1, window_bounds = array<i64: 128, 512>}, {pipeline_mode = #tpu.pipeline_mode<synchronous>, transform_indices = @transform_2, window_bounds = array<i64: 128, 512>}, {pipeline_mode = #tpu.pipeline_mode<synchronous>, transform_indices = @transform_3, window_bounds = array<i64: 1, 512>}, {transform_indices = @transform_4, window_bounds = array<i64: 16, 128>}, {transform_indices = @transform_5, window_bounds = array<i64: 8, 16, 128>}]} {
    %c0_i32 = arith.constant 0 : i32
    %0 = arith.cmpi eq, %arg1, %c0_i32 : i32
    %1 = arith.extui %0 : i1 to i32
    %c0_i32_0 = arith.constant 0 : i32
    %2 = arith.cmpi ne, %1, %c0_i32_0 : i32
    scf.if %2 {
      %c0_86 = arith.constant 0 : index
      %c0_87 = arith.constant 0 : index
      %316 = vector.load %arg6[%c0_86, %c0_87] : memref<16x128xf32, #tpu.memory_space<vmem>>, vector<16x128xf32>
      %c0_88 = arith.constant 0 : index
      %c0_89 = arith.constant 0 : index
      %317 = vector.load %arg8[%c0_88, %c0_89] : memref<16x128xf32, #tpu.memory_space<vmem>>, vector<16x128xf32>
      tpu.vector_store %arg8[%c0_88, %c0_89], %316 {strides = array<i32>} : memref<16x128xf32, #tpu.memory_space<vmem>>, vector<16x128xf32>,
      %c0_90 = arith.constant 0 : index
      %c0_91 = arith.constant 0 : index
      %318 = vector.load %arg9[%c0_90, %c0_91] : memref<16x128xf32, #tpu.memory_space<vmem>>, vector<16x128xf32>
      tpu.vector_store %arg9[%c0_90, %c0_91], %316 {strides = array<i32>} : memref<16x128xf32, #tpu.memory_space<vmem>>, vector<16x128xf32>,
    } else {
    }
    %c0 = arith.constant 0 : index
    %c0_1 = arith.constant 0 : index
    %3 = vector.load %arg3[%c0, %c0_1] : memref<128x512xbf16, #tpu.memory_space<vmem>>, vector<128x512xbf16>
    %c0_2 = arith.constant 0 : index
    %c0_3 = arith.constant 0 : index
    %4 = vector.load %arg4[%c0_2, %c0_3] : memref<128x512xbf16, #tpu.memory_space<vmem>>, vector<128x512xbf16>
    %c0_4 = arith.constant 0 : index
    %c0_5 = arith.constant 0 : index
    %5 = vector.load %arg5[%c0_4, %c0_5] : memref<1x512xf32, #tpu.memory_space<vmem>>, vector<1x512xf32>
    %6 = vector.shape_cast %5 : vector<1x512xf32> to vector<1x512xf32>
    %7 = vector.broadcast %6 : vector<1x512xf32> to vector<16x512xf32>
    %c0_6 = arith.constant 0 : index
    %c0_7 = arith.constant 0 : index
    %8 = vector.load %arg8[%c0_6, %c0_7] : memref<16x128xf32, #tpu.memory_space<vmem>>, vector<16x128xf32>
    %c0_8 = arith.constant 0 : index
    %c0_9 = arith.constant 0 : index
    %9 = vector.load %arg9[%c0_8, %c0_9] : memref<16x128xf32, #tpu.memory_space<vmem>>, vector<16x128xf32>
    %c0_i32_10 = arith.constant 0 : i32
    %10 = arith.index_cast %c0_i32_10 : i32 to index
    %c0_11 = arith.constant 0 : index
    %c0_12 = arith.constant 0 : index
    %11 = vector.load %arg2[%10, %c0_11, %c0_12] : memref<8x16x128xbf16, #tpu.memory_space<vmem>>, vector<1x16x128xbf16>
    %12 = vector.shape_cast %11 : vector<1x16x128xbf16> to vector<16x128xbf16>
    %cst = arith.constant dense<0.000000e+00> : vector<16x512xf32>
    %13 = tpu.matmul %12, %3, %cst {dimension_numbers = #tpu.dot_dimension_numbers<[1], [0], [0], [1], [0, 0, 1, 1], [], []>} : vector<16x128xbf16>, vector<128x512xbf16>, vector<16x512xf32> -> vector<16x512xf32>
    %14 = arith.truncf %8 : vector<16x128xf32> to vector<16x128xbf16>
    %cst_13 = arith.constant dense<0.000000e+00> : vector<16x512xf32>
    %15 = tpu.matmul %14, %4, %cst_13 {dimension_numbers = #tpu.dot_dimension_numbers<[1], [0], [0], [1], [0, 0, 1, 1], [], []>} : vector<16x128xbf16>, vector<128x512xbf16>, vector<16x512xf32> -> vector<16x512xf32>
    %16 = arith.addf %13, %15 : vector<16x512xf32>
    %17 = arith.addf %16, %7 : vector<16x512xf32>
    %18 = vector.extract_strided_slice %17 {offsets = [0, 0], sizes = [16, 128], strides = [1, 1]} : vector<16x512xf32> to vector<16x128xf32>
    %19 = arith.negf %18 : vector<16x128xf32>
    %20 = math.exp %19 : vector<16x128xf32>
    %cst_14 = arith.constant 1.000000e+00 : f32
    %21 = vector.broadcast %cst_14 : f32 to vector<16x128xf32>
    %22 = arith.addf %21, %20 : vector<16x128xf32>
    %23 = arith.divf %21, %22 : vector<16x128xf32>
    %24 = vector.extract_strided_slice %17 {offsets = [0, 128], sizes = [16, 128], strides = [1, 1]} : vector<16x512xf32> to vector<16x128xf32>
    %25 = arith.negf %24 : vector<16x128xf32>
    %26 = math.exp %25 : vector<16x128xf32>
    %cst_15 = arith.constant 1.000000e+00 : f32
    %27 = vector.broadcast %cst_15 : f32 to vector<16x128xf32>
    %28 = arith.addf %27, %26 : vector<16x128xf32>
    %29 = arith.divf %27, %28 : vector<16x128xf32>
    %30 = vector.extract_strided_slice %17 {offsets = [0, 256], sizes = [16, 128], strides = [1, 1]} : vector<16x512xf32> to vector<16x128xf32>
    %31 = math.tanh %30 : vector<16x128xf32>
    %32 = vector.extract_strided_slice %17 {offsets = [0, 384], sizes = [16, 128], strides = [1, 1]} : vector<16x512xf32> to vector<16x128xf32>
    %33 = arith.negf %32 : vector<16x128xf32>
    %34 = math.exp %33 : vector<16x128xf32>
    %cst_16 = arith.constant 1.000000e+00 : f32
    %35 = vector.broadcast %cst_16 : f32 to vector<16x128xf32>
    %36 = arith.addf %35, %34 : vector<16x128xf32>
    %37 = arith.divf %35, %36 : vector<16x128xf32>
    %38 = arith.mulf %29, %9 : vector<16x128xf32>
    %39 = arith.mulf %23, %31 : vector<16x128xf32>
    %40 = arith.addf %38, %39 : vector<16x128xf32>
    %41 = math.tanh %40 : vector<16x128xf32>
    %42 = arith.mulf %37, %41 : vector<16x128xf32>
    %43 = arith.truncf %42 : vector<16x128xf32> to vector<16x128xbf16>
    %44 = arith.index_cast %c0_i32_10 : i32 to index
    %c0_17 = arith.constant 0 : index
    %c0_18 = arith.constant 0 : index
    %45 = vector.load %arg7[%44, %c0_17, %c0_18] : memref<8x16x128xbf16, #tpu.memory_space<vmem>>, vector<1x16x128xbf16>
    %46 = vector.shape_cast %45 : vector<1x16x128xbf16> to vector<16x128xbf16>
    %47 = vector.shape_cast %43 : vector<16x128xbf16> to vector<1x16x128xbf16>
    tpu.vector_store %arg7[%44, %c0_17, %c0_18], %47 {strides = array<i32>} : memref<8x16x128xbf16, #tpu.memory_space<vmem>>, vector<1x16x128xbf16>,
    %c1_i32 = arith.constant 1 : i32
    %48 = arith.index_cast %c1_i32 : i32 to index
    %c0_19 = arith.constant 0 : index
    %c0_20 = arith.constant 0 : index
    %49 = vector.load %arg2[%48, %c0_19, %c0_20] : memref<8x16x128xbf16, #tpu.memory_space<vmem>>, vector<1x16x128xbf16>
    %50 = vector.shape_cast %49 : vector<1x16x128xbf16> to vector<16x128xbf16>
    %cst_21 = arith.constant dense<0.000000e+00> : vector<16x512xf32>
    %51 = tpu.matmul %50, %3, %cst_21 {dimension_numbers = #tpu.dot_dimension_numbers<[1], [0], [0], [1], [0, 0, 1, 1], [], []>} : vector<16x128xbf16>, vector<128x512xbf16>, vector<16x512xf32> -> vector<16x512xf32>
    %52 = arith.truncf %42 : vector<16x128xf32> to vector<16x128xbf16>
    %cst_22 = arith.constant dense<0.000000e+00> : vector<16x512xf32>
    %53 = tpu.matmul %52, %4, %cst_22 {dimension_numbers = #tpu.dot_dimension_numbers<[1], [0], [0], [1], [0, 0, 1, 1], [], []>} : vector<16x128xbf16>, vector<128x512xbf16>, vector<16x512xf32> -> vector<16x512xf32>
    %54 = arith.addf %51, %53 : vector<16x512xf32>
    %55 = arith.addf %54, %7 : vector<16x512xf32>
    %56 = vector.extract_strided_slice %55 {offsets = [0, 0], sizes = [16, 128], strides = [1, 1]} : vector<16x512xf32> to vector<16x128xf32>
    %57 = arith.negf %56 : vector<16x128xf32>
    %58 = math.exp %57 : vector<16x128xf32>
    %cst_23 = arith.constant 1.000000e+00 : f32
    %59 = vector.broadcast %cst_23 : f32 to vector<16x128xf32>
    %60 = arith.addf %59, %58 : vector<16x128xf32>
    %61 = arith.divf %59, %60 : vector<16x128xf32>
    %62 = vector.extract_strided_slice %55 {offsets = [0, 128], sizes = [16, 128], strides = [1, 1]} : vector<16x512xf32> to vector<16x128xf32>
    %63 = arith.negf %62 : vector<16x128xf32>
    %64 = math.exp %63 : vector<16x128xf32>
    %cst_24 = arith.constant 1.000000e+00 : f32
    %65 = vector.broadcast %cst_24 : f32 to vector<16x128xf32>
    %66 = arith.addf %65, %64 : vector<16x128xf32>
    %67 = arith.divf %65, %66 : vector<16x128xf32>
    %68 = vector.extract_strided_slice %55 {offsets = [0, 256], sizes = [16, 128], strides = [1, 1]} : vector<16x512xf32> to vector<16x128xf32>
    %69 = math.tanh %68 : vector<16x128xf32>
    %70 = vector.extract_strided_slice %55 {offsets = [0, 384], sizes = [16, 128], strides = [1, 1]} : vector<16x512xf32> to vector<16x128xf32>
    %71 = arith.negf %70 : vector<16x128xf32>
    %72 = math.exp %71 : vector<16x128xf32>
    %cst_25 = arith.constant 1.000000e+00 : f32
    %73 = vector.broadcast %cst_25 : f32 to vector<16x128xf32>
    %74 = arith.addf %73, %72 : vector<16x128xf32>
    %75 = arith.divf %73, %74 : vector<16x128xf32>
    %76 = arith.mulf %67, %40 : vector<16x128xf32>
    %77 = arith.mulf %61, %69 : vector<16x128xf32>
    %78 = arith.addf %76, %77 : vector<16x128xf32>
    %79 = math.tanh %78 : vector<16x128xf32>
    %80 = arith.mulf %75, %79 : vector<16x128xf32>
    %81 = arith.truncf %80 : vector<16x128xf32> to vector<16x128xbf16>
    %82 = arith.index_cast %c1_i32 : i32 to index
    %c0_26 = arith.constant 0 : index
    %c0_27 = arith.constant 0 : index
    %83 = vector.load %arg7[%82, %c0_26, %c0_27] : memref<8x16x128xbf16, #tpu.memory_space<vmem>>, vector<1x16x128xbf16>
    %84 = vector.shape_cast %83 : vector<1x16x128xbf16> to vector<16x128xbf16>
    %85 = vector.shape_cast %81 : vector<16x128xbf16> to vector<1x16x128xbf16>
    tpu.vector_store %arg7[%82, %c0_26, %c0_27], %85 {strides = array<i32>} : memref<8x16x128xbf16, #tpu.memory_space<vmem>>, vector<1x16x128xbf16>,
    %c2_i32 = arith.constant 2 : i32
    %86 = arith.index_cast %c2_i32 : i32 to index
    %c0_28 = arith.constant 0 : index
    %c0_29 = arith.constant 0 : index
    %87 = vector.load %arg2[%86, %c0_28, %c0_29] : memref<8x16x128xbf16, #tpu.memory_space<vmem>>, vector<1x16x128xbf16>
    %88 = vector.shape_cast %87 : vector<1x16x128xbf16> to vector<16x128xbf16>
    %cst_30 = arith.constant dense<0.000000e+00> : vector<16x512xf32>
    %89 = tpu.matmul %88, %3, %cst_30 {dimension_numbers = #tpu.dot_dimension_numbers<[1], [0], [0], [1], [0, 0, 1, 1], [], []>} : vector<16x128xbf16>, vector<128x512xbf16>, vector<16x512xf32> -> vector<16x512xf32>
    %90 = arith.truncf %80 : vector<16x128xf32> to vector<16x128xbf16>
    %cst_31 = arith.constant dense<0.000000e+00> : vector<16x512xf32>
    %91 = tpu.matmul %90, %4, %cst_31 {dimension_numbers = #tpu.dot_dimension_numbers<[1], [0], [0], [1], [0, 0, 1, 1], [], []>} : vector<16x128xbf16>, vector<128x512xbf16>, vector<16x512xf32> -> vector<16x512xf32>
    %92 = arith.addf %89, %91 : vector<16x512xf32>
    %93 = arith.addf %92, %7 : vector<16x512xf32>
    %94 = vector.extract_strided_slice %93 {offsets = [0, 0], sizes = [16, 128], strides = [1, 1]} : vector<16x512xf32> to vector<16x128xf32>
    %95 = arith.negf %94 : vector<16x128xf32>
    %96 = math.exp %95 : vector<16x128xf32>
    %cst_32 = arith.constant 1.000000e+00 : f32
    %97 = vector.broadcast %cst_32 : f32 to vector<16x128xf32>
    %98 = arith.addf %97, %96 : vector<16x128xf32>
    %99 = arith.divf %97, %98 : vector<16x128xf32>
    %100 = vector.extract_strided_slice %93 {offsets = [0, 128], sizes = [16, 128], strides = [1, 1]} : vector<16x512xf32> to vector<16x128xf32>
    %101 = arith.negf %100 : vector<16x128xf32>
    %102 = math.exp %101 : vector<16x128xf32>
    %cst_33 = arith.constant 1.000000e+00 : f32
    %103 = vector.broadcast %cst_33 : f32 to vector<16x128xf32>
    %104 = arith.addf %103, %102 : vector<16x128xf32>
    %105 = arith.divf %103, %104 : vector<16x128xf32>
    %106 = vector.extract_strided_slice %93 {offsets = [0, 256], sizes = [16, 128], strides = [1, 1]} : vector<16x512xf32> to vector<16x128xf32>
    %107 = math.tanh %106 : vector<16x128xf32>
    %108 = vector.extract_strided_slice %93 {offsets = [0, 384], sizes = [16, 128], strides = [1, 1]} : vector<16x512xf32> to vector<16x128xf32>
    %109 = arith.negf %108 : vector<16x128xf32>
    %110 = math.exp %109 : vector<16x128xf32>
    %cst_34 = arith.constant 1.000000e+00 : f32
    %111 = vector.broadcast %cst_34 : f32 to vector<16x128xf32>
    %112 = arith.addf %111, %110 : vector<16x128xf32>
    %113 = arith.divf %111, %112 : vector<16x128xf32>
    %114 = arith.mulf %105, %78 : vector<16x128xf32>
    %115 = arith.mulf %99, %107 : vector<16x128xf32>
    %116 = arith.addf %114, %115 : vector<16x128xf32>
    %117 = math.tanh %116 : vector<16x128xf32>
    %118 = arith.mulf %113, %117 : vector<16x128xf32>
    %119 = arith.truncf %118 : vector<16x128xf32> to vector<16x128xbf16>
    %120 = arith.index_cast %c2_i32 : i32 to index
    %c0_35 = arith.constant 0 : index
    %c0_36 = arith.constant 0 : index
    %121 = vector.load %arg7[%120, %c0_35, %c0_36] : memref<8x16x128xbf16, #tpu.memory_space<vmem>>, vector<1x16x128xbf16>
    %122 = vector.shape_cast %121 : vector<1x16x128xbf16> to vector<16x128xbf16>
    %123 = vector.shape_cast %119 : vector<16x128xbf16> to vector<1x16x128xbf16>
    tpu.vector_store %arg7[%120, %c0_35, %c0_36], %123 {strides = array<i32>} : memref<8x16x128xbf16, #tpu.memory_space<vmem>>, vector<1x16x128xbf16>,
    %c3_i32 = arith.constant 3 : i32
    %124 = arith.index_cast %c3_i32 : i32 to index
    %c0_37 = arith.constant 0 : index
    %c0_38 = arith.constant 0 : index
    %125 = vector.load %arg2[%124, %c0_37, %c0_38] : memref<8x16x128xbf16, #tpu.memory_space<vmem>>, vector<1x16x128xbf16>
    %126 = vector.shape_cast %125 : vector<1x16x128xbf16> to vector<16x128xbf16>
    %cst_39 = arith.constant dense<0.000000e+00> : vector<16x512xf32>
    %127 = tpu.matmul %126, %3, %cst_39 {dimension_numbers = #tpu.dot_dimension_numbers<[1], [0], [0], [1], [0, 0, 1, 1], [], []>} : vector<16x128xbf16>, vector<128x512xbf16>, vector<16x512xf32> -> vector<16x512xf32>
    %128 = arith.truncf %118 : vector<16x128xf32> to vector<16x128xbf16>
    %cst_40 = arith.constant dense<0.000000e+00> : vector<16x512xf32>
    %129 = tpu.matmul %128, %4, %cst_40 {dimension_numbers = #tpu.dot_dimension_numbers<[1], [0], [0], [1], [0, 0, 1, 1], [], []>} : vector<16x128xbf16>, vector<128x512xbf16>, vector<16x512xf32> -> vector<16x512xf32>
    %130 = arith.addf %127, %129 : vector<16x512xf32>
    %131 = arith.addf %130, %7 : vector<16x512xf32>
    %132 = vector.extract_strided_slice %131 {offsets = [0, 0], sizes = [16, 128], strides = [1, 1]} : vector<16x512xf32> to vector<16x128xf32>
    %133 = arith.negf %132 : vector<16x128xf32>
    %134 = math.exp %133 : vector<16x128xf32>
    %cst_41 = arith.constant 1.000000e+00 : f32
    %135 = vector.broadcast %cst_41 : f32 to vector<16x128xf32>
    %136 = arith.addf %135, %134 : vector<16x128xf32>
    %137 = arith.divf %135, %136 : vector<16x128xf32>
    %138 = vector.extract_strided_slice %131 {offsets = [0, 128], sizes = [16, 128], strides = [1, 1]} : vector<16x512xf32> to vector<16x128xf32>
    %139 = arith.negf %138 : vector<16x128xf32>
    %140 = math.exp %139 : vector<16x128xf32>
    %cst_42 = arith.constant 1.000000e+00 : f32
    %141 = vector.broadcast %cst_42 : f32 to vector<16x128xf32>
    %142 = arith.addf %141, %140 : vector<16x128xf32>
    %143 = arith.divf %141, %142 : vector<16x128xf32>
    %144 = vector.extract_strided_slice %131 {offsets = [0, 256], sizes = [16, 128], strides = [1, 1]} : vector<16x512xf32> to vector<16x128xf32>
    %145 = math.tanh %144 : vector<16x128xf32>
    %146 = vector.extract_strided_slice %131 {offsets = [0, 384], sizes = [16, 128], strides = [1, 1]} : vector<16x512xf32> to vector<16x128xf32>
    %147 = arith.negf %146 : vector<16x128xf32>
    %148 = math.exp %147 : vector<16x128xf32>
    %cst_43 = arith.constant 1.000000e+00 : f32
    %149 = vector.broadcast %cst_43 : f32 to vector<16x128xf32>
    %150 = arith.addf %149, %148 : vector<16x128xf32>
    %151 = arith.divf %149, %150 : vector<16x128xf32>
    %152 = arith.mulf %143, %116 : vector<16x128xf32>
    %153 = arith.mulf %137, %145 : vector<16x128xf32>
    %154 = arith.addf %152, %153 : vector<16x128xf32>
    %155 = math.tanh %154 : vector<16x128xf32>
    %156 = arith.mulf %151, %155 : vector<16x128xf32>
    %157 = arith.truncf %156 : vector<16x128xf32> to vector<16x128xbf16>
    %158 = arith.index_cast %c3_i32 : i32 to index
    %c0_44 = arith.constant 0 : index
    %c0_45 = arith.constant 0 : index
    %159 = vector.load %arg7[%158, %c0_44, %c0_45] : memref<8x16x128xbf16, #tpu.memory_space<vmem>>, vector<1x16x128xbf16>
    %160 = vector.shape_cast %159 : vector<1x16x128xbf16> to vector<16x128xbf16>
    %161 = vector.shape_cast %157 : vector<16x128xbf16> to vector<1x16x128xbf16>
    tpu.vector_store %arg7[%158, %c0_44, %c0_45], %161 {strides = array<i32>} : memref<8x16x128xbf16, #tpu.memory_space<vmem>>, vector<1x16x128xbf16>,
    %c4_i32 = arith.constant 4 : i32
    %162 = arith.index_cast %c4_i32 : i32 to index
    %c0_46 = arith.constant 0 : index
    %c0_47 = arith.constant 0 : index
    %163 = vector.load %arg2[%162, %c0_46, %c0_47] : memref<8x16x128xbf16, #tpu.memory_space<vmem>>, vector<1x16x128xbf16>
    %164 = vector.shape_cast %163 : vector<1x16x128xbf16> to vector<16x128xbf16>
    %cst_48 = arith.constant dense<0.000000e+00> : vector<16x512xf32>
    %165 = tpu.matmul %164, %3, %cst_48 {dimension_numbers = #tpu.dot_dimension_numbers<[1], [0], [0], [1], [0, 0, 1, 1], [], []>} : vector<16x128xbf16>, vector<128x512xbf16>, vector<16x512xf32> -> vector<16x512xf32>
    %166 = arith.truncf %156 : vector<16x128xf32> to vector<16x128xbf16>
    %cst_49 = arith.constant dense<0.000000e+00> : vector<16x512xf32>
    %167 = tpu.matmul %166, %4, %cst_49 {dimension_numbers = #tpu.dot_dimension_numbers<[1], [0], [0], [1], [0, 0, 1, 1], [], []>} : vector<16x128xbf16>, vector<128x512xbf16>, vector<16x512xf32> -> vector<16x512xf32>
    %168 = arith.addf %165, %167 : vector<16x512xf32>
    %169 = arith.addf %168, %7 : vector<16x512xf32>
    %170 = vector.extract_strided_slice %169 {offsets = [0, 0], sizes = [16, 128], strides = [1, 1]} : vector<16x512xf32> to vector<16x128xf32>
    %171 = arith.negf %170 : vector<16x128xf32>
    %172 = math.exp %171 : vector<16x128xf32>
    %cst_50 = arith.constant 1.000000e+00 : f32
    %173 = vector.broadcast %cst_50 : f32 to vector<16x128xf32>
    %174 = arith.addf %173, %172 : vector<16x128xf32>
    %175 = arith.divf %173, %174 : vector<16x128xf32>
    %176 = vector.extract_strided_slice %169 {offsets = [0, 128], sizes = [16, 128], strides = [1, 1]} : vector<16x512xf32> to vector<16x128xf32>
    %177 = arith.negf %176 : vector<16x128xf32>
    %178 = math.exp %177 : vector<16x128xf32>
    %cst_51 = arith.constant 1.000000e+00 : f32
    %179 = vector.broadcast %cst_51 : f32 to vector<16x128xf32>
    %180 = arith.addf %179, %178 : vector<16x128xf32>
    %181 = arith.divf %179, %180 : vector<16x128xf32>
    %182 = vector.extract_strided_slice %169 {offsets = [0, 256], sizes = [16, 128], strides = [1, 1]} : vector<16x512xf32> to vector<16x128xf32>
    %183 = math.tanh %182 : vector<16x128xf32>
    %184 = vector.extract_strided_slice %169 {offsets = [0, 384], sizes = [16, 128], strides = [1, 1]} : vector<16x512xf32> to vector<16x128xf32>
    %185 = arith.negf %184 : vector<16x128xf32>
    %186 = math.exp %185 : vector<16x128xf32>
    %cst_52 = arith.constant 1.000000e+00 : f32
    %187 = vector.broadcast %cst_52 : f32 to vector<16x128xf32>
    %188 = arith.addf %187, %186 : vector<16x128xf32>
    %189 = arith.divf %187, %188 : vector<16x128xf32>
    %190 = arith.mulf %181, %154 : vector<16x128xf32>
    %191 = arith.mulf %175, %183 : vector<16x128xf32>
    %192 = arith.addf %190, %191 : vector<16x128xf32>
    %193 = math.tanh %192 : vector<16x128xf32>
    %194 = arith.mulf %189, %193 : vector<16x128xf32>
    %195 = arith.truncf %194 : vector<16x128xf32> to vector<16x128xbf16>
    %196 = arith.index_cast %c4_i32 : i32 to index
    %c0_53 = arith.constant 0 : index
    %c0_54 = arith.constant 0 : index
    %197 = vector.load %arg7[%196, %c0_53, %c0_54] : memref<8x16x128xbf16, #tpu.memory_space<vmem>>, vector<1x16x128xbf16>
    %198 = vector.shape_cast %197 : vector<1x16x128xbf16> to vector<16x128xbf16>
    %199 = vector.shape_cast %195 : vector<16x128xbf16> to vector<1x16x128xbf16>
    tpu.vector_store %arg7[%196, %c0_53, %c0_54], %199 {strides = array<i32>} : memref<8x16x128xbf16, #tpu.memory_space<vmem>>, vector<1x16x128xbf16>,
    %c5_i32 = arith.constant 5 : i32
    %200 = arith.index_cast %c5_i32 : i32 to index
    %c0_55 = arith.constant 0 : index
    %c0_56 = arith.constant 0 : index
    %201 = vector.load %arg2[%200, %c0_55, %c0_56] : memref<8x16x128xbf16, #tpu.memory_space<vmem>>, vector<1x16x128xbf16>
    %202 = vector.shape_cast %201 : vector<1x16x128xbf16> to vector<16x128xbf16>
    %cst_57 = arith.constant dense<0.000000e+00> : vector<16x512xf32>
    %203 = tpu.matmul %202, %3, %cst_57 {dimension_numbers = #tpu.dot_dimension_numbers<[1], [0], [0], [1], [0, 0, 1, 1], [], []>} : vector<16x128xbf16>, vector<128x512xbf16>, vector<16x512xf32> -> vector<16x512xf32>
    %204 = arith.truncf %194 : vector<16x128xf32> to vector<16x128xbf16>
    %cst_58 = arith.constant dense<0.000000e+00> : vector<16x512xf32>
    %205 = tpu.matmul %204, %4, %cst_58 {dimension_numbers = #tpu.dot_dimension_numbers<[1], [0], [0], [1], [0, 0, 1, 1], [], []>} : vector<16x128xbf16>, vector<128x512xbf16>, vector<16x512xf32> -> vector<16x512xf32>
    %206 = arith.addf %203, %205 : vector<16x512xf32>
    %207 = arith.addf %206, %7 : vector<16x512xf32>
    %208 = vector.extract_strided_slice %207 {offsets = [0, 0], sizes = [16, 128], strides = [1, 1]} : vector<16x512xf32> to vector<16x128xf32>
    %209 = arith.negf %208 : vector<16x128xf32>
    %210 = math.exp %209 : vector<16x128xf32>
    %cst_59 = arith.constant 1.000000e+00 : f32
    %211 = vector.broadcast %cst_59 : f32 to vector<16x128xf32>
    %212 = arith.addf %211, %210 : vector<16x128xf32>
    %213 = arith.divf %211, %212 : vector<16x128xf32>
    %214 = vector.extract_strided_slice %207 {offsets = [0, 128], sizes = [16, 128], strides = [1, 1]} : vector<16x512xf32> to vector<16x128xf32>
    %215 = arith.negf %214 : vector<16x128xf32>
    %216 = math.exp %215 : vector<16x128xf32>
    %cst_60 = arith.constant 1.000000e+00 : f32
    %217 = vector.broadcast %cst_60 : f32 to vector<16x128xf32>
    %218 = arith.addf %217, %216 : vector<16x128xf32>
    %219 = arith.divf %217, %218 : vector<16x128xf32>
    %220 = vector.extract_strided_slice %207 {offsets = [0, 256], sizes = [16, 128], strides = [1, 1]} : vector<16x512xf32> to vector<16x128xf32>
    %221 = math.tanh %220 : vector<16x128xf32>
    %222 = vector.extract_strided_slice %207 {offsets = [0, 384], sizes = [16, 128], strides = [1, 1]} : vector<16x512xf32> to vector<16x128xf32>
    %223 = arith.negf %222 : vector<16x128xf32>
    %224 = math.exp %223 : vector<16x128xf32>
    %cst_61 = arith.constant 1.000000e+00 : f32
    %225 = vector.broadcast %cst_61 : f32 to vector<16x128xf32>
    %226 = arith.addf %225, %224 : vector<16x128xf32>
    %227 = arith.divf %225, %226 : vector<16x128xf32>
    %228 = arith.mulf %219, %192 : vector<16x128xf32>
    %229 = arith.mulf %213, %221 : vector<16x128xf32>
    %230 = arith.addf %228, %229 : vector<16x128xf32>
    %231 = math.tanh %230 : vector<16x128xf32>
    %232 = arith.mulf %227, %231 : vector<16x128xf32>
    %233 = arith.truncf %232 : vector<16x128xf32> to vector<16x128xbf16>
    %234 = arith.index_cast %c5_i32 : i32 to index
    %c0_62 = arith.constant 0 : index
    %c0_63 = arith.constant 0 : index
    %235 = vector.load %arg7[%234, %c0_62, %c0_63] : memref<8x16x128xbf16, #tpu.memory_space<vmem>>, vector<1x16x128xbf16>
    %236 = vector.shape_cast %235 : vector<1x16x128xbf16> to vector<16x128xbf16>
    %237 = vector.shape_cast %233 : vector<16x128xbf16> to vector<1x16x128xbf16>
    tpu.vector_store %arg7[%234, %c0_62, %c0_63], %237 {strides = array<i32>} : memref<8x16x128xbf16, #tpu.memory_space<vmem>>, vector<1x16x128xbf16>,
    %c6_i32 = arith.constant 6 : i32
    %238 = arith.index_cast %c6_i32 : i32 to index
    %c0_64 = arith.constant 0 : index
    %c0_65 = arith.constant 0 : index
    %239 = vector.load %arg2[%238, %c0_64, %c0_65] : memref<8x16x128xbf16, #tpu.memory_space<vmem>>, vector<1x16x128xbf16>
    %240 = vector.shape_cast %239 : vector<1x16x128xbf16> to vector<16x128xbf16>
    %cst_66 = arith.constant dense<0.000000e+00> : vector<16x512xf32>
    %241 = tpu.matmul %240, %3, %cst_66 {dimension_numbers = #tpu.dot_dimension_numbers<[1], [0], [0], [1], [0, 0, 1, 1], [], []>} : vector<16x128xbf16>, vector<128x512xbf16>, vector<16x512xf32> -> vector<16x512xf32>
    %242 = arith.truncf %232 : vector<16x128xf32> to vector<16x128xbf16>
    %cst_67 = arith.constant dense<0.000000e+00> : vector<16x512xf32>
    %243 = tpu.matmul %242, %4, %cst_67 {dimension_numbers = #tpu.dot_dimension_numbers<[1], [0], [0], [1], [0, 0, 1, 1], [], []>} : vector<16x128xbf16>, vector<128x512xbf16>, vector<16x512xf32> -> vector<16x512xf32>
    %244 = arith.addf %241, %243 : vector<16x512xf32>
    %245 = arith.addf %244, %7 : vector<16x512xf32>
    %246 = vector.extract_strided_slice %245 {offsets = [0, 0], sizes = [16, 128], strides = [1, 1]} : vector<16x512xf32> to vector<16x128xf32>
    %247 = arith.negf %246 : vector<16x128xf32>
    %248 = math.exp %247 : vector<16x128xf32>
    %cst_68 = arith.constant 1.000000e+00 : f32
    %249 = vector.broadcast %cst_68 : f32 to vector<16x128xf32>
    %250 = arith.addf %249, %248 : vector<16x128xf32>
    %251 = arith.divf %249, %250 : vector<16x128xf32>
    %252 = vector.extract_strided_slice %245 {offsets = [0, 128], sizes = [16, 128], strides = [1, 1]} : vector<16x512xf32> to vector<16x128xf32>
    %253 = arith.negf %252 : vector<16x128xf32>
    %254 = math.exp %253 : vector<16x128xf32>
    %cst_69 = arith.constant 1.000000e+00 : f32
    %255 = vector.broadcast %cst_69 : f32 to vector<16x128xf32>
    %256 = arith.addf %255, %254 : vector<16x128xf32>
    %257 = arith.divf %255, %256 : vector<16x128xf32>
    %258 = vector.extract_strided_slice %245 {offsets = [0, 256], sizes = [16, 128], strides = [1, 1]} : vector<16x512xf32> to vector<16x128xf32>
    %259 = math.tanh %258 : vector<16x128xf32>
    %260 = vector.extract_strided_slice %245 {offsets = [0, 384], sizes = [16, 128], strides = [1, 1]} : vector<16x512xf32> to vector<16x128xf32>
    %261 = arith.negf %260 : vector<16x128xf32>
    %262 = math.exp %261 : vector<16x128xf32>
    %cst_70 = arith.constant 1.000000e+00 : f32
    %263 = vector.broadcast %cst_70 : f32 to vector<16x128xf32>
    %264 = arith.addf %263, %262 : vector<16x128xf32>
    %265 = arith.divf %263, %264 : vector<16x128xf32>
    %266 = arith.mulf %257, %230 : vector<16x128xf32>
    %267 = arith.mulf %251, %259 : vector<16x128xf32>
    %268 = arith.addf %266, %267 : vector<16x128xf32>
    %269 = math.tanh %268 : vector<16x128xf32>
    %270 = arith.mulf %265, %269 : vector<16x128xf32>
    %271 = arith.truncf %270 : vector<16x128xf32> to vector<16x128xbf16>
    %272 = arith.index_cast %c6_i32 : i32 to index
    %c0_71 = arith.constant 0 : index
    %c0_72 = arith.constant 0 : index
    %273 = vector.load %arg7[%272, %c0_71, %c0_72] : memref<8x16x128xbf16, #tpu.memory_space<vmem>>, vector<1x16x128xbf16>
    %274 = vector.shape_cast %273 : vector<1x16x128xbf16> to vector<16x128xbf16>
    %275 = vector.shape_cast %271 : vector<16x128xbf16> to vector<1x16x128xbf16>
    tpu.vector_store %arg7[%272, %c0_71, %c0_72], %275 {strides = array<i32>} : memref<8x16x128xbf16, #tpu.memory_space<vmem>>, vector<1x16x128xbf16>,
    %c7_i32 = arith.constant 7 : i32
    %276 = arith.index_cast %c7_i32 : i32 to index
    %c0_73 = arith.constant 0 : index
    %c0_74 = arith.constant 0 : index
    %277 = vector.load %arg2[%276, %c0_73, %c0_74] : memref<8x16x128xbf16, #tpu.memory_space<vmem>>, vector<1x16x128xbf16>
    %278 = vector.shape_cast %277 : vector<1x16x128xbf16> to vector<16x128xbf16>
    %cst_75 = arith.constant dense<0.000000e+00> : vector<16x512xf32>
    %279 = tpu.matmul %278, %3, %cst_75 {dimension_numbers = #tpu.dot_dimension_numbers<[1], [0], [0], [1], [0, 0, 1, 1], [], []>} : vector<16x128xbf16>, vector<128x512xbf16>, vector<16x512xf32> -> vector<16x512xf32>
    %280 = arith.truncf %270 : vector<16x128xf32> to vector<16x128xbf16>
    %cst_76 = arith.constant dense<0.000000e+00> : vector<16x512xf32>
    %281 = tpu.matmul %280, %4, %cst_76 {dimension_numbers = #tpu.dot_dimension_numbers<[1], [0], [0], [1], [0, 0, 1, 1], [], []>} : vector<16x128xbf16>, vector<128x512xbf16>, vector<16x512xf32> -> vector<16x512xf32>
    %282 = arith.addf %279, %281 : vector<16x512xf32>
    %283 = arith.addf %282, %7 : vector<16x512xf32>
    %284 = vector.extract_strided_slice %283 {offsets = [0, 0], sizes = [16, 128], strides = [1, 1]} : vector<16x512xf32> to vector<16x128xf32>
    %285 = arith.negf %284 : vector<16x128xf32>
    %286 = math.exp %285 : vector<16x128xf32>
    %cst_77 = arith.constant 1.000000e+00 : f32
    %287 = vector.broadcast %cst_77 : f32 to vector<16x128xf32>
    %288 = arith.addf %287, %286 : vector<16x128xf32>
    %289 = arith.divf %287, %288 : vector<16x128xf32>
    %290 = vector.extract_strided_slice %283 {offsets = [0, 128], sizes = [16, 128], strides = [1, 1]} : vector<16x512xf32> to vector<16x128xf32>
    %291 = arith.negf %290 : vector<16x128xf32>
    %292 = math.exp %291 : vector<16x128xf32>
    %cst_78 = arith.constant 1.000000e+00 : f32
    %293 = vector.broadcast %cst_78 : f32 to vector<16x128xf32>
    %294 = arith.addf %293, %292 : vector<16x128xf32>
    %295 = arith.divf %293, %294 : vector<16x128xf32>
    %296 = vector.extract_strided_slice %283 {offsets = [0, 256], sizes = [16, 128], strides = [1, 1]} : vector<16x512xf32> to vector<16x128xf32>
    %297 = math.tanh %296 : vector<16x128xf32>
    %298 = vector.extract_strided_slice %283 {offsets = [0, 384], sizes = [16, 128], strides = [1, 1]} : vector<16x512xf32> to vector<16x128xf32>
    %299 = arith.negf %298 : vector<16x128xf32>
    %300 = math.exp %299 : vector<16x128xf32>
    %cst_79 = arith.constant 1.000000e+00 : f32
    %301 = vector.broadcast %cst_79 : f32 to vector<16x128xf32>
    %302 = arith.addf %301, %300 : vector<16x128xf32>
    %303 = arith.divf %301, %302 : vector<16x128xf32>
    %304 = arith.mulf %295, %268 : vector<16x128xf32>
    %305 = arith.mulf %289, %297 : vector<16x128xf32>
    %306 = arith.addf %304, %305 : vector<16x128xf32>
    %307 = math.tanh %306 : vector<16x128xf32>
    %308 = arith.mulf %303, %307 : vector<16x128xf32>
    %309 = arith.truncf %308 : vector<16x128xf32> to vector<16x128xbf16>
    %310 = arith.index_cast %c7_i32 : i32 to index
    %c0_80 = arith.constant 0 : index
    %c0_81 = arith.constant 0 : index
    %311 = vector.load %arg7[%310, %c0_80, %c0_81] : memref<8x16x128xbf16, #tpu.memory_space<vmem>>, vector<1x16x128xbf16>
    %312 = vector.shape_cast %311 : vector<1x16x128xbf16> to vector<16x128xbf16>
    %313 = vector.shape_cast %309 : vector<16x128xbf16> to vector<1x16x128xbf16>
    tpu.vector_store %arg7[%310, %c0_80, %c0_81], %313 {strides = array<i32>} : memref<8x16x128xbf16, #tpu.memory_space<vmem>>, vector<1x16x128xbf16>,
    %c8_i32 = arith.constant 8 : i32
    %c0_82 = arith.constant 0 : index
    %c0_83 = arith.constant 0 : index
    %314 = vector.load %arg8[%c0_82, %c0_83] : memref<16x128xf32, #tpu.memory_space<vmem>>, vector<16x128xf32>
    tpu.vector_store %arg8[%c0_82, %c0_83], %308 {strides = array<i32>} : memref<16x128xf32, #tpu.memory_space<vmem>>, vector<16x128xf32>,
    %c0_84 = arith.constant 0 : index
    %c0_85 = arith.constant 0 : index
    %315 = vector.load %arg9[%c0_84, %c0_85] : memref<16x128xf32, #tpu.memory_space<vmem>>, vector<16x128xf32>
    tpu.vector_store %arg9[%c0_84, %c0_85], %306 {strides = array<i32>} : memref<16x128xf32, #tpu.memory_space<vmem>>, vector<16x128xf32>,
    return
  }
  func.func @transform_0(%arg0: i32, %arg1: i32) -> (i32, i32, i32) {
    %c0_i32 = arith.constant 0 : i32
    %c0_i32_0 = arith.constant 0 : i32
    return %arg1, %arg0, %c0_i32 : i32, i32, i32
  }
  func.func @transform_1(%arg0: i32, %arg1: i32) -> (i32, i32) {
    %c0_i32 = arith.constant 0 : i32
    %c0_i32_0 = arith.constant 0 : i32
    %c0_i32_1 = arith.constant 0 : i32
    return %c0_i32, %c0_i32_0 : i32, i32
  }
  func.func @transform_2(%arg0: i32, %arg1: i32) -> (i32, i32) {
    %c0_i32 = arith.constant 0 : i32
    %c0_i32_0 = arith.constant 0 : i32
    %c0_i32_1 = arith.constant 0 : i32
    return %c0_i32, %c0_i32_0 : i32, i32
  }
  func.func @transform_3(%arg0: i32, %arg1: i32) -> (i32, i32) {
    %c0_i32 = arith.constant 0 : i32
    %c0_i32_0 = arith.constant 0 : i32
    %c0_i32_1 = arith.constant 0 : i32
    return %c0_i32, %c0_i32_0 : i32, i32
  }
  func.func @transform_4(%arg0: i32, %arg1: i32) -> (i32, i32) {
    %c0_i32 = arith.constant 0 : i32
    %c0_i32_0 = arith.constant 0 : i32
    return %arg0, %c0_i32 : i32, i32
  }
  func.func @transform_5(%arg0: i32, %arg1: i32) -> (i32, i32, i32) {
    %c0_i32 = arith.constant 0 : i32
    %c0_i32_0 = arith.constant 0 : i32
    return %arg1, %arg0, %c0_i32 : i32, i32, i32
  }
}

module attributes {stable_mosaic.version = 11 : i64} {
  func.func @lstm_recurrence_kernel(%arg0: i32, %arg1: i32, %arg2: memref<8x16x128xbf16, #tpu.memory_space<vmem>>, %arg3: memref<128x512xbf16, #tpu.memory_space<vmem>>, %arg4: memref<128x512xbf16, #tpu.memory_space<vmem>>, %arg5: memref<1x512xf32, #tpu.memory_space<vmem>>, %arg6: memref<16x128xf32, #tpu.memory_space<vmem>>, %arg7: memref<8x16x128xbf16, #tpu.memory_space<vmem>>, %arg8: memref<16x128xf32, #tpu.memory_space<vmem>>, %arg9: memref<16x128xf32, #tpu.memory_space<vmem>>) attributes {dimension_semantics = [#tpu.dimension_semantics<arbitrary>, #tpu.dimension_semantics<arbitrary>], iteration_bounds = array<i64: 1, 1>, scalar_prefetch = 0 : i64, scratch_operands = 2 : i64, tpu.core_type = #tpu.core_type<tc>, window_params = [{transform_indices = @transform_0, window_bounds = array<i64: 8, 16, 128>}, {pipeline_mode = #tpu.pipeline_mode<synchronous>, transform_indices = @transform_1, window_bounds = array<i64: 128, 512>}, {pipeline_mode = #tpu.pipeline_mode<synchronous>, transform_indices = @transform_2, window_bounds = array<i64: 128, 512>}, {pipeline_mode = #tpu.pipeline_mode<synchronous>, transform_indices = @transform_3, window_bounds = array<i64: 1, 512>}, {transform_indices = @transform_4, window_bounds = array<i64: 16, 128>}, {transform_indices = @transform_5, window_bounds = array<i64: 8, 16, 128>}]} {
    %c0_i32 = arith.constant 0 : i32
    %0 = arith.cmpi eq, %arg1, %c0_i32 : i32
    %1 = arith.extui %0 : i1 to i32
    %c0_i32_0 = arith.constant 0 : i32
    %2 = arith.cmpi ne, %1, %c0_i32_0 : i32
    scf.if %2 {
      %c0_86 = arith.constant 0 : index
      %c0_87 = arith.constant 0 : index
      %316 = vector.load %arg6[%c0_86, %c0_87] : memref<16x128xf32, #tpu.memory_space<vmem>>, vector<16x128xf32>
      %c0_88 = arith.constant 0 : index
      %c0_89 = arith.constant 0 : index
      %317 = vector.load %arg8[%c0_88, %c0_89] : memref<16x128xf32, #tpu.memory_space<vmem>>, vector<16x128xf32>
      tpu.vector_store %arg8[%c0_88, %c0_89], %316 {strides = array<i32>} : memref<16x128xf32, #tpu.memory_space<vmem>>, vector<16x128xf32>,
      %c0_90 = arith.constant 0 : index
      %c0_91 = arith.constant 0 : index
      %318 = vector.load %arg9[%c0_90, %c0_91] : memref<16x128xf32, #tpu.memory_space<vmem>>, vector<16x128xf32>
      tpu.vector_store %arg9[%c0_90, %c0_91], %316 {strides = array<i32>} : memref<16x128xf32, #tpu.memory_space<vmem>>, vector<16x128xf32>,
    } else {
    }
    %c0 = arith.constant 0 : index
    %c0_1 = arith.constant 0 : index
    %3 = vector.load %arg3[%c0, %c0_1] : memref<128x512xbf16, #tpu.memory_space<vmem>>, vector<128x512xbf16>
    %c0_2 = arith.constant 0 : index
    %c0_3 = arith.constant 0 : index
    %4 = vector.load %arg4[%c0_2, %c0_3] : memref<128x512xbf16, #tpu.memory_space<vmem>>, vector<128x512xbf16>
    %c0_4 = arith.constant 0 : index
    %c0_5 = arith.constant 0 : index
    %5 = vector.load %arg5[%c0_4, %c0_5] : memref<1x512xf32, #tpu.memory_space<vmem>>, vector<1x512xf32>
    %6 = vector.shape_cast %5 : vector<1x512xf32> to vector<1x512xf32>
    %7 = vector.broadcast %6 : vector<1x512xf32> to vector<16x512xf32>
    %c0_6 = arith.constant 0 : index
    %c0_7 = arith.constant 0 : index
    %8 = vector.load %arg8[%c0_6, %c0_7] : memref<16x128xf32, #tpu.memory_space<vmem>>, vector<16x128xf32>
    %c0_8 = arith.constant 0 : index
    %c0_9 = arith.constant 0 : index
    %9 = vector.load %arg9[%c0_8, %c0_9] : memref<16x128xf32, #tpu.memory_space<vmem>>, vector<16x128xf32>
    %c0_i32_10 = arith.constant 0 : i32
    %10 = arith.index_cast %c0_i32_10 : i32 to index
    %c0_11 = arith.constant 0 : index
    %c0_12 = arith.constant 0 : index
    %11 = vector.load %arg2[%10, %c0_11, %c0_12] : memref<8x16x128xbf16, #tpu.memory_space<vmem>>, vector<1x16x128xbf16>
    %12 = vector.shape_cast %11 : vector<1x16x128xbf16> to vector<16x128xbf16>
    %cst = arith.constant dense<0.000000e+00> : vector<16x512xf32>
    %13 = tpu.matmul %12, %3, %cst {dimension_numbers = #tpu.dot_dimension_numbers<[1], [0], [0], [1], [0, 0, 1, 1], [], []>} : vector<16x128xbf16>, vector<128x512xbf16>, vector<16x512xf32> -> vector<16x512xf32>
    %14 = arith.truncf %8 : vector<16x128xf32> to vector<16x128xbf16>
    %cst_13 = arith.constant dense<0.000000e+00> : vector<16x512xf32>
    %15 = tpu.matmul %14, %4, %cst_13 {dimension_numbers = #tpu.dot_dimension_numbers<[1], [0], [0], [1], [0, 0, 1, 1], [], []>} : vector<16x128xbf16>, vector<128x512xbf16>, vector<16x512xf32> -> vector<16x512xf32>
    %16 = arith.addf %13, %15 : vector<16x512xf32>
    %17 = arith.addf %16, %7 : vector<16x512xf32>
    %18 = vector.extract_strided_slice %17 {offsets = [0, 0], sizes = [16, 128], strides = [1, 1]} : vector<16x512xf32> to vector<16x128xf32>
    %19 = arith.negf %18 : vector<16x128xf32>
    %20 = math.exp %19 : vector<16x128xf32>
    %cst_14 = arith.constant 1.000000e+00 : f32
    %21 = vector.broadcast %cst_14 : f32 to vector<16x128xf32>
    %22 = arith.addf %21, %20 : vector<16x128xf32>
    %23 = arith.divf %21, %22 : vector<16x128xf32>
    %24 = vector.extract_strided_slice %17 {offsets = [0, 128], sizes = [16, 128], strides = [1, 1]} : vector<16x512xf32> to vector<16x128xf32>
    %25 = arith.negf %24 : vector<16x128xf32>
    %26 = math.exp %25 : vector<16x128xf32>
    %cst_15 = arith.constant 1.000000e+00 : f32
    %27 = vector.broadcast %cst_15 : f32 to vector<16x128xf32>
    %28 = arith.addf %27, %26 : vector<16x128xf32>
    %29 = arith.divf %27, %28 : vector<16x128xf32>
    %30 = vector.extract_strided_slice %17 {offsets = [0, 256], sizes = [16, 128], strides = [1, 1]} : vector<16x512xf32> to vector<16x128xf32>
    %31 = math.tanh %30 : vector<16x128xf32>
    %32 = vector.extract_strided_slice %17 {offsets = [0, 384], sizes = [16, 128], strides = [1, 1]} : vector<16x512xf32> to vector<16x128xf32>
    %33 = arith.negf %32 : vector<16x128xf32>
    %34 = math.exp %33 : vector<16x128xf32>
    %cst_16 = arith.constant 1.000000e+00 : f32
    %35 = vector.broadcast %cst_16 : f32 to vector<16x128xf32>
    %36 = arith.addf %35, %34 : vector<16x128xf32>
    %37 = arith.divf %35, %36 : vector<16x128xf32>
    %38 = arith.mulf %29, %9 : vector<16x128xf32>
    %39 = arith.mulf %23, %31 : vector<16x128xf32>
    %40 = arith.addf %38, %39 : vector<16x128xf32>
    %41 = math.tanh %40 : vector<16x128xf32>
    %42 = arith.mulf %37, %41 : vector<16x128xf32>
    %43 = arith.truncf %42 : vector<16x128xf32> to vector<16x128xbf16>
    %44 = arith.index_cast %c0_i32_10 : i32 to index
    %c0_17 = arith.constant 0 : index
    %c0_18 = arith.constant 0 : index
    %45 = vector.load %arg7[%44, %c0_17, %c0_18] : memref<8x16x128xbf16, #tpu.memory_space<vmem>>, vector<1x16x128xbf16>
    %46 = vector.shape_cast %45 : vector<1x16x128xbf16> to vector<16x128xbf16>
    %47 = vector.shape_cast %43 : vector<16x128xbf16> to vector<1x16x128xbf16>
    tpu.vector_store %arg7[%44, %c0_17, %c0_18], %47 {strides = array<i32>} : memref<8x16x128xbf16, #tpu.memory_space<vmem>>, vector<1x16x128xbf16>,
    %c1_i32 = arith.constant 1 : i32
    %48 = arith.index_cast %c1_i32 : i32 to index
    %c0_19 = arith.constant 0 : index
    %c0_20 = arith.constant 0 : index
    %49 = vector.load %arg2[%48, %c0_19, %c0_20] : memref<8x16x128xbf16, #tpu.memory_space<vmem>>, vector<1x16x128xbf16>
    %50 = vector.shape_cast %49 : vector<1x16x128xbf16> to vector<16x128xbf16>
    %cst_21 = arith.constant dense<0.000000e+00> : vector<16x512xf32>
    %51 = tpu.matmul %50, %3, %cst_21 {dimension_numbers = #tpu.dot_dimension_numbers<[1], [0], [0], [1], [0, 0, 1, 1], [], []>} : vector<16x128xbf16>, vector<128x512xbf16>, vector<16x512xf32> -> vector<16x512xf32>
    %52 = arith.truncf %42 : vector<16x128xf32> to vector<16x128xbf16>
    %cst_22 = arith.constant dense<0.000000e+00> : vector<16x512xf32>
    %53 = tpu.matmul %52, %4, %cst_22 {dimension_numbers = #tpu.dot_dimension_numbers<[1], [0], [0], [1], [0, 0, 1, 1], [], []>} : vector<16x128xbf16>, vector<128x512xbf16>, vector<16x512xf32> -> vector<16x512xf32>
    %54 = arith.addf %51, %53 : vector<16x512xf32>
    %55 = arith.addf %54, %7 : vector<16x512xf32>
    %56 = vector.extract_strided_slice %55 {offsets = [0, 0], sizes = [16, 128], strides = [1, 1]} : vector<16x512xf32> to vector<16x128xf32>
    %57 = arith.negf %56 : vector<16x128xf32>
    %58 = math.exp %57 : vector<16x128xf32>
    %cst_23 = arith.constant 1.000000e+00 : f32
    %59 = vector.broadcast %cst_23 : f32 to vector<16x128xf32>
    %60 = arith.addf %59, %58 : vector<16x128xf32>
    %61 = arith.divf %59, %60 : vector<16x128xf32>
    %62 = vector.extract_strided_slice %55 {offsets = [0, 128], sizes = [16, 128], strides = [1, 1]} : vector<16x512xf32> to vector<16x128xf32>
    %63 = arith.negf %62 : vector<16x128xf32>
    %64 = math.exp %63 : vector<16x128xf32>
    %cst_24 = arith.constant 1.000000e+00 : f32
    %65 = vector.broadcast %cst_24 : f32 to vector<16x128xf32>
    %66 = arith.addf %65, %64 : vector<16x128xf32>
    %67 = arith.divf %65, %66 : vector<16x128xf32>
    %68 = vector.extract_strided_slice %55 {offsets = [0, 256], sizes = [16, 128], strides = [1, 1]} : vector<16x512xf32> to vector<16x128xf32>
    %69 = math.tanh %68 : vector<16x128xf32>
    %70 = vector.extract_strided_slice %55 {offsets = [0, 384], sizes = [16, 128], strides = [1, 1]} : vector<16x512xf32> to vector<16x128xf32>
    %71 = arith.negf %70 : vector<16x128xf32>
    %72 = math.exp %71 : vector<16x128xf32>
    %cst_25 = arith.constant 1.000000e+00 : f32
    %73 = vector.broadcast %cst_25 : f32 to vector<16x128xf32>
    %74 = arith.addf %73, %72 : vector<16x128xf32>
    %75 = arith.divf %73, %74 : vector<16x128xf32>
    %76 = arith.mulf %67, %40 : vector<16x128xf32>
    %77 = arith.mulf %61, %69 : vector<16x128xf32>
    %78 = arith.addf %76, %77 : vector<16x128xf32>
    %79 = math.tanh %78 : vector<16x128xf32>
    %80 = arith.mulf %75, %79 : vector<16x128xf32>
    %81 = arith.truncf %80 : vector<16x128xf32> to vector<16x128xbf16>
    %82 = arith.index_cast %c1_i32 : i32 to index
    %c0_26 = arith.constant 0 : index
    %c0_27 = arith.constant 0 : index
    %83 = vector.load %arg7[%82, %c0_26, %c0_27] : memref<8x16x128xbf16, #tpu.memory_space<vmem>>, vector<1x16x128xbf16>
    %84 = vector.shape_cast %83 : vector<1x16x128xbf16> to vector<16x128xbf16>
    %85 = vector.shape_cast %81 : vector<16x128xbf16> to vector<1x16x128xbf16>
    tpu.vector_store %arg7[%82, %c0_26, %c0_27], %85 {strides = array<i32>} : memref<8x16x128xbf16, #tpu.memory_space<vmem>>, vector<1x16x128xbf16>,
    %c2_i32 = arith.constant 2 : i32
    %86 = arith.index_cast %c2_i32 : i32 to index
    %c0_28 = arith.constant 0 : index
    %c0_29 = arith.constant 0 : index
    %87 = vector.load %arg2[%86, %c0_28, %c0_29] : memref<8x16x128xbf16, #tpu.memory_space<vmem>>, vector<1x16x128xbf16>
    %88 = vector.shape_cast %87 : vector<1x16x128xbf16> to vector<16x128xbf16>
    %cst_30 = arith.constant dense<0.000000e+00> : vector<16x512xf32>
    %89 = tpu.matmul %88, %3, %cst_30 {dimension_numbers = #tpu.dot_dimension_numbers<[1], [0], [0], [1], [0, 0, 1, 1], [], []>} : vector<16x128xbf16>, vector<128x512xbf16>, vector<16x512xf32> -> vector<16x512xf32>
    %90 = arith.truncf %80 : vector<16x128xf32> to vector<16x128xbf16>
    %cst_31 = arith.constant dense<0.000000e+00> : vector<16x512xf32>
    %91 = tpu.matmul %90, %4, %cst_31 {dimension_numbers = #tpu.dot_dimension_numbers<[1], [0], [0], [1], [0, 0, 1, 1], [], []>} : vector<16x128xbf16>, vector<128x512xbf16>, vector<16x512xf32> -> vector<16x512xf32>
    %92 = arith.addf %89, %91 : vector<16x512xf32>
    %93 = arith.addf %92, %7 : vector<16x512xf32>
    %94 = vector.extract_strided_slice %93 {offsets = [0, 0], sizes = [16, 128], strides = [1, 1]} : vector<16x512xf32> to vector<16x128xf32>
    %95 = arith.negf %94 : vector<16x128xf32>
    %96 = math.exp %95 : vector<16x128xf32>
    %cst_32 = arith.constant 1.000000e+00 : f32
    %97 = vector.broadcast %cst_32 : f32 to vector<16x128xf32>
    %98 = arith.addf %97, %96 : vector<16x128xf32>
    %99 = arith.divf %97, %98 : vector<16x128xf32>
    %100 = vector.extract_strided_slice %93 {offsets = [0, 128], sizes = [16, 128], strides = [1, 1]} : vector<16x512xf32> to vector<16x128xf32>
    %101 = arith.negf %100 : vector<16x128xf32>
    %102 = math.exp %101 : vector<16x128xf32>
    %cst_33 = arith.constant 1.000000e+00 : f32
    %103 = vector.broadcast %cst_33 : f32 to vector<16x128xf32>
    %104 = arith.addf %103, %102 : vector<16x128xf32>
    %105 = arith.divf %103, %104 : vector<16x128xf32>
    %106 = vector.extract_strided_slice %93 {offsets = [0, 256], sizes = [16, 128], strides = [1, 1]} : vector<16x512xf32> to vector<16x128xf32>
    %107 = math.tanh %106 : vector<16x128xf32>
    %108 = vector.extract_strided_slice %93 {offsets = [0, 384], sizes = [16, 128], strides = [1, 1]} : vector<16x512xf32> to vector<16x128xf32>
    %109 = arith.negf %108 : vector<16x128xf32>
    %110 = math.exp %109 : vector<16x128xf32>
    %cst_34 = arith.constant 1.000000e+00 : f32
    %111 = vector.broadcast %cst_34 : f32 to vector<16x128xf32>
    %112 = arith.addf %111, %110 : vector<16x128xf32>
    %113 = arith.divf %111, %112 : vector<16x128xf32>
    %114 = arith.mulf %105, %78 : vector<16x128xf32>
    %115 = arith.mulf %99, %107 : vector<16x128xf32>
    %116 = arith.addf %114, %115 : vector<16x128xf32>
    %117 = math.tanh %116 : vector<16x128xf32>
    %118 = arith.mulf %113, %117 : vector<16x128xf32>
    %119 = arith.truncf %118 : vector<16x128xf32> to vector<16x128xbf16>
    %120 = arith.index_cast %c2_i32 : i32 to index
    %c0_35 = arith.constant 0 : index
    %c0_36 = arith.constant 0 : index
    %121 = vector.load %arg7[%120, %c0_35, %c0_36] : memref<8x16x128xbf16, #tpu.memory_space<vmem>>, vector<1x16x128xbf16>
    %122 = vector.shape_cast %121 : vector<1x16x128xbf16> to vector<16x128xbf16>
    %123 = vector.shape_cast %119 : vector<16x128xbf16> to vector<1x16x128xbf16>
    tpu.vector_store %arg7[%120, %c0_35, %c0_36], %123 {strides = array<i32>} : memref<8x16x128xbf16, #tpu.memory_space<vmem>>, vector<1x16x128xbf16>,
    %c3_i32 = arith.constant 3 : i32
    %124 = arith.index_cast %c3_i32 : i32 to index
    %c0_37 = arith.constant 0 : index
    %c0_38 = arith.constant 0 : index
    %125 = vector.load %arg2[%124, %c0_37, %c0_38] : memref<8x16x128xbf16, #tpu.memory_space<vmem>>, vector<1x16x128xbf16>
    %126 = vector.shape_cast %125 : vector<1x16x128xbf16> to vector<16x128xbf16>
    %cst_39 = arith.constant dense<0.000000e+00> : vector<16x512xf32>
    %127 = tpu.matmul %126, %3, %cst_39 {dimension_numbers = #tpu.dot_dimension_numbers<[1], [0], [0], [1], [0, 0, 1, 1], [], []>} : vector<16x128xbf16>, vector<128x512xbf16>, vector<16x512xf32> -> vector<16x512xf32>
    %128 = arith.truncf %118 : vector<16x128xf32> to vector<16x128xbf16>
    %cst_40 = arith.constant dense<0.000000e+00> : vector<16x512xf32>
    %129 = tpu.matmul %128, %4, %cst_40 {dimension_numbers = #tpu.dot_dimension_numbers<[1], [0], [0], [1], [0, 0, 1, 1], [], []>} : vector<16x128xbf16>, vector<128x512xbf16>, vector<16x512xf32> -> vector<16x512xf32>
    %130 = arith.addf %127, %129 : vector<16x512xf32>
    %131 = arith.addf %130, %7 : vector<16x512xf32>
    %132 = vector.extract_strided_slice %131 {offsets = [0, 0], sizes = [16, 128], strides = [1, 1]} : vector<16x512xf32> to vector<16x128xf32>
    %133 = arith.negf %132 : vector<16x128xf32>
    %134 = math.exp %133 : vector<16x128xf32>
    %cst_41 = arith.constant 1.000000e+00 : f32
    %135 = vector.broadcast %cst_41 : f32 to vector<16x128xf32>
    %136 = arith.addf %135, %134 : vector<16x128xf32>
    %137 = arith.divf %135, %136 : vector<16x128xf32>
    %138 = vector.extract_strided_slice %131 {offsets = [0, 128], sizes = [16, 128], strides = [1, 1]} : vector<16x512xf32> to vector<16x128xf32>
    %139 = arith.negf %138 : vector<16x128xf32>
    %140 = math.exp %139 : vector<16x128xf32>
    %cst_42 = arith.constant 1.000000e+00 : f32
    %141 = vector.broadcast %cst_42 : f32 to vector<16x128xf32>
    %142 = arith.addf %141, %140 : vector<16x128xf32>
    %143 = arith.divf %141, %142 : vector<16x128xf32>
    %144 = vector.extract_strided_slice %131 {offsets = [0, 256], sizes = [16, 128], strides = [1, 1]} : vector<16x512xf32> to vector<16x128xf32>
    %145 = math.tanh %144 : vector<16x128xf32>
    %146 = vector.extract_strided_slice %131 {offsets = [0, 384], sizes = [16, 128], strides = [1, 1]} : vector<16x512xf32> to vector<16x128xf32>
    %147 = arith.negf %146 : vector<16x128xf32>
    %148 = math.exp %147 : vector<16x128xf32>
    %cst_43 = arith.constant 1.000000e+00 : f32
    %149 = vector.broadcast %cst_43 : f32 to vector<16x128xf32>
    %150 = arith.addf %149, %148 : vector<16x128xf32>
    %151 = arith.divf %149, %150 : vector<16x128xf32>
    %152 = arith.mulf %143, %116 : vector<16x128xf32>
    %153 = arith.mulf %137, %145 : vector<16x128xf32>
    %154 = arith.addf %152, %153 : vector<16x128xf32>
    %155 = math.tanh %154 : vector<16x128xf32>
    %156 = arith.mulf %151, %155 : vector<16x128xf32>
    %157 = arith.truncf %156 : vector<16x128xf32> to vector<16x128xbf16>
    %158 = arith.index_cast %c3_i32 : i32 to index
    %c0_44 = arith.constant 0 : index
    %c0_45 = arith.constant 0 : index
    %159 = vector.load %arg7[%158, %c0_44, %c0_45] : memref<8x16x128xbf16, #tpu.memory_space<vmem>>, vector<1x16x128xbf16>
    %160 = vector.shape_cast %159 : vector<1x16x128xbf16> to vector<16x128xbf16>
    %161 = vector.shape_cast %157 : vector<16x128xbf16> to vector<1x16x128xbf16>
    tpu.vector_store %arg7[%158, %c0_44, %c0_45], %161 {strides = array<i32>} : memref<8x16x128xbf16, #tpu.memory_space<vmem>>, vector<1x16x128xbf16>,
    %c4_i32 = arith.constant 4 : i32
    %162 = arith.index_cast %c4_i32 : i32 to index
    %c0_46 = arith.constant 0 : index
    %c0_47 = arith.constant 0 : index
    %163 = vector.load %arg2[%162, %c0_46, %c0_47] : memref<8x16x128xbf16, #tpu.memory_space<vmem>>, vector<1x16x128xbf16>
    %164 = vector.shape_cast %163 : vector<1x16x128xbf16> to vector<16x128xbf16>
    %cst_48 = arith.constant dense<0.000000e+00> : vector<16x512xf32>
    %165 = tpu.matmul %164, %3, %cst_48 {dimension_numbers = #tpu.dot_dimension_numbers<[1], [0], [0], [1], [0, 0, 1, 1], [], []>} : vector<16x128xbf16>, vector<128x512xbf16>, vector<16x512xf32> -> vector<16x512xf32>
    %166 = arith.truncf %156 : vector<16x128xf32> to vector<16x128xbf16>
    %cst_49 = arith.constant dense<0.000000e+00> : vector<16x512xf32>
    %167 = tpu.matmul %166, %4, %cst_49 {dimension_numbers = #tpu.dot_dimension_numbers<[1], [0], [0], [1], [0, 0, 1, 1], [], []>} : vector<16x128xbf16>, vector<128x512xbf16>, vector<16x512xf32> -> vector<16x512xf32>
    %168 = arith.addf %165, %167 : vector<16x512xf32>
    %169 = arith.addf %168, %7 : vector<16x512xf32>
    %170 = vector.extract_strided_slice %169 {offsets = [0, 0], sizes = [16, 128], strides = [1, 1]} : vector<16x512xf32> to vector<16x128xf32>
    %171 = arith.negf %170 : vector<16x128xf32>
    %172 = math.exp %171 : vector<16x128xf32>
    %cst_50 = arith.constant 1.000000e+00 : f32
    %173 = vector.broadcast %cst_50 : f32 to vector<16x128xf32>
    %174 = arith.addf %173, %172 : vector<16x128xf32>
    %175 = arith.divf %173, %174 : vector<16x128xf32>
    %176 = vector.extract_strided_slice %169 {offsets = [0, 128], sizes = [16, 128], strides = [1, 1]} : vector<16x512xf32> to vector<16x128xf32>
    %177 = arith.negf %176 : vector<16x128xf32>
    %178 = math.exp %177 : vector<16x128xf32>
    %cst_51 = arith.constant 1.000000e+00 : f32
    %179 = vector.broadcast %cst_51 : f32 to vector<16x128xf32>
    %180 = arith.addf %179, %178 : vector<16x128xf32>
    %181 = arith.divf %179, %180 : vector<16x128xf32>
    %182 = vector.extract_strided_slice %169 {offsets = [0, 256], sizes = [16, 128], strides = [1, 1]} : vector<16x512xf32> to vector<16x128xf32>
    %183 = math.tanh %182 : vector<16x128xf32>
    %184 = vector.extract_strided_slice %169 {offsets = [0, 384], sizes = [16, 128], strides = [1, 1]} : vector<16x512xf32> to vector<16x128xf32>
    %185 = arith.negf %184 : vector<16x128xf32>
    %186 = math.exp %185 : vector<16x128xf32>
    %cst_52 = arith.constant 1.000000e+00 : f32
    %187 = vector.broadcast %cst_52 : f32 to vector<16x128xf32>
    %188 = arith.addf %187, %186 : vector<16x128xf32>
    %189 = arith.divf %187, %188 : vector<16x128xf32>
    %190 = arith.mulf %181, %154 : vector<16x128xf32>
    %191 = arith.mulf %175, %183 : vector<16x128xf32>
    %192 = arith.addf %190, %191 : vector<16x128xf32>
    %193 = math.tanh %192 : vector<16x128xf32>
    %194 = arith.mulf %189, %193 : vector<16x128xf32>
    %195 = arith.truncf %194 : vector<16x128xf32> to vector<16x128xbf16>
    %196 = arith.index_cast %c4_i32 : i32 to index
    %c0_53 = arith.constant 0 : index
    %c0_54 = arith.constant 0 : index
    %197 = vector.load %arg7[%196, %c0_53, %c0_54] : memref<8x16x128xbf16, #tpu.memory_space<vmem>>, vector<1x16x128xbf16>
    %198 = vector.shape_cast %197 : vector<1x16x128xbf16> to vector<16x128xbf16>
    %199 = vector.shape_cast %195 : vector<16x128xbf16> to vector<1x16x128xbf16>
    tpu.vector_store %arg7[%196, %c0_53, %c0_54], %199 {strides = array<i32>} : memref<8x16x128xbf16, #tpu.memory_space<vmem>>, vector<1x16x128xbf16>,
    %c5_i32 = arith.constant 5 : i32
    %200 = arith.index_cast %c5_i32 : i32 to index
    %c0_55 = arith.constant 0 : index
    %c0_56 = arith.constant 0 : index
    %201 = vector.load %arg2[%200, %c0_55, %c0_56] : memref<8x16x128xbf16, #tpu.memory_space<vmem>>, vector<1x16x128xbf16>
    %202 = vector.shape_cast %201 : vector<1x16x128xbf16> to vector<16x128xbf16>
    %cst_57 = arith.constant dense<0.000000e+00> : vector<16x512xf32>
    %203 = tpu.matmul %202, %3, %cst_57 {dimension_numbers = #tpu.dot_dimension_numbers<[1], [0], [0], [1], [0, 0, 1, 1], [], []>} : vector<16x128xbf16>, vector<128x512xbf16>, vector<16x512xf32> -> vector<16x512xf32>
    %204 = arith.truncf %194 : vector<16x128xf32> to vector<16x128xbf16>
    %cst_58 = arith.constant dense<0.000000e+00> : vector<16x512xf32>
    %205 = tpu.matmul %204, %4, %cst_58 {dimension_numbers = #tpu.dot_dimension_numbers<[1], [0], [0], [1], [0, 0, 1, 1], [], []>} : vector<16x128xbf16>, vector<128x512xbf16>, vector<16x512xf32> -> vector<16x512xf32>
    %206 = arith.addf %203, %205 : vector<16x512xf32>
    %207 = arith.addf %206, %7 : vector<16x512xf32>
    %208 = vector.extract_strided_slice %207 {offsets = [0, 0], sizes = [16, 128], strides = [1, 1]} : vector<16x512xf32> to vector<16x128xf32>
    %209 = arith.negf %208 : vector<16x128xf32>
    %210 = math.exp %209 : vector<16x128xf32>
    %cst_59 = arith.constant 1.000000e+00 : f32
    %211 = vector.broadcast %cst_59 : f32 to vector<16x128xf32>
    %212 = arith.addf %211, %210 : vector<16x128xf32>
    %213 = arith.divf %211, %212 : vector<16x128xf32>
    %214 = vector.extract_strided_slice %207 {offsets = [0, 128], sizes = [16, 128], strides = [1, 1]} : vector<16x512xf32> to vector<16x128xf32>
    %215 = arith.negf %214 : vector<16x128xf32>
    %216 = math.exp %215 : vector<16x128xf32>
    %cst_60 = arith.constant 1.000000e+00 : f32
    %217 = vector.broadcast %cst_60 : f32 to vector<16x128xf32>
    %218 = arith.addf %217, %216 : vector<16x128xf32>
    %219 = arith.divf %217, %218 : vector<16x128xf32>
    %220 = vector.extract_strided_slice %207 {offsets = [0, 256], sizes = [16, 128], strides = [1, 1]} : vector<16x512xf32> to vector<16x128xf32>
    %221 = math.tanh %220 : vector<16x128xf32>
    %222 = vector.extract_strided_slice %207 {offsets = [0, 384], sizes = [16, 128], strides = [1, 1]} : vector<16x512xf32> to vector<16x128xf32>
    %223 = arith.negf %222 : vector<16x128xf32>
    %224 = math.exp %223 : vector<16x128xf32>
    %cst_61 = arith.constant 1.000000e+00 : f32
    %225 = vector.broadcast %cst_61 : f32 to vector<16x128xf32>
    %226 = arith.addf %225, %224 : vector<16x128xf32>
    %227 = arith.divf %225, %226 : vector<16x128xf32>
    %228 = arith.mulf %219, %192 : vector<16x128xf32>
    %229 = arith.mulf %213, %221 : vector<16x128xf32>
    %230 = arith.addf %228, %229 : vector<16x128xf32>
    %231 = math.tanh %230 : vector<16x128xf32>
    %232 = arith.mulf %227, %231 : vector<16x128xf32>
    %233 = arith.truncf %232 : vector<16x128xf32> to vector<16x128xbf16>
    %234 = arith.index_cast %c5_i32 : i32 to index
    %c0_62 = arith.constant 0 : index
    %c0_63 = arith.constant 0 : index
    %235 = vector.load %arg7[%234, %c0_62, %c0_63] : memref<8x16x128xbf16, #tpu.memory_space<vmem>>, vector<1x16x128xbf16>
    %236 = vector.shape_cast %235 : vector<1x16x128xbf16> to vector<16x128xbf16>
    %237 = vector.shape_cast %233 : vector<16x128xbf16> to vector<1x16x128xbf16>
    tpu.vector_store %arg7[%234, %c0_62, %c0_63], %237 {strides = array<i32>} : memref<8x16x128xbf16, #tpu.memory_space<vmem>>, vector<1x16x128xbf16>,
    %c6_i32 = arith.constant 6 : i32
    %238 = arith.index_cast %c6_i32 : i32 to index
    %c0_64 = arith.constant 0 : index
    %c0_65 = arith.constant 0 : index
    %239 = vector.load %arg2[%238, %c0_64, %c0_65] : memref<8x16x128xbf16, #tpu.memory_space<vmem>>, vector<1x16x128xbf16>
    %240 = vector.shape_cast %239 : vector<1x16x128xbf16> to vector<16x128xbf16>
    %cst_66 = arith.constant dense<0.000000e+00> : vector<16x512xf32>
    %241 = tpu.matmul %240, %3, %cst_66 {dimension_numbers = #tpu.dot_dimension_numbers<[1], [0], [0], [1], [0, 0, 1, 1], [], []>} : vector<16x128xbf16>, vector<128x512xbf16>, vector<16x512xf32> -> vector<16x512xf32>
    %242 = arith.truncf %232 : vector<16x128xf32> to vector<16x128xbf16>
    %cst_67 = arith.constant dense<0.000000e+00> : vector<16x512xf32>
    %243 = tpu.matmul %242, %4, %cst_67 {dimension_numbers = #tpu.dot_dimension_numbers<[1], [0], [0], [1], [0, 0, 1, 1], [], []>} : vector<16x128xbf16>, vector<128x512xbf16>, vector<16x512xf32> -> vector<16x512xf32>
    %244 = arith.addf %241, %243 : vector<16x512xf32>
    %245 = arith.addf %244, %7 : vector<16x512xf32>
    %246 = vector.extract_strided_slice %245 {offsets = [0, 0], sizes = [16, 128], strides = [1, 1]} : vector<16x512xf32> to vector<16x128xf32>
    %247 = arith.negf %246 : vector<16x128xf32>
    %248 = math.exp %247 : vector<16x128xf32>
    %cst_68 = arith.constant 1.000000e+00 : f32
    %249 = vector.broadcast %cst_68 : f32 to vector<16x128xf32>
    %250 = arith.addf %249, %248 : vector<16x128xf32>
    %251 = arith.divf %249, %250 : vector<16x128xf32>
    %252 = vector.extract_strided_slice %245 {offsets = [0, 128], sizes = [16, 128], strides = [1, 1]} : vector<16x512xf32> to vector<16x128xf32>
    %253 = arith.negf %252 : vector<16x128xf32>
    %254 = math.exp %253 : vector<16x128xf32>
    %cst_69 = arith.constant 1.000000e+00 : f32
    %255 = vector.broadcast %cst_69 : f32 to vector<16x128xf32>
    %256 = arith.addf %255, %254 : vector<16x128xf32>
    %257 = arith.divf %255, %256 : vector<16x128xf32>
    %258 = vector.extract_strided_slice %245 {offsets = [0, 256], sizes = [16, 128], strides = [1, 1]} : vector<16x512xf32> to vector<16x128xf32>
    %259 = math.tanh %258 : vector<16x128xf32>
    %260 = vector.extract_strided_slice %245 {offsets = [0, 384], sizes = [16, 128], strides = [1, 1]} : vector<16x512xf32> to vector<16x128xf32>
    %261 = arith.negf %260 : vector<16x128xf32>
    %262 = math.exp %261 : vector<16x128xf32>
    %cst_70 = arith.constant 1.000000e+00 : f32
    %263 = vector.broadcast %cst_70 : f32 to vector<16x128xf32>
    %264 = arith.addf %263, %262 : vector<16x128xf32>
    %265 = arith.divf %263, %264 : vector<16x128xf32>
    %266 = arith.mulf %257, %230 : vector<16x128xf32>
    %267 = arith.mulf %251, %259 : vector<16x128xf32>
    %268 = arith.addf %266, %267 : vector<16x128xf32>
    %269 = math.tanh %268 : vector<16x128xf32>
    %270 = arith.mulf %265, %269 : vector<16x128xf32>
    %271 = arith.truncf %270 : vector<16x128xf32> to vector<16x128xbf16>
    %272 = arith.index_cast %c6_i32 : i32 to index
    %c0_71 = arith.constant 0 : index
    %c0_72 = arith.constant 0 : index
    %273 = vector.load %arg7[%272, %c0_71, %c0_72] : memref<8x16x128xbf16, #tpu.memory_space<vmem>>, vector<1x16x128xbf16>
    %274 = vector.shape_cast %273 : vector<1x16x128xbf16> to vector<16x128xbf16>
    %275 = vector.shape_cast %271 : vector<16x128xbf16> to vector<1x16x128xbf16>
    tpu.vector_store %arg7[%272, %c0_71, %c0_72], %275 {strides = array<i32>} : memref<8x16x128xbf16, #tpu.memory_space<vmem>>, vector<1x16x128xbf16>,
    %c7_i32 = arith.constant 7 : i32
    %276 = arith.index_cast %c7_i32 : i32 to index
    %c0_73 = arith.constant 0 : index
    %c0_74 = arith.constant 0 : index
    %277 = vector.load %arg2[%276, %c0_73, %c0_74] : memref<8x16x128xbf16, #tpu.memory_space<vmem>>, vector<1x16x128xbf16>
    %278 = vector.shape_cast %277 : vector<1x16x128xbf16> to vector<16x128xbf16>
    %cst_75 = arith.constant dense<0.000000e+00> : vector<16x512xf32>
    %279 = tpu.matmul %278, %3, %cst_75 {dimension_numbers = #tpu.dot_dimension_numbers<[1], [0], [0], [1], [0, 0, 1, 1], [], []>} : vector<16x128xbf16>, vector<128x512xbf16>, vector<16x512xf32> -> vector<16x512xf32>
    %280 = arith.truncf %270 : vector<16x128xf32> to vector<16x128xbf16>
    %cst_76 = arith.constant dense<0.000000e+00> : vector<16x512xf32>
    %281 = tpu.matmul %280, %4, %cst_76 {dimension_numbers = #tpu.dot_dimension_numbers<[1], [0], [0], [1], [0, 0, 1, 1], [], []>} : vector<16x128xbf16>, vector<128x512xbf16>, vector<16x512xf32> -> vector<16x512xf32>
    %282 = arith.addf %279, %281 : vector<16x512xf32>
    %283 = arith.addf %282, %7 : vector<16x512xf32>
    %284 = vector.extract_strided_slice %283 {offsets = [0, 0], sizes = [16, 128], strides = [1, 1]} : vector<16x512xf32> to vector<16x128xf32>
    %285 = arith.negf %284 : vector<16x128xf32>
    %286 = math.exp %285 : vector<16x128xf32>
    %cst_77 = arith.constant 1.000000e+00 : f32
    %287 = vector.broadcast %cst_77 : f32 to vector<16x128xf32>
    %288 = arith.addf %287, %286 : vector<16x128xf32>
    %289 = arith.divf %287, %288 : vector<16x128xf32>
    %290 = vector.extract_strided_slice %283 {offsets = [0, 128], sizes = [16, 128], strides = [1, 1]} : vector<16x512xf32> to vector<16x128xf32>
    %291 = arith.negf %290 : vector<16x128xf32>
    %292 = math.exp %291 : vector<16x128xf32>
    %cst_78 = arith.constant 1.000000e+00 : f32
    %293 = vector.broadcast %cst_78 : f32 to vector<16x128xf32>
    %294 = arith.addf %293, %292 : vector<16x128xf32>
    %295 = arith.divf %293, %294 : vector<16x128xf32>
    %296 = vector.extract_strided_slice %283 {offsets = [0, 256], sizes = [16, 128], strides = [1, 1]} : vector<16x512xf32> to vector<16x128xf32>
    %297 = math.tanh %296 : vector<16x128xf32>
    %298 = vector.extract_strided_slice %283 {offsets = [0, 384], sizes = [16, 128], strides = [1, 1]} : vector<16x512xf32> to vector<16x128xf32>
    %299 = arith.negf %298 : vector<16x128xf32>
    %300 = math.exp %299 : vector<16x128xf32>
    %cst_79 = arith.constant 1.000000e+00 : f32
    %301 = vector.broadcast %cst_79 : f32 to vector<16x128xf32>
    %302 = arith.addf %301, %300 : vector<16x128xf32>
    %303 = arith.divf %301, %302 : vector<16x128xf32>
    %304 = arith.mulf %295, %268 : vector<16x128xf32>
    %305 = arith.mulf %289, %297 : vector<16x128xf32>
    %306 = arith.addf %304, %305 : vector<16x128xf32>
    %307 = math.tanh %306 : vector<16x128xf32>
    %308 = arith.mulf %303, %307 : vector<16x128xf32>
    %309 = arith.truncf %308 : vector<16x128xf32> to vector<16x128xbf16>
    %310 = arith.index_cast %c7_i32 : i32 to index
    %c0_80 = arith.constant 0 : index
    %c0_81 = arith.constant 0 : index
    %311 = vector.load %arg7[%310, %c0_80, %c0_81] : memref<8x16x128xbf16, #tpu.memory_space<vmem>>, vector<1x16x128xbf16>
    %312 = vector.shape_cast %311 : vector<1x16x128xbf16> to vector<16x128xbf16>
    %313 = vector.shape_cast %309 : vector<16x128xbf16> to vector<1x16x128xbf16>
    tpu.vector_store %arg7[%310, %c0_80, %c0_81], %313 {strides = array<i32>} : memref<8x16x128xbf16, #tpu.memory_space<vmem>>, vector<1x16x128xbf16>,
    %c8_i32 = arith.constant 8 : i32
    %c0_82 = arith.constant 0 : index
    %c0_83 = arith.constant 0 : index
    %314 = vector.load %arg8[%c0_82, %c0_83] : memref<16x128xf32, #tpu.memory_space<vmem>>, vector<16x128xf32>
    tpu.vector_store %arg8[%c0_82, %c0_83], %308 {strides = array<i32>} : memref<16x128xf32, #tpu.memory_space<vmem>>, vector<16x128xf32>,
    %c0_84 = arith.constant 0 : index
    %c0_85 = arith.constant 0 : index
    %315 = vector.load %arg9[%c0_84, %c0_85] : memref<16x128xf32, #tpu.memory_space<vmem>>, vector<16x128xf32>
    tpu.vector_store %arg9[%c0_84, %c0_85], %306 {strides = array<i32>} : memref<16x128xf32, #tpu.memory_space<vmem>>, vector<16x128xf32>,
    return
  }
  func.func @transform_0(%arg0: i32, %arg1: i32) -> (i32, i32, i32) {
    %c0_i32 = arith.constant 0 : i32
    %c0_i32_0 = arith.constant 0 : i32
    return %arg1, %arg0, %c0_i32 : i32, i32, i32
  }
  func.func @transform_1(%arg0: i32, %arg1: i32) -> (i32, i32) {
    %c0_i32 = arith.constant 0 : i32
    %c0_i32_0 = arith.constant 0 : i32
    %c0_i32_1 = arith.constant 0 : i32
    return %c0_i32, %c0_i32_0 : i32, i32
  }
  func.func @transform_2(%arg0: i32, %arg1: i32) -> (i32, i32) {
    %c0_i32 = arith.constant 0 : i32
    %c0_i32_0 = arith.constant 0 : i32
    %c0_i32_1 = arith.constant 0 : i32
    return %c0_i32, %c0_i32_0 : i32, i32
  }
  func.func @transform_3(%arg0: i32, %arg1: i32) -> (i32, i32) {
    %c0_i32 = arith.constant 0 : i32
    %c0_i32_0 = arith.constant 0 : i32
    %c0_i32_1 = arith.constant 0 : i32
    return %c0_i32, %c0_i32_0 : i32, i32
  }
  func.func @transform_4(%arg0: i32, %arg1: i32) -> (i32, i32) {
    %c0_i32 = arith.constant 0 : i32
    %c0_i32_0 = arith.constant 0 : i32
    return %arg0, %c0_i32 : i32, i32
  }
  func.func @transform_5(%arg0: i32, %arg1: i32) -> (i32, i32, i32) {
    %c0_i32 = arith.constant 0 : i32
    %c0_i32_0 = arith.constant 0 : i32
    return %arg1, %arg0, %c0_i32 : i32, i32, i32
  }
}

</mosaic_0001>

<bundles_post_ra>
// kernel: tpu_custom_call.1
= control target key start
LH: loop header
LB: loop body
LE: loop exit
PB: predicated region body
PF: predicated region fallthrough
CT: control target
= control target key end

     0   :  { %10 = vsyncpa [#allocation5], 0  ;;  %s4247_s0 = inlined_call_operand.hbm [shape: bf16[8,16,128], index: 0, kind: input, shape index: {}]   ;;  %s4248_s1 = inlined_call_operand.hbm [shape: bf16[128,512], index: 1, kind: input, shape index: {}]   ;;  %s4249_s2 = inlined_call_operand.hbm [shape: bf16[128,512], index: 2, kind: input, shape index: {}]   ;;  %s4250_s3 = inlined_call_operand.vmem [shape: f32[1,512], index: 3, kind: input, shape index: {}]   ;;  %s4251_s4 = inlined_call_operand.hbm [shape: f32[16,128], index: 4, kind: input, shape index: {}]   ;;  %s4252_s5 = inlined_call_operand.hbm [shape: bf16[8,16,128], index: 5, kind: output, shape index: {}]  }
   0x1   :  { %11 = vsyncpa [#allocation8], 0 }
   0x2   :  { %12 = vsyncpa [#allocation11], 0 }
   0x3   :  { %13 = vsyncpa [#allocation6], 0  ;;  %s3275_s18 = smov [#allocation7]  }
   0x4   :  { %s31_s19 = sshll.u32 %s3275_s18, 4  ;;  %s32_s19 = int_to_ptr.vmem [resolvable:$true] %s31_s19 }
   0x5   :  { %s3175_s20 = scalar_lea.vmem %s32_s19, 4096  ;;  %p3180_p1 = scmp.lt.s32.totalorder %s32_s19, %s32_s19 }
   0x6   :  { %p3176_p0 = scmp.ne.s32.totalorder %s32_s19, %s3175_s20  ;;  %p3181_p2 = scmp.lt.s32.totalorder %s3175_s20, %s3175_s20 }
   0x8   :  { %p3182_p3 = por %p3181_p2, %p3180_p1 }
   0xa   :  { %p3183_p4 = pnand %p3182_p3, %p3176_p0 }
   0xc   :  { %3186 = shalt.err (!%p3183_p4)
}
   0xd   :  { %s3276_s21 = smov 256   ;;  %s3277_s22 = smov 16  }
   0xe   :  { %37 = dma.hbm_to_vmem [thread:$0]  %s4248_s1, 4096, %s32_s19, [#allocation8], %s3276_s21, %s3276_s21, %s3277_s22  }
   0xf   :  { %s3278_s25 = smov [#allocation4]  }
  0x10   :  { %s19_s26 = sshll.u32 %s3278_s25, 4  ;;  %s20_s26 = int_to_ptr.vmem [resolvable:$true] %s19_s26 }
  0x11   :  { %s3195_s27 = scalar_lea.vmem %s20_s26, 1024  ;;  %p3200_p6 = scmp.lt.s32.totalorder %s20_s26, %s20_s26 }
  0x12   :  { %p3196_p5 = scmp.ne.s32.totalorder %s20_s26, %s3195_s27  ;;  %p3201_p7 = scmp.lt.s32.totalorder %s3195_s27, %s3195_s27 }
  0x14   :  { %p3202_p8 = por %p3201_p7, %p3200_p6 }
  0x16   :  { %p3203_p9 = pnand %p3202_p8, %p3196_p5 }
  0x18   :  { %3206 = shalt.err (!%p3203_p9)
}
  0x19   :  { %s3279_s28 = smov 64   ;;  %s3280_s29 = smov 4  }
  0x1a   :  { %25 = dma.hbm_to_vmem [thread:$0]  %s4247_s0, 1024, %s20_s26, [#allocation5], %s3279_s28, %s3279_s28, %s3280_s29  }
  0x1b   :  { %s3281_s1 = smov [#allocation9]   ;;  %s3282_s8 = smov [#allocation10]  }
  0x1c   :  { %s43_s7 = sshll.u32 %s3281_s1, 4  ;;  %s57_s9 = sshll.u32 %s3282_s8, 4  ;;  %s44_s7 = int_to_ptr.vmem [resolvable:$true] %s43_s7  ;;  %s58_s9 = int_to_ptr.vmem [resolvable:$true] %s57_s9 }
  0x1d   :  { %s3215_s10 = scalar_lea.vmem %s44_s7, 4096  ;;  %p3220_p11 = scmp.lt.s32.totalorder %s44_s7, %s44_s7 }
  0x1e   :  { %p3216_p10 = scmp.ne.s32.totalorder %s44_s7, %s3215_s10  ;;  %p3221_p12 = scmp.lt.s32.totalorder %s3215_s10, %s3215_s10 }
  0x20   :  { %p3222_p13 = por %p3221_p12, %p3220_p11 }
  0x22   :  { %p3223_p0 = pnand %p3222_p13, %p3216_p10 }
  0x24   :  { %3226 = shalt.err (!%p3223_p0)
}
  0x25   :  { %49 = dma.hbm_to_vmem [thread:$0]  %s4249_s2, 4096, %s44_s7, [#allocation8], %s3276_s21, %s3276_s21, %s3277_s22  }
  0x26   :  { %s3235_s0 = scalar_lea.vmem %s58_s9, 256  ;;  %p3240_p2 = scmp.lt.s32.totalorder %s58_s9, %s58_s9 }
  0x27   :  { %p3236_p1 = scmp.ne.s32.totalorder %s58_s9, %s3235_s0  ;;  %p3241_p3 = scmp.lt.s32.totalorder %s3235_s0, %s3235_s0 }
  0x29   :  { %p3242_p4 = por %p3241_p3, %p3240_p2 }
  0x2b   :  { %p3243_p5 = pnand %p3242_p4, %p3236_p1 }
  0x2d   :  { %3246 = shalt.err (!%p3243_p5)
}
  0x2e   :  { %s3283_s13 = smov 128   ;;  %s3284_s14 = smov 8  }
  0x2f   :  { %63 = dma.hbm_to_vmem [thread:$0]  %s4251_s4, 256, %s58_s9, [#allocation11], %s3283_s13, %s3283_s13, %s3284_s14  }
  0x30   :  { %3267 = dma.done.wait [#allocation5], 1024  }
  0x31   :  { %3268 = vsyncadd [#allocation5], 4294966272 }
  0x32   :  { %3269 = dma.done.wait [#allocation8], 8192  }
  0x33   :  { %3270 = vsyncadd [#allocation8], 4294959104 }
  0x34   :  { %3271 = dma.done.wait [#allocation11], 256  }
  0x35   :  { %3272 = vsyncadd [#allocation11], 4294967040  ;;  %v4253_v0 = vmov 0   ;;  %v3340_v1 = vld [vmem:[#allocation9 + $0xe4] ss:$16 sps:$4 sm:$0xff]   ;;  %v3434_v34 = vld [vmem:[#allocation10 + $0x8] sm:$0xff] }
  0x36   :  { %372 = vmatprep.mubr.bf16.mxu0 %v4253_v0  ;;  %415 = vmatprep.mubr.bf16.mxu1 %v4253_v0  ;;  %v3342_v2 = vld [vmem:[#allocation9 + $0xec] ss:$16 sps:$4 sm:$0xff]   ;;  %v3345_v3 = vld [vmem:[#allocation9 + $0xe0] ss:$16 sps:$4 sm:$0xff]   ;;  %v3347_v4 = vld [vmem:[#allocation9 + $0xe8] ss:$16 sps:$4 sm:$0xff]  }
  0x37   :  { %340 = vmatprep.subr.bf16.mxu0 %v3340_v1  ;;  %383 = vmatprep.subr.bf16.mxu1 %v3342_v2  ;;  %v3350_v5 = vld [vmem:[#allocation9 + $0xc4] ss:$16 sps:$4 sm:$0xff]   ;;  %v3354_v6 = vld [vmem:[#allocation9 + $0xcc] ss:$16 sps:$4 sm:$0xff]   ;;  %v3356_v7 = vld [vmem:[#allocation9 + $0xc0] ss:$16 sps:$4 sm:$0xff]  }
  0x38   :  { %341 = vmatpush1.bf16.msra.mxu0 %v3345_v3  ;;  %384 = vmatpush1.bf16.msra.mxu1 %v3347_v4  ;;  %4360 = vst [vmem:[#allocation17_spill] sm:$0xff] %v3354_v6  ;;  %4361 = vst [vmem:[#allocation18_spill] sm:$0xff] %v3356_v7  ;;  %v3359_v8 = vld [vmem:[#allocation9 + $0xc8] ss:$16 sps:$4 sm:$0xff]   ;;  %v3362_v9 = vld [vmem:[#allocation9 + $0xa4] ss:$16 sps:$4 sm:$0xff]  }
  0x39   :  { %342 = vmatprep.subr.bf16.mxu0 %v3350_v5  ;;  %4362 = vst [vmem:[#allocation19_spill] sm:$0xff] %v3359_v8  ;;  %385 = vmatprep.subr.bf16.mxu1 %v3354_v6  ;;  %4363 = vst [vmem:[#allocation20_spill] sm:$0xff] %v3362_v9  ;;  %v3364_v10 = vld [vmem:[#allocation9 + $0xac] ss:$16 sps:$4 sm:$0xff]   ;;  %v3366_v11 = vld [vmem:[#allocation9 + $0xa0] ss:$16 sps:$4 sm:$0xff]  }
  0x3a   :  { %4364 = vst [vmem:[#allocation21_spill] sm:$0xff] %v3364_v10  ;;  %4365 = vst [vmem:[#allocation22_spill] sm:$0xff] %v3366_v11  ;;  %v3368_v12 = vld [vmem:[#allocation9 + $0xa8] ss:$16 sps:$4 sm:$0xff]   ;;  %v3372_v13 = vld [vmem:[#allocation9 + $0x84] ss:$16 sps:$4 sm:$0xff]  }
  0x3b   :  { %4366 = vst [vmem:[#allocation23_spill] sm:$0xff] %v3368_v12  ;;  %4367 = vst [vmem:[#allocation24_spill] sm:$0xff] %v3372_v13  ;;  %v3376_v14 = vld [vmem:[#allocation9 + $0x8c] ss:$16 sps:$4 sm:$0xff]   ;;  %v3378_v15 = vld [vmem:[#allocation9 + $0x80] ss:$16 sps:$4 sm:$0xff]  }
  0x3c   :  { %343 = vmatpush1.bf16.msra.mxu0 %v3356_v7  ;;  %386 = vmatpush1.bf16.msra.mxu1 %v3359_v8  ;;  %4368 = vst [vmem:[#allocation25_spill] sm:$0xff] %v3376_v14  ;;  %4369 = vst [vmem:[#allocation26_spill] sm:$0xff] %v3378_v15  ;;  %v3382_v16 = vld [vmem:[#allocation9 + $0x88] ss:$16 sps:$4 sm:$0xff]   ;;  %v3384_v17 = vld [vmem:[#allocation9 + $0x64] ss:$16 sps:$4 sm:$0xff]  }
  0x3d   :  { %344 = vmatprep.subr.bf16.mxu0 %v3362_v9  ;;  %387 = vmatprep.subr.bf16.mxu1 %v3364_v10  ;;  %4370 = vst [vmem:[#allocation27_spill] sm:$0xff] %v3382_v16  ;;  %4371 = vst [vmem:[#allocation28_spill] sm:$0xff] %v3384_v17  ;;  %v3388_v18 = vld [vmem:[#allocation9 + $0x6c] ss:$16 sps:$4 sm:$0xff]   ;;  %v3390_v19 = vld [vmem:[#allocation9 + $0x60] ss:$16 sps:$4 sm:$0xff]  }
  0x3e   :  { %4372 = vst [vmem:[#allocation29_spill] sm:$0xff] %v3388_v18  ;;  %4373 = vst [vmem:[#allocation30_spill] sm:$0xff] %v3390_v19  ;;  %v3392_v20 = vld [vmem:[#allocation9 + $0x68] ss:$16 sps:$4 sm:$0xff]   ;;  %v3396_v21 = vld [vmem:[#allocation9 + $0x44] ss:$16 sps:$4 sm:$0xff]  }
  0x3f   :  { %4374 = vst [vmem:[#allocation31_spill] sm:$0xff] %v3392_v20  ;;  %4375 = vst [vmem:[#allocation32_spill] sm:$0xff] %v3396_v21  ;;  %v3400_v22 = vld [vmem:[#allocation9 + $0x4c] ss:$16 sps:$4 sm:$0xff]   ;;  %v3404_v23 = vld [vmem:[#allocation9 + $0x40] ss:$16 sps:$4 sm:$0xff]  }
  0x40   :  { %345 = vmatpush1.bf16.msra.mxu0 %v3366_v11  ;;  %388 = vmatpush1.bf16.msra.mxu1 %v3368_v12  ;;  %4376 = vst [vmem:[#allocation33_spill] sm:$0xff] %v3400_v22  ;;  %4377 = vst [vmem:[#allocation34_spill] sm:$0xff] %v3404_v23  ;;  %v3406_v24 = vld [vmem:[#allocation9 + $0x48] ss:$16 sps:$4 sm:$0xff]   ;;  %v3410_v25 = vld [vmem:[#allocation9 + $0x24] ss:$16 sps:$4 sm:$0xff]  }
  0x41   :  { %346 = vmatprep.subr.bf16.mxu0 %v3372_v13  ;;  %389 = vmatprep.subr.bf16.mxu1 %v3376_v14  ;;  %4378 = vst [vmem:[#allocation35_spill] sm:$0xff] %v3406_v24  ;;  %4379 = vst [vmem:[#allocation36_spill] sm:$0xff] %v3410_v25  ;;  %v3412_v26 = vld [vmem:[#allocation9 + $0x2c] ss:$16 sps:$4 sm:$0xff]   ;;  %v3414_v27 = vld [vmem:[#allocation9 + $0x20] ss:$16 sps:$4 sm:$0xff]  }
  0x42   :  { %4380 = vst [vmem:[#allocation37_spill] sm:$0xff] %v3412_v26  ;;  %4381 = vst [vmem:[#allocation38_spill] sm:$0xff] %v3414_v27  ;;  %v3418_v28 = vld [vmem:[#allocation9 + $0x28] ss:$16 sps:$4 sm:$0xff]   ;;  %v3420_v29 = vld [vmem:[#allocation9 + $0x4] ss:$16 sps:$4 sm:$0xff]  }
  0x43   :  { %4382 = vst [vmem:[#allocation39_spill] sm:$0xff] %v3418_v28  ;;  %4383 = vst [vmem:[#allocation40_spill] sm:$0xff] %v3420_v29  ;;  %v3424_v30 = vld [vmem:[#allocation9 + $0xc] ss:$16 sps:$4 sm:$0xff]   ;;  %v3426_v31 = vld [vmem:[#allocation9] ss:$16 sps:$4 sm:$0xff]  }
  0x44   :  { %347 = vmatpush1.bf16.msra.mxu0 %v3378_v15  ;;  %390 = vmatpush1.bf16.msra.mxu1 %v3382_v16  ;;  %4384 = vst [vmem:[#allocation41_spill] sm:$0xff] %v3424_v30  ;;  %4385 = vst [vmem:[#allocation42_spill] sm:$0xff] %v3426_v31  ;;  %v3428_v32 = vld [vmem:[#allocation9 + $0x8] ss:$16 sps:$4 sm:$0xff]   ;;  %v3430_v33 = vld [vmem:[#allocation10] sm:$0xff] }
  0x45   :  { %348 = vmatprep.subr.bf16.mxu0 %v3384_v17  ;;  %391 = vmatprep.subr.bf16.mxu1 %v3388_v18  ;;  %4386 = vst [vmem:[#allocation43_spill] sm:$0xff] %v3428_v32  ;;  %v3438_v35 = vld [vmem:[#allocation7 + $0xe4] ss:$16 sps:$4 sm:$0xff]   ;;  %v3440_v36 = vld [vmem:[#allocation7 + $0xec] ss:$16 sps:$4 sm:$0xff]   ;;  %v179_v37 = vpack.c.bf16 %v3434_v34, %v3430_v33 }
  0x46   :  { %4387 = vst [vmem:[#allocation44_spill] sm:$0xff] %v3438_v35  ;;  %4388 = vst [vmem:[#allocation45_spill] sm:$0xff] %v3440_v36  ;;  %v3444_v38 = vld [vmem:[#allocation7 + $0xe0] ss:$16 sps:$4 sm:$0xff]   ;;  %v3448_v39 = vld [vmem:[#allocation7 + $0xe8] ss:$16 sps:$4 sm:$0xff]  }
  0x47   :  { %v3450_v40 = vld [vmem:[#allocation7 + $0xc4] ss:$16 sps:$4 sm:$0xff]   ;;  %v3454_v41 = vld [vmem:[#allocation7 + $0xcc] ss:$16 sps:$4 sm:$0xff]   ;;  %v3456_v42 = vld [vmem:[#allocation7 + $0xc0] ss:$16 sps:$4 sm:$0xff]  }
  0x48   :  { %349 = vmatpush1.bf16.msra.mxu0 %v3390_v19  ;;  %392 = vmatpush1.bf16.msra.mxu1 %v3392_v20  ;;  %v3460_v43 = vld [vmem:[#allocation7 + $0xc8] ss:$16 sps:$4 sm:$0xff]   ;;  %v3464_v44 = vld [vmem:[#allocation7 + $0xa4] ss:$16 sps:$4 sm:$0xff]   ;;  %v3466_v45 = vld [vmem:[#allocation7 + $0xac] ss:$16 sps:$4 sm:$0xff]  }
  0x49   :  { %350 = vmatprep.subr.bf16.mxu0 %v3396_v21  ;;  %393 = vmatprep.subr.bf16.mxu1 %v3400_v22  ;;  %v3470_v46 = vld [vmem:[#allocation7 + $0xa0] ss:$16 sps:$4 sm:$0xff]   ;;  %v3474_v47 = vld [vmem:[#allocation7 + $0xa8] ss:$16 sps:$4 sm:$0xff]   ;;  %v3476_v48 = vld [vmem:[#allocation7 + $0x84] ss:$16 sps:$4 sm:$0xff]  }
  0x4a   :  { %v3480_v49 = vld [vmem:[#allocation7 + $0x8c] ss:$16 sps:$4 sm:$0xff]   ;;  %v3482_v50 = vld [vmem:[#allocation7 + $0x80] ss:$16 sps:$4 sm:$0xff]   ;;  %v3484_v51 = vld [vmem:[#allocation7 + $0x88] ss:$16 sps:$4 sm:$0xff]  }
  0x4b   :  { %v3486_v52 = vld [vmem:[#allocation7 + $0x64] ss:$16 sps:$4 sm:$0xff]   ;;  %v3490_v53 = vld [vmem:[#allocation7 + $0x6c] ss:$16 sps:$4 sm:$0xff]   ;;  %v3494_v54 = vld [vmem:[#allocation7 + $0x60] ss:$16 sps:$4 sm:$0xff]  }
  0x4c   :  { %351 = vmatpush1.bf16.msra.mxu0 %v3404_v23  ;;  %394 = vmatpush1.bf16.msra.mxu1 %v3406_v24  ;;  %v3496_v55 = vld [vmem:[#allocation7 + $0x68] ss:$16 sps:$4 sm:$0xff]   ;;  %v3502_v56 = vld [vmem:[#allocation7 + $0x44] ss:$16 sps:$4 sm:$0xff]   ;;  %v3504_v57 = vld [vmem:[#allocation7 + $0x4c] ss:$16 sps:$4 sm:$0xff]  }
  0x4d   :  { %352 = vmatprep.subr.bf16.mxu0 %v3410_v25  ;;  %395 = vmatprep.subr.bf16.mxu1 %v3412_v26  ;;  %4389 = vst [vmem:[#allocation46_spill] sm:$0xff] %v3504_v57  ;;  %v3508_v58 = vld [vmem:[#allocation7 + $0x40] ss:$16 sps:$4 sm:$0xff]   ;;  %v3510_v59 = vld [vmem:[#allocation7 + $0x48] ss:$16 sps:$4 sm:$0xff]  }
  0x4e   :  { %4390 = vst [vmem:[#allocation47_spill] sm:$0xff] %v3508_v58  ;;  %4391 = vst [vmem:[#allocation48_spill] sm:$0xff] %v3510_v59  ;;  %v3514_v60 = vld [vmem:[#allocation7 + $0x24] ss:$16 sps:$4 sm:$0xff]   ;;  %v3516_v61 = vld [vmem:[#allocation7 + $0x2c] ss:$16 sps:$4 sm:$0xff]  }
  0x4f   :  { %v3520_v62 = vld [vmem:[#allocation7 + $0x20] ss:$16 sps:$4 sm:$0xff]   ;;  %v3522_v63 = vld [vmem:[#allocation7 + $0x28] ss:$16 sps:$4 sm:$0xff]  }
  0x50   :  { %353 = vmatpush1.bf16.msra.mxu0 %v3414_v27  ;;  %396 = vmatpush1.bf16.msra.mxu1 %v3418_v28 }
  0x51   :  { %354 = vmatprep.subr.bf16.mxu0 %v3420_v29  ;;  %397 = vmatprep.subr.bf16.mxu1 %v3424_v30 }
  0x54   :  { %355 = vmatpush1.bf16.msra.mxu0 %v3426_v31  ;;  %398 = vmatpush1.bf16.msra.mxu1 %v3428_v32 }
  0x55   :  { %592 = vmatprep.subr.bf16.mxu0 %v3438_v35  ;;  %635 = vmatprep.subr.bf16.mxu1 %v3440_v36 }
  0x57   :  { %373 = vmatmul.mubr.bf16.vlgmr.msra.gmra.mxu0 %v179_v37  ;;  %416 = vmatmul.mubr.bf16.vlgmr.msra.gmra.mxu1 %v179_v37  ;;  %v3526_v37 = vld [vmem:[#allocation7 + $0x4] ss:$16 sps:$4 sm:$0xff]  }
  0x58   :  { %593 = vmatpush1.bf16.msra.mxu0 %v3444_v38  ;;  %636 = vmatpush1.bf16.msra.mxu1 %v3448_v39 }
  0x59   :  { %594 = vmatprep.subr.bf16.mxu0 %v3450_v40  ;;  %637 = vmatprep.subr.bf16.mxu1 %v3454_v41 }
  0x5a   :  { %624 = vmatprep.mubr.bf16.mxu0 %v4253_v0  ;;  %667 = vmatprep.mubr.bf16.mxu1 %v4253_v0  ;;  %v3528_v0 = vld [vmem:[#allocation7 + $0xc] ss:$16 sps:$4 sm:$0xff]  }
  0x5b   :  { %4392 = vst [vmem:[#allocation49_spill] sm:$0xff] %v3528_v0 }
  0x5c   :  { %595 = vmatpush1.bf16.msra.mxu0 %v3456_v42  ;;  %638 = vmatpush1.bf16.msra.mxu1 %v3460_v43 }
  0x5d   :  { %596 = vmatprep.subr.bf16.mxu0 %v3464_v44  ;;  %639 = vmatprep.subr.bf16.mxu1 %v3466_v45 }
  0x60   :  { %597 = vmatpush1.bf16.msra.mxu0 %v3470_v46  ;;  %640 = vmatpush1.bf16.msra.mxu1 %v3474_v47 }
  0x61   :  { %598 = vmatprep.subr.bf16.mxu0 %v3476_v48  ;;  %641 = vmatprep.subr.bf16.mxu1 %v3480_v49 }
  0x64   :  { %599 = vmatpush1.bf16.msra.mxu0 %v3482_v50  ;;  %642 = vmatpush1.bf16.msra.mxu1 %v3484_v51 }
  0x65   :  { %600 = vmatprep.subr.bf16.mxu0 %v3486_v52  ;;  %643 = vmatprep.subr.bf16.mxu1 %v3490_v53 }
  0x68   :  { %601 = vmatpush1.bf16.msra.mxu0 %v3494_v54  ;;  %644 = vmatpush1.bf16.msra.mxu1 %v3496_v55 }
  0x69   :  { %602 = vmatprep.subr.bf16.mxu0 %v3502_v56  ;;  %645 = vmatprep.subr.bf16.mxu1 %v3504_v57  ;;  %v3532_v57 = vld [vmem:[#allocation7] ss:$16 sps:$4 sm:$0xff]  }
  0x6c   :  { %603 = vmatpush1.bf16.msra.mxu0 %v3508_v58  ;;  %646 = vmatpush1.bf16.msra.mxu1 %v3510_v59  ;;  %v3534_v58 = vld [vmem:[#allocation7 + $0x8] ss:$16 sps:$4 sm:$0xff]   ;;  %v2803_v59 = vld [vmem:[#allocation4] sm:$0xff]  }
  0x6d   :  { %604 = vmatprep.subr.bf16.mxu0 %v3514_v60  ;;  %647 = vmatprep.subr.bf16.mxu1 %v3516_v61 }
  0x70   :  { %605 = vmatpush1.bf16.msra.mxu0 %v3520_v62  ;;  %648 = vmatpush1.bf16.msra.mxu1 %v3522_v63 }
  0x71   :  { %606 = vmatprep.subr.bf16.mxu0 %v3526_v37  ;;  %649 = vmatprep.subr.bf16.mxu1 %v3528_v0  ;;  %v4393_v0 = vmov 0  }
  0x74   :  { %607 = vmatpush1.bf16.msra.mxu0 %v3532_v57  ;;  %650 = vmatpush1.bf16.msra.mxu1 %v3534_v58 }
  0x75   :  { %747 = vmatprep.subr.bf16.mxu0 %v3340_v1  ;;  %790 = vmatprep.subr.bf16.mxu1 %v3342_v2 }
  0x77   :  { %625 = vmatmul.mubr.bf16.vlgmr.msra.gmra.mxu0 %v2803_v59  ;;  %668 = vmatmul.mubr.bf16.vlgmr.msra.gmra.mxu1 %v2803_v59 }
  0x78   :  { %748 = vmatpush1.bf16.msra.mxu0 %v3345_v3  ;;  %791 = vmatpush1.bf16.msra.mxu1 %v3347_v4 }
  0x79   :  { %749 = vmatprep.subr.bf16.mxu0 %v3350_v5  ;;  %792 = vmatprep.subr.bf16.mxu1 %v3354_v6 }
  0x7a   :  { %779 = vmatprep.mubr.bf16.mxu0 %v4393_v0  ;;  %822 = vmatprep.mubr.bf16.mxu1 %v4393_v0 }
  0x7c   :  { %750 = vmatpush1.bf16.msra.mxu0 %v3356_v7  ;;  %793 = vmatpush1.bf16.msra.mxu1 %v3359_v8 }
  0x7d   :  { %751 = vmatprep.subr.bf16.mxu0 %v3362_v9  ;;  %794 = vmatprep.subr.bf16.mxu1 %v3364_v10 }
  0x80   :  { %752 = vmatpush1.bf16.msra.mxu0 %v3366_v11  ;;  %795 = vmatpush1.bf16.msra.mxu1 %v3368_v12 }
  0x81   :  { %753 = vmatprep.subr.bf16.mxu0 %v3372_v13  ;;  %796 = vmatprep.subr.bf16.mxu1 %v3376_v14 }
  0x84   :  { %754 = vmatpush1.bf16.msra.mxu0 %v3378_v15  ;;  %797 = vmatpush1.bf16.msra.mxu1 %v3382_v16 }
  0x85   :  { %755 = vmatprep.subr.bf16.mxu0 %v3384_v17  ;;  %798 = vmatprep.subr.bf16.mxu1 %v3388_v18 }
  0x88   :  { %756 = vmatpush1.bf16.msra.mxu0 %v3390_v19  ;;  %799 = vmatpush1.bf16.msra.mxu1 %v3392_v20 }
  0x89   :  { %757 = vmatprep.subr.bf16.mxu0 %v3396_v21  ;;  %800 = vmatprep.subr.bf16.mxu1 %v3400_v22 }
  0x8c   :  { %758 = vmatpush1.bf16.msra.mxu0 %v3404_v23  ;;  %801 = vmatpush1.bf16.msra.mxu1 %v3406_v24  ;;  %v153_v24 = vlaneseq }
  0x8d   :  { %759 = vmatprep.subr.bf16.mxu0 %v3410_v25  ;;  %802 = vmatprep.subr.bf16.mxu1 %v3412_v26 }
  0x90   :  { %760 = vmatpush1.bf16.msra.mxu0 %v3414_v27  ;;  %803 = vmatpush1.bf16.msra.mxu1 %v3418_v28  ;;  %v154_v27 = vshrl.u32 %v153_v24, 7 }
  0x91   :  { %761 = vmatprep.subr.bf16.mxu0 %v3420_v29  ;;  %804 = vmatprep.subr.bf16.mxu1 %v3424_v30  ;;  %v151_v30 = vld [vmem:[%s4250_s3] sm:$0xf]  ;;  %s3286_s3 = smov [#allocation12]  }
  0x92   :  { %v155_v21 = vsub.s32 0, %v154_v27  ;;  %v167_v7 = vsub.s32 3, %v154_v27  ;;  %s2489_s17 = sshll.u32 %s3286_s3, 4  ;;  %s2490_s17 = int_to_ptr.vmem [resolvable:$true] %s2489_s17 }
  0x93   :  { %s3247_s18 = scalar_lea.vmem %s2490_s17, 1024  ;;  %p3252_p7 = scmp.lt.s32.totalorder %s2490_s17, %s2490_s17 }
  0x94   :  { %762 = vmatpush1.bf16.msra.mxu0 %v3426_v31  ;;  %805 = vmatpush1.bf16.msra.mxu1 %v3428_v32  ;;  %v159_v31 = vsub.s32 1, %v154_v27  ;;  %v3579_v20 = vrot.slane %v151_v30, %v155_v21  ;;  %v3587_v6 = vrot.slane %v151_v30, %v167_v7  ;;  %p3248_p6 = scmp.ne.s32.totalorder %s2490_s17, %s3247_s18  ;;  %p3253_p8 = scmp.lt.s32.totalorder %s3247_s18, %s3247_s18 }
  0x95   :  { %839 = vmatprep.subr.bf16.mxu0 %v3438_v35  ;;  %882 = vmatprep.subr.bf16.mxu1 %v3440_v36 }
  0x96   :  { %v3581_v18 = vrot.slane %v151_v30, %v159_v31  ;;  %p3254_p9 = por %p3253_p8, %p3252_p7 }
  0x98   :  { %p3255_p10 = pnand %p3254_p9, %p3248_p6 }
 0x117   :  { %v374_v59 = vpop.f32.mrf.mxu0  ;;  %v417_v25 = vpop.f32.mrf.mxu1 }
 0x119   :  { %v376_v26 = vpop.f32.mrf.mxu0  ;;  %v419_v23 = vpop.f32.mrf.mxu1 }
 0x11b   :  { %v378_v22 = vpop.f32.mrf.mxu0  ;;  %v421_v28 = vpop.f32.mrf.mxu1 }
 0x11d   :  { %v380_v29 = vpop.f32.mrf.mxu0  ;;  %v423_v32 = vpop.f32.mrf.mxu1 }
 0x137   :  { %v626_v35 = vpop.f32.mrf.mxu0  ;;  %v669_v36 = vpop.f32.mrf.mxu1 }
 0x138   :  { %v627_v19 = vadd.f32 %v626_v35, %v374_v59  ;;  %v163_v59 = vsub.s32 2, %v154_v27 }
 0x139   :  { %v628_v17 = vpop.f32.mrf.mxu0  ;;  %v671_v15 = vpop.f32.mrf.mxu1 }
 0x13a   :  { %v678_v24 = vadd.f32 %v627_v19, %v3579_v20  ;;  %v629_v16 = vadd.f32 %v628_v17, %v376_v26 }
 0x13b   :  { %v630_v14 = vpop.f32.mrf.mxu0  ;;  %v673_v21 = vpop.f32.mrf.mxu1 }
 0x13c   :  { %v2568_v13 = vmul.f32 -1.442695, %v678_v24  ;;  %v679_v12 = vadd.f32 %v629_v16, %v3581_v18  ;;  %v631_v11 = vadd.f32 %v630_v14, %v378_v22  ;;  %v672_v24 = vadd.f32 %v671_v15, %v419_v23 }
 0x13d   :  { %v632_v10 = vpop.f32.mrf.mxu0  ;;  %v675_v26 = vpop.f32.mrf.mxu1  ;;  %v3589_v14 = vrot.slane %v151_v30, %v163_v59 }
 0x13e   :  { %2811 = vpow2.f32 %v2568_v13  ;;  %v2570_v9 = vmul.f32 -1.442695, %v679_v12  ;;  %v633_v8 = vadd.f32 %v632_v10, %v380_v29  ;;  %v682_v35 = vadd.f32 %v631_v11, %v3579_v20 }
 0x13f   :  { %v670_v12 = vadd.f32 %v669_v36, %v417_v25  ;;  %v676_v13 = vadd.f32 %v675_v26, %v423_v32  ;;  %v681_v10 = vadd.f32 %v672_v24, %v3587_v6 }
 0x140   :  { %2813 = vpow2.f32 %v2570_v9  ;;  %v683_v31 = vadd.f32 %v633_v8, %v3581_v18  ;;  %v2569_v19 = vmul.f32 -1.442695, %v682_v35  ;;  %v674_v8 = vadd.f32 %v673_v21, %v421_v28 }
 0x141   :  { %v680_v11 = vadd.f32 %v670_v12, %v3589_v14  ;;  %v685_v9 = vadd.f32 %v676_v13, %v3587_v6  ;;  %v2572_v22 = vmul.f32 -1.442695, %v681_v10 }
 0x142   :  { %v2571_v17 = vmul.f32 -1.442695, %v683_v31  ;;  %2815 = vpow2.f32 %v2569_v19  ;;  %v684_v23 = vadd.f32 %v674_v8, %v3589_v14 }
 0x143   :  { %v2573_v7 = vmul.f32 -1.442695, %v685_v9 }
 0x144   :  { %2817 = vpow2.f32 %v2571_v17 }
 0x145   :  { %2819 = vtanh.f32 %v680_v11 }
 0x14b   :  { %v2812_v16 = vpop.eup %2811 }
 0x14c   :  { %v692_v27 = vadd.f32 1.0, %v2812_v16 }
 0x14d   :  { %v2814_v29 = vpop.eup %2813 }
 0x14e   :  { %2821 = vrcp.f32 %v692_v27  ;;  %v704_v15 = vadd.f32 1.0, %v2814_v29 }
 0x14f   :  { %2823 = vpow2.f32 %v2572_v22  ;;  %v2816_v25 = vpop.eup %2815 }
 0x150   :  { %2825 = vrcp.f32 %v704_v15  ;;  %v693_v32 = vadd.f32 1.0, %v2816_v25  ;;  %v4395_v25 = vld [vmem:[#allocation47_spill] sm:$0xff] }
 0x151   :  { %v2818_v30 = vpop.eup %2817  ;;  %2827 = vpow2.f32 %v2573_v7 }
 0x152   :  { %2829 = vtanh.f32 %v684_v23  ;;  %v705_v36 = vadd.f32 1.0, %v2818_v30  ;;  %v2820_v28 = vpop.eup %2819  ;;  %v4396_v30 = vld [vmem:[#allocation48_spill] sm:$0xff] }
 0x153   :  { %2831 = vrcp.f32 %v693_v32  ;;  %v4397_v32 = vld [vmem:[#allocation49_spill] sm:$0xff] }
 0x154   :  { %2833 = vrcp.f32 %v705_v36  ;;  %v2804_v36 = vld [vmem:[#allocation4 + $0x8] sm:$0xff]  }
 0x15b   :  { %v2822_v21 = vpop.eup %2821 }
 0x15c   :  { %v2824_v35 = vpop.eup %2823  ;;  %v726_v19 = vmul.f32 %v2822_v21, %v2820_v28  ;;  %v4398_v28 = vld [vmem:[#allocation17_spill] sm:$0xff]  ;;  %v4399_v21 = vld [vmem:[#allocation18_spill] sm:$0xff] }
 0x15d   :  { %v2826_v31 = vpop.eup %2825  ;;  %v718_v24 = vadd.f32 1.0, %v2824_v35  ;;  %v4400_v35 = vld [vmem:[#allocation19_spill] sm:$0xff] }
 0x15e   :  { %v2828_v59 = vpop.eup %2827  ;;  %v724_v17 = vmul.f32 %v2826_v31, %v3430_v33  ;;  %v4403_v31 = vld [vmem:[#allocation22_spill] sm:$0xff] }
 0x15f   :  { %v2830_v26 = vpop.eup %2829  ;;  %v719_v11 = vadd.f32 1.0, %v2828_v59  ;;  %2835 = vrcp.f32 %v718_v24  ;;  %v4407_v59 = vld [vmem:[#allocation26_spill] sm:$0xff] }
 0x160   :  { %v2832_v12 = vpop.eup %2831  ;;  %v3596_v13 = vadd.f32 %v726_v19, %v724_v17  ;;  %v4408_v19 = vld [vmem:[#allocation27_spill] sm:$0xff]  ;;  %v4409_v17 = vld [vmem:[#allocation28_spill] sm:$0xff]  ;;  %v4411_v24 = vld [vmem:[#allocation30_spill] sm:$0xff] }
 0x161   :  { %v2834_v10 = vpop.eup %2833  ;;  %v727_v9 = vmul.f32 %v2832_v12, %v2830_v26  ;;  %v4410_v26 = vld [vmem:[#allocation29_spill] sm:$0xff]  ;;  %v4412_v12 = vld [vmem:[#allocation31_spill] sm:$0xff] }
 0x162   :  { %v725_v8 = vmul.f32 %v2834_v10, %v3434_v34  ;;  %2837 = vtanh.f32 %v3596_v13  ;;  %v4394_v34 = vld [vmem:[#allocation46_spill] sm:$0xff]  ;;  %v4413_v10 = vld [vmem:[#allocation32_spill] sm:$0xff] }
 0x163   :  { %2839 = vrcp.f32 %v719_v11  ;;  %v4414_v11 = vld [vmem:[#allocation33_spill] sm:$0xff] }
 0x164   :  { %v3599_v16 = vadd.f32 %v727_v9, %v725_v8  ;;  %v4415_v9 = vld [vmem:[#allocation34_spill] sm:$0xff]  ;;  %v4416_v8 = vld [vmem:[#allocation35_spill] sm:$0xff] }
 0x166   :  { %2841 = vtanh.f32 %v3599_v16 }
 0x16c   :  { %v2836_v22 = vpop.eup %2835 }
 0x16f   :  { %v2838_v33 = vpop.eup %2837 }
 0x170   :  { %v2840_v27 = vpop.eup %2839  ;;  %v732_v7 = vmul.f32 %v2838_v33, %v2836_v22  ;;  %v4417_v22 = vld [vmem:[#allocation36_spill] sm:$0xff]  ;;  %v4418_v33 = vld [vmem:[#allocation37_spill] sm:$0xff] }
 0x173   :  { %v2842_v29 = vpop.eup %2841 }
 0x174   :  { %v733_v15 = vmul.f32 %v2842_v29, %v2840_v27  ;;  %v4419_v27 = vld [vmem:[#allocation38_spill] sm:$0xff]  ;;  %v4420_v29 = vld [vmem:[#allocation39_spill] sm:$0xff] }
 0x176   :  { %v734_v23 = vpack.c.bf16 %v733_v15, %v732_v7  ;;  %v4421_v7 = vld [vmem:[#allocation40_spill] sm:$0xff]  ;;  %v4422_v15 = vld [vmem:[#allocation41_spill] sm:$0xff] }
 0x178   :  { %2659 = vst [vmem:[#allocation12] sm:$0xff] %v734_v23   ;;  %780 = vmatmul.mubr.bf16.vlgmr.msra.gmra.mxu0 %v734_v23  ;;  %823 = vmatmul.mubr.bf16.vlgmr.msra.gmra.mxu1 %v734_v23  ;;  %v4423_v23 = vld [vmem:[#allocation42_spill] sm:$0xff] }
 0x179   :  { %840 = vmatpush1.bf16.msra.mxu0 %v3444_v38  ;;  %883 = vmatpush1.bf16.msra.mxu1 %v3448_v39 }
 0x17a   :  { %841 = vmatprep.subr.bf16.mxu0 %v3450_v40  ;;  %884 = vmatprep.subr.bf16.mxu1 %v3454_v41 }
 0x17b   :  { %871 = vmatprep.mubr.bf16.mxu0 %v4393_v0  ;;  %914 = vmatprep.mubr.bf16.mxu1 %v4393_v0 }
 0x17d   :  { %842 = vmatpush1.bf16.msra.mxu0 %v3456_v42  ;;  %885 = vmatpush1.bf16.msra.mxu1 %v3460_v43 }
 0x17e   :  { %843 = vmatprep.subr.bf16.mxu0 %v3464_v44  ;;  %886 = vmatprep.subr.bf16.mxu1 %v3466_v45 }
 0x181   :  { %844 = vmatpush1.bf16.msra.mxu0 %v3470_v46  ;;  %887 = vmatpush1.bf16.msra.mxu1 %v3474_v47 }
 0x182   :  { %845 = vmatprep.subr.bf16.mxu0 %v3476_v48  ;;  %888 = vmatprep.subr.bf16.mxu1 %v3480_v49 }
 0x185   :  { %846 = vmatpush1.bf16.msra.mxu0 %v3482_v50  ;;  %889 = vmatpush1.bf16.msra.mxu1 %v3484_v51 }
 0x186   :  { %847 = vmatprep.subr.bf16.mxu0 %v3486_v52  ;;  %890 = vmatprep.subr.bf16.mxu1 %v3490_v53 }
 0x189   :  { %848 = vmatpush1.bf16.msra.mxu0 %v3494_v54  ;;  %891 = vmatpush1.bf16.msra.mxu1 %v3496_v55 }
 0x18a   :  { %849 = vmatprep.subr.bf16.mxu0 %v3502_v56  ;;  %892 = vmatprep.subr.bf16.mxu1 %v4394_v34 }
 0x18d   :  { %850 = vmatpush1.bf16.msra.mxu0 %v4395_v25  ;;  %893 = vmatpush1.bf16.msra.mxu1 %v4396_v30 }
 0x18e   :  { %851 = vmatprep.subr.bf16.mxu0 %v3514_v60  ;;  %894 = vmatprep.subr.bf16.mxu1 %v3516_v61 }
 0x191   :  { %852 = vmatpush1.bf16.msra.mxu0 %v3520_v62  ;;  %895 = vmatpush1.bf16.msra.mxu1 %v3522_v63 }
 0x192   :  { %853 = vmatprep.subr.bf16.mxu0 %v3526_v37  ;;  %896 = vmatprep.subr.bf16.mxu1 %v4397_v32 }
 0x195   :  { %854 = vmatpush1.bf16.msra.mxu0 %v3532_v57  ;;  %897 = vmatpush1.bf16.msra.mxu1 %v3534_v58 }
 0x196   :  { %995 = vmatprep.subr.bf16.mxu0 %v3340_v1  ;;  %1038 = vmatprep.subr.bf16.mxu1 %v3342_v2  ;;  %v4401_v1 = vld [vmem:[#allocation20_spill] sm:$0xff]  ;;  %v4402_v2 = vld [vmem:[#allocation21_spill] sm:$0xff] }
 0x198   :  { %872 = vmatmul.mubr.bf16.vlgmr.msra.gmra.mxu0 %v2804_v36  ;;  %915 = vmatmul.mubr.bf16.vlgmr.msra.gmra.mxu1 %v2804_v36  ;;  %v4424_v36 = vld [vmem:[#allocation43_spill] sm:$0xff] }
 0x199   :  { %996 = vmatpush1.bf16.msra.mxu0 %v3345_v3  ;;  %1039 = vmatpush1.bf16.msra.mxu1 %v3347_v4  ;;  %v4404_v3 = vld [vmem:[#allocation23_spill] sm:$0xff]  ;;  %v4405_v4 = vld [vmem:[#allocation24_spill] sm:$0xff] }
 0x19a   :  { %997 = vmatprep.subr.bf16.mxu0 %v3350_v5  ;;  %1040 = vmatprep.subr.bf16.mxu1 %v4398_v28  ;;  %v4406_v5 = vld [vmem:[#allocation25_spill] sm:$0xff]  ;;  %v4425_v28 = vld [vmem:[#allocation44_spill] sm:$0xff] }
 0x19b   :  { %1027 = vmatprep.mubr.bf16.mxu0 %v4393_v0  ;;  %1070 = vmatprep.mubr.bf16.mxu1 %v4393_v0 }
 0x19d   :  { %998 = vmatpush1.bf16.msra.mxu0 %v4399_v21  ;;  %1041 = vmatpush1.bf16.msra.mxu1 %v4400_v35  ;;  %v4426_v21 = vld [vmem:[#allocation45_spill] sm:$0xff] }
 0x19e   :  { %999 = vmatprep.subr.bf16.mxu0 %v4401_v1  ;;  %1042 = vmatprep.subr.bf16.mxu1 %v4402_v2 }
 0x1a1   :  { %1000 = vmatpush1.bf16.msra.mxu0 %v4403_v31  ;;  %1043 = vmatpush1.bf16.msra.mxu1 %v4404_v3 }
 0x1a2   :  { %1001 = vmatprep.subr.bf16.mxu0 %v4405_v4  ;;  %1044 = vmatprep.subr.bf16.mxu1 %v4406_v5 }
 0x1a5   :  { %1002 = vmatpush1.bf16.msra.mxu0 %v4407_v59  ;;  %1045 = vmatpush1.bf16.msra.mxu1 %v4408_v19 }
 0x1a6   :  { %1003 = vmatprep.subr.bf16.mxu0 %v4409_v17  ;;  %1046 = vmatprep.subr.bf16.mxu1 %v4410_v26 }
 0x1a9   :  { %1004 = vmatpush1.bf16.msra.mxu0 %v4411_v24  ;;  %1047 = vmatpush1.bf16.msra.mxu1 %v4412_v12 }
 0x1aa   :  { %1005 = vmatprep.subr.bf16.mxu0 %v4413_v10  ;;  %1048 = vmatprep.subr.bf16.mxu1 %v4414_v11 }
 0x1ad   :  { %1006 = vmatpush1.bf16.msra.mxu0 %v4415_v9  ;;  %1049 = vmatpush1.bf16.msra.mxu1 %v4416_v8 }
 0x1ae   :  { %1007 = vmatprep.subr.bf16.mxu0 %v4417_v22  ;;  %1050 = vmatprep.subr.bf16.mxu1 %v4418_v33 }
 0x1b1   :  { %1008 = vmatpush1.bf16.msra.mxu0 %v4419_v27  ;;  %1051 = vmatpush1.bf16.msra.mxu1 %v4420_v29 }
 0x1b2   :  { %1009 = vmatprep.subr.bf16.mxu0 %v4421_v7  ;;  %1052 = vmatprep.subr.bf16.mxu1 %v4422_v15 }
 0x1b5   :  { %1010 = vmatpush1.bf16.msra.mxu0 %v4423_v23  ;;  %1053 = vmatpush1.bf16.msra.mxu1 %v4424_v36 }
 0x1b6   :  { %1087 = vmatprep.subr.bf16.mxu0 %v4425_v28  ;;  %1130 = vmatprep.subr.bf16.mxu1 %v4426_v21 }
 0x238   :  { %v781_v35 = vpop.f32.mrf.mxu0  ;;  %v824_v1 = vpop.f32.mrf.mxu1 }
 0x23a   :  { %v783_v2 = vpop.f32.mrf.mxu0  ;;  %v826_v31 = vpop.f32.mrf.mxu1 }
 0x23c   :  { %v785_v3 = vpop.f32.mrf.mxu0  ;;  %v828_v4 = vpop.f32.mrf.mxu1 }
 0x23e   :  { %v787_v5 = vpop.f32.mrf.mxu0  ;;  %v830_v59 = vpop.f32.mrf.mxu1 }
 0x258   :  { %v873_v19 = vpop.f32.mrf.mxu0  ;;  %v916_v17 = vpop.f32.mrf.mxu1 }
 0x259   :  { %v874_v26 = vadd.f32 %v873_v19, %v781_v35 }
 0x25a   :  { %v875_v15 = vpop.f32.mrf.mxu0  ;;  %v918_v36 = vpop.f32.mrf.mxu1 }
 0x25b   :  { %v925_v23 = vadd.f32 %v874_v26, %v3579_v20  ;;  %v876_v7 = vadd.f32 %v875_v15, %v783_v2  ;;  %v919_v15 = vadd.f32 %v918_v36, %v826_v31 }
 0x25c   :  { %v877_v29 = vpop.f32.mrf.mxu0  ;;  %v920_v8 = vpop.f32.mrf.mxu1 }
 0x25d   :  { %v2577_v28 = vmul.f32 -1.442695, %v925_v23  ;;  %v926_v21 = vadd.f32 %v876_v7, %v3581_v18  ;;  %v878_v27 = vadd.f32 %v877_v29, %v785_v3  ;;  %v917_v23 = vadd.f32 %v916_v17, %v824_v1 }
 0x25e   :  { %v879_v33 = vpop.f32.mrf.mxu0  ;;  %v922_v26 = vpop.f32.mrf.mxu1  ;;  %v928_v29 = vadd.f32 %v919_v15, %v3587_v6 }
 0x25f   :  { %2843 = vpow2.f32 %v2577_v28  ;;  %v2579_v22 = vmul.f32 -1.442695, %v926_v21  ;;  %v880_v9 = vadd.f32 %v879_v33, %v787_v5  ;;  %v929_v11 = vadd.f32 %v878_v27, %v3579_v20 }
 0x260   :  { %v923_v2 = vadd.f32 %v922_v26, %v830_v59  ;;  %v927_v7 = vadd.f32 %v917_v23, %v3589_v14  ;;  %v921_v33 = vadd.f32 %v920_v8, %v828_v4  ;;  %v2581_v27 = vmul.f32 -1.442695, %v928_v29 }
 0x261   :  { %2845 = vpow2.f32 %v2579_v22  ;;  %v930_v35 = vadd.f32 %v880_v9, %v3581_v18  ;;  %v2578_v19 = vmul.f32 -1.442695, %v929_v11 }
 0x262   :  { %v932_v28 = vadd.f32 %v923_v2, %v3587_v6  ;;  %v931_v36 = vadd.f32 %v921_v33, %v3589_v14 }
 0x263   :  { %v2580_v10 = vmul.f32 -1.442695, %v930_v35  ;;  %2847 = vpow2.f32 %v2578_v19 }
 0x264   :  { %v2582_v11 = vmul.f32 -1.442695, %v932_v28 }
 0x265   :  { %2849 = vpow2.f32 %v2580_v10 }
 0x266   :  { %2851 = vtanh.f32 %v927_v7 }
 0x26c   :  { %v2844_v21 = vpop.eup %2843 }
 0x26d   :  { %v939_v22 = vadd.f32 1.0, %v2844_v21 }
 0x26e   :  { %v2846_v3 = vpop.eup %2845 }
 0x26f   :  { %2853 = vrcp.f32 %v939_v22  ;;  %v951_v9 = vadd.f32 1.0, %v2846_v3 }
 0x270   :  { %2855 = vpow2.f32 %v2581_v27  ;;  %v2848_v10 = vpop.eup %2847 }
 0x271   :  { %2857 = vrcp.f32 %v951_v9  ;;  %v940_v31 = vadd.f32 1.0, %v2848_v10 }
 0x272   :  { %v2850_v1 = vpop.eup %2849  ;;  %2859 = vpow2.f32 %v2582_v11 }
 0x273   :  { %2861 = vtanh.f32 %v931_v36  ;;  %v952_v5 = vadd.f32 1.0, %v2850_v1  ;;  %v2852_v8 = vpop.eup %2851  ;;  %v4443_v1 = vld [vmem:[#allocation32_spill] sm:$0xff] }
 0x274   :  { %2863 = vrcp.f32 %v940_v31  ;;  %v4444_v31 = vld [vmem:[#allocation33_spill] sm:$0xff] }
 0x275   :  { %2865 = vrcp.f32 %v952_v5  ;;  %v4445_v5 = vld [vmem:[#allocation34_spill] sm:$0xff] }
 0x27c   :  { %v2854_v4 = vpop.eup %2853 }
 0x27d   :  { %v2856_v59 = vpop.eup %2855  ;;  %v973_v19 = vmul.f32 %v2854_v4, %v2852_v8  ;;  %v4446_v8 = vld [vmem:[#allocation35_spill] sm:$0xff]  ;;  %v4447_v4 = vld [vmem:[#allocation36_spill] sm:$0xff] }
 0x27e   :  { %v2858_v17 = vpop.eup %2857  ;;  %v965_v23 = vadd.f32 1.0, %v2856_v59  ;;  %v4448_v59 = vld [vmem:[#allocation37_spill] sm:$0xff] }
 0x27f   :  { %v2860_v35 = vpop.eup %2859  ;;  %v971_v26 = vmul.f32 %v2858_v17, %v3596_v13  ;;  %v4449_v17 = vld [vmem:[#allocation38_spill] sm:$0xff] }
 0x280   :  { %v2862_v15 = vpop.eup %2861  ;;  %v966_v28 = vadd.f32 1.0, %v2860_v35  ;;  %2867 = vrcp.f32 %v965_v23  ;;  %v4450_v35 = vld [vmem:[#allocation39_spill] sm:$0xff]  ;;  %v4456_v23 = vld [vmem:[#allocation45_spill] sm:$0xff] }
 0x281   :  { %v2864_v2 = vpop.eup %2863  ;;  %v3680_v29 = vadd.f32 %v973_v19, %v971_v26  ;;  %v4451_v19 = vld [vmem:[#allocation40_spill] sm:$0xff]  ;;  %v4454_v26 = vld [vmem:[#allocation43_spill] sm:$0xff] }
 0x282   :  { %v2866_v7 = vpop.eup %2865  ;;  %v974_v33 = vmul.f32 %v2864_v2, %v2862_v15  ;;  %v4455_v15 = vld [vmem:[#allocation44_spill] sm:$0xff] }
 0x283   :  { %v972_v21 = vmul.f32 %v2866_v7, %v3599_v16  ;;  %2869 = vtanh.f32 %v3680_v29  ;;  %v3772_v16 = vld [vmem:[#allocation9 + $0x6c] ss:$16 sps:$4 sm:$0xff]  }
 0x284   :  { %2871 = vrcp.f32 %v966_v28  ;;  %4442 = vst [vmem:[#allocation28_spill] sm:$0xff] %v3772_v16 }
 0x285   :  { %v3683_v27 = vadd.f32 %v974_v33, %v972_v21 }
 0x287   :  { %2873 = vtanh.f32 %v3683_v27 }
 0x28d   :  { %v2868_v22 = vpop.eup %2867 }
 0x290   :  { %v2870_v13 = vpop.eup %2869 }
 0x291   :  { %v2872_v3 = vpop.eup %2871  ;;  %v979_v9 = vmul.f32 %v2870_v13, %v2868_v22 }
 0x294   :  { %v2874_v11 = vpop.eup %2873 }
 0x295   :  { %v980_v36 = vmul.f32 %v2874_v11, %v2872_v3 }
 0x297   :  { %v981_v10 = vpack.c.bf16 %v980_v36, %v979_v9 }
 0x299   :  { %2664 = vst [vmem:[#allocation12 + $0x8] sm:$0xff] %v981_v10   ;;  %1028 = vmatmul.mubr.bf16.vlgmr.msra.gmra.mxu0 %v981_v10  ;;  %1071 = vmatmul.mubr.bf16.vlgmr.msra.gmra.mxu1 %v981_v10 }
 0x29a   :  { %1088 = vmatpush1.bf16.msra.mxu0 %v3444_v38  ;;  %1131 = vmatpush1.bf16.msra.mxu1 %v3448_v39  ;;  %v2805_v38 = vld [vmem:[#allocation4 + $0x10] sm:$0xff]  }
 0x29b   :  { %1089 = vmatprep.subr.bf16.mxu0 %v3450_v40  ;;  %1132 = vmatprep.subr.bf16.mxu1 %v3454_v41  ;;  %v3719_v39 = vld [vmem:[#allocation9 + $0xe4] ss:$16 sps:$4 sm:$0xff]   ;;  %v3722_v40 = vld [vmem:[#allocation9 + $0xec] ss:$16 sps:$4 sm:$0xff]   ;;  %v3725_v41 = vld [vmem:[#allocation9 + $0xe0] ss:$16 sps:$4 sm:$0xff]  }
 0x29c   :  { %1119 = vmatprep.mubr.bf16.mxu0 %v4393_v0  ;;  %1162 = vmatprep.mubr.bf16.mxu1 %v4393_v0  ;;  %4427 = vst [vmem:[#allocation46_spill] sm:$0xff] %v3725_v41 }
 0x29e   :  { %1090 = vmatpush1.bf16.msra.mxu0 %v3456_v42  ;;  %1133 = vmatpush1.bf16.msra.mxu1 %v3460_v43  ;;  %v3728_v42 = vld [vmem:[#allocation9 + $0xe8] ss:$16 sps:$4 sm:$0xff]   ;;  %v3731_v43 = vld [vmem:[#allocation9 + $0xc4] ss:$16 sps:$4 sm:$0xff]  }
 0x29f   :  { %1091 = vmatprep.subr.bf16.mxu0 %v3464_v44  ;;  %1134 = vmatprep.subr.bf16.mxu1 %v3466_v45  ;;  %4428 = vst [vmem:[#allocation47_spill] sm:$0xff] %v3728_v42  ;;  %4429 = vst [vmem:[#allocation48_spill] sm:$0xff] %v3731_v43  ;;  %v3734_v44 = vld [vmem:[#allocation9 + $0xcc] ss:$16 sps:$4 sm:$0xff]   ;;  %v3739_v45 = vld [vmem:[#allocation9 + $0xc0] ss:$16 sps:$4 sm:$0xff]  }
 0x2a0   :  { %4430 = vst [vmem:[#allocation49_spill] sm:$0xff] %v3734_v44  ;;  %4431 = vst [vmem:[#allocation17_spill] sm:$0xff] %v3739_v45 }
 0x2a2   :  { %1092 = vmatpush1.bf16.msra.mxu0 %v3470_v46  ;;  %1135 = vmatpush1.bf16.msra.mxu1 %v3474_v47  ;;  %v3742_v46 = vld [vmem:[#allocation9 + $0xc8] ss:$16 sps:$4 sm:$0xff]   ;;  %v3745_v47 = vld [vmem:[#allocation9 + $0xa4] ss:$16 sps:$4 sm:$0xff]  }
 0x2a3   :  { %1093 = vmatprep.subr.bf16.mxu0 %v3476_v48  ;;  %1136 = vmatprep.subr.bf16.mxu1 %v3480_v49  ;;  %4432 = vst [vmem:[#allocation18_spill] sm:$0xff] %v3742_v46  ;;  %4433 = vst [vmem:[#allocation19_spill] sm:$0xff] %v3745_v47  ;;  %v3748_v48 = vld [vmem:[#allocation9 + $0xac] ss:$16 sps:$4 sm:$0xff]   ;;  %v3751_v49 = vld [vmem:[#allocation9 + $0xa0] ss:$16 sps:$4 sm:$0xff]  }
 0x2a4   :  { %4434 = vst [vmem:[#allocation20_spill] sm:$0xff] %v3748_v48  ;;  %4435 = vst [vmem:[#allocation21_spill] sm:$0xff] %v3751_v49 }
 0x2a6   :  { %1094 = vmatpush1.bf16.msra.mxu0 %v3482_v50  ;;  %1137 = vmatpush1.bf16.msra.mxu1 %v3484_v51  ;;  %v3754_v50 = vld [vmem:[#allocation9 + $0xa8] ss:$16 sps:$4 sm:$0xff]   ;;  %v3757_v51 = vld [vmem:[#allocation9 + $0x84] ss:$16 sps:$4 sm:$0xff]  }
 0x2a7   :  { %1095 = vmatprep.subr.bf16.mxu0 %v3486_v52  ;;  %1138 = vmatprep.subr.bf16.mxu1 %v3490_v53  ;;  %4436 = vst [vmem:[#allocation22_spill] sm:$0xff] %v3754_v50  ;;  %4437 = vst [vmem:[#allocation23_spill] sm:$0xff] %v3757_v51  ;;  %v3760_v52 = vld [vmem:[#allocation9 + $0x8c] ss:$16 sps:$4 sm:$0xff]   ;;  %v3763_v53 = vld [vmem:[#allocation9 + $0x80] ss:$16 sps:$4 sm:$0xff]  }
 0x2a8   :  { %4438 = vst [vmem:[#allocation24_spill] sm:$0xff] %v3760_v52  ;;  %4439 = vst [vmem:[#allocation25_spill] sm:$0xff] %v3763_v53 }
 0x2aa   :  { %1096 = vmatpush1.bf16.msra.mxu0 %v3494_v54  ;;  %1139 = vmatpush1.bf16.msra.mxu1 %v3496_v55  ;;  %v3766_v54 = vld [vmem:[#allocation9 + $0x88] ss:$16 sps:$4 sm:$0xff]   ;;  %v3769_v55 = vld [vmem:[#allocation9 + $0x64] ss:$16 sps:$4 sm:$0xff]  }
 0x2ab   :  { %1097 = vmatprep.subr.bf16.mxu0 %v3502_v56  ;;  %1140 = vmatprep.subr.bf16.mxu1 %v4394_v34  ;;  %4440 = vst [vmem:[#allocation26_spill] sm:$0xff] %v3766_v54  ;;  %4441 = vst [vmem:[#allocation27_spill] sm:$0xff] %v3769_v55 }
 0x2ae   :  { %1098 = vmatpush1.bf16.msra.mxu0 %v4395_v25  ;;  %1141 = vmatpush1.bf16.msra.mxu1 %v4396_v30 }
 0x2af   :  { %1099 = vmatprep.subr.bf16.mxu0 %v3514_v60  ;;  %1142 = vmatprep.subr.bf16.mxu1 %v3516_v61 }
 0x2b2   :  { %1100 = vmatpush1.bf16.msra.mxu0 %v3520_v62  ;;  %1143 = vmatpush1.bf16.msra.mxu1 %v3522_v63 }
 0x2b3   :  { %1101 = vmatprep.subr.bf16.mxu0 %v3526_v37  ;;  %1144 = vmatprep.subr.bf16.mxu1 %v4397_v32 }
 0x2b6   :  { %1102 = vmatpush1.bf16.msra.mxu0 %v3532_v57  ;;  %1145 = vmatpush1.bf16.msra.mxu1 %v3534_v58 }
 0x2b7   :  { %1243 = vmatprep.subr.bf16.mxu0 %v3719_v39  ;;  %1286 = vmatprep.subr.bf16.mxu1 %v3722_v40 }
 0x2b9   :  { %1120 = vmatmul.mubr.bf16.vlgmr.msra.gmra.mxu0 %v2805_v38  ;;  %1163 = vmatmul.mubr.bf16.vlgmr.msra.gmra.mxu1 %v2805_v38 }
 0x2ba   :  { %1244 = vmatpush1.bf16.msra.mxu0 %v3725_v41  ;;  %1287 = vmatpush1.bf16.msra.mxu1 %v3728_v42 }
 0x2bb   :  { %1245 = vmatprep.subr.bf16.mxu0 %v3731_v43  ;;  %1288 = vmatprep.subr.bf16.mxu1 %v3734_v44 }
 0x2bc   :  { %1275 = vmatprep.mubr.bf16.mxu0 %v4393_v0  ;;  %1318 = vmatprep.mubr.bf16.mxu1 %v4393_v0 }
 0x2be   :  { %1246 = vmatpush1.bf16.msra.mxu0 %v3739_v45  ;;  %1289 = vmatpush1.bf16.msra.mxu1 %v3742_v46 }
 0x2bf   :  { %1247 = vmatprep.subr.bf16.mxu0 %v3745_v47  ;;  %1290 = vmatprep.subr.bf16.mxu1 %v3748_v48 }
 0x2c2   :  { %1248 = vmatpush1.bf16.msra.mxu0 %v3751_v49  ;;  %1291 = vmatpush1.bf16.msra.mxu1 %v3754_v50 }
 0x2c3   :  { %1249 = vmatprep.subr.bf16.mxu0 %v3757_v51  ;;  %1292 = vmatprep.subr.bf16.mxu1 %v3760_v52 }
 0x2c6   :  { %1250 = vmatpush1.bf16.msra.mxu0 %v3763_v53  ;;  %1293 = vmatpush1.bf16.msra.mxu1 %v3766_v54 }
 0x2c7   :  { %1251 = vmatprep.subr.bf16.mxu0 %v3769_v55  ;;  %1294 = vmatprep.subr.bf16.mxu1 %v3772_v16 }
 0x2ca   :  { %1252 = vmatpush1.bf16.msra.mxu0 %v4411_v24  ;;  %1295 = vmatpush1.bf16.msra.mxu1 %v4412_v12  ;;  %v4452_v24 = vld [vmem:[#allocation41_spill] sm:$0xff]  ;;  %v4453_v12 = vld [vmem:[#allocation42_spill] sm:$0xff] }
 0x2cb   :  { %1253 = vmatprep.subr.bf16.mxu0 %v4443_v1  ;;  %1296 = vmatprep.subr.bf16.mxu1 %v4444_v31 }
 0x2ce   :  { %1254 = vmatpush1.bf16.msra.mxu0 %v4445_v5  ;;  %1297 = vmatpush1.bf16.msra.mxu1 %v4446_v8 }
 0x2cf   :  { %1255 = vmatprep.subr.bf16.mxu0 %v4447_v4  ;;  %1298 = vmatprep.subr.bf16.mxu1 %v4448_v59 }
 0x2d2   :  { %1256 = vmatpush1.bf16.msra.mxu0 %v4449_v17  ;;  %1299 = vmatpush1.bf16.msra.mxu1 %v4450_v35 }
 0x2d3   :  { %1257 = vmatprep.subr.bf16.mxu0 %v4451_v19  ;;  %1300 = vmatprep.subr.bf16.mxu1 %v4452_v24 }
 0x2d6   :  { %1258 = vmatpush1.bf16.msra.mxu0 %v4453_v12  ;;  %1301 = vmatpush1.bf16.msra.mxu1 %v4454_v26 }
 0x2d7   :  { %1335 = vmatprep.subr.bf16.mxu0 %v4455_v15  ;;  %1378 = vmatprep.subr.bf16.mxu1 %v4456_v23 }
 0x359   :  { %v1029_v2 = vpop.f32.mrf.mxu0  ;;  %v1072_v7 = vpop.f32.mrf.mxu1 }
 0x35b   :  { %v1031_v28 = vpop.f32.mrf.mxu0  ;;  %v1074_v33 = vpop.f32.mrf.mxu1 }
 0x35d   :  { %v1033_v21 = vpop.f32.mrf.mxu0  ;;  %v1076_v22 = vpop.f32.mrf.mxu1 }
 0x35f   :  { %v1035_v13 = vpop.f32.mrf.mxu0  ;;  %v1078_v3 = vpop.f32.mrf.mxu1 }
 0x379   :  { %v1121_v11 = vpop.f32.mrf.mxu0  ;;  %v1164_v9 = vpop.f32.mrf.mxu1 }
 0x37a   :  { %v1122_v36 = vadd.f32 %v1121_v11, %v1029_v2  ;;  %v1165_v11 = vadd.f32 %v1164_v9, %v1072_v7 }
 0x37b   :  { %v1123_v10 = vpop.f32.mrf.mxu0  ;;  %v1166_v31 = vpop.f32.mrf.mxu1 }
 0x37c   :  { %v1173_v38 = vadd.f32 %v1122_v36, %v3579_v20  ;;  %v1124_v1 = vadd.f32 %v1123_v10, %v1031_v28  ;;  %v1167_v28 = vadd.f32 %v1166_v31, %v1074_v33  ;;  %v1175_v10 = vadd.f32 %v1165_v11, %v3589_v14 }
 0x37d   :  { %v1125_v5 = vpop.f32.mrf.mxu0  ;;  %v1168_v19 = vpop.f32.mrf.mxu1 }
 0x37e   :  { %v2586_v8 = vmul.f32 -1.442695, %v1173_v38  ;;  %v1174_v4 = vadd.f32 %v1124_v1, %v3581_v18  ;;  %v1126_v59 = vadd.f32 %v1125_v5, %v1033_v21  ;;  %v1176_v21 = vadd.f32 %v1167_v28, %v3587_v6 }
 0x37f   :  { %v1127_v17 = vpop.f32.mrf.mxu0  ;;  %v1170_v2 = vpop.f32.mrf.mxu1 }
 0x380   :  { %2875 = vpow2.f32 %v2586_v8  ;;  %v2588_v35 = vmul.f32 -1.442695, %v1174_v4  ;;  %v1128_v24 = vadd.f32 %v1127_v17, %v1035_v13  ;;  %v1177_v12 = vadd.f32 %v1126_v59, %v3579_v20 }
 0x381   :  { %v1171_v36 = vadd.f32 %v1170_v2, %v1078_v3  ;;  %v1169_v13 = vadd.f32 %v1168_v19, %v1076_v22  ;;  %v2590_v5 = vmul.f32 -1.442695, %v1176_v21 }
 0x382   :  { %2877 = vpow2.f32 %v2588_v35  ;;  %v1178_v26 = vadd.f32 %v1128_v24, %v3581_v18  ;;  %v2587_v15 = vmul.f32 -1.442695, %v1177_v12 }
 0x383   :  { %v1180_v38 = vadd.f32 %v1171_v36, %v3587_v6  ;;  %v1179_v33 = vadd.f32 %v1169_v13, %v3589_v14 }
 0x384   :  { %v2589_v23 = vmul.f32 -1.442695, %v1178_v26  ;;  %2879 = vpow2.f32 %v2587_v15 }
 0x385   :  { %v2591_v59 = vmul.f32 -1.442695, %v1180_v38 }
 0x386   :  { %2881 = vpow2.f32 %v2589_v23 }
 0x387   :  { %2883 = vtanh.f32 %v1175_v10 }
 0x38d   :  { %v2876_v1 = vpop.eup %2875 }
 0x38e   :  { %v1187_v8 = vadd.f32 1.0, %v2876_v1 }
 0x38f   :  { %v2878_v4 = vpop.eup %2877 }
 0x390   :  { %2885 = vrcp.f32 %v1187_v8  ;;  %v1199_v17 = vadd.f32 1.0, %v2878_v4 }
 0x391   :  { %2887 = vpow2.f32 %v2590_v5  ;;  %v2880_v7 = vpop.eup %2879 }
 0x392   :  { %2889 = vrcp.f32 %v1199_v17  ;;  %v1188_v9 = vadd.f32 1.0, %v2880_v7  ;;  %v3813_v7 = vld [vmem:[#allocation7 + $0xc4] ss:$16 sps:$4 sm:$0xff]  }
 0x393   :  { %v2882_v3 = vpop.eup %2881  ;;  %2891 = vpow2.f32 %v2591_v59 }
 0x394   :  { %2893 = vtanh.f32 %v1179_v33  ;;  %v1200_v31 = vadd.f32 1.0, %v2882_v3  ;;  %v2884_v22 = vpop.eup %2883  ;;  %v3807_v33 = vld [vmem:[#allocation7 + $0xe0] ss:$16 sps:$4 sm:$0xff]   ;;  %v3816_v3 = vld [vmem:[#allocation7 + $0xcc] ss:$16 sps:$4 sm:$0xff]  }
 0x395   :  { %2895 = vrcp.f32 %v1188_v9  ;;  %v3821_v9 = vld [vmem:[#allocation7 + $0xc0] ss:$16 sps:$4 sm:$0xff]  }
 0x396   :  { %2897 = vrcp.f32 %v1200_v31  ;;  %v3824_v31 = vld [vmem:[#allocation7 + $0xc8] ss:$16 sps:$4 sm:$0xff]  }
 0x39d   :  { %v2886_v35 = vpop.eup %2885 }
 0x39e   :  { %v2888_v19 = vpop.eup %2887  ;;  %v1221_v26 = vmul.f32 %v2886_v35, %v2884_v22  ;;  %v3827_v22 = vld [vmem:[#allocation7 + $0xa4] ss:$16 sps:$4 sm:$0xff]   ;;  %v3830_v35 = vld [vmem:[#allocation7 + $0xac] ss:$16 sps:$4 sm:$0xff]  }
 0x39f   :  { %v2890_v24 = vpop.eup %2889  ;;  %v1213_v2 = vadd.f32 1.0, %v2888_v19  ;;  %v3833_v19 = vld [vmem:[#allocation7 + $0xa0] ss:$16 sps:$4 sm:$0xff]  }
 0x3a0   :  { %v2892_v12 = vpop.eup %2891  ;;  %v1219_v15 = vmul.f32 %v2890_v24, %v3680_v29  ;;  %v3836_v24 = vld [vmem:[#allocation7 + $0xa8] ss:$16 sps:$4 sm:$0xff]  }
 0x3a1   :  { %v2894_v23 = vpop.eup %2893  ;;  %v1214_v21 = vadd.f32 1.0, %v2892_v12  ;;  %2899 = vrcp.f32 %v1213_v2  ;;  %v3839_v12 = vld [vmem:[#allocation7 + $0x84] ss:$16 sps:$4 sm:$0xff]  }
 0x3a2   :  { %v2896_v28 = vpop.eup %2895  ;;  %v3800_v11 = vadd.f32 %v1221_v26, %v1219_v15  ;;  %v3842_v26 = vld [vmem:[#allocation7 + $0x8c] ss:$16 sps:$4 sm:$0xff]   ;;  %v3845_v15 = vld [vmem:[#allocation7 + $0x80] ss:$16 sps:$4 sm:$0xff]   ;;  %v3851_v2 = vld [vmem:[#allocation7 + $0x64] ss:$16 sps:$4 sm:$0xff]  }
 0x3a3   :  { %v2898_v36 = vpop.eup %2897  ;;  %v1222_v10 = vmul.f32 %v2896_v28, %v2894_v23  ;;  %v3848_v23 = vld [vmem:[#allocation7 + $0x88] ss:$16 sps:$4 sm:$0xff]   ;;  %v3854_v28 = vld [vmem:[#allocation7 + $0x6c] ss:$16 sps:$4 sm:$0xff]  }
 0x3a4   :  { %v1220_v38 = vmul.f32 %v2898_v36, %v3683_v27  ;;  %2901 = vtanh.f32 %v3800_v11  ;;  %v3810_v27 = vld [vmem:[#allocation7 + $0xe8] ss:$16 sps:$4 sm:$0xff]   ;;  %v3857_v36 = vld [vmem:[#allocation7 + $0x60] ss:$16 sps:$4 sm:$0xff]  }
 0x3a5   :  { %2903 = vrcp.f32 %v1214_v21  ;;  %v3860_v21 = vld [vmem:[#allocation7 + $0x68] ss:$16 sps:$4 sm:$0xff]  }
 0x3a6   :  { %v3803_v13 = vadd.f32 %v1222_v10, %v1220_v38  ;;  %v2806_v10 = vld [vmem:[#allocation4 + $0x18] sm:$0xff]   ;;  %v3931_v38 = vld [vmem:[#allocation9] ss:$16 sps:$4 sm:$0xff]  }
 0x3a7   :  { %4469 = vst [vmem:[#allocation41_spill] sm:$0xff] %v3931_v38 }
 0x3a8   :  { %2905 = vtanh.f32 %v3803_v13 }
 0x3ae   :  { %v2900_v1 = vpop.eup %2899 }
 0x3b1   :  { %v2902_v29 = vpop.eup %2901 }
 0x3b2   :  { %v2904_v5 = vpop.eup %2903  ;;  %v1227_v4 = vmul.f32 %v2902_v29, %v2900_v1  ;;  %v3934_v1 = vld [vmem:[#allocation9 + $0x8] ss:$16 sps:$4 sm:$0xff]   ;;  %v3937_v29 = vld [vmem:[#allocation7 + $0xe4] ss:$16 sps:$4 sm:$0xff]  }
 0x3b3   :  { %4470 = vst [vmem:[#allocation42_spill] sm:$0xff] %v3934_v1  ;;  %4471 = vst [vmem:[#allocation43_spill] sm:$0xff] %v3937_v29 }
 0x3b5   :  { %v2906_v8 = vpop.eup %2905 }
 0x3b6   :  { %v1228_v59 = vmul.f32 %v2906_v8, %v2904_v5  ;;  %v3940_v5 = vld [vmem:[#allocation7 + $0xec] ss:$16 sps:$4 sm:$0xff]  }
 0x3b7   :  { %4472 = vst [vmem:[#allocation44_spill] sm:$0xff] %v3940_v5 }
 0x3b8   :  { %v1229_v17 = vpack.c.bf16 %v1228_v59, %v1227_v4 }
 0x3ba   :  { %2669 = vst [vmem:[#allocation12 + $0x10] sm:$0xff] %v1229_v17   ;;  %1276 = vmatmul.mubr.bf16.vlgmr.msra.gmra.mxu0 %v1229_v17  ;;  %1319 = vmatmul.mubr.bf16.vlgmr.msra.gmra.mxu1 %v1229_v17 }
 0x3bb   :  { %1336 = vmatpush1.bf16.msra.mxu0 %v3807_v33  ;;  %1379 = vmatpush1.bf16.msra.mxu1 %v3810_v27 }
 0x3bc   :  { %1337 = vmatprep.subr.bf16.mxu0 %v3813_v7  ;;  %1380 = vmatprep.subr.bf16.mxu1 %v3816_v3 }
 0x3bd   :  { %1367 = vmatprep.mubr.bf16.mxu0 %v4393_v0  ;;  %1410 = vmatprep.mubr.bf16.mxu1 %v4393_v0 }
 0x3bf   :  { %1338 = vmatpush1.bf16.msra.mxu0 %v3821_v9  ;;  %1381 = vmatpush1.bf16.msra.mxu1 %v3824_v31 }
 0x3c0   :  { %1339 = vmatprep.subr.bf16.mxu0 %v3827_v22  ;;  %1382 = vmatprep.subr.bf16.mxu1 %v3830_v35 }
 0x3c3   :  { %1340 = vmatpush1.bf16.msra.mxu0 %v3833_v19  ;;  %1383 = vmatpush1.bf16.msra.mxu1 %v3836_v24 }
 0x3c4   :  { %1341 = vmatprep.subr.bf16.mxu0 %v3839_v12  ;;  %1384 = vmatprep.subr.bf16.mxu1 %v3842_v26 }
 0x3c7   :  { %1342 = vmatpush1.bf16.msra.mxu0 %v3845_v15  ;;  %1385 = vmatpush1.bf16.msra.mxu1 %v3848_v23 }
 0x3c8   :  { %1343 = vmatprep.subr.bf16.mxu0 %v3851_v2  ;;  %1386 = vmatprep.subr.bf16.mxu1 %v3854_v28 }
 0x3cb   :  { %1344 = vmatpush1.bf16.msra.mxu0 %v3857_v36  ;;  %1387 = vmatpush1.bf16.msra.mxu1 %v3860_v21 }
 0x3cc   :  { %1345 = vmatprep.subr.bf16.mxu0 %v3502_v56  ;;  %1388 = vmatprep.subr.bf16.mxu1 %v4394_v34  ;;  %v3895_v56 = vld [vmem:[#allocation9 + $0x60] ss:$16 sps:$4 sm:$0xff]  }
 0x3cd   :  { %4457 = vst [vmem:[#allocation29_spill] sm:$0xff] %v3895_v56  ;;  %v3919_v34 = vld [vmem:[#allocation9 + $0x20] ss:$16 sps:$4 sm:$0xff]  }
 0x3ce   :  { %4465 = vst [vmem:[#allocation37_spill] sm:$0xff] %v3919_v34 }
 0x3cf   :  { %1346 = vmatpush1.bf16.msra.mxu0 %v4395_v25  ;;  %1389 = vmatpush1.bf16.msra.mxu1 %v4396_v30  ;;  %v3922_v25 = vld [vmem:[#allocation9 + $0x28] ss:$16 sps:$4 sm:$0xff]   ;;  %v3925_v30 = vld [vmem:[#allocation9 + $0x4] ss:$16 sps:$4 sm:$0xff]  }
 0x3d0   :  { %1347 = vmatprep.subr.bf16.mxu0 %v3514_v60  ;;  %1390 = vmatprep.subr.bf16.mxu1 %v3516_v61  ;;  %v3904_v60 = vld [vmem:[#allocation9 + $0x4c] ss:$16 sps:$4 sm:$0xff]   ;;  %v3907_v61 = vld [vmem:[#allocation9 + $0x40] ss:$16 sps:$4 sm:$0xff]   ;;  %4466 = vst [vmem:[#allocation38_spill] sm:$0xff] %v3922_v25  ;;  %4467 = vst [vmem:[#allocation39_spill] sm:$0xff] %v3925_v30 }
 0x3d1   :  { %4460 = vst [vmem:[#allocation32_spill] sm:$0xff] %v3904_v60  ;;  %4461 = vst [vmem:[#allocation33_spill] sm:$0xff] %v3907_v61 }
 0x3d3   :  { %1348 = vmatpush1.bf16.msra.mxu0 %v3520_v62  ;;  %1391 = vmatpush1.bf16.msra.mxu1 %v3522_v63  ;;  %v3910_v62 = vld [vmem:[#allocation9 + $0x48] ss:$16 sps:$4 sm:$0xff]   ;;  %v3913_v63 = vld [vmem:[#allocation9 + $0x24] ss:$16 sps:$4 sm:$0xff]  }
 0x3d4   :  { %1349 = vmatprep.subr.bf16.mxu0 %v3526_v37  ;;  %1392 = vmatprep.subr.bf16.mxu1 %v4397_v32  ;;  %4462 = vst [vmem:[#allocation34_spill] sm:$0xff] %v3910_v62  ;;  %4463 = vst [vmem:[#allocation35_spill] sm:$0xff] %v3913_v63  ;;  %v3916_v37 = vld [vmem:[#allocation9 + $0x2c] ss:$16 sps:$4 sm:$0xff]  }
 0x3d5   :  { %4464 = vst [vmem:[#allocation36_spill] sm:$0xff] %v3916_v37  ;;  %v3928_v32 = vld [vmem:[#allocation9 + $0xc] ss:$16 sps:$4 sm:$0xff]  }
 0x3d6   :  { %4468 = vst [vmem:[#allocation40_spill] sm:$0xff] %v3928_v32 }
 0x3d7   :  { %1350 = vmatpush1.bf16.msra.mxu0 %v3532_v57  ;;  %1393 = vmatpush1.bf16.msra.mxu1 %v3534_v58  ;;  %v3898_v57 = vld [vmem:[#allocation9 + $0x68] ss:$16 sps:$4 sm:$0xff]   ;;  %v3901_v58 = vld [vmem:[#allocation9 + $0x44] ss:$16 sps:$4 sm:$0xff]  }
 0x3d8   :  { %1491 = vmatprep.subr.bf16.mxu0 %v3719_v39  ;;  %1534 = vmatprep.subr.bf16.mxu1 %v3722_v40  ;;  %4458 = vst [vmem:[#allocation30_spill] sm:$0xff] %v3898_v57  ;;  %4459 = vst [vmem:[#allocation31_spill] sm:$0xff] %v3901_v58 }
 0x3da   :  { %1368 = vmatmul.mubr.bf16.vlgmr.msra.gmra.mxu0 %v2806_v10  ;;  %1411 = vmatmul.mubr.bf16.vlgmr.msra.gmra.mxu1 %v2806_v10 }
 0x3db   :  { %1492 = vmatpush1.bf16.msra.mxu0 %v3725_v41  ;;  %1535 = vmatpush1.bf16.msra.mxu1 %v3728_v42 }
 0x3dc   :  { %1493 = vmatprep.subr.bf16.mxu0 %v3731_v43  ;;  %1536 = vmatprep.subr.bf16.mxu1 %v3734_v44 }
 0x3dd   :  { %1523 = vmatprep.mubr.bf16.mxu0 %v4393_v0  ;;  %1566 = vmatprep.mubr.bf16.mxu1 %v4393_v0 }
 0x3df   :  { %1494 = vmatpush1.bf16.msra.mxu0 %v3739_v45  ;;  %1537 = vmatpush1.bf16.msra.mxu1 %v3742_v46 }
 0x3e0   :  { %1495 = vmatprep.subr.bf16.mxu0 %v3745_v47  ;;  %1538 = vmatprep.subr.bf16.mxu1 %v3748_v48 }
 0x3e3   :  { %1496 = vmatpush1.bf16.msra.mxu0 %v3751_v49  ;;  %1539 = vmatpush1.bf16.msra.mxu1 %v3754_v50 }
 0x3e4   :  { %1497 = vmatprep.subr.bf16.mxu0 %v3757_v51  ;;  %1540 = vmatprep.subr.bf16.mxu1 %v3760_v52 }
 0x3e7   :  { %1498 = vmatpush1.bf16.msra.mxu0 %v3763_v53  ;;  %1541 = vmatpush1.bf16.msra.mxu1 %v3766_v54 }
 0x3e8   :  { %1499 = vmatprep.subr.bf16.mxu0 %v3769_v55  ;;  %1542 = vmatprep.subr.bf16.mxu1 %v3772_v16 }
 0x3eb   :  { %1500 = vmatpush1.bf16.msra.mxu0 %v3895_v56  ;;  %1543 = vmatpush1.bf16.msra.mxu1 %v3898_v57 }
 0x3ec   :  { %1501 = vmatprep.subr.bf16.mxu0 %v3901_v58  ;;  %1544 = vmatprep.subr.bf16.mxu1 %v3904_v60 }
 0x3ef   :  { %1502 = vmatpush1.bf16.msra.mxu0 %v3907_v61  ;;  %1545 = vmatpush1.bf16.msra.mxu1 %v3910_v62 }
 0x3f0   :  { %1503 = vmatprep.subr.bf16.mxu0 %v3913_v63  ;;  %1546 = vmatprep.subr.bf16.mxu1 %v3916_v37 }
 0x3f3   :  { %1504 = vmatpush1.bf16.msra.mxu0 %v3919_v34  ;;  %1547 = vmatpush1.bf16.msra.mxu1 %v3922_v25 }
 0x3f4   :  { %1505 = vmatprep.subr.bf16.mxu0 %v3925_v30  ;;  %1548 = vmatprep.subr.bf16.mxu1 %v3928_v32 }
 0x3f7   :  { %1506 = vmatpush1.bf16.msra.mxu0 %v3931_v38  ;;  %1549 = vmatpush1.bf16.msra.mxu1 %v3934_v1 }
 0x3f8   :  { %1583 = vmatprep.subr.bf16.mxu0 %v3937_v29  ;;  %1626 = vmatprep.subr.bf16.mxu1 %v3940_v5 }
 0x47a   :  { %v1277_v8 = vpop.f32.mrf.mxu0  ;;  %v1320_v4 = vpop.f32.mrf.mxu1 }
 0x47c   :  { %v1279_v59 = vpop.f32.mrf.mxu0  ;;  %v1322_v17 = vpop.f32.mrf.mxu1 }
 0x47e   :  { %v1281_v10 = vpop.f32.mrf.mxu0  ;;  %v1324_v32 = vpop.f32.mrf.mxu1 }
 0x480   :  { %v1283_v30 = vpop.f32.mrf.mxu0  ;;  %v1326_v38 = vpop.f32.mrf.mxu1 }
 0x49a   :  { %v1369_v25 = vpop.f32.mrf.mxu0  ;;  %v1412_v34 = vpop.f32.mrf.mxu1 }
 0x49b   :  { %v1370_v37 = vadd.f32 %v1369_v25, %v1277_v8 }
 0x49c   :  { %v1371_v1 = vpop.f32.mrf.mxu0  ;;  %v1414_v29 = vpop.f32.mrf.mxu1 }
 0x49d   :  { %v1421_v63 = vadd.f32 %v1370_v37, %v3579_v20  ;;  %v1372_v62 = vadd.f32 %v1371_v1, %v1279_v59  ;;  %v1415_v1 = vadd.f32 %v1414_v29, %v1322_v17 }
 0x49e   :  { %v1373_v61 = vpop.f32.mrf.mxu0  ;;  %v1416_v16 = vpop.f32.mrf.mxu1 }
 0x49f   :  { %v2595_v60 = vmul.f32 -1.442695, %v1421_v63  ;;  %v1422_v5 = vadd.f32 %v1372_v62, %v3581_v18  ;;  %v1374_v58 = vadd.f32 %v1373_v61, %v1281_v10  ;;  %v1413_v63 = vadd.f32 %v1412_v34, %v1320_v4 }
 0x4a0   :  { %v1375_v57 = vpop.f32.mrf.mxu0  ;;  %v1418_v37 = vpop.f32.mrf.mxu1  ;;  %v1424_v61 = vadd.f32 %v1415_v1, %v3587_v6 }
 0x4a1   :  { %2907 = vpow2.f32 %v2595_v60  ;;  %v2597_v56 = vmul.f32 -1.442695, %v1422_v5  ;;  %v1376_v55 = vadd.f32 %v1375_v57, %v1283_v30  ;;  %v1425_v54 = vadd.f32 %v1374_v58, %v3579_v20 }
 0x4a2   :  { %v1419_v59 = vadd.f32 %v1418_v37, %v1326_v38  ;;  %v1423_v60 = vadd.f32 %v1413_v63, %v3589_v14  ;;  %v1417_v57 = vadd.f32 %v1416_v16, %v1324_v32  ;;  %v2599_v58 = vmul.f32 -1.442695, %v1424_v61 }
 0x4a3   :  { %2909 = vpow2.f32 %v2597_v56  ;;  %v1426_v25 = vadd.f32 %v1376_v55, %v3581_v18  ;;  %v2596_v8 = vmul.f32 -1.442695, %v1425_v54 }
 0x4a4   :  { %v1428_v62 = vadd.f32 %v1419_v59, %v3587_v6  ;;  %v1427_v29 = vadd.f32 %v1417_v57, %v3589_v14 }
 0x4a5   :  { %v2598_v53 = vmul.f32 -1.442695, %v1426_v25  ;;  %2911 = vpow2.f32 %v2596_v8 }
 0x4a6   :  { %v2600_v54 = vmul.f32 -1.442695, %v1428_v62 }
 0x4a7   :  { %2913 = vpow2.f32 %v2598_v53 }
 0x4a8   :  { %2915 = vtanh.f32 %v1423_v60 }
 0x4ae   :  { %v2908_v30 = vpop.eup %2907 }
 0x4af   :  { %v1435_v56 = vadd.f32 1.0, %v2908_v30 }
 0x4b0   :  { %v2910_v5 = vpop.eup %2909 }
 0x4b1   :  { %2917 = vrcp.f32 %v1435_v56  ;;  %v1447_v55 = vadd.f32 1.0, %v2910_v5 }
 0x4b2   :  { %2919 = vpow2.f32 %v2599_v58  ;;  %v2912_v53 = vpop.eup %2911 }
 0x4b3   :  { %2921 = vrcp.f32 %v1447_v55  ;;  %v1436_v38 = vadd.f32 1.0, %v2912_v53 }
 0x4b4   :  { %v2914_v34 = vpop.eup %2913  ;;  %2923 = vpow2.f32 %v2600_v54 }
 0x4b5   :  { %2925 = vtanh.f32 %v1427_v29  ;;  %v1448_v4 = vadd.f32 1.0, %v2914_v34  ;;  %v2916_v16 = vpop.eup %2915  ;;  %v3982_v34 = vld [vmem:[#allocation7 + $0x4c] ss:$16 sps:$4 sm:$0xff]  }
 0x4b6   :  { %2927 = vrcp.f32 %v1436_v38  ;;  %v3985_v38 = vld [vmem:[#allocation7 + $0x40] ss:$16 sps:$4 sm:$0xff]  }
 0x4b7   :  { %2929 = vrcp.f32 %v1448_v4  ;;  %v3988_v4 = vld [vmem:[#allocation7 + $0x48] ss:$16 sps:$4 sm:$0xff]  }
 0x4be   :  { %v2918_v32 = vpop.eup %2917 }
 0x4bf   :  { %v2920_v17 = vpop.eup %2919  ;;  %v1469_v8 = vmul.f32 %v2918_v32, %v2916_v16  ;;  %v3991_v16 = vld [vmem:[#allocation7 + $0x24] ss:$16 sps:$4 sm:$0xff]   ;;  %v3994_v32 = vld [vmem:[#allocation7 + $0x2c] ss:$16 sps:$4 sm:$0xff]  }
 0x4c0   :  { %v2922_v10 = vpop.eup %2921  ;;  %v1461_v63 = vadd.f32 1.0, %v2920_v17  ;;  %v3997_v17 = vld [vmem:[#allocation7 + $0x20] ss:$16 sps:$4 sm:$0xff]  }
 0x4c1   :  { %v2924_v25 = vpop.eup %2923  ;;  %v1467_v37 = vmul.f32 %v2922_v10, %v3800_v11  ;;  %v4000_v10 = vld [vmem:[#allocation7 + $0x28] ss:$16 sps:$4 sm:$0xff]  }
 0x4c2   :  { %v2926_v1 = vpop.eup %2925  ;;  %v1462_v62 = vadd.f32 1.0, %v2924_v25  ;;  %2931 = vrcp.f32 %v1461_v63  ;;  %v4003_v25 = vld [vmem:[#allocation7 + $0x4] ss:$16 sps:$4 sm:$0xff]   ;;  %v4012_v63 = vld [vmem:[#allocation7 + $0x8] ss:$16 sps:$4 sm:$0xff]  }
 0x4c3   :  { %v2928_v59 = vpop.eup %2927  ;;  %v3952_v61 = vadd.f32 %v1469_v8, %v1467_v37  ;;  %v4006_v8 = vld [vmem:[#allocation7 + $0xc] ss:$16 sps:$4 sm:$0xff]   ;;  %v2807_v37 = vld [vmem:[#allocation4 + $0x20] sm:$0xff]  }
 0x4c4   :  { %v2930_v60 = vpop.eup %2929  ;;  %v1470_v57 = vmul.f32 %v2928_v59, %v2926_v1  ;;  %v4009_v1 = vld [vmem:[#allocation7] ss:$16 sps:$4 sm:$0xff]  }
 0x4c5   :  { %v1468_v30 = vmul.f32 %v2930_v60, %v3803_v13  ;;  %2933 = vtanh.f32 %v3952_v61  ;;  %v3979_v13 = vld [vmem:[#allocation7 + $0x44] ss:$16 sps:$4 sm:$0xff]   ;;  %v4474_v60 = vld [vmem:[#allocation26_spill] sm:$0xff] }
 0x4c6   :  { %2935 = vrcp.f32 %v1462_v62  ;;  %v4473_v59 = vld [vmem:[#allocation25_spill] sm:$0xff]  ;;  %v4475_v62 = vld [vmem:[#allocation27_spill] sm:$0xff] }
 0x4c7   :  { %v3955_v58 = vadd.f32 %v1470_v57, %v1468_v30  ;;  %v4476_v57 = vld [vmem:[#allocation28_spill] sm:$0xff]  ;;  %v4477_v30 = vld [vmem:[#allocation29_spill] sm:$0xff] }
 0x4c9   :  { %2937 = vtanh.f32 %v3955_v58 }
 0x4cf   :  { %v2932_v56 = vpop.eup %2931 }
 0x4d2   :  { %v2934_v11 = vpop.eup %2933 }
 0x4d3   :  { %v2936_v5 = vpop.eup %2935  ;;  %v1475_v55 = vmul.f32 %v2934_v11, %v2932_v56  ;;  %v4478_v56 = vld [vmem:[#allocation30_spill] sm:$0xff]  ;;  %v4479_v11 = vld [vmem:[#allocation31_spill] sm:$0xff] }
 0x4d6   :  { %v2938_v54 = vpop.eup %2937 }
 0x4d7   :  { %v1476_v29 = vmul.f32 %v2938_v54, %v2936_v5  ;;  %v4480_v5 = vld [vmem:[#allocation32_spill] sm:$0xff]  ;;  %v4481_v54 = vld [vmem:[#allocation33_spill] sm:$0xff] }
 0x4d9   :  { %v1477_v53 = vpack.c.bf16 %v1476_v29, %v1475_v55  ;;  %v4482_v55 = vld [vmem:[#allocation34_spill] sm:$0xff]  ;;  %v4483_v29 = vld [vmem:[#allocation35_spill] sm:$0xff] }
 0x4db   :  { %2674 = vst [vmem:[#allocation12 + $0x18] sm:$0xff] %v1477_v53   ;;  %1524 = vmatmul.mubr.bf16.vlgmr.msra.gmra.mxu0 %v1477_v53  ;;  %1567 = vmatmul.mubr.bf16.vlgmr.msra.gmra.mxu1 %v1477_v53  ;;  %v4484_v53 = vld [vmem:[#allocation36_spill] sm:$0xff] }
 0x4dc   :  { %1584 = vmatpush1.bf16.msra.mxu0 %v3807_v33  ;;  %1627 = vmatpush1.bf16.msra.mxu1 %v3810_v27 }
 0x4dd   :  { %1585 = vmatprep.subr.bf16.mxu0 %v3813_v7  ;;  %1628 = vmatprep.subr.bf16.mxu1 %v3816_v3 }
 0x4de   :  { %1615 = vmatprep.mubr.bf16.mxu0 %v4393_v0  ;;  %1658 = vmatprep.mubr.bf16.mxu1 %v4393_v0 }
 0x4e0   :  { %1586 = vmatpush1.bf16.msra.mxu0 %v3821_v9  ;;  %1629 = vmatpush1.bf16.msra.mxu1 %v3824_v31 }
 0x4e1   :  { %1587 = vmatprep.subr.bf16.mxu0 %v3827_v22  ;;  %1630 = vmatprep.subr.bf16.mxu1 %v3830_v35 }
 0x4e4   :  { %1588 = vmatpush1.bf16.msra.mxu0 %v3833_v19  ;;  %1631 = vmatpush1.bf16.msra.mxu1 %v3836_v24 }
 0x4e5   :  { %1589 = vmatprep.subr.bf16.mxu0 %v3839_v12  ;;  %1632 = vmatprep.subr.bf16.mxu1 %v3842_v26 }
 0x4e8   :  { %1590 = vmatpush1.bf16.msra.mxu0 %v3845_v15  ;;  %1633 = vmatpush1.bf16.msra.mxu1 %v3848_v23 }
 0x4e9   :  { %1591 = vmatprep.subr.bf16.mxu0 %v3851_v2  ;;  %1634 = vmatprep.subr.bf16.mxu1 %v3854_v28 }
 0x4ec   :  { %1592 = vmatpush1.bf16.msra.mxu0 %v3857_v36  ;;  %1635 = vmatpush1.bf16.msra.mxu1 %v3860_v21 }
 0x4ed   :  { %1593 = vmatprep.subr.bf16.mxu0 %v3979_v13  ;;  %1636 = vmatprep.subr.bf16.mxu1 %v3982_v34 }
 0x4f0   :  { %1594 = vmatpush1.bf16.msra.mxu0 %v3985_v38  ;;  %1637 = vmatpush1.bf16.msra.mxu1 %v3988_v4 }
 0x4f1   :  { %1595 = vmatprep.subr.bf16.mxu0 %v3991_v16  ;;  %1638 = vmatprep.subr.bf16.mxu1 %v3994_v32 }
 0x4f4   :  { %1596 = vmatpush1.bf16.msra.mxu0 %v3997_v17  ;;  %1639 = vmatpush1.bf16.msra.mxu1 %v4000_v10 }
 0x4f5   :  { %1597 = vmatprep.subr.bf16.mxu0 %v4003_v25  ;;  %1640 = vmatprep.subr.bf16.mxu1 %v4006_v8 }
 0x4f8   :  { %1598 = vmatpush1.bf16.msra.mxu0 %v4009_v1  ;;  %1641 = vmatpush1.bf16.msra.mxu1 %v4012_v63 }
 0x4f9   :  { %1739 = vmatprep.subr.bf16.mxu0 %v3719_v39  ;;  %1782 = vmatprep.subr.bf16.mxu1 %v3722_v40 }
 0x4fb   :  { %1616 = vmatmul.mubr.bf16.vlgmr.msra.gmra.mxu0 %v2807_v37  ;;  %1659 = vmatmul.mubr.bf16.vlgmr.msra.gmra.mxu1 %v2807_v37  ;;  %v4485_v37 = vld [vmem:[#allocation37_spill] sm:$0xff] }
 0x4fc   :  { %1740 = vmatpush1.bf16.msra.mxu0 %v3725_v41  ;;  %1783 = vmatpush1.bf16.msra.mxu1 %v3728_v42 }
 0x4fd   :  { %1741 = vmatprep.subr.bf16.mxu0 %v3731_v43  ;;  %1784 = vmatprep.subr.bf16.mxu1 %v3734_v44 }
 0x4fe   :  { %1771 = vmatprep.mubr.bf16.mxu0 %v4393_v0  ;;  %1814 = vmatprep.mubr.bf16.mxu1 %v4393_v0 }
 0x500   :  { %1742 = vmatpush1.bf16.msra.mxu0 %v3739_v45  ;;  %1785 = vmatpush1.bf16.msra.mxu1 %v3742_v46 }
 0x501   :  { %1743 = vmatprep.subr.bf16.mxu0 %v3745_v47  ;;  %1786 = vmatprep.subr.bf16.mxu1 %v3748_v48 }
 0x504   :  { %1744 = vmatpush1.bf16.msra.mxu0 %v3751_v49  ;;  %1787 = vmatpush1.bf16.msra.mxu1 %v3754_v50 }
 0x505   :  { %1745 = vmatprep.subr.bf16.mxu0 %v3757_v51  ;;  %1788 = vmatprep.subr.bf16.mxu1 %v3760_v52 }
 0x508   :  { %1746 = vmatpush1.bf16.msra.mxu0 %v4473_v59  ;;  %1789 = vmatpush1.bf16.msra.mxu1 %v4474_v60 }
 0x509   :  { %1747 = vmatprep.subr.bf16.mxu0 %v4475_v62  ;;  %1790 = vmatprep.subr.bf16.mxu1 %v4476_v57  ;;  %v4486_v62 = vld [vmem:[#allocation38_spill] sm:$0xff]  ;;  %v4487_v57 = vld [vmem:[#allocation39_spill] sm:$0xff] }
 0x50c   :  { %1748 = vmatpush1.bf16.msra.mxu0 %v4477_v30  ;;  %1791 = vmatpush1.bf16.msra.mxu1 %v4478_v56  ;;  %v4488_v30 = vld [vmem:[#allocation40_spill] sm:$0xff]  ;;  %v4489_v56 = vld [vmem:[#allocation41_spill] sm:$0xff] }
 0x50d   :  { %1749 = vmatprep.subr.bf16.mxu0 %v4479_v11  ;;  %1792 = vmatprep.subr.bf16.mxu1 %v4480_v5  ;;  %v4490_v11 = vld [vmem:[#allocation42_spill] sm:$0xff]  ;;  %v4491_v5 = vld [vmem:[#allocation43_spill] sm:$0xff] }
 0x510   :  { %1750 = vmatpush1.bf16.msra.mxu0 %v4481_v54  ;;  %1793 = vmatpush1.bf16.msra.mxu1 %v4482_v55  ;;  %v4492_v54 = vld [vmem:[#allocation44_spill] sm:$0xff] }
 0x511   :  { %1751 = vmatprep.subr.bf16.mxu0 %v4483_v29  ;;  %1794 = vmatprep.subr.bf16.mxu1 %v4484_v53 }
 0x514   :  { %1752 = vmatpush1.bf16.msra.mxu0 %v4485_v37  ;;  %1795 = vmatpush1.bf16.msra.mxu1 %v4486_v62 }
 0x515   :  { %1753 = vmatprep.subr.bf16.mxu0 %v4487_v57  ;;  %1796 = vmatprep.subr.bf16.mxu1 %v4488_v30 }
 0x518   :  { %1754 = vmatpush1.bf16.msra.mxu0 %v4489_v56  ;;  %1797 = vmatpush1.bf16.msra.mxu1 %v4490_v11 }
 0x519   :  { %1831 = vmatprep.subr.bf16.mxu0 %v4491_v5  ;;  %1874 = vmatprep.subr.bf16.mxu1 %v4492_v54 }
 0x59b   :  { %v1525_v55 = vpop.f32.mrf.mxu0  ;;  %v1568_v29 = vpop.f32.mrf.mxu1 }
 0x59d   :  { %v1527_v60 = vpop.f32.mrf.mxu0  ;;  %v1570_v53 = vpop.f32.mrf.mxu1 }
 0x59f   :  { %v1529_v59 = vpop.f32.mrf.mxu0  ;;  %v1572_v37 = vpop.f32.mrf.mxu1 }
 0x5a1   :  { %v1531_v52 = vpop.f32.mrf.mxu0  ;;  %v1574_v62 = vpop.f32.mrf.mxu1 }
 0x5bb   :  { %v1617_v51 = vpop.f32.mrf.mxu0  ;;  %v1660_v57 = vpop.f32.mrf.mxu1 }
 0x5bc   :  { %v1618_v50 = vadd.f32 %v1617_v51, %v1525_v55 }
 0x5bd   :  { %v1619_v30 = vpop.f32.mrf.mxu0  ;;  %v1662_v11 = vpop.f32.mrf.mxu1 }
 0x5be   :  { %v1669_v56 = vadd.f32 %v1618_v50, %v3579_v20  ;;  %v1620_v49 = vadd.f32 %v1619_v30, %v1527_v60  ;;  %v1663_v60 = vadd.f32 %v1662_v11, %v1570_v53  ;;  %v1661_v30 = vadd.f32 %v1660_v57, %v1568_v29 }
 0x5bf   :  { %v1621_v48 = vpop.f32.mrf.mxu0  ;;  %v1664_v44 = vpop.f32.mrf.mxu1 }
 0x5c0   :  { %v2604_v5 = vmul.f32 -1.442695, %v1669_v56  ;;  %v1670_v54 = vadd.f32 %v1620_v49, %v3581_v18  ;;  %v1622_v47 = vadd.f32 %v1621_v48, %v1529_v59  ;;  %v1672_v48 = vadd.f32 %v1663_v60, %v3587_v6 }
 0x5c1   :  { %v1623_v46 = vpop.f32.mrf.mxu0  ;;  %v1666_v50 = vpop.f32.mrf.mxu1  ;;  %v1671_v49 = vadd.f32 %v1661_v30, %v3589_v14 }
 0x5c2   :  { %2939 = vpow2.f32 %v2604_v5  ;;  %v2606_v45 = vmul.f32 -1.442695, %v1670_v54  ;;  %v1624_v43 = vadd.f32 %v1623_v46, %v1531_v52  ;;  %v1673_v42 = vadd.f32 %v1622_v47, %v3579_v20 }
 0x5c3   :  { %v1667_v56 = vadd.f32 %v1666_v50, %v1574_v62  ;;  %v1665_v46 = vadd.f32 %v1664_v44, %v1572_v37  ;;  %v2608_v47 = vmul.f32 -1.442695, %v1672_v48 }
 0x5c4   :  { %2941 = vpow2.f32 %v2606_v45  ;;  %v1674_v51 = vadd.f32 %v1624_v43, %v3581_v18  ;;  %v2605_v55 = vmul.f32 -1.442695, %v1673_v42 }
 0x5c5   :  { %v1676_v59 = vadd.f32 %v1667_v56, %v3587_v6  ;;  %v1675_v11 = vadd.f32 %v1665_v46, %v3589_v14 }
 0x5c6   :  { %v2607_v41 = vmul.f32 -1.442695, %v1674_v51  ;;  %2943 = vpow2.f32 %v2605_v55 }
 0x5c7   :  { %v2609_v42 = vmul.f32 -1.442695, %v1676_v59 }
 0x5c8   :  { %2945 = vpow2.f32 %v2607_v41 }
 0x5c9   :  { %2947 = vtanh.f32 %v1671_v49 }
 0x5cf   :  { %v2940_v52 = vpop.eup %2939 }
 0x5d0   :  { %v1683_v45 = vadd.f32 1.0, %v2940_v52 }
 0x5d1   :  { %v2942_v5 = vpop.eup %2941 }
 0x5d2   :  { %2949 = vrcp.f32 %v1683_v45  ;;  %v1695_v43 = vadd.f32 1.0, %v2942_v5 }
 0x5d3   :  { %2951 = vpow2.f32 %v2608_v47  ;;  %v2944_v41 = vpop.eup %2943 }
 0x5d4   :  { %2953 = vrcp.f32 %v1695_v43  ;;  %v1684_v57 = vadd.f32 1.0, %v2944_v41 }
 0x5d5   :  { %v2946_v62 = vpop.eup %2945  ;;  %2955 = vpow2.f32 %v2609_v42 }
 0x5d6   :  { %2957 = vtanh.f32 %v1675_v11  ;;  %v1696_v54 = vadd.f32 1.0, %v2946_v62  ;;  %v2948_v44 = vpop.eup %2947  ;;  %v4493_v62 = vld [vmem:[#allocation46_spill] sm:$0xff] }
 0x5d7   :  { %2959 = vrcp.f32 %v1684_v57  ;;  %v4494_v57 = vld [vmem:[#allocation47_spill] sm:$0xff] }
 0x5d8   :  { %2961 = vrcp.f32 %v1696_v54  ;;  %v4495_v54 = vld [vmem:[#allocation48_spill] sm:$0xff] }
 0x5df   :  { %v2950_v29 = vpop.eup %2949 }
 0x5e0   :  { %v2952_v53 = vpop.eup %2951  ;;  %v1717_v55 = vmul.f32 %v2950_v29, %v2948_v44  ;;  %v4496_v44 = vld [vmem:[#allocation49_spill] sm:$0xff] }
 0x5e1   :  { %v2954_v37 = vpop.eup %2953  ;;  %v1709_v30 = vadd.f32 1.0, %v2952_v53  ;;  %v4497_v29 = vld [vmem:[#allocation17_spill] sm:$0xff]  ;;  %v4498_v53 = vld [vmem:[#allocation18_spill] sm:$0xff] }
 0x5e2   :  { %v2956_v51 = vpop.eup %2955  ;;  %v1715_v50 = vmul.f32 %v2954_v37, %v3952_v61  ;;  %v4501_v37 = vld [vmem:[#allocation21_spill] sm:$0xff] }
 0x5e3   :  { %v2958_v60 = vpop.eup %2957  ;;  %v1710_v59 = vadd.f32 1.0, %v2956_v51  ;;  %2963 = vrcp.f32 %v1709_v30  ;;  %v4502_v51 = vld [vmem:[#allocation22_spill] sm:$0xff] }
 0x5e4   :  { %v2960_v56 = vpop.eup %2959  ;;  %v4060_v48 = vadd.f32 %v1717_v55, %v1715_v50  ;;  %v4503_v55 = vld [vmem:[#allocation23_spill] sm:$0xff]  ;;  %v4504_v50 = vld [vmem:[#allocation24_spill] sm:$0xff]  ;;  %v4506_v30 = vld [vmem:[#allocation26_spill] sm:$0xff] }
 0x5e5   :  { %v2962_v49 = vpop.eup %2961  ;;  %v1718_v46 = vmul.f32 %v2960_v56, %v2958_v60  ;;  %v4505_v60 = vld [vmem:[#allocation25_spill] sm:$0xff]  ;;  %v4507_v56 = vld [vmem:[#allocation27_spill] sm:$0xff] }
 0x5e6   :  { %v1716_v52 = vmul.f32 %v2962_v49, %v3955_v58  ;;  %2965 = vtanh.f32 %v4060_v48  ;;  %v2808_v58 = vld [vmem:[#allocation4 + $0x28] sm:$0xff]  }
 0x5e7   :  { %2967 = vrcp.f32 %v1710_v59  ;;  %v4508_v49 = vld [vmem:[#allocation28_spill] sm:$0xff]  ;;  %v4509_v59 = vld [vmem:[#allocation29_spill] sm:$0xff] }
 0x5e8   :  { %v4063_v47 = vadd.f32 %v1718_v46, %v1716_v52  ;;  %v4510_v46 = vld [vmem:[#allocation30_spill] sm:$0xff]  ;;  %v4511_v52 = vld [vmem:[#allocation31_spill] sm:$0xff] }
 0x5ea   :  { %2969 = vtanh.f32 %v4063_v47 }
 0x5f0   :  { %v2964_v45 = vpop.eup %2963 }
 0x5f3   :  { %v2966_v61 = vpop.eup %2965 }
 0x5f4   :  { %v2968_v5 = vpop.eup %2967  ;;  %v1723_v43 = vmul.f32 %v2966_v61, %v2964_v45  ;;  %v4512_v45 = vld [vmem:[#allocation32_spill] sm:$0xff]  ;;  %v4513_v61 = vld [vmem:[#allocation33_spill] sm:$0xff] }
 0x5f7   :  { %v2970_v42 = vpop.eup %2969 }
 0x5f8   :  { %v1724_v11 = vmul.f32 %v2970_v42, %v2968_v5  ;;  %v4514_v5 = vld [vmem:[#allocation34_spill] sm:$0xff]  ;;  %v4515_v42 = vld [vmem:[#allocation35_spill] sm:$0xff] }
 0x5fa   :  { %v1725_v41 = vpack.c.bf16 %v1724_v11, %v1723_v43  ;;  %v4516_v43 = vld [vmem:[#allocation36_spill] sm:$0xff]  ;;  %v4517_v11 = vld [vmem:[#allocation37_spill] sm:$0xff] }
 0x5fc   :  { %2679 = vst [vmem:[#allocation12 + $0x20] sm:$0xff] %v1725_v41   ;;  %1772 = vmatmul.mubr.bf16.vlgmr.msra.gmra.mxu0 %v1725_v41  ;;  %1815 = vmatmul.mubr.bf16.vlgmr.msra.gmra.mxu1 %v1725_v41  ;;  %v4518_v41 = vld [vmem:[#allocation38_spill] sm:$0xff] }
 0x5fd   :  { %1832 = vmatpush1.bf16.msra.mxu0 %v3807_v33  ;;  %1875 = vmatpush1.bf16.msra.mxu1 %v3810_v27 }
 0x5fe   :  { %1833 = vmatprep.subr.bf16.mxu0 %v3813_v7  ;;  %1876 = vmatprep.subr.bf16.mxu1 %v3816_v3 }
 0x5ff   :  { %1863 = vmatprep.mubr.bf16.mxu0 %v4393_v0  ;;  %1906 = vmatprep.mubr.bf16.mxu1 %v4393_v0 }
 0x601   :  { %1834 = vmatpush1.bf16.msra.mxu0 %v3821_v9  ;;  %1877 = vmatpush1.bf16.msra.mxu1 %v3824_v31 }
 0x602   :  { %1835 = vmatprep.subr.bf16.mxu0 %v3827_v22  ;;  %1878 = vmatprep.subr.bf16.mxu1 %v3830_v35 }
 0x605   :  { %1836 = vmatpush1.bf16.msra.mxu0 %v3833_v19  ;;  %1879 = vmatpush1.bf16.msra.mxu1 %v3836_v24 }
 0x606   :  { %1837 = vmatprep.subr.bf16.mxu0 %v3839_v12  ;;  %1880 = vmatprep.subr.bf16.mxu1 %v3842_v26 }
 0x609   :  { %1838 = vmatpush1.bf16.msra.mxu0 %v3845_v15  ;;  %1881 = vmatpush1.bf16.msra.mxu1 %v3848_v23 }
 0x60a   :  { %1839 = vmatprep.subr.bf16.mxu0 %v3851_v2  ;;  %1882 = vmatprep.subr.bf16.mxu1 %v3854_v28 }
 0x60d   :  { %1840 = vmatpush1.bf16.msra.mxu0 %v3857_v36  ;;  %1883 = vmatpush1.bf16.msra.mxu1 %v3860_v21 }
 0x60e   :  { %1841 = vmatprep.subr.bf16.mxu0 %v3979_v13  ;;  %1884 = vmatprep.subr.bf16.mxu1 %v3982_v34 }
 0x611   :  { %1842 = vmatpush1.bf16.msra.mxu0 %v3985_v38  ;;  %1885 = vmatpush1.bf16.msra.mxu1 %v3988_v4 }
 0x612   :  { %1843 = vmatprep.subr.bf16.mxu0 %v3991_v16  ;;  %1886 = vmatprep.subr.bf16.mxu1 %v3994_v32 }
 0x615   :  { %1844 = vmatpush1.bf16.msra.mxu0 %v3997_v17  ;;  %1887 = vmatpush1.bf16.msra.mxu1 %v4000_v10 }
 0x616   :  { %1845 = vmatprep.subr.bf16.mxu0 %v4003_v25  ;;  %1888 = vmatprep.subr.bf16.mxu1 %v4006_v8 }
 0x619   :  { %1846 = vmatpush1.bf16.msra.mxu0 %v4009_v1  ;;  %1889 = vmatpush1.bf16.msra.mxu1 %v4012_v63 }
 0x61a   :  { %1987 = vmatprep.subr.bf16.mxu0 %v3719_v39  ;;  %2030 = vmatprep.subr.bf16.mxu1 %v3722_v40  ;;  %v4499_v39 = vld [vmem:[#allocation19_spill] sm:$0xff]  ;;  %v4500_v40 = vld [vmem:[#allocation20_spill] sm:$0xff] }
 0x61c   :  { %1864 = vmatmul.mubr.bf16.vlgmr.msra.gmra.mxu0 %v2808_v58  ;;  %1907 = vmatmul.mubr.bf16.vlgmr.msra.gmra.mxu1 %v2808_v58  ;;  %v4519_v58 = vld [vmem:[#allocation39_spill] sm:$0xff] }
 0x61d   :  { %1988 = vmatpush1.bf16.msra.mxu0 %v4493_v62  ;;  %2031 = vmatpush1.bf16.msra.mxu1 %v4494_v57  ;;  %v4520_v62 = vld [vmem:[#allocation40_spill] sm:$0xff]  ;;  %v4521_v57 = vld [vmem:[#allocation41_spill] sm:$0xff] }
 0x61e   :  { %1989 = vmatprep.subr.bf16.mxu0 %v4495_v54  ;;  %2032 = vmatprep.subr.bf16.mxu1 %v4496_v44  ;;  %v4522_v54 = vld [vmem:[#allocation42_spill] sm:$0xff]  ;;  %v4523_v44 = vld [vmem:[#allocation43_spill] sm:$0xff] }
 0x61f   :  { %2019 = vmatprep.mubr.bf16.mxu0 %v4393_v0  ;;  %2062 = vmatprep.mubr.bf16.mxu1 %v4393_v0 }
 0x621   :  { %1990 = vmatpush1.bf16.msra.mxu0 %v4497_v29  ;;  %2033 = vmatpush1.bf16.msra.mxu1 %v4498_v53  ;;  %v4524_v29 = vld [vmem:[#allocation44_spill] sm:$0xff] }
 0x622   :  { %1991 = vmatprep.subr.bf16.mxu0 %v4499_v39  ;;  %2034 = vmatprep.subr.bf16.mxu1 %v4500_v40 }
 0x625   :  { %1992 = vmatpush1.bf16.msra.mxu0 %v4501_v37  ;;  %2035 = vmatpush1.bf16.msra.mxu1 %v4502_v51 }
 0x626   :  { %1993 = vmatprep.subr.bf16.mxu0 %v4503_v55  ;;  %2036 = vmatprep.subr.bf16.mxu1 %v4504_v50 }
 0x629   :  { %1994 = vmatpush1.bf16.msra.mxu0 %v4505_v60  ;;  %2037 = vmatpush1.bf16.msra.mxu1 %v4506_v30 }
 0x62a   :  { %1995 = vmatprep.subr.bf16.mxu0 %v4507_v56  ;;  %2038 = vmatprep.subr.bf16.mxu1 %v4508_v49 }
 0x62d   :  { %1996 = vmatpush1.bf16.msra.mxu0 %v4509_v59  ;;  %2039 = vmatpush1.bf16.msra.mxu1 %v4510_v46 }
 0x62e   :  { %1997 = vmatprep.subr.bf16.mxu0 %v4511_v52  ;;  %2040 = vmatprep.subr.bf16.mxu1 %v4512_v45 }
 0x631   :  { %1998 = vmatpush1.bf16.msra.mxu0 %v4513_v61  ;;  %2041 = vmatpush1.bf16.msra.mxu1 %v4514_v5 }
 0x632   :  { %1999 = vmatprep.subr.bf16.mxu0 %v4515_v42  ;;  %2042 = vmatprep.subr.bf16.mxu1 %v4516_v43 }
 0x635   :  { %2000 = vmatpush1.bf16.msra.mxu0 %v4517_v11  ;;  %2043 = vmatpush1.bf16.msra.mxu1 %v4518_v41 }
 0x636   :  { %2001 = vmatprep.subr.bf16.mxu0 %v4519_v58  ;;  %2044 = vmatprep.subr.bf16.mxu1 %v4520_v62 }
 0x639   :  { %2002 = vmatpush1.bf16.msra.mxu0 %v4521_v57  ;;  %2045 = vmatpush1.bf16.msra.mxu1 %v4522_v54 }
 0x63a   :  { %2079 = vmatprep.subr.bf16.mxu0 %v4523_v44  ;;  %2122 = vmatprep.subr.bf16.mxu1 %v4524_v29 }
 0x6bc   :  { %v1773_v53 = vpop.f32.mrf.mxu0  ;;  %v1816_v39 = vpop.f32.mrf.mxu1 }
 0x6be   :  { %v1775_v40 = vpop.f32.mrf.mxu0  ;;  %v1818_v37 = vpop.f32.mrf.mxu1 }
 0x6c0   :  { %v1777_v51 = vpop.f32.mrf.mxu0  ;;  %v1820_v55 = vpop.f32.mrf.mxu1 }
 0x6c2   :  { %v1779_v50 = vpop.f32.mrf.mxu0  ;;  %v1822_v60 = vpop.f32.mrf.mxu1 }
 0x6dc   :  { %v1865_v30 = vpop.f32.mrf.mxu0  ;;  %v1908_v56 = vpop.f32.mrf.mxu1 }
 0x6dd   :  { %v1866_v49 = vadd.f32 %v1865_v30, %v1773_v53 }
 0x6de   :  { %v1867_v62 = vpop.f32.mrf.mxu0  ;;  %v1910_v54 = vpop.f32.mrf.mxu1 }
 0x6df   :  { %v1917_v57 = vadd.f32 %v1866_v49, %v3579_v20  ;;  %v1868_v58 = vadd.f32 %v1867_v62, %v1775_v40  ;;  %v1911_v62 = vadd.f32 %v1910_v54, %v1818_v37 }
 0x6e0   :  { %v1869_v41 = vpop.f32.mrf.mxu0  ;;  %v1912_v5 = vpop.f32.mrf.mxu1 }
 0x6e1   :  { %v2613_v44 = vmul.f32 -1.442695, %v1917_v57  ;;  %v1918_v29 = vadd.f32 %v1868_v58, %v3581_v18  ;;  %v1870_v11 = vadd.f32 %v1869_v41, %v1777_v51  ;;  %v1909_v57 = vadd.f32 %v1908_v56, %v1816_v39 }
 0x6e2   :  { %v1871_v43 = vpop.f32.mrf.mxu0  ;;  %v1914_v49 = vpop.f32.mrf.mxu1  ;;  %v1920_v41 = vadd.f32 %v1911_v62, %v3587_v6 }
 0x6e3   :  { %2971 = vpow2.f32 %v2613_v44  ;;  %v2615_v42 = vmul.f32 -1.442695, %v1918_v29  ;;  %v1872_v61 = vadd.f32 %v1871_v43, %v1779_v50  ;;  %v1921_v45 = vadd.f32 %v1870_v11, %v3579_v20 }
 0x6e4   :  { %v1915_v40 = vadd.f32 %v1914_v49, %v1822_v60  ;;  %v1919_v58 = vadd.f32 %v1909_v57, %v3589_v14  ;;  %v1913_v43 = vadd.f32 %v1912_v5, %v1820_v55  ;;  %v2617_v11 = vmul.f32 -1.442695, %v1920_v41 }
 0x6e5   :  { %2973 = vpow2.f32 %v2615_v42  ;;  %v1922_v53 = vadd.f32 %v1872_v61, %v3581_v18  ;;  %v2614_v30 = vmul.f32 -1.442695, %v1921_v45 }
 0x6e6   :  { %v1924_v44 = vadd.f32 %v1915_v40, %v3587_v6  ;;  %v1923_v54 = vadd.f32 %v1913_v43, %v3589_v14 }
 0x6e7   :  { %v2616_v52 = vmul.f32 -1.442695, %v1922_v53  ;;  %2975 = vpow2.f32 %v2614_v30 }
 0x6e8   :  { %v2618_v45 = vmul.f32 -1.442695, %v1924_v44 }
 0x6e9   :  { %2977 = vpow2.f32 %v2616_v52 }
 0x6ea   :  { %2979 = vtanh.f32 %v1919_v58 }
 0x6f0   :  { %v2972_v29 = vpop.eup %2971 }
 0x6f1   :  { %v1931_v42 = vadd.f32 1.0, %v2972_v29 }
 0x6f2   :  { %v2974_v51 = vpop.eup %2973 }
 0x6f3   :  { %2981 = vrcp.f32 %v1931_v42  ;;  %v1943_v61 = vadd.f32 1.0, %v2974_v51 }
 0x6f4   :  { %2983 = vpow2.f32 %v2617_v11  ;;  %v2976_v52 = vpop.eup %2975 }
 0x6f5   :  { %2985 = vrcp.f32 %v1943_v61  ;;  %v1932_v37 = vadd.f32 1.0, %v2976_v52 }
 0x6f6   :  { %v2978_v39 = vpop.eup %2977  ;;  %2987 = vpow2.f32 %v2618_v45 }
 0x6f7   :  { %2989 = vtanh.f32 %v1923_v54  ;;  %v1944_v50 = vadd.f32 1.0, %v2978_v39  ;;  %v2980_v5 = vpop.eup %2979  ;;  %v4525_v39 = vld [vmem:[#allocation31_spill] sm:$0xff] }
 0x6f8   :  { %2991 = vrcp.f32 %v1932_v37  ;;  %v4526_v37 = vld [vmem:[#allocation32_spill] sm:$0xff] }
 0x6f9   :  { %2993 = vrcp.f32 %v1944_v50  ;;  %v4527_v50 = vld [vmem:[#allocation33_spill] sm:$0xff] }
 0x700   :  { %v2982_v55 = vpop.eup %2981 }
 0x701   :  { %v2984_v60 = vpop.eup %2983  ;;  %v1965_v30 = vmul.f32 %v2982_v55, %v2980_v5  ;;  %v4528_v5 = vld [vmem:[#allocation34_spill] sm:$0xff]  ;;  %v4529_v55 = vld [vmem:[#allocation35_spill] sm:$0xff] }
 0x702   :  { %v2986_v56 = vpop.eup %2985  ;;  %v1957_v57 = vadd.f32 1.0, %v2984_v60  ;;  %v4530_v60 = vld [vmem:[#allocation36_spill] sm:$0xff] }
 0x703   :  { %v2988_v53 = vpop.eup %2987  ;;  %v1963_v49 = vmul.f32 %v2986_v56, %v4060_v48  ;;  %v4531_v56 = vld [vmem:[#allocation37_spill] sm:$0xff] }
 0x704   :  { %v2990_v62 = vpop.eup %2989  ;;  %v1958_v44 = vadd.f32 1.0, %v2988_v53  ;;  %2995 = vrcp.f32 %v1957_v57  ;;  %v4532_v53 = vld [vmem:[#allocation38_spill] sm:$0xff]  ;;  %v4538_v57 = vld [vmem:[#allocation44_spill] sm:$0xff] }
 0x705   :  { %v2992_v40 = vpop.eup %2991  ;;  %v4144_v41 = vadd.f32 %v1965_v30, %v1963_v49  ;;  %v4533_v30 = vld [vmem:[#allocation39_spill] sm:$0xff]  ;;  %v4536_v49 = vld [vmem:[#allocation42_spill] sm:$0xff] }
 0x706   :  { %v2994_v58 = vpop.eup %2993  ;;  %v1966_v43 = vmul.f32 %v2992_v40, %v2990_v62  ;;  %v4537_v62 = vld [vmem:[#allocation43_spill] sm:$0xff] }
 0x707   :  { %v1964_v29 = vmul.f32 %v2994_v58, %v4063_v47  ;;  %2997 = vtanh.f32 %v4144_v41  ;;  %v3148_v47 = vld [vmem:[#allocation9 + $0x6c] ss:$16 sps:$4 sm:$0xff]  }
 0x708   :  { %2999 = vrcp.f32 %v1958_v44 }
 0x709   :  { %v4147_v11 = vadd.f32 %v1966_v43, %v1964_v29 }
 0x70b   :  { %3001 = vtanh.f32 %v4147_v11 }
 0x711   :  { %v2996_v42 = vpop.eup %2995 }
 0x714   :  { %v2998_v48 = vpop.eup %2997 }
 0x715   :  { %v3000_v51 = vpop.eup %2999  ;;  %v1971_v61 = vmul.f32 %v2998_v48, %v2996_v42 }
 0x718   :  { %v3002_v45 = vpop.eup %3001 }
 0x719   :  { %v1972_v54 = vmul.f32 %v3002_v45, %v3000_v51 }
 0x71b   :  { %v1973_v52 = vpack.c.bf16 %v1972_v54, %v1971_v61 }
 0x71d   :  { %2684 = vst [vmem:[#allocation12 + $0x28] sm:$0xff] %v1973_v52   ;;  %2020 = vmatmul.mubr.bf16.vlgmr.msra.gmra.mxu0 %v1973_v52  ;;  %2063 = vmatmul.mubr.bf16.vlgmr.msra.gmra.mxu1 %v1973_v52 }
 0x71e   :  { %2080 = vmatpush1.bf16.msra.mxu0 %v3807_v33  ;;  %2123 = vmatpush1.bf16.msra.mxu1 %v3810_v27  ;;  %v2809_v33 = vld [vmem:[#allocation4 + $0x30] sm:$0xff]  }
 0x71f   :  { %2081 = vmatprep.subr.bf16.mxu0 %v3813_v7  ;;  %2124 = vmatprep.subr.bf16.mxu1 %v3816_v3  ;;  %v3131_v27 = vld [vmem:[#allocation9 + $0xe4] ss:$16 sps:$4 sm:$0xff]   ;;  %v3132_v7 = vld [vmem:[#allocation9 + $0xec] ss:$16 sps:$4 sm:$0xff]   ;;  %v3133_v3 = vld [vmem:[#allocation9 + $0xe0] ss:$16 sps:$4 sm:$0xff]  }
 0x720   :  { %2111 = vmatprep.mubr.bf16.mxu0 %v4393_v0  ;;  %2154 = vmatprep.mubr.bf16.mxu1 %v4393_v0 }
 0x722   :  { %2082 = vmatpush1.bf16.msra.mxu0 %v3821_v9  ;;  %2125 = vmatpush1.bf16.msra.mxu1 %v3824_v31  ;;  %v3134_v9 = vld [vmem:[#allocation9 + $0xe8] ss:$16 sps:$4 sm:$0xff]   ;;  %v3135_v31 = vld [vmem:[#allocation9 + $0xc4] ss:$16 sps:$4 sm:$0xff]  }
 0x723   :  { %2083 = vmatprep.subr.bf16.mxu0 %v3827_v22  ;;  %2126 = vmatprep.subr.bf16.mxu1 %v3830_v35  ;;  %v3136_v22 = vld [vmem:[#allocation9 + $0xcc] ss:$16 sps:$4 sm:$0xff]   ;;  %v3137_v35 = vld [vmem:[#allocation9 + $0xc0] ss:$16 sps:$4 sm:$0xff]  }
 0x726   :  { %2084 = vmatpush1.bf16.msra.mxu0 %v3833_v19  ;;  %2127 = vmatpush1.bf16.msra.mxu1 %v3836_v24  ;;  %v3138_v19 = vld [vmem:[#allocation9 + $0xc8] ss:$16 sps:$4 sm:$0xff]   ;;  %v3139_v24 = vld [vmem:[#allocation9 + $0xa4] ss:$16 sps:$4 sm:$0xff]  }
 0x727   :  { %2085 = vmatprep.subr.bf16.mxu0 %v3839_v12  ;;  %2128 = vmatprep.subr.bf16.mxu1 %v3842_v26  ;;  %v3140_v12 = vld [vmem:[#allocation9 + $0xac] ss:$16 sps:$4 sm:$0xff]   ;;  %v3141_v26 = vld [vmem:[#allocation9 + $0xa0] ss:$16 sps:$4 sm:$0xff]  }
 0x72a   :  { %2086 = vmatpush1.bf16.msra.mxu0 %v3845_v15  ;;  %2129 = vmatpush1.bf16.msra.mxu1 %v3848_v23  ;;  %v3142_v15 = vld [vmem:[#allocation9 + $0xa8] ss:$16 sps:$4 sm:$0xff]   ;;  %v3143_v23 = vld [vmem:[#allocation9 + $0x84] ss:$16 sps:$4 sm:$0xff]  }
 0x72b   :  { %2087 = vmatprep.subr.bf16.mxu0 %v3851_v2  ;;  %2130 = vmatprep.subr.bf16.mxu1 %v3854_v28  ;;  %v3144_v2 = vld [vmem:[#allocation9 + $0x8c] ss:$16 sps:$4 sm:$0xff]   ;;  %v3145_v28 = vld [vmem:[#allocation9 + $0x80] ss:$16 sps:$4 sm:$0xff]  }
 0x72e   :  { %2088 = vmatpush1.bf16.msra.mxu0 %v3857_v36  ;;  %2131 = vmatpush1.bf16.msra.mxu1 %v3860_v21  ;;  %v3146_v36 = vld [vmem:[#allocation9 + $0x88] ss:$16 sps:$4 sm:$0xff]   ;;  %v3147_v21 = vld [vmem:[#allocation9 + $0x64] ss:$16 sps:$4 sm:$0xff]  }
 0x72f   :  { %2089 = vmatprep.subr.bf16.mxu0 %v3979_v13  ;;  %2132 = vmatprep.subr.bf16.mxu1 %v3982_v34 }
 0x732   :  { %2090 = vmatpush1.bf16.msra.mxu0 %v3985_v38  ;;  %2133 = vmatpush1.bf16.msra.mxu1 %v3988_v4 }
 0x733   :  { %2091 = vmatprep.subr.bf16.mxu0 %v3991_v16  ;;  %2134 = vmatprep.subr.bf16.mxu1 %v3994_v32 }
 0x736   :  { %2092 = vmatpush1.bf16.msra.mxu0 %v3997_v17  ;;  %2135 = vmatpush1.bf16.msra.mxu1 %v4000_v10 }
 0x737   :  { %2093 = vmatprep.subr.bf16.mxu0 %v4003_v25  ;;  %2136 = vmatprep.subr.bf16.mxu1 %v4006_v8 }
 0x73a   :  { %2094 = vmatpush1.bf16.msra.mxu0 %v4009_v1  ;;  %2137 = vmatpush1.bf16.msra.mxu1 %v4012_v63 }
 0x73b   :  { %2235 = vmatprep.subr.bf16.mxu0 %v3131_v27  ;;  %2278 = vmatprep.subr.bf16.mxu1 %v3132_v7 }
 0x73d   :  { %2112 = vmatmul.mubr.bf16.vlgmr.msra.gmra.mxu0 %v2809_v33  ;;  %2155 = vmatmul.mubr.bf16.vlgmr.msra.gmra.mxu1 %v2809_v33 }
 0x73e   :  { %2236 = vmatpush1.bf16.msra.mxu0 %v3133_v3  ;;  %2279 = vmatpush1.bf16.msra.mxu1 %v3134_v9 }
 0x73f   :  { %2237 = vmatprep.subr.bf16.mxu0 %v3135_v31  ;;  %2280 = vmatprep.subr.bf16.mxu1 %v3136_v22 }
 0x740   :  { %2267 = vmatprep.mubr.bf16.mxu0 %v4393_v0  ;;  %2310 = vmatprep.mubr.bf16.mxu1 %v4393_v0 }
 0x742   :  { %2238 = vmatpush1.bf16.msra.mxu0 %v3137_v35  ;;  %2281 = vmatpush1.bf16.msra.mxu1 %v3138_v19 }
 0x743   :  { %2239 = vmatprep.subr.bf16.mxu0 %v3139_v24  ;;  %2282 = vmatprep.subr.bf16.mxu1 %v3140_v12 }
 0x746   :  { %2240 = vmatpush1.bf16.msra.mxu0 %v3141_v26  ;;  %2283 = vmatpush1.bf16.msra.mxu1 %v3142_v15 }
 0x747   :  { %2241 = vmatprep.subr.bf16.mxu0 %v3143_v23  ;;  %2284 = vmatprep.subr.bf16.mxu1 %v3144_v2 }
 0x74a   :  { %2242 = vmatpush1.bf16.msra.mxu0 %v3145_v28  ;;  %2285 = vmatpush1.bf16.msra.mxu1 %v3146_v36 }
 0x74b   :  { %2243 = vmatprep.subr.bf16.mxu0 %v3147_v21  ;;  %2286 = vmatprep.subr.bf16.mxu1 %v3148_v47 }
 0x74e   :  { %2244 = vmatpush1.bf16.msra.mxu0 %v4509_v59  ;;  %2287 = vmatpush1.bf16.msra.mxu1 %v4510_v46  ;;  %v4534_v59 = vld [vmem:[#allocation40_spill] sm:$0xff]  ;;  %v4535_v46 = vld [vmem:[#allocation41_spill] sm:$0xff] }
 0x74f   :  { %2245 = vmatprep.subr.bf16.mxu0 %v4525_v39  ;;  %2288 = vmatprep.subr.bf16.mxu1 %v4526_v37 }
 0x752   :  { %2246 = vmatpush1.bf16.msra.mxu0 %v4527_v50  ;;  %2289 = vmatpush1.bf16.msra.mxu1 %v4528_v5 }
 0x753   :  { %2247 = vmatprep.subr.bf16.mxu0 %v4529_v55  ;;  %2290 = vmatprep.subr.bf16.mxu1 %v4530_v60 }
 0x756   :  { %2248 = vmatpush1.bf16.msra.mxu0 %v4531_v56  ;;  %2291 = vmatpush1.bf16.msra.mxu1 %v4532_v53 }
 0x757   :  { %2249 = vmatprep.subr.bf16.mxu0 %v4533_v30  ;;  %2292 = vmatprep.subr.bf16.mxu1 %v4534_v59 }
 0x75a   :  { %2250 = vmatpush1.bf16.msra.mxu0 %v4535_v46  ;;  %2293 = vmatpush1.bf16.msra.mxu1 %v4536_v49 }
 0x75b   :  { %2327 = vmatprep.subr.bf16.mxu0 %v4537_v62  ;;  %2370 = vmatprep.subr.bf16.mxu1 %v4538_v57 }
 0x7dd   :  { %v2021_v40 = vpop.f32.mrf.mxu0  ;;  %v2064_v58 = vpop.f32.mrf.mxu1 }
 0x7df   :  { %v2023_v44 = vpop.f32.mrf.mxu0  ;;  %v2066_v43 = vpop.f32.mrf.mxu1 }
 0x7e1   :  { %v2025_v29 = vpop.f32.mrf.mxu0  ;;  %v2068_v42 = vpop.f32.mrf.mxu1 }
 0x7e3   :  { %v2027_v48 = vpop.f32.mrf.mxu0  ;;  %v2070_v51 = vpop.f32.mrf.mxu1 }
 0x7fd   :  { %v2113_v45 = vpop.f32.mrf.mxu0  ;;  %v2156_v61 = vpop.f32.mrf.mxu1 }
 0x7fe   :  { %v2114_v54 = vadd.f32 %v2113_v45, %v2021_v40  ;;  %v2157_v21 = vadd.f32 %v2156_v61, %v2064_v58 }
 0x7ff   :  { %v2115_v52 = vpop.f32.mrf.mxu0  ;;  %v2158_v7 = vpop.f32.mrf.mxu1 }
 0x800   :  { %v2165_v33 = vadd.f32 %v2114_v54, %v3579_v20  ;;  %v2116_v27 = vadd.f32 %v2115_v52, %v2023_v44  ;;  %v2159_v36 = vadd.f32 %v2158_v7, %v2066_v43  ;;  %v2167_v37 = vadd.f32 %v2157_v21, %v3589_v14  ;;  %v3156_v21 = vld [vmem:[#allocation7 + $0xac] ss:$16 sps:$4 sm:$0xff]  }
 0x801   :  { %v2117_v3 = vpop.f32.mrf.mxu0  ;;  %v2160_v24 = vpop.f32.mrf.mxu1 }
 0x802   :  { %v2622_v9 = vmul.f32 -1.442695, %v2165_v33  ;;  %v2166_v31 = vadd.f32 %v2116_v27, %v3581_v18  ;;  %v2118_v22 = vadd.f32 %v2117_v3, %v2025_v29  ;;  %v2168_v39 = vadd.f32 %v2159_v36, %v3587_v6  ;;  %v3155_v36 = vld [vmem:[#allocation7 + $0xa4] ss:$16 sps:$4 sm:$0xff]  }
 0x803   :  { %v2119_v35 = vpop.f32.mrf.mxu0  ;;  %v2162_v28 = vpop.f32.mrf.mxu1  ;;  %v2161_v5 = vadd.f32 %v2160_v24, %v2068_v42 }
 0x804   :  { %3003 = vpow2.f32 %v2622_v9  ;;  %v2624_v19 = vmul.f32 -1.442695, %v2166_v31  ;;  %v2120_v12 = vadd.f32 %v2119_v35, %v2027_v48  ;;  %v2169_v26 = vadd.f32 %v2118_v22, %v3579_v20 }
 0x805   :  { %v2163_v47 = vadd.f32 %v2162_v28, %v2070_v51  ;;  %v2626_v60 = vmul.f32 -1.442695, %v2168_v39  ;;  %v2171_v46 = vadd.f32 %v2161_v5, %v3589_v14  ;;  %v3154_v28 = vld [vmem:[#allocation7 + $0xc8] ss:$16 sps:$4 sm:$0xff]   ;;  %v3161_v5 = vld [vmem:[#allocation7 + $0x80] ss:$16 sps:$4 sm:$0xff]  }
 0x806   :  { %3005 = vpow2.f32 %v2624_v19  ;;  %v2170_v15 = vadd.f32 %v2120_v12, %v3581_v18  ;;  %v2623_v23 = vmul.f32 -1.442695, %v2169_v26  ;;  %v3149_v26 = vld [vmem:[#allocation7 + $0xe0] ss:$16 sps:$4 sm:$0xff]   ;;  %v3158_v39 = vld [vmem:[#allocation7 + $0xa8] ss:$16 sps:$4 sm:$0xff]  }
 0x807   :  { %v2172_v50 = vadd.f32 %v2163_v47, %v3587_v6  ;;  %v3157_v47 = vld [vmem:[#allocation7 + $0xa0] ss:$16 sps:$4 sm:$0xff]  }
 0x808   :  { %v2625_v2 = vmul.f32 -1.442695, %v2170_v15  ;;  %3007 = vpow2.f32 %v2623_v23  ;;  %v3151_v15 = vld [vmem:[#allocation7 + $0xc4] ss:$16 sps:$4 sm:$0xff]   ;;  %v3152_v23 = vld [vmem:[#allocation7 + $0xcc] ss:$16 sps:$4 sm:$0xff]  }
 0x809   :  { %v2627_v30 = vmul.f32 -1.442695, %v2172_v50  ;;  %v3160_v50 = vld [vmem:[#allocation7 + $0x8c] ss:$16 sps:$4 sm:$0xff]  }
 0x80a   :  { %3009 = vpow2.f32 %v2625_v2  ;;  %v3153_v2 = vld [vmem:[#allocation7 + $0xc0] ss:$16 sps:$4 sm:$0xff]  }
 0x80b   :  { %3011 = vtanh.f32 %v2167_v37  ;;  %v3159_v37 = vld [vmem:[#allocation7 + $0x84] ss:$16 sps:$4 sm:$0xff]  }
 0x811   :  { %v3004_v55 = vpop.eup %3003 }
 0x812   :  { %v2179_v56 = vadd.f32 1.0, %v3004_v55  ;;  %v3162_v55 = vld [vmem:[#allocation7 + $0x88] ss:$16 sps:$4 sm:$0xff]  }
 0x813   :  { %v3006_v53 = vpop.eup %3005 }
 0x814   :  { %3013 = vrcp.f32 %v2179_v56  ;;  %v2191_v59 = vadd.f32 1.0, %v3006_v53  ;;  %v3165_v56 = vld [vmem:[#allocation7 + $0x60] ss:$16 sps:$4 sm:$0xff]   ;;  %v3166_v53 = vld [vmem:[#allocation7 + $0x68] ss:$16 sps:$4 sm:$0xff]  }
 0x815   :  { %3015 = vpow2.f32 %v2626_v60  ;;  %v3008_v49 = vpop.eup %3007  ;;  %v3164_v60 = vld [vmem:[#allocation7 + $0x6c] ss:$16 sps:$4 sm:$0xff]  }
 0x816   :  { %3017 = vrcp.f32 %v2191_v59  ;;  %v2180_v57 = vadd.f32 1.0, %v3008_v49 }
 0x817   :  { %v3010_v62 = vpop.eup %3009  ;;  %3019 = vpow2.f32 %v2627_v30  ;;  %v2810_v30 = vld [vmem:[#allocation4 + $0x38] sm:$0xff]  }
 0x818   :  { %3021 = vtanh.f32 %v2171_v46  ;;  %v2192_v40 = vadd.f32 1.0, %v3010_v62  ;;  %v3012_v58 = vpop.eup %3011 }
 0x819   :  { %3023 = vrcp.f32 %v2180_v57 }
 0x81a   :  { %3025 = vrcp.f32 %v2192_v40 }
 0x821   :  { %v3014_v44 = vpop.eup %3013 }
 0x822   :  { %v3016_v43 = vpop.eup %3015  ;;  %v2213_v48 = vmul.f32 %v3014_v44, %v3012_v58 }
 0x823   :  { %v3018_v29 = vpop.eup %3017  ;;  %v2205_v61 = vadd.f32 1.0, %v3016_v43 }
 0x824   :  { %v3020_v42 = vpop.eup %3019  ;;  %v2211_v51 = vmul.f32 %v3018_v29, %v4144_v41 }
 0x825   :  { %v3022_v45 = vpop.eup %3021  ;;  %v2206_v27 = vadd.f32 1.0, %v3020_v42  ;;  %3027 = vrcp.f32 %v2205_v61 }
 0x826   :  { %v3024_v54 = vpop.eup %3023  ;;  %v4210_v52 = vadd.f32 %v2213_v48, %v2211_v51 }
 0x827   :  { %v3026_v33 = vpop.eup %3025  ;;  %v2214_v7 = vmul.f32 %v3024_v54, %v3022_v45 }
 0x828   :  { %v2212_v3 = vmul.f32 %v3026_v33, %v4147_v11  ;;  %3029 = vtanh.f32 %v4210_v52  ;;  %v3150_v11 = vld [vmem:[#allocation7 + $0xe8] ss:$16 sps:$4 sm:$0xff]  }
 0x829   :  { %3031 = vrcp.f32 %v2206_v27 }
 0x82a   :  { %v4213_v9 = vadd.f32 %v2214_v7, %v2212_v3 }
 0x82c   :  { %3033 = vtanh.f32 %v4213_v9 }
 0x832   :  { %v3028_v31 = vpop.eup %3027 }
 0x835   :  { %v3030_v41 = vpop.eup %3029 }
 0x836   :  { %v3032_v22 = vpop.eup %3031  ;;  %v2219_v19 = vmul.f32 %v3030_v41, %v3028_v31 }
 0x839   :  { %v3034_v35 = vpop.eup %3033 }
 0x83a   :  { %v2220_v24 = vmul.f32 %v3034_v35, %v3032_v22 }
 0x83c   :  { %v2221_v12 = vpack.c.bf16 %v2220_v24, %v2219_v19 }
 0x83e   :  { %2689 = vst [vmem:[#allocation12 + $0x30] sm:$0xff] %v2221_v12   ;;  %2268 = vmatmul.mubr.bf16.vlgmr.msra.gmra.mxu0 %v2221_v12  ;;  %2311 = vmatmul.mubr.bf16.vlgmr.msra.gmra.mxu1 %v2221_v12 }
 0x83f   :  { %2328 = vmatpush1.bf16.msra.mxu0 %v3149_v26  ;;  %2371 = vmatpush1.bf16.msra.mxu1 %v3150_v11 }
 0x840   :  { %2329 = vmatprep.subr.bf16.mxu0 %v3151_v15  ;;  %2372 = vmatprep.subr.bf16.mxu1 %v3152_v23 }
 0x841   :  { %2359 = vmatprep.mubr.bf16.mxu0 %v4393_v0  ;;  %2402 = vmatprep.mubr.bf16.mxu1 %v4393_v0  ;;  %v3163_v0 = vld [vmem:[#allocation7 + $0x64] ss:$16 sps:$4 sm:$0xff]  }
 0x843   :  { %2330 = vmatpush1.bf16.msra.mxu0 %v3153_v2  ;;  %2373 = vmatpush1.bf16.msra.mxu1 %v3154_v28 }
 0x844   :  { %2331 = vmatprep.subr.bf16.mxu0 %v3155_v36  ;;  %2374 = vmatprep.subr.bf16.mxu1 %v3156_v21 }
 0x847   :  { %2332 = vmatpush1.bf16.msra.mxu0 %v3157_v47  ;;  %2375 = vmatpush1.bf16.msra.mxu1 %v3158_v39 }
 0x848   :  { %2333 = vmatprep.subr.bf16.mxu0 %v3159_v37  ;;  %2376 = vmatprep.subr.bf16.mxu1 %v3160_v50 }
 0x84b   :  { %2334 = vmatpush1.bf16.msra.mxu0 %v3161_v5  ;;  %2377 = vmatpush1.bf16.msra.mxu1 %v3162_v55 }
 0x84c   :  { %2335 = vmatprep.subr.bf16.mxu0 %v3163_v0  ;;  %2378 = vmatprep.subr.bf16.mxu1 %v3164_v60 }
 0x84f   :  { %2336 = vmatpush1.bf16.msra.mxu0 %v3165_v56  ;;  %2379 = vmatpush1.bf16.msra.mxu1 %v3166_v53 }
 0x850   :  { %2337 = vmatprep.subr.bf16.mxu0 %v3979_v13  ;;  %2380 = vmatprep.subr.bf16.mxu1 %v3982_v34 }
 0x853   :  { %2338 = vmatpush1.bf16.msra.mxu0 %v3985_v38  ;;  %2381 = vmatpush1.bf16.msra.mxu1 %v3988_v4 }
 0x854   :  { %2339 = vmatprep.subr.bf16.mxu0 %v3991_v16  ;;  %2382 = vmatprep.subr.bf16.mxu1 %v3994_v32 }
 0x857   :  { %2340 = vmatpush1.bf16.msra.mxu0 %v3997_v17  ;;  %2383 = vmatpush1.bf16.msra.mxu1 %v4000_v10 }
 0x858   :  { %2341 = vmatprep.subr.bf16.mxu0 %v4003_v25  ;;  %2384 = vmatprep.subr.bf16.mxu1 %v4006_v8 }
 0x85b   :  { %2342 = vmatpush1.bf16.msra.mxu0 %v4009_v1  ;;  %2385 = vmatpush1.bf16.msra.mxu1 %v4012_v63 }
 0x85e   :  { %2360 = vmatmul.mubr.bf16.vlgmr.msra.gmra.mxu0 %v2810_v30  ;;  %2403 = vmatmul.mubr.bf16.vlgmr.msra.gmra.mxu1 %v2810_v30 }
 0x8fe   :  { %v2269_v13 = vpop.f32.mrf.mxu0  ;;  %v2312_v34 = vpop.f32.mrf.mxu1 }
 0x900   :  { %v2271_v38 = vpop.f32.mrf.mxu0  ;;  %v2314_v4 = vpop.f32.mrf.mxu1 }
 0x902   :  { %v2273_v16 = vpop.f32.mrf.mxu0  ;;  %v2316_v32 = vpop.f32.mrf.mxu1 }
 0x904   :  { %v2275_v17 = vpop.f32.mrf.mxu0  ;;  %v2318_v59 = vpop.f32.mrf.mxu1 }
 0x91e   :  { %v2361_v10 = vpop.f32.mrf.mxu0  ;;  %v2404_v46 = vpop.f32.mrf.mxu1 }
 0x91f   :  { %v2362_v25 = vadd.f32 %v2361_v10, %v2269_v13  ;;  %v2405_v27 = vadd.f32 %v2404_v46, %v2312_v34 }
 0x920   :  { %v2363_v49 = vpop.f32.mrf.mxu0  ;;  %v2406_v1 = vpop.f32.mrf.mxu1 }
 0x921   :  { %v2413_v8 = vadd.f32 %v2362_v25, %v3579_v20  ;;  %v2364_v62 = vadd.f32 %v2363_v49, %v2271_v38  ;;  %v2407_v33 = vadd.f32 %v2406_v1, %v2314_v4  ;;  %v2415_v31 = vadd.f32 %v2405_v27, %v3589_v14 }
 0x922   :  { %v2365_v57 = vpop.f32.mrf.mxu0  ;;  %v2408_v29 = vpop.f32.mrf.mxu1 }
 0x923   :  { %v2631_v63 = vmul.f32 -1.442695, %v2413_v8  ;;  %v2414_v40 = vadd.f32 %v2364_v62, %v3581_v18  ;;  %v2366_v58 = vadd.f32 %v2365_v57, %v2273_v16  ;;  %v2416_v3 = vadd.f32 %v2407_v33, %v3587_v6 }
 0x924   :  { %v2367_v44 = vpop.f32.mrf.mxu0  ;;  %v2410_v54 = vpop.f32.mrf.mxu1  ;;  %v2409_v22 = vadd.f32 %v2408_v29, %v2316_v32 }
 0x925   :  { %3035 = vpow2.f32 %v2631_v63  ;;  %v2633_v43 = vmul.f32 -1.442695, %v2414_v40  ;;  %v2368_v42 = vadd.f32 %v2367_v44, %v2275_v17  ;;  %v2417_v48 = vadd.f32 %v2366_v58, %v3579_v20 }
 0x926   :  { %v2411_v7 = vadd.f32 %v2410_v54, %v2318_v59  ;;  %v2635_v20 = vmul.f32 -1.442695, %v2416_v3  ;;  %v2419_v26 = vadd.f32 %v2409_v22, %v3589_v14 }
 0x927   :  { %3037 = vpow2.f32 %v2633_v43  ;;  %v2418_v51 = vadd.f32 %v2368_v42, %v3581_v18  ;;  %v2632_v45 = vmul.f32 -1.442695, %v2417_v48 }
 0x928   :  { %v2420_v41 = vadd.f32 %v2411_v7, %v3587_v6 }
 0x929   :  { %v2634_v61 = vmul.f32 -1.442695, %v2418_v51  ;;  %3039 = vpow2.f32 %v2632_v45 }
 0x92a   :  { %v2636_v18 = vmul.f32 -1.442695, %v2420_v41 }
 0x92b   :  { %3041 = vpow2.f32 %v2634_v61 }
 0x92c   :  { %3043 = vtanh.f32 %v2415_v31 }
 0x932   :  { %v3036_v35 = vpop.eup %3035 }
 0x933   :  { %v2427_v19 = vadd.f32 1.0, %v3036_v35 }
 0x934   :  { %v3038_v24 = vpop.eup %3037 }
 0x935   :  { %3045 = vrcp.f32 %v2427_v19  ;;  %v2439_v12 = vadd.f32 1.0, %v3038_v24 }
 0x936   :  { %3047 = vpow2.f32 %v2635_v20  ;;  %v3040_v11 = vpop.eup %3039 }
 0x937   :  { %3049 = vrcp.f32 %v2439_v12  ;;  %v2428_v23 = vadd.f32 1.0, %v3040_v11 }
 0x938   :  { %v3042_v15 = vpop.eup %3041  ;;  %3051 = vpow2.f32 %v2636_v18 }
 0x939   :  { %3053 = vtanh.f32 %v2419_v26  ;;  %v2440_v2 = vadd.f32 1.0, %v3042_v15  ;;  %v3044_v6 = vpop.eup %3043 }
 0x93a   :  { %3055 = vrcp.f32 %v2428_v23 }
 0x93b   :  { %3057 = vrcp.f32 %v2440_v2 }
 0x942   :  { %v3046_v28 = vpop.eup %3045 }
 0x943   :  { %v3048_v36 = vpop.eup %3047  ;;  %v2461_v39 = vmul.f32 %v3046_v28, %v3044_v6 }
 0x944   :  { %v3050_v21 = vpop.eup %3049  ;;  %v2453_v14 = vadd.f32 1.0, %v3048_v36 }
 0x945   :  { %v3052_v47 = vpop.eup %3051  ;;  %v2459_v37 = vmul.f32 %v3050_v21, %v4210_v52 }
 0x946   :  { %v3054_v50 = vpop.eup %3053  ;;  %v2454_v60 = vadd.f32 1.0, %v3052_v47  ;;  %3059 = vrcp.f32 %v2453_v14 }
 0x947   :  { %v3056_v5 = vpop.eup %3055  ;;  %v2463_v55 = vadd.f32 %v2461_v39, %v2459_v37 }
 0x948   :  { %v3058_v0 = vpop.eup %3057  ;;  %v2462_v56 = vmul.f32 %v3056_v5, %v3054_v50 }
 0x949   :  { %v2460_v53 = vmul.f32 %v3058_v0, %v4213_v9  ;;  %3061 = vtanh.f32 %v2463_v55 }
 0x94a   :  { %3063 = vrcp.f32 %v2454_v60 }
 0x94b   :  { %v2464_v30 = vadd.f32 %v2462_v56, %v2460_v53 }
 0x94d   :  { %3065 = vtanh.f32 %v2464_v30 }
 0x953   :  { %v3060_v13 = vpop.eup %3059 }
 0x956   :  { %v3062_v34 = vpop.eup %3061 }
 0x957   :  { %v3064_v38 = vpop.eup %3063  ;;  %v2467_v52 = vmul.f32 %v3062_v34, %v3060_v13 }
 0x95a   :  { %v3066_v4 = vpop.eup %3065 }
 0x95b   :  { %v2468_v16 = vmul.f32 %v3066_v4, %v3064_v38 }
 0x95d   :  { %v2693_v32 = vpack.c.bf16 %v2468_v16, %v2467_v52 }
 0x95f   :  { %2694 = vst [vmem:[#allocation12 + $0x38] sm:$0xff] %v2693_v32  }
 0x960   :  { %3258 = shalt.err (!%p3255_p10)
}
 0x961   :  { %2495 = dma.vmem_to_hbm [thread:$0]  %s2490_s17, 1024, %s4252_s5, [#allocation6], %s3279_s28, %s3279_s28, %s3280_s29  }
 0x962   :  { %3273 = dma.done.wait [#allocation6], 1024  }
 0x963   :  { %3274 = vsyncadd [#allocation6], 4294966272 }
 0x964   :  { %2499 = vsyncpa [#allocation5], 1 }
 0x965   :  { %2500 = vsyncpa [#allocation8], 1 }
 0x966   :  { %2501 = vsyncpa [#allocation11], 1 }
 0x967   :  { %2502 = vsyncpa [#allocation6], 1 }

// kernel: tpu_custom_call.1
= control target key start
LH: loop header
LB: loop body
LE: loop exit
PB: predicated region body
PF: predicated region fallthrough
CT: control target
= control target key end

     0   :  { %10 = vsyncpa [#allocation5], 0  ;;  %s4247_s0 = inlined_call_operand.hbm [shape: bf16[8,16,128], index: 0, kind: input, shape index: {}]   ;;  %s4248_s1 = inlined_call_operand.hbm [shape: bf16[128,512], index: 1, kind: input, shape index: {}]   ;;  %s4249_s2 = inlined_call_operand.hbm [shape: bf16[128,512], index: 2, kind: input, shape index: {}]   ;;  %s4250_s3 = inlined_call_operand.vmem [shape: f32[1,512], index: 3, kind: input, shape index: {}]   ;;  %s4251_s4 = inlined_call_operand.hbm [shape: f32[16,128], index: 4, kind: input, shape index: {}]   ;;  %s4252_s5 = inlined_call_operand.hbm [shape: bf16[8,16,128], index: 5, kind: output, shape index: {}]  }
   0x1   :  { %11 = vsyncpa [#allocation8], 0 }
   0x2   :  { %12 = vsyncpa [#allocation11], 0 }
   0x3   :  { %13 = vsyncpa [#allocation6], 0  ;;  %s3275_s18 = smov [#allocation7]  }
   0x4   :  { %s31_s19 = sshll.u32 %s3275_s18, 4  ;;  %s32_s19 = int_to_ptr.vmem [resolvable:$true] %s31_s19 }
   0x5   :  { %s3175_s20 = scalar_lea.vmem %s32_s19, 4096  ;;  %p3180_p1 = scmp.lt.s32.totalorder %s32_s19, %s32_s19 }
   0x6   :  { %p3176_p0 = scmp.ne.s32.totalorder %s32_s19, %s3175_s20  ;;  %p3181_p2 = scmp.lt.s32.totalorder %s3175_s20, %s3175_s20 }
   0x8   :  { %p3182_p3 = por %p3181_p2, %p3180_p1 }
   0xa   :  { %p3183_p4 = pnand %p3182_p3, %p3176_p0 }
   0xc   :  { %3186 = shalt.err (!%p3183_p4)
}
   0xd   :  { %s3276_s21 = smov 256   ;;  %s3277_s22 = smov 16  }
   0xe   :  { %37 = dma.hbm_to_vmem [thread:$0]  %s4248_s1, 4096, %s32_s19, [#allocation8], %s3276_s21, %s3276_s21, %s3277_s22  }
   0xf   :  { %s3278_s25 = smov [#allocation4]  }
  0x10   :  { %s19_s26 = sshll.u32 %s3278_s25, 4  ;;  %s20_s26 = int_to_ptr.vmem [resolvable:$true] %s19_s26 }
  0x11   :  { %s3195_s27 = scalar_lea.vmem %s20_s26, 1024  ;;  %p3200_p6 = scmp.lt.s32.totalorder %s20_s26, %s20_s26 }
  0x12   :  { %p3196_p5 = scmp.ne.s32.totalorder %s20_s26, %s3195_s27  ;;  %p3201_p7 = scmp.lt.s32.totalorder %s3195_s27, %s3195_s27 }
  0x14   :  { %p3202_p8 = por %p3201_p7, %p3200_p6 }
  0x16   :  { %p3203_p9 = pnand %p3202_p8, %p3196_p5 }
  0x18   :  { %3206 = shalt.err (!%p3203_p9)
}
  0x19   :  { %s3279_s28 = smov 64   ;;  %s3280_s29 = smov 4  }
  0x1a   :  { %25 = dma.hbm_to_vmem [thread:$0]  %s4247_s0, 1024, %s20_s26, [#allocation5], %s3279_s28, %s3279_s28, %s3280_s29  }
  0x1b   :  { %s3281_s1 = smov [#allocation9]   ;;  %s3282_s8 = smov [#allocation10]  }
  0x1c   :  { %s43_s7 = sshll.u32 %s3281_s1, 4  ;;  %s57_s9 = sshll.u32 %s3282_s8, 4  ;;  %s44_s7 = int_to_ptr.vmem [resolvable:$true] %s43_s7  ;;  %s58_s9 = int_to_ptr.vmem [resolvable:$true] %s57_s9 }
  0x1d   :  { %s3215_s10 = scalar_lea.vmem %s44_s7, 4096  ;;  %p3220_p11 = scmp.lt.s32.totalorder %s44_s7, %s44_s7 }
  0x1e   :  { %p3216_p10 = scmp.ne.s32.totalorder %s44_s7, %s3215_s10  ;;  %p3221_p12 = scmp.lt.s32.totalorder %s3215_s10, %s3215_s10 }
  0x20   :  { %p3222_p13 = por %p3221_p12, %p3220_p11 }
  0x22   :  { %p3223_p0 = pnand %p3222_p13, %p3216_p10 }
  0x24   :  { %3226 = shalt.err (!%p3223_p0)
}
  0x25   :  { %49 = dma.hbm_to_vmem [thread:$0]  %s4249_s2, 4096, %s44_s7, [#allocation8], %s3276_s21, %s3276_s21, %s3277_s22  }
  0x26   :  { %s3235_s0 = scalar_lea.vmem %s58_s9, 256  ;;  %p3240_p2 = scmp.lt.s32.totalorder %s58_s9, %s58_s9 }
  0x27   :  { %p3236_p1 = scmp.ne.s32.totalorder %s58_s9, %s3235_s0  ;;  %p3241_p3 = scmp.lt.s32.totalorder %s3235_s0, %s3235_s0 }
  0x29   :  { %p3242_p4 = por %p3241_p3, %p3240_p2 }
  0x2b   :  { %p3243_p5 = pnand %p3242_p4, %p3236_p1 }
  0x2d   :  { %3246 = shalt.err (!%p3243_p5)
}
  0x2e   :  { %s3283_s13 = smov 128   ;;  %s3284_s14 = smov 8  }
  0x2f   :  { %63 = dma.hbm_to_vmem [thread:$0]  %s4251_s4, 256, %s58_s9, [#allocation11], %s3283_s13, %s3283_s13, %s3284_s14  }
  0x30   :  { %3267 = dma.done.wait [#allocation5], 1024  }
  0x31   :  { %3268 = vsyncadd [#allocation5], 4294966272 }
  0x32   :  { %3269 = dma.done.wait [#allocation8], 8192  }
  0x33   :  { %3270 = vsyncadd [#allocation8], 4294959104 }
  0x34   :  { %3271 = dma.done.wait [#allocation11], 256  }
  0x35   :  { %3272 = vsyncadd [#allocation11], 4294967040  ;;  %v4253_v0 = vmov 0   ;;  %v3340_v1 = vld [vmem:[#allocation9 + $0xe4] ss:$16 sps:$4 sm:$0xff]   ;;  %v3434_v34 = vld [vmem:[#allocation10 + $0x8] sm:$0xff] }
  0x36   :  { %372 = vmatprep.mubr.bf16.mxu0 %v4253_v0  ;;  %415 = vmatprep.mubr.bf16.mxu1 %v4253_v0  ;;  %v3342_v2 = vld [vmem:[#allocation9 + $0xec] ss:$16 sps:$4 sm:$0xff]   ;;  %v3345_v3 = vld [vmem:[#allocation9 + $0xe0] ss:$16 sps:$4 sm:$0xff]   ;;  %v3347_v4 = vld [vmem:[#allocation9 + $0xe8] ss:$16 sps:$4 sm:$0xff]  }
  0x37   :  { %340 = vmatprep.subr.bf16.mxu0 %v3340_v1  ;;  %383 = vmatprep.subr.bf16.mxu1 %v3342_v2  ;;  %v3350_v5 = vld [vmem:[#allocation9 + $0xc4] ss:$16 sps:$4 sm:$0xff]   ;;  %v3354_v6 = vld [vmem:[#allocation9 + $0xcc] ss:$16 sps:$4 sm:$0xff]   ;;  %v3356_v7 = vld [vmem:[#allocation9 + $0xc0] ss:$16 sps:$4 sm:$0xff]  }
  0x38   :  { %341 = vmatpush1.bf16.msra.mxu0 %v3345_v3  ;;  %384 = vmatpush1.bf16.msra.mxu1 %v3347_v4  ;;  %4360 = vst [vmem:[#allocation17_spill] sm:$0xff] %v3354_v6  ;;  %4361 = vst [vmem:[#allocation18_spill] sm:$0xff] %v3356_v7  ;;  %v3359_v8 = vld [vmem:[#allocation9 + $0xc8] ss:$16 sps:$4 sm:$0xff]   ;;  %v3362_v9 = vld [vmem:[#allocation9 + $0xa4] ss:$16 sps:$4 sm:$0xff]  }
  0x39   :  { %342 = vmatprep.subr.bf16.mxu0 %v3350_v5  ;;  %4362 = vst [vmem:[#allocation19_spill] sm:$0xff] %v3359_v8  ;;  %385 = vmatprep.subr.bf16.mxu1 %v3354_v6  ;;  %4363 = vst [vmem:[#allocation20_spill] sm:$0xff] %v3362_v9  ;;  %v3364_v10 = vld [vmem:[#allocation9 + $0xac] ss:$16 sps:$4 sm:$0xff]   ;;  %v3366_v11 = vld [vmem:[#allocation9 + $0xa0] ss:$16 sps:$4 sm:$0xff]  }
  0x3a   :  { %4364 = vst [vmem:[#allocation21_spill] sm:$0xff] %v3364_v10  ;;  %4365 = vst [vmem:[#allocation22_spill] sm:$0xff] %v3366_v11  ;;  %v3368_v12 = vld [vmem:[#allocation9 + $0xa8] ss:$16 sps:$4 sm:$0xff]   ;;  %v3372_v13 = vld [vmem:[#allocation9 + $0x84] ss:$16 sps:$4 sm:$0xff]  }
  0x3b   :  { %4366 = vst [vmem:[#allocation23_spill] sm:$0xff] %v3368_v12  ;;  %4367 = vst [vmem:[#allocation24_spill] sm:$0xff] %v3372_v13  ;;  %v3376_v14 = vld [vmem:[#allocation9 + $0x8c] ss:$16 sps:$4 sm:$0xff]   ;;  %v3378_v15 = vld [vmem:[#allocation9 + $0x80] ss:$16 sps:$4 sm:$0xff]  }
  0x3c   :  { %343 = vmatpush1.bf16.msra.mxu0 %v3356_v7  ;;  %386 = vmatpush1.bf16.msra.mxu1 %v3359_v8  ;;  %4368 = vst [vmem:[#allocation25_spill] sm:$0xff] %v3376_v14  ;;  %4369 = vst [vmem:[#allocation26_spill] sm:$0xff] %v3378_v15  ;;  %v3382_v16 = vld [vmem:[#allocation9 + $0x88] ss:$16 sps:$4 sm:$0xff]   ;;  %v3384_v17 = vld [vmem:[#allocation9 + $0x64] ss:$16 sps:$4 sm:$0xff]  }
  0x3d   :  { %344 = vmatprep.subr.bf16.mxu0 %v3362_v9  ;;  %387 = vmatprep.subr.bf16.mxu1 %v3364_v10  ;;  %4370 = vst [vmem:[#allocation27_spill] sm:$0xff] %v3382_v16  ;;  %4371 = vst [vmem:[#allocation28_spill] sm:$0xff] %v3384_v17  ;;  %v3388_v18 = vld [vmem:[#allocation9 + $0x6c] ss:$16 sps:$4 sm:$0xff]   ;;  %v3390_v19 = vld [vmem:[#allocation9 + $0x60] ss:$16 sps:$4 sm:$0xff]  }
  0x3e   :  { %4372 = vst [vmem:[#allocation29_spill] sm:$0xff] %v3388_v18  ;;  %4373 = vst [vmem:[#allocation30_spill] sm:$0xff] %v3390_v19  ;;  %v3392_v20 = vld [vmem:[#allocation9 + $0x68] ss:$16 sps:$4 sm:$0xff]   ;;  %v3396_v21 = vld [vmem:[#allocation9 + $0x44] ss:$16 sps:$4 sm:$0xff]  }
  0x3f   :  { %4374 = vst [vmem:[#allocation31_spill] sm:$0xff] %v3392_v20  ;;  %4375 = vst [vmem:[#allocation32_spill] sm:$0xff] %v3396_v21  ;;  %v3400_v22 = vld [vmem:[#allocation9 + $0x4c] ss:$16 sps:$4 sm:$0xff]   ;;  %v3404_v23 = vld [vmem:[#allocation9 + $0x40] ss:$16 sps:$4 sm:$0xff]  }
  0x40   :  { %345 = vmatpush1.bf16.msra.mxu0 %v3366_v11  ;;  %388 = vmatpush1.bf16.msra.mxu1 %v3368_v12  ;;  %4376 = vst [vmem:[#allocation33_spill] sm:$0xff] %v3400_v22  ;;  %4377 = vst [vmem:[#allocation34_spill] sm:$0xff] %v3404_v23  ;;  %v3406_v24 = vld [vmem:[#allocation9 + $0x48] ss:$16 sps:$4 sm:$0xff]   ;;  %v3410_v25 = vld [vmem:[#allocation9 + $0x24] ss:$16 sps:$4 sm:$0xff]  }
  0x41   :  { %346 = vmatprep.subr.bf16.mxu0 %v3372_v13  ;;  %389 = vmatprep.subr.bf16.mxu1 %v3376_v14  ;;  %4378 = vst [vmem:[#allocation35_spill] sm:$0xff] %v3406_v24  ;;  %4379 = vst [vmem:[#allocation36_spill] sm:$0xff] %v3410_v25  ;;  %v3412_v26 = vld [vmem:[#allocation9 + $0x2c] ss:$16 sps:$4 sm:$0xff]   ;;  %v3414_v27 = vld [vmem:[#allocation9 + $0x20] ss:$16 sps:$4 sm:$0xff]  }
  0x42   :  { %4380 = vst [vmem:[#allocation37_spill] sm:$0xff] %v3412_v26  ;;  %4381 = vst [vmem:[#allocation38_spill] sm:$0xff] %v3414_v27  ;;  %v3418_v28 = vld [vmem:[#allocation9 + $0x28] ss:$16 sps:$4 sm:$0xff]   ;;  %v3420_v29 = vld [vmem:[#allocation9 + $0x4] ss:$16 sps:$4 sm:$0xff]  }
  0x43   :  { %4382 = vst [vmem:[#allocation39_spill] sm:$0xff] %v3418_v28  ;;  %4383 = vst [vmem:[#allocation40_spill] sm:$0xff] %v3420_v29  ;;  %v3424_v30 = vld [vmem:[#allocation9 + $0xc] ss:$16 sps:$4 sm:$0xff]   ;;  %v3426_v31 = vld [vmem:[#allocation9] ss:$16 sps:$4 sm:$0xff]  }
  0x44   :  { %347 = vmatpush1.bf16.msra.mxu0 %v3378_v15  ;;  %390 = vmatpush1.bf16.msra.mxu1 %v3382_v16  ;;  %4384 = vst [vmem:[#allocation41_spill] sm:$0xff] %v3424_v30  ;;  %4385 = vst [vmem:[#allocation42_spill] sm:$0xff] %v3426_v31  ;;  %v3428_v32 = vld [vmem:[#allocation9 + $0x8] ss:$16 sps:$4 sm:$0xff]   ;;  %v3430_v33 = vld [vmem:[#allocation10] sm:$0xff] }
  0x45   :  { %348 = vmatprep.subr.bf16.mxu0 %v3384_v17  ;;  %391 = vmatprep.subr.bf16.mxu1 %v3388_v18  ;;  %4386 = vst [vmem:[#allocation43_spill] sm:$0xff] %v3428_v32  ;;  %v3438_v35 = vld [vmem:[#allocation7 + $0xe4] ss:$16 sps:$4 sm:$0xff]   ;;  %v3440_v36 = vld [vmem:[#allocation7 + $0xec] ss:$16 sps:$4 sm:$0xff]   ;;  %v179_v37 = vpack.c.bf16 %v3434_v34, %v3430_v33 }
  0x46   :  { %4387 = vst [vmem:[#allocation44_spill] sm:$0xff] %v3438_v35  ;;  %4388 = vst [vmem:[#allocation45_spill] sm:$0xff] %v3440_v36  ;;  %v3444_v38 = vld [vmem:[#allocation7 + $0xe0] ss:$16 sps:$4 sm:$0xff]   ;;  %v3448_v39 = vld [vmem:[#allocation7 + $0xe8] ss:$16 sps:$4 sm:$0xff]  }
  0x47   :  { %v3450_v40 = vld [vmem:[#allocation7 + $0xc4] ss:$16 sps:$4 sm:$0xff]   ;;  %v3454_v41 = vld [vmem:[#allocation7 + $0xcc] ss:$16 sps:$4 sm:$0xff]   ;;  %v3456_v42 = vld [vmem:[#allocation7 + $0xc0] ss:$16 sps:$4 sm:$0xff]  }
  0x48   :  { %349 = vmatpush1.bf16.msra.mxu0 %v3390_v19  ;;  %392 = vmatpush1.bf16.msra.mxu1 %v3392_v20  ;;  %v3460_v43 = vld [vmem:[#allocation7 + $0xc8] ss:$16 sps:$4 sm:$0xff]   ;;  %v3464_v44 = vld [vmem:[#allocation7 + $0xa4] ss:$16 sps:$4 sm:$0xff]   ;;  %v3466_v45 = vld [vmem:[#allocation7 + $0xac] ss:$16 sps:$4 sm:$0xff]  }
  0x49   :  { %350 = vmatprep.subr.bf16.mxu0 %v3396_v21  ;;  %393 = vmatprep.subr.bf16.mxu1 %v3400_v22  ;;  %v3470_v46 = vld [vmem:[#allocation7 + $0xa0] ss:$16 sps:$4 sm:$0xff]   ;;  %v3474_v47 = vld [vmem:[#allocation7 + $0xa8] ss:$16 sps:$4 sm:$0xff]   ;;  %v3476_v48 = vld [vmem:[#allocation7 + $0x84] ss:$16 sps:$4 sm:$0xff]  }
  0x4a   :  { %v3480_v49 = vld [vmem:[#allocation7 + $0x8c] ss:$16 sps:$4 sm:$0xff]   ;;  %v3482_v50 = vld [vmem:[#allocation7 + $0x80] ss:$16 sps:$4 sm:$0xff]   ;;  %v3484_v51 = vld [vmem:[#allocation7 + $0x88] ss:$16 sps:$4 sm:$0xff]  }
  0x4b   :  { %v3486_v52 = vld [vmem:[#allocation7 + $0x64] ss:$16 sps:$4 sm:$0xff]   ;;  %v3490_v53 = vld [vmem:[#allocation7 + $0x6c] ss:$16 sps:$4 sm:$0xff]   ;;  %v3494_v54 = vld [vmem:[#allocation7 + $0x60] ss:$16 sps:$4 sm:$0xff]  }
  0x4c   :  { %351 = vmatpush1.bf16.msra.mxu0 %v3404_v23  ;;  %394 = vmatpush1.bf16.msra.mxu1 %v3406_v24  ;;  %v3496_v55 = vld [vmem:[#allocation7 + $0x68] ss:$16 sps:$4 sm:$0xff]   ;;  %v3502_v56 = vld [vmem:[#allocation7 + $0x44] ss:$16 sps:$4 sm:$0xff]   ;;  %v3504_v57 = vld [vmem:[#allocation7 + $0x4c] ss:$16 sps:$4 sm:$0xff]  }
  0x4d   :  { %352 = vmatprep.subr.bf16.mxu0 %v3410_v25  ;;  %395 = vmatprep.subr.bf16.mxu1 %v3412_v26  ;;  %4389 = vst [vmem:[#allocation46_spill] sm:$0xff] %v3504_v57  ;;  %v3508_v58 = vld [vmem:[#allocation7 + $0x40] ss:$16 sps:$4 sm:$0xff]   ;;  %v3510_v59 = vld [vmem:[#allocation7 + $0x48] ss:$16 sps:$4 sm:$0xff]  }
  0x4e   :  { %4390 = vst [vmem:[#allocation47_spill] sm:$0xff] %v3508_v58  ;;  %4391 = vst [vmem:[#allocation48_spill] sm:$0xff] %v3510_v59  ;;  %v3514_v60 = vld [vmem:[#allocation7 + $0x24] ss:$16 sps:$4 sm:$0xff]   ;;  %v3516_v61 = vld [vmem:[#allocation7 + $0x2c] ss:$16 sps:$4 sm:$0xff]  }
  0x4f   :  { %v3520_v62 = vld [vmem:[#allocation7 + $0x20] ss:$16 sps:$4 sm:$0xff]   ;;  %v3522_v63 = vld [vmem:[#allocation7 + $0x28] ss:$16 sps:$4 sm:$0xff]  }
  0x50   :  { %353 = vmatpush1.bf16.msra.mxu0 %v3414_v27  ;;  %396 = vmatpush1.bf16.msra.mxu1 %v3418_v28 }
  0x51   :  { %354 = vmatprep.subr.bf16.mxu0 %v3420_v29  ;;  %397 = vmatprep.subr.bf16.mxu1 %v3424_v30 }
  0x54   :  { %355 = vmatpush1.bf16.msra.mxu0 %v3426_v31  ;;  %398 = vmatpush1.bf16.msra.mxu1 %v3428_v32 }
  0x55   :  { %592 = vmatprep.subr.bf16.mxu0 %v3438_v35  ;;  %635 = vmatprep.subr.bf16.mxu1 %v3440_v36 }
  0x57   :  { %373 = vmatmul.mubr.bf16.vlgmr.msra.gmra.mxu0 %v179_v37  ;;  %416 = vmatmul.mubr.bf16.vlgmr.msra.gmra.mxu1 %v179_v37  ;;  %v3526_v37 = vld [vmem:[#allocation7 + $0x4] ss:$16 sps:$4 sm:$0xff]  }
  0x58   :  { %593 = vmatpush1.bf16.msra.mxu0 %v3444_v38  ;;  %636 = vmatpush1.bf16.msra.mxu1 %v3448_v39 }
  0x59   :  { %594 = vmatprep.subr.bf16.mxu0 %v3450_v40  ;;  %637 = vmatprep.subr.bf16.mxu1 %v3454_v41 }
  0x5a   :  { %624 = vmatprep.mubr.bf16.mxu0 %v4253_v0  ;;  %667 = vmatprep.mubr.bf16.mxu1 %v4253_v0  ;;  %v3528_v0 = vld [vmem:[#allocation7 + $0xc] ss:$16 sps:$4 sm:$0xff]  }
  0x5b   :  { %4392 = vst [vmem:[#allocation49_spill] sm:$0xff] %v3528_v0 }
  0x5c   :  { %595 = vmatpush1.bf16.msra.mxu0 %v3456_v42  ;;  %638 = vmatpush1.bf16.msra.mxu1 %v3460_v43 }
  0x5d   :  { %596 = vmatprep.subr.bf16.mxu0 %v3464_v44  ;;  %639 = vmatprep.subr.bf16.mxu1 %v3466_v45 }
  0x60   :  { %597 = vmatpush1.bf16.msra.mxu0 %v3470_v46  ;;  %640 = vmatpush1.bf16.msra.mxu1 %v3474_v47 }
  0x61   :  { %598 = vmatprep.subr.bf16.mxu0 %v3476_v48  ;;  %641 = vmatprep.subr.bf16.mxu1 %v3480_v49 }
  0x64   :  { %599 = vmatpush1.bf16.msra.mxu0 %v3482_v50  ;;  %642 = vmatpush1.bf16.msra.mxu1 %v3484_v51 }
  0x65   :  { %600 = vmatprep.subr.bf16.mxu0 %v3486_v52  ;;  %643 = vmatprep.subr.bf16.mxu1 %v3490_v53 }
  0x68   :  { %601 = vmatpush1.bf16.msra.mxu0 %v3494_v54  ;;  %644 = vmatpush1.bf16.msra.mxu1 %v3496_v55 }
  0x69   :  { %602 = vmatprep.subr.bf16.mxu0 %v3502_v56  ;;  %645 = vmatprep.subr.bf16.mxu1 %v3504_v57  ;;  %v3532_v57 = vld [vmem:[#allocation7] ss:$16 sps:$4 sm:$0xff]  }
  0x6c   :  { %603 = vmatpush1.bf16.msra.mxu0 %v3508_v58  ;;  %646 = vmatpush1.bf16.msra.mxu1 %v3510_v59  ;;  %v3534_v58 = vld [vmem:[#allocation7 + $0x8] ss:$16 sps:$4 sm:$0xff]   ;;  %v2803_v59 = vld [vmem:[#allocation4] sm:$0xff]  }
  0x6d   :  { %604 = vmatprep.subr.bf16.mxu0 %v3514_v60  ;;  %647 = vmatprep.subr.bf16.mxu1 %v3516_v61 }
  0x70   :  { %605 = vmatpush1.bf16.msra.mxu0 %v3520_v62  ;;  %648 = vmatpush1.bf16.msra.mxu1 %v3522_v63 }
  0x71   :  { %606 = vmatprep.subr.bf16.mxu0 %v3526_v37  ;;  %649 = vmatprep.subr.bf16.mxu1 %v3528_v0  ;;  %v4393_v0 = vmov 0  }
  0x74   :  { %607 = vmatpush1.bf16.msra.mxu0 %v3532_v57  ;;  %650 = vmatpush1.bf16.msra.mxu1 %v3534_v58 }
  0x75   :  { %747 = vmatprep.subr.bf16.mxu0 %v3340_v1  ;;  %790 = vmatprep.subr.bf16.mxu1 %v3342_v2 }
  0x77   :  { %625 = vmatmul.mubr.bf16.vlgmr.msra.gmra.mxu0 %v2803_v59  ;;  %668 = vmatmul.mubr.bf16.vlgmr.msra.gmra.mxu1 %v2803_v59 }
  0x78   :  { %748 = vmatpush1.bf16.msra.mxu0 %v3345_v3  ;;  %791 = vmatpush1.bf16.msra.mxu1 %v3347_v4 }
  0x79   :  { %749 = vmatprep.subr.bf16.mxu0 %v3350_v5  ;;  %792 = vmatprep.subr.bf16.mxu1 %v3354_v6 }
  0x7a   :  { %779 = vmatprep.mubr.bf16.mxu0 %v4393_v0  ;;  %822 = vmatprep.mubr.bf16.mxu1 %v4393_v0 }
  0x7c   :  { %750 = vmatpush1.bf16.msra.mxu0 %v3356_v7  ;;  %793 = vmatpush1.bf16.msra.mxu1 %v3359_v8 }
  0x7d   :  { %751 = vmatprep.subr.bf16.mxu0 %v3362_v9  ;;  %794 = vmatprep.subr.bf16.mxu1 %v3364_v10 }
  0x80   :  { %752 = vmatpush1.bf16.msra.mxu0 %v3366_v11  ;;  %795 = vmatpush1.bf16.msra.mxu1 %v3368_v12 }
  0x81   :  { %753 = vmatprep.subr.bf16.mxu0 %v3372_v13  ;;  %796 = vmatprep.subr.bf16.mxu1 %v3376_v14 }
  0x84   :  { %754 = vmatpush1.bf16.msra.mxu0 %v3378_v15  ;;  %797 = vmatpush1.bf16.msra.mxu1 %v3382_v16 }
  0x85   :  { %755 = vmatprep.subr.bf16.mxu0 %v3384_v17  ;;  %798 = vmatprep.subr.bf16.mxu1 %v3388_v18 }
  0x88   :  { %756 = vmatpush1.bf16.msra.mxu0 %v3390_v19  ;;  %799 = vmatpush1.bf16.msra.mxu1 %v3392_v20 }
  0x89   :  { %757 = vmatprep.subr.bf16.mxu0 %v3396_v21  ;;  %800 = vmatprep.subr.bf16.mxu1 %v3400_v22 }
  0x8c   :  { %758 = vmatpush1.bf16.msra.mxu0 %v3404_v23  ;;  %801 = vmatpush1.bf16.msra.mxu1 %v3406_v24  ;;  %v153_v24 = vlaneseq }
  0x8d   :  { %759 = vmatprep.subr.bf16.mxu0 %v3410_v25  ;;  %802 = vmatprep.subr.bf16.mxu1 %v3412_v26 }
  0x90   :  { %760 = vmatpush1.bf16.msra.mxu0 %v3414_v27  ;;  %803 = vmatpush1.bf16.msra.mxu1 %v3418_v28  ;;  %v154_v27 = vshrl.u32 %v153_v24, 7 }
  0x91   :  { %761 = vmatprep.subr.bf16.mxu0 %v3420_v29  ;;  %804 = vmatprep.subr.bf16.mxu1 %v3424_v30  ;;  %v151_v30 = vld [vmem:[%s4250_s3] sm:$0xf]  ;;  %s3286_s3 = smov [#allocation12]  }
  0x92   :  { %v155_v21 = vsub.s32 0, %v154_v27  ;;  %v167_v7 = vsub.s32 3, %v154_v27  ;;  %s2489_s17 = sshll.u32 %s3286_s3, 4  ;;  %s2490_s17 = int_to_ptr.vmem [resolvable:$true] %s2489_s17 }
  0x93   :  { %s3247_s18 = scalar_lea.vmem %s2490_s17, 1024  ;;  %p3252_p7 = scmp.lt.s32.totalorder %s2490_s17, %s2490_s17 }
  0x94   :  { %762 = vmatpush1.bf16.msra.mxu0 %v3426_v31  ;;  %805 = vmatpush1.bf16.msra.mxu1 %v3428_v32  ;;  %v159_v31 = vsub.s32 1, %v154_v27  ;;  %v3579_v20 = vrot.slane %v151_v30, %v155_v21  ;;  %v3587_v6 = vrot.slane %v151_v30, %v167_v7  ;;  %p3248_p6 = scmp.ne.s32.totalorder %s2490_s17, %s3247_s18  ;;  %p3253_p8 = scmp.lt.s32.totalorder %s3247_s18, %s3247_s18 }
  0x95   :  { %839 = vmatprep.subr.bf16.mxu0 %v3438_v35  ;;  %882 = vmatprep.subr.bf16.mxu1 %v3440_v36 }
  0x96   :  { %v3581_v18 = vrot.slane %v151_v30, %v159_v31  ;;  %p3254_p9 = por %p3253_p8, %p3252_p7 }
  0x98   :  { %p3255_p10 = pnand %p3254_p9, %p3248_p6 }
 0x117   :  { %v374_v59 = vpop.f32.mrf.mxu0  ;;  %v417_v25 = vpop.f32.mrf.mxu1 }
 0x119   :  { %v376_v26 = vpop.f32.mrf.mxu0  ;;  %v419_v23 = vpop.f32.mrf.mxu1 }
 0x11b   :  { %v378_v22 = vpop.f32.mrf.mxu0  ;;  %v421_v28 = vpop.f32.mrf.mxu1 }
 0x11d   :  { %v380_v29 = vpop.f32.mrf.mxu0  ;;  %v423_v32 = vpop.f32.mrf.mxu1 }
 0x137   :  { %v626_v35 = vpop.f32.mrf.mxu0  ;;  %v669_v36 = vpop.f32.mrf.mxu1 }
 0x138   :  { %v627_v19 = vadd.f32 %v626_v35, %v374_v59  ;;  %v163_v59 = vsub.s32 2, %v154_v27 }
 0x139   :  { %v628_v17 = vpop.f32.mrf.mxu0  ;;  %v671_v15 = vpop.f32.mrf.mxu1 }
 0x13a   :  { %v678_v24 = vadd.f32 %v627_v19, %v3579_v20  ;;  %v629_v16 = vadd.f32 %v628_v17, %v376_v26 }
 0x13b   :  { %v630_v14 = vpop.f32.mrf.mxu0  ;;  %v673_v21 = vpop.f32.mrf.mxu1 }
 0x13c   :  { %v2568_v13 = vmul.f32 -1.442695, %v678_v24  ;;  %v679_v12 = vadd.f32 %v629_v16, %v3581_v18  ;;  %v631_v11 = vadd.f32 %v630_v14, %v378_v22  ;;  %v672_v24 = vadd.f32 %v671_v15, %v419_v23 }
 0x13d   :  { %v632_v10 = vpop.f32.mrf.mxu0  ;;  %v675_v26 = vpop.f32.mrf.mxu1  ;;  %v3589_v14 = vrot.slane %v151_v30, %v163_v59 }
 0x13e   :  { %2811 = vpow2.f32 %v2568_v13  ;;  %v2570_v9 = vmul.f32 -1.442695, %v679_v12  ;;  %v633_v8 = vadd.f32 %v632_v10, %v380_v29  ;;  %v682_v35 = vadd.f32 %v631_v11, %v3579_v20 }
 0x13f   :  { %v670_v12 = vadd.f32 %v669_v36, %v417_v25  ;;  %v676_v13 = vadd.f32 %v675_v26, %v423_v32  ;;  %v681_v10 = vadd.f32 %v672_v24, %v3587_v6 }
 0x140   :  { %2813 = vpow2.f32 %v2570_v9  ;;  %v683_v31 = vadd.f32 %v633_v8, %v3581_v18  ;;  %v2569_v19 = vmul.f32 -1.442695, %v682_v35  ;;  %v674_v8 = vadd.f32 %v673_v21, %v421_v28 }
 0x141   :  { %v680_v11 = vadd.f32 %v670_v12, %v3589_v14  ;;  %v685_v9 = vadd.f32 %v676_v13, %v3587_v6  ;;  %v2572_v22 = vmul.f32 -1.442695, %v681_v10 }
 0x142   :  { %v2571_v17 = vmul.f32 -1.442695, %v683_v31  ;;  %2815 = vpow2.f32 %v2569_v19  ;;  %v684_v23 = vadd.f32 %v674_v8, %v3589_v14 }
 0x143   :  { %v2573_v7 = vmul.f32 -1.442695, %v685_v9 }
 0x144   :  { %2817 = vpow2.f32 %v2571_v17 }
 0x145   :  { %2819 = vtanh.f32 %v680_v11 }
 0x14b   :  { %v2812_v16 = vpop.eup %2811 }
 0x14c   :  { %v692_v27 = vadd.f32 1.0, %v2812_v16 }
 0x14d   :  { %v2814_v29 = vpop.eup %2813 }
 0x14e   :  { %2821 = vrcp.f32 %v692_v27  ;;  %v704_v15 = vadd.f32 1.0, %v2814_v29 }
 0x14f   :  { %2823 = vpow2.f32 %v2572_v22  ;;  %v2816_v25 = vpop.eup %2815 }
 0x150   :  { %2825 = vrcp.f32 %v704_v15  ;;  %v693_v32 = vadd.f32 1.0, %v2816_v25  ;;  %v4395_v25 = vld [vmem:[#allocation47_spill] sm:$0xff] }
 0x151   :  { %v2818_v30 = vpop.eup %2817  ;;  %2827 = vpow2.f32 %v2573_v7 }
 0x152   :  { %2829 = vtanh.f32 %v684_v23  ;;  %v705_v36 = vadd.f32 1.0, %v2818_v30  ;;  %v2820_v28 = vpop.eup %2819  ;;  %v4396_v30 = vld [vmem:[#allocation48_spill] sm:$0xff] }
 0x153   :  { %2831 = vrcp.f32 %v693_v32  ;;  %v4397_v32 = vld [vmem:[#allocation49_spill] sm:$0xff] }
 0x154   :  { %2833 = vrcp.f32 %v705_v36  ;;  %v2804_v36 = vld [vmem:[#allocation4 + $0x8] sm:$0xff]  }
 0x15b   :  { %v2822_v21 = vpop.eup %2821 }
 0x15c   :  { %v2824_v35 = vpop.eup %2823  ;;  %v726_v19 = vmul.f32 %v2822_v21, %v2820_v28  ;;  %v4398_v28 = vld [vmem:[#allocation17_spill] sm:$0xff]  ;;  %v4399_v21 = vld [vmem:[#allocation18_spill] sm:$0xff] }
 0x15d   :  { %v2826_v31 = vpop.eup %2825  ;;  %v718_v24 = vadd.f32 1.0, %v2824_v35  ;;  %v4400_v35 = vld [vmem:[#allocation19_spill] sm:$0xff] }
 0x15e   :  { %v2828_v59 = vpop.eup %2827  ;;  %v724_v17 = vmul.f32 %v2826_v31, %v3430_v33  ;;  %v4403_v31 = vld [vmem:[#allocation22_spill] sm:$0xff] }
 0x15f   :  { %v2830_v26 = vpop.eup %2829  ;;  %v719_v11 = vadd.f32 1.0, %v2828_v59  ;;  %2835 = vrcp.f32 %v718_v24  ;;  %v4407_v59 = vld [vmem:[#allocation26_spill] sm:$0xff] }
 0x160   :  { %v2832_v12 = vpop.eup %2831  ;;  %v3596_v13 = vadd.f32 %v726_v19, %v724_v17  ;;  %v4408_v19 = vld [vmem:[#allocation27_spill] sm:$0xff]  ;;  %v4409_v17 = vld [vmem:[#allocation28_spill] sm:$0xff]  ;;  %v4411_v24 = vld [vmem:[#allocation30_spill] sm:$0xff] }
 0x161   :  { %v2834_v10 = vpop.eup %2833  ;;  %v727_v9 = vmul.f32 %v2832_v12, %v2830_v26  ;;  %v4410_v26 = vld [vmem:[#allocation29_spill] sm:$0xff]  ;;  %v4412_v12 = vld [vmem:[#allocation31_spill] sm:$0xff] }
 0x162   :  { %v725_v8 = vmul.f32 %v2834_v10, %v3434_v34  ;;  %2837 = vtanh.f32 %v3596_v13  ;;  %v4394_v34 = vld [vmem:[#allocation46_spill] sm:$0xff]  ;;  %v4413_v10 = vld [vmem:[#allocation32_spill] sm:$0xff] }
 0x163   :  { %2839 = vrcp.f32 %v719_v11  ;;  %v4414_v11 = vld [vmem:[#allocation33_spill] sm:$0xff] }
 0x164   :  { %v3599_v16 = vadd.f32 %v727_v9, %v725_v8  ;;  %v4415_v9 = vld [vmem:[#allocation34_spill] sm:$0xff]  ;;  %v4416_v8 = vld [vmem:[#allocation35_spill] sm:$0xff] }
 0x166   :  { %2841 = vtanh.f32 %v3599_v16 }
 0x16c   :  { %v2836_v22 = vpop.eup %2835 }
 0x16f   :  { %v2838_v33 = vpop.eup %2837 }
 0x170   :  { %v2840_v27 = vpop.eup %2839  ;;  %v732_v7 = vmul.f32 %v2838_v33, %v2836_v22  ;;  %v4417_v22 = vld [vmem:[#allocation36_spill] sm:$0xff]  ;;  %v4418_v33 = vld [vmem:[#allocation37_spill] sm:$0xff] }
 0x173   :  { %v2842_v29 = vpop.eup %2841 }
 0x174   :  { %v733_v15 = vmul.f32 %v2842_v29, %v2840_v27  ;;  %v4419_v27 = vld [vmem:[#allocation38_spill] sm:$0xff]  ;;  %v4420_v29 = vld [vmem:[#allocation39_spill] sm:$0xff] }
 0x176   :  { %v734_v23 = vpack.c.bf16 %v733_v15, %v732_v7  ;;  %v4421_v7 = vld [vmem:[#allocation40_spill] sm:$0xff]  ;;  %v4422_v15 = vld [vmem:[#allocation41_spill] sm:$0xff] }
 0x178   :  { %2659 = vst [vmem:[#allocation12] sm:$0xff] %v734_v23   ;;  %780 = vmatmul.mubr.bf16.vlgmr.msra.gmra.mxu0 %v734_v23  ;;  %823 = vmatmul.mubr.bf16.vlgmr.msra.gmra.mxu1 %v734_v23  ;;  %v4423_v23 = vld [vmem:[#allocation42_spill] sm:$0xff] }
 0x179   :  { %840 = vmatpush1.bf16.msra.mxu0 %v3444_v38  ;;  %883 = vmatpush1.bf16.msra.mxu1 %v3448_v39 }
 0x17a   :  { %841 = vmatprep.subr.bf16.mxu0 %v3450_v40  ;;  %884 = vmatprep.subr.bf16.mxu1 %v3454_v41 }
 0x17b   :  { %871 = vmatprep.mubr.bf16.mxu0 %v4393_v0  ;;  %914 = vmatprep.mubr.bf16.mxu1 %v4393_v0 }
 0x17d   :  { %842 = vmatpush1.bf16.msra.mxu0 %v3456_v42  ;;  %885 = vmatpush1.bf16.msra.mxu1 %v3460_v43 }
 0x17e   :  { %843 = vmatprep.subr.bf16.mxu0 %v3464_v44  ;;  %886 = vmatprep.subr.bf16.mxu1 %v3466_v45 }
 0x181   :  { %844 = vmatpush1.bf16.msra.mxu0 %v3470_v46  ;;  %887 = vmatpush1.bf16.msra.mxu1 %v3474_v47 }
 0x182   :  { %845 = vmatprep.subr.bf16.mxu0 %v3476_v48  ;;  %888 = vmatprep.subr.bf16.mxu1 %v3480_v49 }
 0x185   :  { %846 = vmatpush1.bf16.msra.mxu0 %v3482_v50  ;;  %889 = vmatpush1.bf16.msra.mxu1 %v3484_v51 }
 0x186   :  { %847 = vmatprep.subr.bf16.mxu0 %v3486_v52  ;;  %890 = vmatprep.subr.bf16.mxu1 %v3490_v53 }
 0x189   :  { %848 = vmatpush1.bf16.msra.mxu0 %v3494_v54  ;;  %891 = vmatpush1.bf16.msra.mxu1 %v3496_v55 }
 0x18a   :  { %849 = vmatprep.subr.bf16.mxu0 %v3502_v56  ;;  %892 = vmatprep.subr.bf16.mxu1 %v4394_v34 }
 0x18d   :  { %850 = vmatpush1.bf16.msra.mxu0 %v4395_v25  ;;  %893 = vmatpush1.bf16.msra.mxu1 %v4396_v30 }
 0x18e   :  { %851 = vmatprep.subr.bf16.mxu0 %v3514_v60  ;;  %894 = vmatprep.subr.bf16.mxu1 %v3516_v61 }
 0x191   :  { %852 = vmatpush1.bf16.msra.mxu0 %v3520_v62  ;;  %895 = vmatpush1.bf16.msra.mxu1 %v3522_v63 }
 0x192   :  { %853 = vmatprep.subr.bf16.mxu0 %v3526_v37  ;;  %896 = vmatprep.subr.bf16.mxu1 %v4397_v32 }
 0x195   :  { %854 = vmatpush1.bf16.msra.mxu0 %v3532_v57  ;;  %897 = vmatpush1.bf16.msra.mxu1 %v3534_v58 }
 0x196   :  { %995 = vmatprep.subr.bf16.mxu0 %v3340_v1  ;;  %1038 = vmatprep.subr.bf16.mxu1 %v3342_v2  ;;  %v4401_v1 = vld [vmem:[#allocation20_spill] sm:$0xff]  ;;  %v4402_v2 = vld [vmem:[#allocation21_spill] sm:$0xff] }
 0x198   :  { %872 = vmatmul.mubr.bf16.vlgmr.msra.gmra.mxu0 %v2804_v36  ;;  %915 = vmatmul.mubr.bf16.vlgmr.msra.gmra.mxu1 %v2804_v36  ;;  %v4424_v36 = vld [vmem:[#allocation43_spill] sm:$0xff] }
 0x199   :  { %996 = vmatpush1.bf16.msra.mxu0 %v3345_v3  ;;  %1039 = vmatpush1.bf16.msra.mxu1 %v3347_v4  ;;  %v4404_v3 = vld [vmem:[#allocation23_spill] sm:$0xff]  ;;  %v4405_v4 = vld [vmem:[#allocation24_spill] sm:$0xff] }
 0x19a   :  { %997 = vmatprep.subr.bf16.mxu0 %v3350_v5  ;;  %1040 = vmatprep.subr.bf16.mxu1 %v4398_v28  ;;  %v4406_v5 = vld [vmem:[#allocation25_spill] sm:$0xff]  ;;  %v4425_v28 = vld [vmem:[#allocation44_spill] sm:$0xff] }
 0x19b   :  { %1027 = vmatprep.mubr.bf16.mxu0 %v4393_v0  ;;  %1070 = vmatprep.mubr.bf16.mxu1 %v4393_v0 }
 0x19d   :  { %998 = vmatpush1.bf16.msra.mxu0 %v4399_v21  ;;  %1041 = vmatpush1.bf16.msra.mxu1 %v4400_v35  ;;  %v4426_v21 = vld [vmem:[#allocation45_spill] sm:$0xff] }
 0x19e   :  { %999 = vmatprep.subr.bf16.mxu0 %v4401_v1  ;;  %1042 = vmatprep.subr.bf16.mxu1 %v4402_v2 }
 0x1a1   :  { %1000 = vmatpush1.bf16.msra.mxu0 %v4403_v31  ;;  %1043 = vmatpush1.bf16.msra.mxu1 %v4404_v3 }
 0x1a2   :  { %1001 = vmatprep.subr.bf16.mxu0 %v4405_v4  ;;  %1044 = vmatprep.subr.bf16.mxu1 %v4406_v5 }
 0x1a5   :  { %1002 = vmatpush1.bf16.msra.mxu0 %v4407_v59  ;;  %1045 = vmatpush1.bf16.msra.mxu1 %v4408_v19 }
 0x1a6   :  { %1003 = vmatprep.subr.bf16.mxu0 %v4409_v17  ;;  %1046 = vmatprep.subr.bf16.mxu1 %v4410_v26 }
 0x1a9   :  { %1004 = vmatpush1.bf16.msra.mxu0 %v4411_v24  ;;  %1047 = vmatpush1.bf16.msra.mxu1 %v4412_v12 }
 0x1aa   :  { %1005 = vmatprep.subr.bf16.mxu0 %v4413_v10  ;;  %1048 = vmatprep.subr.bf16.mxu1 %v4414_v11 }
 0x1ad   :  { %1006 = vmatpush1.bf16.msra.mxu0 %v4415_v9  ;;  %1049 = vmatpush1.bf16.msra.mxu1 %v4416_v8 }
 0x1ae   :  { %1007 = vmatprep.subr.bf16.mxu0 %v4417_v22  ;;  %1050 = vmatprep.subr.bf16.mxu1 %v4418_v33 }
 0x1b1   :  { %1008 = vmatpush1.bf16.msra.mxu0 %v4419_v27  ;;  %1051 = vmatpush1.bf16.msra.mxu1 %v4420_v29 }
 0x1b2   :  { %1009 = vmatprep.subr.bf16.mxu0 %v4421_v7  ;;  %1052 = vmatprep.subr.bf16.mxu1 %v4422_v15 }
 0x1b5   :  { %1010 = vmatpush1.bf16.msra.mxu0 %v4423_v23  ;;  %1053 = vmatpush1.bf16.msra.mxu1 %v4424_v36 }
 0x1b6   :  { %1087 = vmatprep.subr.bf16.mxu0 %v4425_v28  ;;  %1130 = vmatprep.subr.bf16.mxu1 %v4426_v21 }
 0x238   :  { %v781_v35 = vpop.f32.mrf.mxu0  ;;  %v824_v1 = vpop.f32.mrf.mxu1 }
 0x23a   :  { %v783_v2 = vpop.f32.mrf.mxu0  ;;  %v826_v31 = vpop.f32.mrf.mxu1 }
 0x23c   :  { %v785_v3 = vpop.f32.mrf.mxu0  ;;  %v828_v4 = vpop.f32.mrf.mxu1 }
 0x23e   :  { %v787_v5 = vpop.f32.mrf.mxu0  ;;  %v830_v59 = vpop.f32.mrf.mxu1 }
 0x258   :  { %v873_v19 = vpop.f32.mrf.mxu0  ;;  %v916_v17 = vpop.f32.mrf.mxu1 }
 0x259   :  { %v874_v26 = vadd.f32 %v873_v19, %v781_v35 }
 0x25a   :  { %v875_v15 = vpop.f32.mrf.mxu0  ;;  %v918_v36 = vpop.f32.mrf.mxu1 }
 0x25b   :  { %v925_v23 = vadd.f32 %v874_v26, %v3579_v20  ;;  %v876_v7 = vadd.f32 %v875_v15, %v783_v2  ;;  %v919_v15 = vadd.f32 %v918_v36, %v826_v31 }
 0x25c   :  { %v877_v29 = vpop.f32.mrf.mxu0  ;;  %v920_v8 = vpop.f32.mrf.mxu1 }
 0x25d   :  { %v2577_v28 = vmul.f32 -1.442695, %v925_v23  ;;  %v926_v21 = vadd.f32 %v876_v7, %v3581_v18  ;;  %v878_v27 = vadd.f32 %v877_v29, %v785_v3  ;;  %v917_v23 = vadd.f32 %v916_v17, %v824_v1 }
 0x25e   :  { %v879_v33 = vpop.f32.mrf.mxu0  ;;  %v922_v26 = vpop.f32.mrf.mxu1  ;;  %v928_v29 = vadd.f32 %v919_v15, %v3587_v6 }
 0x25f   :  { %2843 = vpow2.f32 %v2577_v28  ;;  %v2579_v22 = vmul.f32 -1.442695, %v926_v21  ;;  %v880_v9 = vadd.f32 %v879_v33, %v787_v5  ;;  %v929_v11 = vadd.f32 %v878_v27, %v3579_v20 }
 0x260   :  { %v923_v2 = vadd.f32 %v922_v26, %v830_v59  ;;  %v927_v7 = vadd.f32 %v917_v23, %v3589_v14  ;;  %v921_v33 = vadd.f32 %v920_v8, %v828_v4  ;;  %v2581_v27 = vmul.f32 -1.442695, %v928_v29 }
 0x261   :  { %2845 = vpow2.f32 %v2579_v22  ;;  %v930_v35 = vadd.f32 %v880_v9, %v3581_v18  ;;  %v2578_v19 = vmul.f32 -1.442695, %v929_v11 }
 0x262   :  { %v932_v28 = vadd.f32 %v923_v2, %v3587_v6  ;;  %v931_v36 = vadd.f32 %v921_v33, %v3589_v14 }
 0x263   :  { %v2580_v10 = vmul.f32 -1.442695, %v930_v35  ;;  %2847 = vpow2.f32 %v2578_v19 }
 0x264   :  { %v2582_v11 = vmul.f32 -1.442695, %v932_v28 }
 0x265   :  { %2849 = vpow2.f32 %v2580_v10 }
 0x266   :  { %2851 = vtanh.f32 %v927_v7 }
 0x26c   :  { %v2844_v21 = vpop.eup %2843 }
 0x26d   :  { %v939_v22 = vadd.f32 1.0, %v2844_v21 }
 0x26e   :  { %v2846_v3 = vpop.eup %2845 }
 0x26f   :  { %2853 = vrcp.f32 %v939_v22  ;;  %v951_v9 = vadd.f32 1.0, %v2846_v3 }
 0x270   :  { %2855 = vpow2.f32 %v2581_v27  ;;  %v2848_v10 = vpop.eup %2847 }
 0x271   :  { %2857 = vrcp.f32 %v951_v9  ;;  %v940_v31 = vadd.f32 1.0, %v2848_v10 }
 0x272   :  { %v2850_v1 = vpop.eup %2849  ;;  %2859 = vpow2.f32 %v2582_v11 }
 0x273   :  { %2861 = vtanh.f32 %v931_v36  ;;  %v952_v5 = vadd.f32 1.0, %v2850_v1  ;;  %v2852_v8 = vpop.eup %2851  ;;  %v4443_v1 = vld [vmem:[#allocation32_spill] sm:$0xff] }
 0x274   :  { %2863 = vrcp.f32 %v940_v31  ;;  %v4444_v31 = vld [vmem:[#allocation33_spill] sm:$0xff] }
 0x275   :  { %2865 = vrcp.f32 %v952_v5  ;;  %v4445_v5 = vld [vmem:[#allocation34_spill] sm:$0xff] }
 0x27c   :  { %v2854_v4 = vpop.eup %2853 }
 0x27d   :  { %v2856_v59 = vpop.eup %2855  ;;  %v973_v19 = vmul.f32 %v2854_v4, %v2852_v8  ;;  %v4446_v8 = vld [vmem:[#allocation35_spill] sm:$0xff]  ;;  %v4447_v4 = vld [vmem:[#allocation36_spill] sm:$0xff] }
 0x27e   :  { %v2858_v17 = vpop.eup %2857  ;;  %v965_v23 = vadd.f32 1.0, %v2856_v59  ;;  %v4448_v59 = vld [vmem:[#allocation37_spill] sm:$0xff] }
 0x27f   :  { %v2860_v35 = vpop.eup %2859  ;;  %v971_v26 = vmul.f32 %v2858_v17, %v3596_v13  ;;  %v4449_v17 = vld [vmem:[#allocation38_spill] sm:$0xff] }
 0x280   :  { %v2862_v15 = vpop.eup %2861  ;;  %v966_v28 = vadd.f32 1.0, %v2860_v35  ;;  %2867 = vrcp.f32 %v965_v23  ;;  %v4450_v35 = vld [vmem:[#allocation39_spill] sm:$0xff]  ;;  %v4456_v23 = vld [vmem:[#allocation45_spill] sm:$0xff] }
 0x281   :  { %v2864_v2 = vpop.eup %2863  ;;  %v3680_v29 = vadd.f32 %v973_v19, %v971_v26  ;;  %v4451_v19 = vld [vmem:[#allocation40_spill] sm:$0xff]  ;;  %v4454_v26 = vld [vmem:[#allocation43_spill] sm:$0xff] }
 0x282   :  { %v2866_v7 = vpop.eup %2865  ;;  %v974_v33 = vmul.f32 %v2864_v2, %v2862_v15  ;;  %v4455_v15 = vld [vmem:[#allocation44_spill] sm:$0xff] }
 0x283   :  { %v972_v21 = vmul.f32 %v2866_v7, %v3599_v16  ;;  %2869 = vtanh.f32 %v3680_v29  ;;  %v3772_v16 = vld [vmem:[#allocation9 + $0x6c] ss:$16 sps:$4 sm:$0xff]  }
 0x284   :  { %2871 = vrcp.f32 %v966_v28  ;;  %4442 = vst [vmem:[#allocation28_spill] sm:$0xff] %v3772_v16 }
 0x285   :  { %v3683_v27 = vadd.f32 %v974_v33, %v972_v21 }
 0x287   :  { %2873 = vtanh.f32 %v3683_v27 }
 0x28d   :  { %v2868_v22 = vpop.eup %2867 }
 0x290   :  { %v2870_v13 = vpop.eup %2869 }
 0x291   :  { %v2872_v3 = vpop.eup %2871  ;;  %v979_v9 = vmul.f32 %v2870_v13, %v2868_v22 }
 0x294   :  { %v2874_v11 = vpop.eup %2873 }
 0x295   :  { %v980_v36 = vmul.f32 %v2874_v11, %v2872_v3 }
 0x297   :  { %v981_v10 = vpack.c.bf16 %v980_v36, %v979_v9 }
 0x299   :  { %2664 = vst [vmem:[#allocation12 + $0x8] sm:$0xff] %v981_v10   ;;  %1028 = vmatmul.mubr.bf16.vlgmr.msra.gmra.mxu0 %v981_v10  ;;  %1071 = vmatmul.mubr.bf16.vlgmr.msra.gmra.mxu1 %v981_v10 }
 0x29a   :  { %1088 = vmatpush1.bf16.msra.mxu0 %v3444_v38  ;;  %1131 = vmatpush1.bf16.msra.mxu1 %v3448_v39  ;;  %v2805_v38 = vld [vmem:[#allocation4 + $0x10] sm:$0xff]  }
 0x29b   :  { %1089 = vmatprep.subr.bf16.mxu0 %v3450_v40  ;;  %1132 = vmatprep.subr.bf16.mxu1 %v3454_v41  ;;  %v3719_v39 = vld [vmem:[#allocation9 + $0xe4] ss:$16 sps:$4 sm:$0xff]   ;;  %v3722_v40 = vld [vmem:[#allocation9 + $0xec] ss:$16 sps:$4 sm:$0xff]   ;;  %v3725_v41 = vld [vmem:[#allocation9 + $0xe0] ss:$16 sps:$4 sm:$0xff]  }
 0x29c   :  { %1119 = vmatprep.mubr.bf16.mxu0 %v4393_v0  ;;  %1162 = vmatprep.mubr.bf16.mxu1 %v4393_v0  ;;  %4427 = vst [vmem:[#allocation46_spill] sm:$0xff] %v3725_v41 }
 0x29e   :  { %1090 = vmatpush1.bf16.msra.mxu0 %v3456_v42  ;;  %1133 = vmatpush1.bf16.msra.mxu1 %v3460_v43  ;;  %v3728_v42 = vld [vmem:[#allocation9 + $0xe8] ss:$16 sps:$4 sm:$0xff]   ;;  %v3731_v43 = vld [vmem:[#allocation9 + $0xc4] ss:$16 sps:$4 sm:$0xff]  }
 0x29f   :  { %1091 = vmatprep.subr.bf16.mxu0 %v3464_v44  ;;  %1134 = vmatprep.subr.bf16.mxu1 %v3466_v45  ;;  %4428 = vst [vmem:[#allocation47_spill] sm:$0xff] %v3728_v42  ;;  %4429 = vst [vmem:[#allocation48_spill] sm:$0xff] %v3731_v43  ;;  %v3734_v44 = vld [vmem:[#allocation9 + $0xcc] ss:$16 sps:$4 sm:$0xff]   ;;  %v3739_v45 = vld [vmem:[#allocation9 + $0xc0] ss:$16 sps:$4 sm:$0xff]  }
 0x2a0   :  { %4430 = vst [vmem:[#allocation49_spill] sm:$0xff] %v3734_v44  ;;  %4431 = vst [vmem:[#allocation17_spill] sm:$0xff] %v3739_v45 }
 0x2a2   :  { %1092 = vmatpush1.bf16.msra.mxu0 %v3470_v46  ;;  %1135 = vmatpush1.bf16.msra.mxu1 %v3474_v47  ;;  %v3742_v46 = vld [vmem:[#allocation9 + $0xc8] ss:$16 sps:$4 sm:$0xff]   ;;  %v3745_v47 = vld [vmem:[#allocation9 + $0xa4] ss:$16 sps:$4 sm:$0xff]  }
 0x2a3   :  { %1093 = vmatprep.subr.bf16.mxu0 %v3476_v48  ;;  %1136 = vmatprep.subr.bf16.mxu1 %v3480_v49  ;;  %4432 = vst [vmem:[#allocation18_spill] sm:$0xff] %v3742_v46  ;;  %4433 = vst [vmem:[#allocation19_spill] sm:$0xff] %v3745_v47  ;;  %v3748_v48 = vld [vmem:[#allocation9 + $0xac] ss:$16 sps:$4 sm:$0xff]   ;;  %v3751_v49 = vld [vmem:[#allocation9 + $0xa0] ss:$16 sps:$4 sm:$0xff]  }
 0x2a4   :  { %4434 = vst [vmem:[#allocation20_spill] sm:$0xff] %v3748_v48  ;;  %4435 = vst [vmem:[#allocation21_spill] sm:$0xff] %v3751_v49 }
 0x2a6   :  { %1094 = vmatpush1.bf16.msra.mxu0 %v3482_v50  ;;  %1137 = vmatpush1.bf16.msra.mxu1 %v3484_v51  ;;  %v3754_v50 = vld [vmem:[#allocation9 + $0xa8] ss:$16 sps:$4 sm:$0xff]   ;;  %v3757_v51 = vld [vmem:[#allocation9 + $0x84] ss:$16 sps:$4 sm:$0xff]  }
 0x2a7   :  { %1095 = vmatprep.subr.bf16.mxu0 %v3486_v52  ;;  %1138 = vmatprep.subr.bf16.mxu1 %v3490_v53  ;;  %4436 = vst [vmem:[#allocation22_spill] sm:$0xff] %v3754_v50  ;;  %4437 = vst [vmem:[#allocation23_spill] sm:$0xff] %v3757_v51  ;;  %v3760_v52 = vld [vmem:[#allocation9 + $0x8c] ss:$16 sps:$4 sm:$0xff]   ;;  %v3763_v53 = vld [vmem:[#allocation9 + $0x80] ss:$16 sps:$4 sm:$0xff]  }
 0x2a8   :  { %4438 = vst [vmem:[#allocation24_spill] sm:$0xff] %v3760_v52  ;;  %4439 = vst [vmem:[#allocation25_spill] sm:$0xff] %v3763_v53 }
 0x2aa   :  { %1096 = vmatpush1.bf16.msra.mxu0 %v3494_v54  ;;  %1139 = vmatpush1.bf16.msra.mxu1 %v3496_v55  ;;  %v3766_v54 = vld [vmem:[#allocation9 + $0x88] ss:$16 sps:$4 sm:$0xff]   ;;  %v3769_v55 = vld [vmem:[#allocation9 + $0x64] ss:$16 sps:$4 sm:$0xff]  }
 0x2ab   :  { %1097 = vmatprep.subr.bf16.mxu0 %v3502_v56  ;;  %1140 = vmatprep.subr.bf16.mxu1 %v4394_v34  ;;  %4440 = vst [vmem:[#allocation26_spill] sm:$0xff] %v3766_v54  ;;  %4441 = vst [vmem:[#allocation27_spill] sm:$0xff] %v3769_v55 }
 0x2ae   :  { %1098 = vmatpush1.bf16.msra.mxu0 %v4395_v25  ;;  %1141 = vmatpush1.bf16.msra.mxu1 %v4396_v30 }
 0x2af   :  { %1099 = vmatprep.subr.bf16.mxu0 %v3514_v60  ;;  %1142 = vmatprep.subr.bf16.mxu1 %v3516_v61 }
 0x2b2   :  { %1100 = vmatpush1.bf16.msra.mxu0 %v3520_v62  ;;  %1143 = vmatpush1.bf16.msra.mxu1 %v3522_v63 }
 0x2b3   :  { %1101 = vmatprep.subr.bf16.mxu0 %v3526_v37  ;;  %1144 = vmatprep.subr.bf16.mxu1 %v4397_v32 }
 0x2b6   :  { %1102 = vmatpush1.bf16.msra.mxu0 %v3532_v57  ;;  %1145 = vmatpush1.bf16.msra.mxu1 %v3534_v58 }
 0x2b7   :  { %1243 = vmatprep.subr.bf16.mxu0 %v3719_v39  ;;  %1286 = vmatprep.subr.bf16.mxu1 %v3722_v40 }
 0x2b9   :  { %1120 = vmatmul.mubr.bf16.vlgmr.msra.gmra.mxu0 %v2805_v38  ;;  %1163 = vmatmul.mubr.bf16.vlgmr.msra.gmra.mxu1 %v2805_v38 }
 0x2ba   :  { %1244 = vmatpush1.bf16.msra.mxu0 %v3725_v41  ;;  %1287 = vmatpush1.bf16.msra.mxu1 %v3728_v42 }
 0x2bb   :  { %1245 = vmatprep.subr.bf16.mxu0 %v3731_v43  ;;  %1288 = vmatprep.subr.bf16.mxu1 %v3734_v44 }
 0x2bc   :  { %1275 = vmatprep.mubr.bf16.mxu0 %v4393_v0  ;;  %1318 = vmatprep.mubr.bf16.mxu1 %v4393_v0 }
 0x2be   :  { %1246 = vmatpush1.bf16.msra.mxu0 %v3739_v45  ;;  %1289 = vmatpush1.bf16.msra.mxu1 %v3742_v46 }
 0x2bf   :  { %1247 = vmatprep.subr.bf16.mxu0 %v3745_v47  ;;  %1290 = vmatprep.subr.bf16.mxu1 %v3748_v48 }
 0x2c2   :  { %1248 = vmatpush1.bf16.msra.mxu0 %v3751_v49  ;;  %1291 = vmatpush1.bf16.msra.mxu1 %v3754_v50 }
 0x2c3   :  { %1249 = vmatprep.subr.bf16.mxu0 %v3757_v51  ;;  %1292 = vmatprep.subr.bf16.mxu1 %v3760_v52 }
 0x2c6   :  { %1250 = vmatpush1.bf16.msra.mxu0 %v3763_v53  ;;  %1293 = vmatpush1.bf16.msra.mxu1 %v3766_v54 }
 0x2c7   :  { %1251 = vmatprep.subr.bf16.mxu0 %v3769_v55  ;;  %1294 = vmatprep.subr.bf16.mxu1 %v3772_v16 }
 0x2ca   :  { %1252 = vmatpush1.bf16.msra.mxu0 %v4411_v24  ;;  %1295 = vmatpush1.bf16.msra.mxu1 %v4412_v12  ;;  %v4452_v24 = vld [vmem:[#allocation41_spill] sm:$0xff]  ;;  %v4453_v12 = vld [vmem:[#allocation42_spill] sm:$0xff] }
 0x2cb   :  { %1253 = vmatprep.subr.bf16.mxu0 %v4443_v1  ;;  %1296 = vmatprep.subr.bf16.mxu1 %v4444_v31 }
 0x2ce   :  { %1254 = vmatpush1.bf16.msra.mxu0 %v4445_v5  ;;  %1297 = vmatpush1.bf16.msra.mxu1 %v4446_v8 }
 0x2cf   :  { %1255 = vmatprep.subr.bf16.mxu0 %v4447_v4  ;;  %1298 = vmatprep.subr.bf16.mxu1 %v4448_v59 }
 0x2d2   :  { %1256 = vmatpush1.bf16.msra.mxu0 %v4449_v17  ;;  %1299 = vmatpush1.bf16.msra.mxu1 %v4450_v35 }
 0x2d3   :  { %1257 = vmatprep.subr.bf16.mxu0 %v4451_v19  ;;  %1300 = vmatprep.subr.bf16.mxu1 %v4452_v24 }
 0x2d6   :  { %1258 = vmatpush1.bf16.msra.mxu0 %v4453_v12  ;;  %1301 = vmatpush1.bf16.msra.mxu1 %v4454_v26 }
 0x2d7   :  { %1335 = vmatprep.subr.bf16.mxu0 %v4455_v15  ;;  %1378 = vmatprep.subr.bf16.mxu1 %v4456_v23 }
 0x359   :  { %v1029_v2 = vpop.f32.mrf.mxu0  ;;  %v1072_v7 = vpop.f32.mrf.mxu1 }
 0x35b   :  { %v1031_v28 = vpop.f32.mrf.mxu0  ;;  %v1074_v33 = vpop.f32.mrf.mxu1 }
 0x35d   :  { %v1033_v21 = vpop.f32.mrf.mxu0  ;;  %v1076_v22 = vpop.f32.mrf.mxu1 }
 0x35f   :  { %v1035_v13 = vpop.f32.mrf.mxu0  ;;  %v1078_v3 = vpop.f32.mrf.mxu1 }
 0x379   :  { %v1121_v11 = vpop.f32.mrf.mxu0  ;;  %v1164_v9 = vpop.f32.mrf.mxu1 }
 0x37a   :  { %v1122_v36 = vadd.f32 %v1121_v11, %v1029_v2  ;;  %v1165_v11 = vadd.f32 %v1164_v9, %v1072_v7 }
 0x37b   :  { %v1123_v10 = vpop.f32.mrf.mxu0  ;;  %v1166_v31 = vpop.f32.mrf.mxu1 }
 0x37c   :  { %v1173_v38 = vadd.f32 %v1122_v36, %v3579_v20  ;;  %v1124_v1 = vadd.f32 %v1123_v10, %v1031_v28  ;;  %v1167_v28 = vadd.f32 %v1166_v31, %v1074_v33  ;;  %v1175_v10 = vadd.f32 %v1165_v11, %v3589_v14 }
 0x37d   :  { %v1125_v5 = vpop.f32.mrf.mxu0  ;;  %v1168_v19 = vpop.f32.mrf.mxu1 }
 0x37e   :  { %v2586_v8 = vmul.f32 -1.442695, %v1173_v38  ;;  %v1174_v4 = vadd.f32 %v1124_v1, %v3581_v18  ;;  %v1126_v59 = vadd.f32 %v1125_v5, %v1033_v21  ;;  %v1176_v21 = vadd.f32 %v1167_v28, %v3587_v6 }
 0x37f   :  { %v1127_v17 = vpop.f32.mrf.mxu0  ;;  %v1170_v2 = vpop.f32.mrf.mxu1 }
 0x380   :  { %2875 = vpow2.f32 %v2586_v8  ;;  %v2588_v35 = vmul.f32 -1.442695, %v1174_v4  ;;  %v1128_v24 = vadd.f32 %v1127_v17, %v1035_v13  ;;  %v1177_v12 = vadd.f32 %v1126_v59, %v3579_v20 }
 0x381   :  { %v1171_v36 = vadd.f32 %v1170_v2, %v1078_v3  ;;  %v1169_v13 = vadd.f32 %v1168_v19, %v1076_v22  ;;  %v2590_v5 = vmul.f32 -1.442695, %v1176_v21 }
 0x382   :  { %2877 = vpow2.f32 %v2588_v35  ;;  %v1178_v26 = vadd.f32 %v1128_v24, %v3581_v18  ;;  %v2587_v15 = vmul.f32 -1.442695, %v1177_v12 }
 0x383   :  { %v1180_v38 = vadd.f32 %v1171_v36, %v3587_v6  ;;  %v1179_v33 = vadd.f32 %v1169_v13, %v3589_v14 }
 0x384   :  { %v2589_v23 = vmul.f32 -1.442695, %v1178_v26  ;;  %2879 = vpow2.f32 %v2587_v15 }
 0x385   :  { %v2591_v59 = vmul.f32 -1.442695, %v1180_v38 }
 0x386   :  { %2881 = vpow2.f32 %v2589_v23 }
 0x387   :  { %2883 = vtanh.f32 %v1175_v10 }
 0x38d   :  { %v2876_v1 = vpop.eup %2875 }
 0x38e   :  { %v1187_v8 = vadd.f32 1.0, %v2876_v1 }
 0x38f   :  { %v2878_v4 = vpop.eup %2877 }
 0x390   :  { %2885 = vrcp.f32 %v1187_v8  ;;  %v1199_v17 = vadd.f32 1.0, %v2878_v4 }
 0x391   :  { %2887 = vpow2.f32 %v2590_v5  ;;  %v2880_v7 = vpop.eup %2879 }
 0x392   :  { %2889 = vrcp.f32 %v1199_v17  ;;  %v1188_v9 = vadd.f32 1.0, %v2880_v7  ;;  %v3813_v7 = vld [vmem:[#allocation7 + $0xc4] ss:$16 sps:$4 sm:$0xff]  }
 0x393   :  { %v2882_v3 = vpop.eup %2881  ;;  %2891 = vpow2.f32 %v2591_v59 }
 0x394   :  { %2893 = vtanh.f32 %v1179_v33  ;;  %v1200_v31 = vadd.f32 1.0, %v2882_v3  ;;  %v2884_v22 = vpop.eup %2883  ;;  %v3807_v33 = vld [vmem:[#allocation7 + $0xe0] ss:$16 sps:$4 sm:$0xff]   ;;  %v3816_v3 = vld [vmem:[#allocation7 + $0xcc] ss:$16 sps:$4 sm:$0xff]  }
 0x395   :  { %2895 = vrcp.f32 %v1188_v9  ;;  %v3821_v9 = vld [vmem:[#allocation7 + $0xc0] ss:$16 sps:$4 sm:$0xff]  }
 0x396   :  { %2897 = vrcp.f32 %v1200_v31  ;;  %v3824_v31 = vld [vmem:[#allocation7 + $0xc8] ss:$16 sps:$4 sm:$0xff]  }
 0x39d   :  { %v2886_v35 = vpop.eup %2885 }
 0x39e   :  { %v2888_v19 = vpop.eup %2887  ;;  %v1221_v26 = vmul.f32 %v2886_v35, %v2884_v22  ;;  %v3827_v22 = vld [vmem:[#allocation7 + $0xa4] ss:$16 sps:$4 sm:$0xff]   ;;  %v3830_v35 = vld [vmem:[#allocation7 + $0xac] ss:$16 sps:$4 sm:$0xff]  }
 0x39f   :  { %v2890_v24 = vpop.eup %2889  ;;  %v1213_v2 = vadd.f32 1.0, %v2888_v19  ;;  %v3833_v19 = vld [vmem:[#allocation7 + $0xa0] ss:$16 sps:$4 sm:$0xff]  }
 0x3a0   :  { %v2892_v12 = vpop.eup %2891  ;;  %v1219_v15 = vmul.f32 %v2890_v24, %v3680_v29  ;;  %v3836_v24 = vld [vmem:[#allocation7 + $0xa8] ss:$16 sps:$4 sm:$0xff]  }
 0x3a1   :  { %v2894_v23 = vpop.eup %2893  ;;  %v1214_v21 = vadd.f32 1.0, %v2892_v12  ;;  %2899 = vrcp.f32 %v1213_v2  ;;  %v3839_v12 = vld [vmem:[#allocation7 + $0x84] ss:$16 sps:$4 sm:$0xff]  }
 0x3a2   :  { %v2896_v28 = vpop.eup %2895  ;;  %v3800_v11 = vadd.f32 %v1221_v26, %v1219_v15  ;;  %v3842_v26 = vld [vmem:[#allocation7 + $0x8c] ss:$16 sps:$4 sm:$0xff]   ;;  %v3845_v15 = vld [vmem:[#allocation7 + $0x80] ss:$16 sps:$4 sm:$0xff]   ;;  %v3851_v2 = vld [vmem:[#allocation7 + $0x64] ss:$16 sps:$4 sm:$0xff]  }
 0x3a3   :  { %v2898_v36 = vpop.eup %2897  ;;  %v1222_v10 = vmul.f32 %v2896_v28, %v2894_v23  ;;  %v3848_v23 = vld [vmem:[#allocation7 + $0x88] ss:$16 sps:$4 sm:$0xff]   ;;  %v3854_v28 = vld [vmem:[#allocation7 + $0x6c] ss:$16 sps:$4 sm:$0xff]  }
 0x3a4   :  { %v1220_v38 = vmul.f32 %v2898_v36, %v3683_v27  ;;  %2901 = vtanh.f32 %v3800_v11  ;;  %v3810_v27 = vld [vmem:[#allocation7 + $0xe8] ss:$16 sps:$4 sm:$0xff]   ;;  %v3857_v36 = vld [vmem:[#allocation7 + $0x60] ss:$16 sps:$4 sm:$0xff]  }
 0x3a5   :  { %2903 = vrcp.f32 %v1214_v21  ;;  %v3860_v21 = vld [vmem:[#allocation7 + $0x68] ss:$16 sps:$4 sm:$0xff]  }
 0x3a6   :  { %v3803_v13 = vadd.f32 %v1222_v10, %v1220_v38  ;;  %v2806_v10 = vld [vmem:[#allocation4 + $0x18] sm:$0xff]   ;;  %v3931_v38 = vld [vmem:[#allocation9] ss:$16 sps:$4 sm:$0xff]  }
 0x3a7   :  { %4469 = vst [vmem:[#allocation41_spill] sm:$0xff] %v3931_v38 }
 0x3a8   :  { %2905 = vtanh.f32 %v3803_v13 }
 0x3ae   :  { %v2900_v1 = vpop.eup %2899 }
 0x3b1   :  { %v2902_v29 = vpop.eup %2901 }
 0x3b2   :  { %v2904_v5 = vpop.eup %2903  ;;  %v1227_v4 = vmul.f32 %v2902_v29, %v2900_v1  ;;  %v3934_v1 = vld [vmem:[#allocation9 + $0x8] ss:$16 sps:$4 sm:$0xff]   ;;  %v3937_v29 = vld [vmem:[#allocation7 + $0xe4] ss:$16 sps:$4 sm:$0xff]  }
 0x3b3   :  { %4470 = vst [vmem:[#allocation42_spill] sm:$0xff] %v3934_v1  ;;  %4471 = vst [vmem:[#allocation43_spill] sm:$0xff] %v3937_v29 }
 0x3b5   :  { %v2906_v8 = vpop.eup %2905 }
 0x3b6   :  { %v1228_v59 = vmul.f32 %v2906_v8, %v2904_v5  ;;  %v3940_v5 = vld [vmem:[#allocation7 + $0xec] ss:$16 sps:$4 sm:$0xff]  }
 0x3b7   :  { %4472 = vst [vmem:[#allocation44_spill] sm:$0xff] %v3940_v5 }
 0x3b8   :  { %v1229_v17 = vpack.c.bf16 %v1228_v59, %v1227_v4 }
 0x3ba   :  { %2669 = vst [vmem:[#allocation12 + $0x10] sm:$0xff] %v1229_v17   ;;  %1276 = vmatmul.mubr.bf16.vlgmr.msra.gmra.mxu0 %v1229_v17  ;;  %1319 = vmatmul.mubr.bf16.vlgmr.msra.gmra.mxu1 %v1229_v17 }
 0x3bb   :  { %1336 = vmatpush1.bf16.msra.mxu0 %v3807_v33  ;;  %1379 = vmatpush1.bf16.msra.mxu1 %v3810_v27 }
 0x3bc   :  { %1337 = vmatprep.subr.bf16.mxu0 %v3813_v7  ;;  %1380 = vmatprep.subr.bf16.mxu1 %v3816_v3 }
 0x3bd   :  { %1367 = vmatprep.mubr.bf16.mxu0 %v4393_v0  ;;  %1410 = vmatprep.mubr.bf16.mxu1 %v4393_v0 }
 0x3bf   :  { %1338 = vmatpush1.bf16.msra.mxu0 %v3821_v9  ;;  %1381 = vmatpush1.bf16.msra.mxu1 %v3824_v31 }
 0x3c0   :  { %1339 = vmatprep.subr.bf16.mxu0 %v3827_v22  ;;  %1382 = vmatprep.subr.bf16.mxu1 %v3830_v35 }
 0x3c3   :  { %1340 = vmatpush1.bf16.msra.mxu0 %v3833_v19  ;;  %1383 = vmatpush1.bf16.msra.mxu1 %v3836_v24 }
 0x3c4   :  { %1341 = vmatprep.subr.bf16.mxu0 %v3839_v12  ;;  %1384 = vmatprep.subr.bf16.mxu1 %v3842_v26 }
 0x3c7   :  { %1342 = vmatpush1.bf16.msra.mxu0 %v3845_v15  ;;  %1385 = vmatpush1.bf16.msra.mxu1 %v3848_v23 }
 0x3c8   :  { %1343 = vmatprep.subr.bf16.mxu0 %v3851_v2  ;;  %1386 = vmatprep.subr.bf16.mxu1 %v3854_v28 }
 0x3cb   :  { %1344 = vmatpush1.bf16.msra.mxu0 %v3857_v36  ;;  %1387 = vmatpush1.bf16.msra.mxu1 %v3860_v21 }
 0x3cc   :  { %1345 = vmatprep.subr.bf16.mxu0 %v3502_v56  ;;  %1388 = vmatprep.subr.bf16.mxu1 %v4394_v34  ;;  %v3895_v56 = vld [vmem:[#allocation9 + $0x60] ss:$16 sps:$4 sm:$0xff]  }
 0x3cd   :  { %4457 = vst [vmem:[#allocation29_spill] sm:$0xff] %v3895_v56  ;;  %v3919_v34 = vld [vmem:[#allocation9 + $0x20] ss:$16 sps:$4 sm:$0xff]  }
 0x3ce   :  { %4465 = vst [vmem:[#allocation37_spill] sm:$0xff] %v3919_v34 }
 0x3cf   :  { %1346 = vmatpush1.bf16.msra.mxu0 %v4395_v25  ;;  %1389 = vmatpush1.bf16.msra.mxu1 %v4396_v30  ;;  %v3922_v25 = vld [vmem:[#allocation9 + $0x28] ss:$16 sps:$4 sm:$0xff]   ;;  %v3925_v30 = vld [vmem:[#allocation9 + $0x4] ss:$16 sps:$4 sm:$0xff]  }
 0x3d0   :  { %1347 = vmatprep.subr.bf16.mxu0 %v3514_v60  ;;  %1390 = vmatprep.subr.bf16.mxu1 %v3516_v61  ;;  %v3904_v60 = vld [vmem:[#allocation9 + $0x4c] ss:$16 sps:$4 sm:$0xff]   ;;  %v3907_v61 = vld [vmem:[#allocation9 + $0x40] ss:$16 sps:$4 sm:$0xff]   ;;  %4466 = vst [vmem:[#allocation38_spill] sm:$0xff] %v3922_v25  ;;  %4467 = vst [vmem:[#allocation39_spill] sm:$0xff] %v3925_v30 }
 0x3d1   :  { %4460 = vst [vmem:[#allocation32_spill] sm:$0xff] %v3904_v60  ;;  %4461 = vst [vmem:[#allocation33_spill] sm:$0xff] %v3907_v61 }
 0x3d3   :  { %1348 = vmatpush1.bf16.msra.mxu0 %v3520_v62  ;;  %1391 = vmatpush1.bf16.msra.mxu1 %v3522_v63  ;;  %v3910_v62 = vld [vmem:[#allocation9 + $0x48] ss:$16 sps:$4 sm:$0xff]   ;;  %v3913_v63 = vld [vmem:[#allocation9 + $0x24] ss:$16 sps:$4 sm:$0xff]  }
 0x3d4   :  { %1349 = vmatprep.subr.bf16.mxu0 %v3526_v37  ;;  %1392 = vmatprep.subr.bf16.mxu1 %v4397_v32  ;;  %4462 = vst [vmem:[#allocation34_spill] sm:$0xff] %v3910_v62  ;;  %4463 = vst [vmem:[#allocation35_spill] sm:$0xff] %v3913_v63  ;;  %v3916_v37 = vld [vmem:[#allocation9 + $0x2c] ss:$16 sps:$4 sm:$0xff]  }
 0x3d5   :  { %4464 = vst [vmem:[#allocation36_spill] sm:$0xff] %v3916_v37  ;;  %v3928_v32 = vld [vmem:[#allocation9 + $0xc] ss:$16 sps:$4 sm:$0xff]  }
 0x3d6   :  { %4468 = vst [vmem:[#allocation40_spill] sm:$0xff] %v3928_v32 }
 0x3d7   :  { %1350 = vmatpush1.bf16.msra.mxu0 %v3532_v57  ;;  %1393 = vmatpush1.bf16.msra.mxu1 %v3534_v58  ;;  %v3898_v57 = vld [vmem:[#allocation9 + $0x68] ss:$16 sps:$4 sm:$0xff]   ;;  %v3901_v58 = vld [vmem:[#allocation9 + $0x44] ss:$16 sps:$4 sm:$0xff]  }
 0x3d8   :  { %1491 = vmatprep.subr.bf16.mxu0 %v3719_v39  ;;  %1534 = vmatprep.subr.bf16.mxu1 %v3722_v40  ;;  %4458 = vst [vmem:[#allocation30_spill] sm:$0xff] %v3898_v57  ;;  %4459 = vst [vmem:[#allocation31_spill] sm:$0xff] %v3901_v58 }
 0x3da   :  { %1368 = vmatmul.mubr.bf16.vlgmr.msra.gmra.mxu0 %v2806_v10  ;;  %1411 = vmatmul.mubr.bf16.vlgmr.msra.gmra.mxu1 %v2806_v10 }
 0x3db   :  { %1492 = vmatpush1.bf16.msra.mxu0 %v3725_v41  ;;  %1535 = vmatpush1.bf16.msra.mxu1 %v3728_v42 }
 0x3dc   :  { %1493 = vmatprep.subr.bf16.mxu0 %v3731_v43  ;;  %1536 = vmatprep.subr.bf16.mxu1 %v3734_v44 }
 0x3dd   :  { %1523 = vmatprep.mubr.bf16.mxu0 %v4393_v0  ;;  %1566 = vmatprep.mubr.bf16.mxu1 %v4393_v0 }
 0x3df   :  { %1494 = vmatpush1.bf16.msra.mxu0 %v3739_v45  ;;  %1537 = vmatpush1.bf16.msra.mxu1 %v3742_v46 }
 0x3e0   :  { %1495 = vmatprep.subr.bf16.mxu0 %v3745_v47  ;;  %1538 = vmatprep.subr.bf16.mxu1 %v3748_v48 }
 0x3e3   :  { %1496 = vmatpush1.bf16.msra.mxu0 %v3751_v49  ;;  %1539 = vmatpush1.bf16.msra.mxu1 %v3754_v50 }
 0x3e4   :  { %1497 = vmatprep.subr.bf16.mxu0 %v3757_v51  ;;  %1540 = vmatprep.subr.bf16.mxu1 %v3760_v52 }
 0x3e7   :  { %1498 = vmatpush1.bf16.msra.mxu0 %v3763_v53  ;;  %1541 = vmatpush1.bf16.msra.mxu1 %v3766_v54 }
 0x3e8   :  { %1499 = vmatprep.subr.bf16.mxu0 %v3769_v55  ;;  %1542 = vmatprep.subr.bf16.mxu1 %v3772_v16 }
 0x3eb   :  { %1500 = vmatpush1.bf16.msra.mxu0 %v3895_v56  ;;  %1543 = vmatpush1.bf16.msra.mxu1 %v3898_v57 }
 0x3ec   :  { %1501 = vmatprep.subr.bf16.mxu0 %v3901_v58  ;;  %1544 = vmatprep.subr.bf16.mxu1 %v3904_v60 }
 0x3ef   :  { %1502 = vmatpush1.bf16.msra.mxu0 %v3907_v61  ;;  %1545 = vmatpush1.bf16.msra.mxu1 %v3910_v62 }
 0x3f0   :  { %1503 = vmatprep.subr.bf16.mxu0 %v3913_v63  ;;  %1546 = vmatprep.subr.bf16.mxu1 %v3916_v37 }
 0x3f3   :  { %1504 = vmatpush1.bf16.msra.mxu0 %v3919_v34  ;;  %1547 = vmatpush1.bf16.msra.mxu1 %v3922_v25 }
 0x3f4   :  { %1505 = vmatprep.subr.bf16.mxu0 %v3925_v30  ;;  %1548 = vmatprep.subr.bf16.mxu1 %v3928_v32 }
 0x3f7   :  { %1506 = vmatpush1.bf16.msra.mxu0 %v3931_v38  ;;  %1549 = vmatpush1.bf16.msra.mxu1 %v3934_v1 }
 0x3f8   :  { %1583 = vmatprep.subr.bf16.mxu0 %v3937_v29  ;;  %1626 = vmatprep.subr.bf16.mxu1 %v3940_v5 }
 0x47a   :  { %v1277_v8 = vpop.f32.mrf.mxu0  ;;  %v1320_v4 = vpop.f32.mrf.mxu1 }
 0x47c   :  { %v1279_v59 = vpop.f32.mrf.mxu0  ;;  %v1322_v17 = vpop.f32.mrf.mxu1 }
 0x47e   :  { %v1281_v10 = vpop.f32.mrf.mxu0  ;;  %v1324_v32 = vpop.f32.mrf.mxu1 }
 0x480   :  { %v1283_v30 = vpop.f32.mrf.mxu0  ;;  %v1326_v38 = vpop.f32.mrf.mxu1 }
 0x49a   :  { %v1369_v25 = vpop.f32.mrf.mxu0  ;;  %v1412_v34 = vpop.f32.mrf.mxu1 }
 0x49b   :  { %v1370_v37 = vadd.f32 %v1369_v25, %v1277_v8 }
 0x49c   :  { %v1371_v1 = vpop.f32.mrf.mxu0  ;;  %v1414_v29 = vpop.f32.mrf.mxu1 }
 0x49d   :  { %v1421_v63 = vadd.f32 %v1370_v37, %v3579_v20  ;;  %v1372_v62 = vadd.f32 %v1371_v1, %v1279_v59  ;;  %v1415_v1 = vadd.f32 %v1414_v29, %v1322_v17 }
 0x49e   :  { %v1373_v61 = vpop.f32.mrf.mxu0  ;;  %v1416_v16 = vpop.f32.mrf.mxu1 }
 0x49f   :  { %v2595_v60 = vmul.f32 -1.442695, %v1421_v63  ;;  %v1422_v5 = vadd.f32 %v1372_v62, %v3581_v18  ;;  %v1374_v58 = vadd.f32 %v1373_v61, %v1281_v10  ;;  %v1413_v63 = vadd.f32 %v1412_v34, %v1320_v4 }
 0x4a0   :  { %v1375_v57 = vpop.f32.mrf.mxu0  ;;  %v1418_v37 = vpop.f32.mrf.mxu1  ;;  %v1424_v61 = vadd.f32 %v1415_v1, %v3587_v6 }
 0x4a1   :  { %2907 = vpow2.f32 %v2595_v60  ;;  %v2597_v56 = vmul.f32 -1.442695, %v1422_v5  ;;  %v1376_v55 = vadd.f32 %v1375_v57, %v1283_v30  ;;  %v1425_v54 = vadd.f32 %v1374_v58, %v3579_v20 }
 0x4a2   :  { %v1419_v59 = vadd.f32 %v1418_v37, %v1326_v38  ;;  %v1423_v60 = vadd.f32 %v1413_v63, %v3589_v14  ;;  %v1417_v57 = vadd.f32 %v1416_v16, %v1324_v32  ;;  %v2599_v58 = vmul.f32 -1.442695, %v1424_v61 }
 0x4a3   :  { %2909 = vpow2.f32 %v2597_v56  ;;  %v1426_v25 = vadd.f32 %v1376_v55, %v3581_v18  ;;  %v2596_v8 = vmul.f32 -1.442695, %v1425_v54 }
 0x4a4   :  { %v1428_v62 = vadd.f32 %v1419_v59, %v3587_v6  ;;  %v1427_v29 = vadd.f32 %v1417_v57, %v3589_v14 }
 0x4a5   :  { %v2598_v53 = vmul.f32 -1.442695, %v1426_v25  ;;  %2911 = vpow2.f32 %v2596_v8 }
 0x4a6   :  { %v2600_v54 = vmul.f32 -1.442695, %v1428_v62 }
 0x4a7   :  { %2913 = vpow2.f32 %v2598_v53 }
 0x4a8   :  { %2915 = vtanh.f32 %v1423_v60 }
 0x4ae   :  { %v2908_v30 = vpop.eup %2907 }
 0x4af   :  { %v1435_v56 = vadd.f32 1.0, %v2908_v30 }
 0x4b0   :  { %v2910_v5 = vpop.eup %2909 }
 0x4b1   :  { %2917 = vrcp.f32 %v1435_v56  ;;  %v1447_v55 = vadd.f32 1.0, %v2910_v5 }
 0x4b2   :  { %2919 = vpow2.f32 %v2599_v58  ;;  %v2912_v53 = vpop.eup %2911 }
 0x4b3   :  { %2921 = vrcp.f32 %v1447_v55  ;;  %v1436_v38 = vadd.f32 1.0, %v2912_v53 }
 0x4b4   :  { %v2914_v34 = vpop.eup %2913  ;;  %2923 = vpow2.f32 %v2600_v54 }
 0x4b5   :  { %2925 = vtanh.f32 %v1427_v29  ;;  %v1448_v4 = vadd.f32 1.0, %v2914_v34  ;;  %v2916_v16 = vpop.eup %2915  ;;  %v3982_v34 = vld [vmem:[#allocation7 + $0x4c] ss:$16 sps:$4 sm:$0xff]  }
 0x4b6   :  { %2927 = vrcp.f32 %v1436_v38  ;;  %v3985_v38 = vld [vmem:[#allocation7 + $0x40] ss:$16 sps:$4 sm:$0xff]  }
 0x4b7   :  { %2929 = vrcp.f32 %v1448_v4  ;;  %v3988_v4 = vld [vmem:[#allocation7 + $0x48] ss:$16 sps:$4 sm:$0xff]  }
 0x4be   :  { %v2918_v32 = vpop.eup %2917 }
 0x4bf   :  { %v2920_v17 = vpop.eup %2919  ;;  %v1469_v8 = vmul.f32 %v2918_v32, %v2916_v16  ;;  %v3991_v16 = vld [vmem:[#allocation7 + $0x24] ss:$16 sps:$4 sm:$0xff]   ;;  %v3994_v32 = vld [vmem:[#allocation7 + $0x2c] ss:$16 sps:$4 sm:$0xff]  }
 0x4c0   :  { %v2922_v10 = vpop.eup %2921  ;;  %v1461_v63 = vadd.f32 1.0, %v2920_v17  ;;  %v3997_v17 = vld [vmem:[#allocation7 + $0x20] ss:$16 sps:$4 sm:$0xff]  }
 0x4c1   :  { %v2924_v25 = vpop.eup %2923  ;;  %v1467_v37 = vmul.f32 %v2922_v10, %v3800_v11  ;;  %v4000_v10 = vld [vmem:[#allocation7 + $0x28] ss:$16 sps:$4 sm:$0xff]  }
 0x4c2   :  { %v2926_v1 = vpop.eup %2925  ;;  %v1462_v62 = vadd.f32 1.0, %v2924_v25  ;;  %2931 = vrcp.f32 %v1461_v63  ;;  %v4003_v25 = vld [vmem:[#allocation7 + $0x4] ss:$16 sps:$4 sm:$0xff]   ;;  %v4012_v63 = vld [vmem:[#allocation7 + $0x8] ss:$16 sps:$4 sm:$0xff]  }
 0x4c3   :  { %v2928_v59 = vpop.eup %2927  ;;  %v3952_v61 = vadd.f32 %v1469_v8, %v1467_v37  ;;  %v4006_v8 = vld [vmem:[#allocation7 + $0xc] ss:$16 sps:$4 sm:$0xff]   ;;  %v2807_v37 = vld [vmem:[#allocation4 + $0x20] sm:$0xff]  }
 0x4c4   :  { %v2930_v60 = vpop.eup %2929  ;;  %v1470_v57 = vmul.f32 %v2928_v59, %v2926_v1  ;;  %v4009_v1 = vld [vmem:[#allocation7] ss:$16 sps:$4 sm:$0xff]  }
 0x4c5   :  { %v1468_v30 = vmul.f32 %v2930_v60, %v3803_v13  ;;  %2933 = vtanh.f32 %v3952_v61  ;;  %v3979_v13 = vld [vmem:[#allocation7 + $0x44] ss:$16 sps:$4 sm:$0xff]   ;;  %v4474_v60 = vld [vmem:[#allocation26_spill] sm:$0xff] }
 0x4c6   :  { %2935 = vrcp.f32 %v1462_v62  ;;  %v4473_v59 = vld [vmem:[#allocation25_spill] sm:$0xff]  ;;  %v4475_v62 = vld [vmem:[#allocation27_spill] sm:$0xff] }
 0x4c7   :  { %v3955_v58 = vadd.f32 %v1470_v57, %v1468_v30  ;;  %v4476_v57 = vld [vmem:[#allocation28_spill] sm:$0xff]  ;;  %v4477_v30 = vld [vmem:[#allocation29_spill] sm:$0xff] }
 0x4c9   :  { %2937 = vtanh.f32 %v3955_v58 }
 0x4cf   :  { %v2932_v56 = vpop.eup %2931 }
 0x4d2   :  { %v2934_v11 = vpop.eup %2933 }
 0x4d3   :  { %v2936_v5 = vpop.eup %2935  ;;  %v1475_v55 = vmul.f32 %v2934_v11, %v2932_v56  ;;  %v4478_v56 = vld [vmem:[#allocation30_spill] sm:$0xff]  ;;  %v4479_v11 = vld [vmem:[#allocation31_spill] sm:$0xff] }
 0x4d6   :  { %v2938_v54 = vpop.eup %2937 }
 0x4d7   :  { %v1476_v29 = vmul.f32 %v2938_v54, %v2936_v5  ;;  %v4480_v5 = vld [vmem:[#allocation32_spill] sm:$0xff]  ;;  %v4481_v54 = vld [vmem:[#allocation33_spill] sm:$0xff] }
 0x4d9   :  { %v1477_v53 = vpack.c.bf16 %v1476_v29, %v1475_v55  ;;  %v4482_v55 = vld [vmem:[#allocation34_spill] sm:$0xff]  ;;  %v4483_v29 = vld [vmem:[#allocation35_spill] sm:$0xff] }
 0x4db   :  { %2674 = vst [vmem:[#allocation12 + $0x18] sm:$0xff] %v1477_v53   ;;  %1524 = vmatmul.mubr.bf16.vlgmr.msra.gmra.mxu0 %v1477_v53  ;;  %1567 = vmatmul.mubr.bf16.vlgmr.msra.gmra.mxu1 %v1477_v53  ;;  %v4484_v53 = vld [vmem:[#allocation36_spill] sm:$0xff] }
 0x4dc   :  { %1584 = vmatpush1.bf16.msra.mxu0 %v3807_v33  ;;  %1627 = vmatpush1.bf16.msra.mxu1 %v3810_v27 }
 0x4dd   :  { %1585 = vmatprep.subr.bf16.mxu0 %v3813_v7  ;;  %1628 = vmatprep.subr.bf16.mxu1 %v3816_v3 }
 0x4de   :  { %1615 = vmatprep.mubr.bf16.mxu0 %v4393_v0  ;;  %1658 = vmatprep.mubr.bf16.mxu1 %v4393_v0 }
 0x4e0   :  { %1586 = vmatpush1.bf16.msra.mxu0 %v3821_v9  ;;  %1629 = vmatpush1.bf16.msra.mxu1 %v3824_v31 }
 0x4e1   :  { %1587 = vmatprep.subr.bf16.mxu0 %v3827_v22  ;;  %1630 = vmatprep.subr.bf16.mxu1 %v3830_v35 }
 0x4e4   :  { %1588 = vmatpush1.bf16.msra.mxu0 %v3833_v19  ;;  %1631 = vmatpush1.bf16.msra.mxu1 %v3836_v24 }
 0x4e5   :  { %1589 = vmatprep.subr.bf16.mxu0 %v3839_v12  ;;  %1632 = vmatprep.subr.bf16.mxu1 %v3842_v26 }
 0x4e8   :  { %1590 = vmatpush1.bf16.msra.mxu0 %v3845_v15  ;;  %1633 = vmatpush1.bf16.msra.mxu1 %v3848_v23 }
 0x4e9   :  { %1591 = vmatprep.subr.bf16.mxu0 %v3851_v2  ;;  %1634 = vmatprep.subr.bf16.mxu1 %v3854_v28 }
 0x4ec   :  { %1592 = vmatpush1.bf16.msra.mxu0 %v3857_v36  ;;  %1635 = vmatpush1.bf16.msra.mxu1 %v3860_v21 }
 0x4ed   :  { %1593 = vmatprep.subr.bf16.mxu0 %v3979_v13  ;;  %1636 = vmatprep.subr.bf16.mxu1 %v3982_v34 }
 0x4f0   :  { %1594 = vmatpush1.bf16.msra.mxu0 %v3985_v38  ;;  %1637 = vmatpush1.bf16.msra.mxu1 %v3988_v4 }
 0x4f1   :  { %1595 = vmatprep.subr.bf16.mxu0 %v3991_v16  ;;  %1638 = vmatprep.subr.bf16.mxu1 %v3994_v32 }
 0x4f4   :  { %1596 = vmatpush1.bf16.msra.mxu0 %v3997_v17  ;;  %1639 = vmatpush1.bf16.msra.mxu1 %v4000_v10 }
 0x4f5   :  { %1597 = vmatprep.subr.bf16.mxu0 %v4003_v25  ;;  %1640 = vmatprep.subr.bf16.mxu1 %v4006_v8 }
 0x4f8   :  { %1598 = vmatpush1.bf16.msra.mxu0 %v4009_v1  ;;  %1641 = vmatpush1.bf16.msra.mxu1 %v4012_v63 }
 0x4f9   :  { %1739 = vmatprep.subr.bf16.mxu0 %v3719_v39  ;;  %1782 = vmatprep.subr.bf16.mxu1 %v3722_v40 }
 0x4fb   :  { %1616 = vmatmul.mubr.bf16.vlgmr.msra.gmra.mxu0 %v2807_v37  ;;  %1659 = vmatmul.mubr.bf16.vlgmr.msra.gmra.mxu1 %v2807_v37  ;;  %v4485_v37 = vld [vmem:[#allocation37_spill] sm:$0xff] }
 0x4fc   :  { %1740 = vmatpush1.bf16.msra.mxu0 %v3725_v41  ;;  %1783 = vmatpush1.bf16.msra.mxu1 %v3728_v42 }
 0x4fd   :  { %1741 = vmatprep.subr.bf16.mxu0 %v3731_v43  ;;  %1784 = vmatprep.subr.bf16.mxu1 %v3734_v44 }
 0x4fe   :  { %1771 = vmatprep.mubr.bf16.mxu0 %v4393_v0  ;;  %1814 = vmatprep.mubr.bf16.mxu1 %v4393_v0 }
 0x500   :  { %1742 = vmatpush1.bf16.msra.mxu0 %v3739_v45  ;;  %1785 = vmatpush1.bf16.msra.mxu1 %v3742_v46 }
 0x501   :  { %1743 = vmatprep.subr.bf16.mxu0 %v3745_v47  ;;  %1786 = vmatprep.subr.bf16.mxu1 %v3748_v48 }
 0x504   :  { %1744 = vmatpush1.bf16.msra.mxu0 %v3751_v49  ;;  %1787 = vmatpush1.bf16.msra.mxu1 %v3754_v50 }
 0x505   :  { %1745 = vmatprep.subr.bf16.mxu0 %v3757_v51  ;;  %1788 = vmatprep.subr.bf16.mxu1 %v3760_v52 }
 0x508   :  { %1746 = vmatpush1.bf16.msra.mxu0 %v4473_v59  ;;  %1789 = vmatpush1.bf16.msra.mxu1 %v4474_v60 }
 0x509   :  { %1747 = vmatprep.subr.bf16.mxu0 %v4475_v62  ;;  %1790 = vmatprep.subr.bf16.mxu1 %v4476_v57  ;;  %v4486_v62 = vld [vmem:[#allocation38_spill] sm:$0xff]  ;;  %v4487_v57 = vld [vmem:[#allocation39_spill] sm:$0xff] }
 0x50c   :  { %1748 = vmatpush1.bf16.msra.mxu0 %v4477_v30  ;;  %1791 = vmatpush1.bf16.msra.mxu1 %v4478_v56  ;;  %v4488_v30 = vld [vmem:[#allocation40_spill] sm:$0xff]  ;;  %v4489_v56 = vld [vmem:[#allocation41_spill] sm:$0xff] }
 0x50d   :  { %1749 = vmatprep.subr.bf16.mxu0 %v4479_v11  ;;  %1792 = vmatprep.subr.bf16.mxu1 %v4480_v5  ;;  %v4490_v11 = vld [vmem:[#allocation42_spill] sm:$0xff]  ;;  %v4491_v5 = vld [vmem:[#allocation43_spill] sm:$0xff] }
 0x510   :  { %1750 = vmatpush1.bf16.msra.mxu0 %v4481_v54  ;;  %1793 = vmatpush1.bf16.msra.mxu1 %v4482_v55  ;;  %v4492_v54 = vld [vmem:[#allocation44_spill] sm:$0xff] }
 0x511   :  { %1751 = vmatprep.subr.bf16.mxu0 %v4483_v29  ;;  %1794 = vmatprep.subr.bf16.mxu1 %v4484_v53 }
 0x514   :  { %1752 = vmatpush1.bf16.msra.mxu0 %v4485_v37  ;;  %1795 = vmatpush1.bf16.msra.mxu1 %v4486_v62 }
 0x515   :  { %1753 = vmatprep.subr.bf16.mxu0 %v4487_v57  ;;  %1796 = vmatprep.subr.bf16.mxu1 %v4488_v30 }
 0x518   :  { %1754 = vmatpush1.bf16.msra.mxu0 %v4489_v56  ;;  %1797 = vmatpush1.bf16.msra.mxu1 %v4490_v11 }
 0x519   :  { %1831 = vmatprep.subr.bf16.mxu0 %v4491_v5  ;;  %1874 = vmatprep.subr.bf16.mxu1 %v4492_v54 }
 0x59b   :  { %v1525_v55 = vpop.f32.mrf.mxu0  ;;  %v1568_v29 = vpop.f32.mrf.mxu1 }
 0x59d   :  { %v1527_v60 = vpop.f32.mrf.mxu0  ;;  %v1570_v53 = vpop.f32.mrf.mxu1 }
 0x59f   :  { %v1529_v59 = vpop.f32.mrf.mxu0  ;;  %v1572_v37 = vpop.f32.mrf.mxu1 }
 0x5a1   :  { %v1531_v52 = vpop.f32.mrf.mxu0  ;;  %v1574_v62 = vpop.f32.mrf.mxu1 }
 0x5bb   :  { %v1617_v51 = vpop.f32.mrf.mxu0  ;;  %v1660_v57 = vpop.f32.mrf.mxu1 }
 0x5bc   :  { %v1618_v50 = vadd.f32 %v1617_v51, %v1525_v55 }
 0x5bd   :  { %v1619_v30 = vpop.f32.mrf.mxu0  ;;  %v1662_v11 = vpop.f32.mrf.mxu1 }
 0x5be   :  { %v1669_v56 = vadd.f32 %v1618_v50, %v3579_v20  ;;  %v1620_v49 = vadd.f32 %v1619_v30, %v1527_v60  ;;  %v1663_v60 = vadd.f32 %v1662_v11, %v1570_v53  ;;  %v1661_v30 = vadd.f32 %v1660_v57, %v1568_v29 }
 0x5bf   :  { %v1621_v48 = vpop.f32.mrf.mxu0  ;;  %v1664_v44 = vpop.f32.mrf.mxu1 }
 0x5c0   :  { %v2604_v5 = vmul.f32 -1.442695, %v1669_v56  ;;  %v1670_v54 = vadd.f32 %v1620_v49, %v3581_v18  ;;  %v1622_v47 = vadd.f32 %v1621_v48, %v1529_v59  ;;  %v1672_v48 = vadd.f32 %v1663_v60, %v3587_v6 }
 0x5c1   :  { %v1623_v46 = vpop.f32.mrf.mxu0  ;;  %v1666_v50 = vpop.f32.mrf.mxu1  ;;  %v1671_v49 = vadd.f32 %v1661_v30, %v3589_v14 }
 0x5c2   :  { %2939 = vpow2.f32 %v2604_v5  ;;  %v2606_v45 = vmul.f32 -1.442695, %v1670_v54  ;;  %v1624_v43 = vadd.f32 %v1623_v46, %v1531_v52  ;;  %v1673_v42 = vadd.f32 %v1622_v47, %v3579_v20 }
 0x5c3   :  { %v1667_v56 = vadd.f32 %v1666_v50, %v1574_v62  ;;  %v1665_v46 = vadd.f32 %v1664_v44, %v1572_v37  ;;  %v2608_v47 = vmul.f32 -1.442695, %v1672_v48 }
 0x5c4   :  { %2941 = vpow2.f32 %v2606_v45  ;;  %v1674_v51 = vadd.f32 %v1624_v43, %v3581_v18  ;;  %v2605_v55 = vmul.f32 -1.442695, %v1673_v42 }
 0x5c5   :  { %v1676_v59 = vadd.f32 %v1667_v56, %v3587_v6  ;;  %v1675_v11 = vadd.f32 %v1665_v46, %v3589_v14 }
 0x5c6   :  { %v2607_v41 = vmul.f32 -1.442695, %v1674_v51  ;;  %2943 = vpow2.f32 %v2605_v55 }
 0x5c7   :  { %v2609_v42 = vmul.f32 -1.442695, %v1676_v59 }
 0x5c8   :  { %2945 = vpow2.f32 %v2607_v41 }
 0x5c9   :  { %2947 = vtanh.f32 %v1671_v49 }
 0x5cf   :  { %v2940_v52 = vpop.eup %2939 }
 0x5d0   :  { %v1683_v45 = vadd.f32 1.0, %v2940_v52 }
 0x5d1   :  { %v2942_v5 = vpop.eup %2941 }
 0x5d2   :  { %2949 = vrcp.f32 %v1683_v45  ;;  %v1695_v43 = vadd.f32 1.0, %v2942_v5 }
 0x5d3   :  { %2951 = vpow2.f32 %v2608_v47  ;;  %v2944_v41 = vpop.eup %2943 }
 0x5d4   :  { %2953 = vrcp.f32 %v1695_v43  ;;  %v1684_v57 = vadd.f32 1.0, %v2944_v41 }
 0x5d5   :  { %v2946_v62 = vpop.eup %2945  ;;  %2955 = vpow2.f32 %v2609_v42 }
 0x5d6   :  { %2957 = vtanh.f32 %v1675_v11  ;;  %v1696_v54 = vadd.f32 1.0, %v2946_v62  ;;  %v2948_v44 = vpop.eup %2947  ;;  %v4493_v62 = vld [vmem:[#allocation46_spill] sm:$0xff] }
 0x5d7   :  { %2959 = vrcp.f32 %v1684_v57  ;;  %v4494_v57 = vld [vmem:[#allocation47_spill] sm:$0xff] }
 0x5d8   :  { %2961 = vrcp.f32 %v1696_v54  ;;  %v4495_v54 = vld [vmem:[#allocation48_spill] sm:$0xff] }
 0x5df   :  { %v2950_v29 = vpop.eup %2949 }
 0x5e0   :  { %v2952_v53 = vpop.eup %2951  ;;  %v1717_v55 = vmul.f32 %v2950_v29, %v2948_v44  ;;  %v4496_v44 = vld [vmem:[#allocation49_spill] sm:$0xff] }
 0x5e1   :  { %v2954_v37 = vpop.eup %2953  ;;  %v1709_v30 = vadd.f32 1.0, %v2952_v53  ;;  %v4497_v29 = vld [vmem:[#allocation17_spill] sm:$0xff]  ;;  %v4498_v53 = vld [vmem:[#allocation18_spill] sm:$0xff] }
 0x5e2   :  { %v2956_v51 = vpop.eup %2955  ;;  %v1715_v50 = vmul.f32 %v2954_v37, %v3952_v61  ;;  %v4501_v37 = vld [vmem:[#allocation21_spill] sm:$0xff] }
 0x5e3   :  { %v2958_v60 = vpop.eup %2957  ;;  %v1710_v59 = vadd.f32 1.0, %v2956_v51  ;;  %2963 = vrcp.f32 %v1709_v30  ;;  %v4502_v51 = vld [vmem:[#allocation22_spill] sm:$0xff] }
 0x5e4   :  { %v2960_v56 = vpop.eup %2959  ;;  %v4060_v48 = vadd.f32 %v1717_v55, %v1715_v50  ;;  %v4503_v55 = vld [vmem:[#allocation23_spill] sm:$0xff]  ;;  %v4504_v50 = vld [vmem:[#allocation24_spill] sm:$0xff]  ;;  %v4506_v30 = vld [vmem:[#allocation26_spill] sm:$0xff] }
 0x5e5   :  { %v2962_v49 = vpop.eup %2961  ;;  %v1718_v46 = vmul.f32 %v2960_v56, %v2958_v60  ;;  %v4505_v60 = vld [vmem:[#allocation25_spill] sm:$0xff]  ;;  %v4507_v56 = vld [vmem:[#allocation27_spill] sm:$0xff] }
 0x5e6   :  { %v1716_v52 = vmul.f32 %v2962_v49, %v3955_v58  ;;  %2965 = vtanh.f32 %v4060_v48  ;;  %v2808_v58 = vld [vmem:[#allocation4 + $0x28] sm:$0xff]  }
 0x5e7   :  { %2967 = vrcp.f32 %v1710_v59  ;;  %v4508_v49 = vld [vmem:[#allocation28_spill] sm:$0xff]  ;;  %v4509_v59 = vld [vmem:[#allocation29_spill] sm:$0xff] }
 0x5e8   :  { %v4063_v47 = vadd.f32 %v1718_v46, %v1716_v52  ;;  %v4510_v46 = vld [vmem:[#allocation30_spill] sm:$0xff]  ;;  %v4511_v52 = vld [vmem:[#allocation31_spill] sm:$0xff] }
 0x5ea   :  { %2969 = vtanh.f32 %v4063_v47 }
 0x5f0   :  { %v2964_v45 = vpop.eup %2963 }
 0x5f3   :  { %v2966_v61 = vpop.eup %2965 }
 0x5f4   :  { %v2968_v5 = vpop.eup %2967  ;;  %v1723_v43 = vmul.f32 %v2966_v61, %v2964_v45  ;;  %v4512_v45 = vld [vmem:[#allocation32_spill] sm:$0xff]  ;;  %v4513_v61 = vld [vmem:[#allocation33_spill] sm:$0xff] }
 0x5f7   :  { %v2970_v42 = vpop.eup %2969 }
 0x5f8   :  { %v1724_v11 = vmul.f32 %v2970_v42, %v2968_v5  ;;  %v4514_v5 = vld [vmem:[#allocation34_spill] sm:$0xff]  ;;  %v4515_v42 = vld [vmem:[#allocation35_spill] sm:$0xff] }
 0x5fa   :  { %v1725_v41 = vpack.c.bf16 %v1724_v11, %v1723_v43  ;;  %v4516_v43 = vld [vmem:[#allocation36_spill] sm:$0xff]  ;;  %v4517_v11 = vld [vmem:[#allocation37_spill] sm:$0xff] }
 0x5fc   :  { %2679 = vst [vmem:[#allocation12 + $0x20] sm:$0xff] %v1725_v41   ;;  %1772 = vmatmul.mubr.bf16.vlgmr.msra.gmra.mxu0 %v1725_v41  ;;  %1815 = vmatmul.mubr.bf16.vlgmr.msra.gmra.mxu1 %v1725_v41  ;;  %v4518_v41 = vld [vmem:[#allocation38_spill] sm:$0xff] }
 0x5fd   :  { %1832 = vmatpush1.bf16.msra.mxu0 %v3807_v33  ;;  %1875 = vmatpush1.bf16.msra.mxu1 %v3810_v27 }
 0x5fe   :  { %1833 = vmatprep.subr.bf16.mxu0 %v3813_v7  ;;  %1876 = vmatprep.subr.bf16.mxu1 %v3816_v3 }
 0x5ff   :  { %1863 = vmatprep.mubr.bf16.mxu0 %v4393_v0  ;;  %1906 = vmatprep.mubr.bf16.mxu1 %v4393_v0 }
 0x601   :  { %1834 = vmatpush1.bf16.msra.mxu0 %v3821_v9  ;;  %1877 = vmatpush1.bf16.msra.mxu1 %v3824_v31 }
 0x602   :  { %1835 = vmatprep.subr.bf16.mxu0 %v3827_v22  ;;  %1878 = vmatprep.subr.bf16.mxu1 %v3830_v35 }
 0x605   :  { %1836 = vmatpush1.bf16.msra.mxu0 %v3833_v19  ;;  %1879 = vmatpush1.bf16.msra.mxu1 %v3836_v24 }
 0x606   :  { %1837 = vmatprep.subr.bf16.mxu0 %v3839_v12  ;;  %1880 = vmatprep.subr.bf16.mxu1 %v3842_v26 }
 0x609   :  { %1838 = vmatpush1.bf16.msra.mxu0 %v3845_v15  ;;  %1881 = vmatpush1.bf16.msra.mxu1 %v3848_v23 }
 0x60a   :  { %1839 = vmatprep.subr.bf16.mxu0 %v3851_v2  ;;  %1882 = vmatprep.subr.bf16.mxu1 %v3854_v28 }
 0x60d   :  { %1840 = vmatpush1.bf16.msra.mxu0 %v3857_v36  ;;  %1883 = vmatpush1.bf16.msra.mxu1 %v3860_v21 }
 0x60e   :  { %1841 = vmatprep.subr.bf16.mxu0 %v3979_v13  ;;  %1884 = vmatprep.subr.bf16.mxu1 %v3982_v34 }
 0x611   :  { %1842 = vmatpush1.bf16.msra.mxu0 %v3985_v38  ;;  %1885 = vmatpush1.bf16.msra.mxu1 %v3988_v4 }
 0x612   :  { %1843 = vmatprep.subr.bf16.mxu0 %v3991_v16  ;;  %1886 = vmatprep.subr.bf16.mxu1 %v3994_v32 }
 0x615   :  { %1844 = vmatpush1.bf16.msra.mxu0 %v3997_v17  ;;  %1887 = vmatpush1.bf16.msra.mxu1 %v4000_v10 }
 0x616   :  { %1845 = vmatprep.subr.bf16.mxu0 %v4003_v25  ;;  %1888 = vmatprep.subr.bf16.mxu1 %v4006_v8 }
 0x619   :  { %1846 = vmatpush1.bf16.msra.mxu0 %v4009_v1  ;;  %1889 = vmatpush1.bf16.msra.mxu1 %v4012_v63 }
 0x61a   :  { %1987 = vmatprep.subr.bf16.mxu0 %v3719_v39  ;;  %2030 = vmatprep.subr.bf16.mxu1 %v3722_v40  ;;  %v4499_v39 = vld [vmem:[#allocation19_spill] sm:$0xff]  ;;  %v4500_v40 = vld [vmem:[#allocation20_spill] sm:$0xff] }
 0x61c   :  { %1864 = vmatmul.mubr.bf16.vlgmr.msra.gmra.mxu0 %v2808_v58  ;;  %1907 = vmatmul.mubr.bf16.vlgmr.msra.gmra.mxu1 %v2808_v58  ;;  %v4519_v58 = vld [vmem:[#allocation39_spill] sm:$0xff] }
 0x61d   :  { %1988 = vmatpush1.bf16.msra.mxu0 %v4493_v62  ;;  %2031 = vmatpush1.bf16.msra.mxu1 %v4494_v57  ;;  %v4520_v62 = vld [vmem:[#allocation40_spill] sm:$0xff]  ;;  %v4521_v57 = vld [vmem:[#allocation41_spill] sm:$0xff] }
 0x61e   :  { %1989 = vmatprep.subr.bf16.mxu0 %v4495_v54  ;;  %2032 = vmatprep.subr.bf16.mxu1 %v4496_v44  ;;  %v4522_v54 = vld [vmem:[#allocation42_spill] sm:$0xff]  ;;  %v4523_v44 = vld [vmem:[#allocation43_spill] sm:$0xff] }
 0x61f   :  { %2019 = vmatprep.mubr.bf16.mxu0 %v4393_v0  ;;  %2062 = vmatprep.mubr.bf16.mxu1 %v4393_v0 }
 0x621   :  { %1990 = vmatpush1.bf16.msra.mxu0 %v4497_v29  ;;  %2033 = vmatpush1.bf16.msra.mxu1 %v4498_v53  ;;  %v4524_v29 = vld [vmem:[#allocation44_spill] sm:$0xff] }
 0x622   :  { %1991 = vmatprep.subr.bf16.mxu0 %v4499_v39  ;;  %2034 = vmatprep.subr.bf16.mxu1 %v4500_v40 }
 0x625   :  { %1992 = vmatpush1.bf16.msra.mxu0 %v4501_v37  ;;  %2035 = vmatpush1.bf16.msra.mxu1 %v4502_v51 }
 0x626   :  { %1993 = vmatprep.subr.bf16.mxu0 %v4503_v55  ;;  %2036 = vmatprep.subr.bf16.mxu1 %v4504_v50 }
 0x629   :  { %1994 = vmatpush1.bf16.msra.mxu0 %v4505_v60  ;;  %2037 = vmatpush1.bf16.msra.mxu1 %v4506_v30 }
 0x62a   :  { %1995 = vmatprep.subr.bf16.mxu0 %v4507_v56  ;;  %2038 = vmatprep.subr.bf16.mxu1 %v4508_v49 }
 0x62d   :  { %1996 = vmatpush1.bf16.msra.mxu0 %v4509_v59  ;;  %2039 = vmatpush1.bf16.msra.mxu1 %v4510_v46 }
 0x62e   :  { %1997 = vmatprep.subr.bf16.mxu0 %v4511_v52  ;;  %2040 = vmatprep.subr.bf16.mxu1 %v4512_v45 }
 0x631   :  { %1998 = vmatpush1.bf16.msra.mxu0 %v4513_v61  ;;  %2041 = vmatpush1.bf16.msra.mxu1 %v4514_v5 }
 0x632   :  { %1999 = vmatprep.subr.bf16.mxu0 %v4515_v42  ;;  %2042 = vmatprep.subr.bf16.mxu1 %v4516_v43 }
 0x635   :  { %2000 = vmatpush1.bf16.msra.mxu0 %v4517_v11  ;;  %2043 = vmatpush1.bf16.msra.mxu1 %v4518_v41 }
 0x636   :  { %2001 = vmatprep.subr.bf16.mxu0 %v4519_v58  ;;  %2044 = vmatprep.subr.bf16.mxu1 %v4520_v62 }
 0x639   :  { %2002 = vmatpush1.bf16.msra.mxu0 %v4521_v57  ;;  %2045 = vmatpush1.bf16.msra.mxu1 %v4522_v54 }
 0x63a   :  { %2079 = vmatprep.subr.bf16.mxu0 %v4523_v44  ;;  %2122 = vmatprep.subr.bf16.mxu1 %v4524_v29 }
 0x6bc   :  { %v1773_v53 = vpop.f32.mrf.mxu0  ;;  %v1816_v39 = vpop.f32.mrf.mxu1 }
 0x6be   :  { %v1775_v40 = vpop.f32.mrf.mxu0  ;;  %v1818_v37 = vpop.f32.mrf.mxu1 }
 0x6c0   :  { %v1777_v51 = vpop.f32.mrf.mxu0  ;;  %v1820_v55 = vpop.f32.mrf.mxu1 }
 0x6c2   :  { %v1779_v50 = vpop.f32.mrf.mxu0  ;;  %v1822_v60 = vpop.f32.mrf.mxu1 }
 0x6dc   :  { %v1865_v30 = vpop.f32.mrf.mxu0  ;;  %v1908_v56 = vpop.f32.mrf.mxu1 }
 0x6dd   :  { %v1866_v49 = vadd.f32 %v1865_v30, %v1773_v53 }
 0x6de   :  { %v1867_v62 = vpop.f32.mrf.mxu0  ;;  %v1910_v54 = vpop.f32.mrf.mxu1 }
 0x6df   :  { %v1917_v57 = vadd.f32 %v1866_v49, %v3579_v20  ;;  %v1868_v58 = vadd.f32 %v1867_v62, %v1775_v40  ;;  %v1911_v62 = vadd.f32 %v1910_v54, %v1818_v37 }
 0x6e0   :  { %v1869_v41 = vpop.f32.mrf.mxu0  ;;  %v1912_v5 = vpop.f32.mrf.mxu1 }
 0x6e1   :  { %v2613_v44 = vmul.f32 -1.442695, %v1917_v57  ;;  %v1918_v29 = vadd.f32 %v1868_v58, %v3581_v18  ;;  %v1870_v11 = vadd.f32 %v1869_v41, %v1777_v51  ;;  %v1909_v57 = vadd.f32 %v1908_v56, %v1816_v39 }
 0x6e2   :  { %v1871_v43 = vpop.f32.mrf.mxu0  ;;  %v1914_v49 = vpop.f32.mrf.mxu1  ;;  %v1920_v41 = vadd.f32 %v1911_v62, %v3587_v6 }
 0x6e3   :  { %2971 = vpow2.f32 %v2613_v44  ;;  %v2615_v42 = vmul.f32 -1.442695, %v1918_v29  ;;  %v1872_v61 = vadd.f32 %v1871_v43, %v1779_v50  ;;  %v1921_v45 = vadd.f32 %v1870_v11, %v3579_v20 }
 0x6e4   :  { %v1915_v40 = vadd.f32 %v1914_v49, %v1822_v60  ;;  %v1919_v58 = vadd.f32 %v1909_v57, %v3589_v14  ;;  %v1913_v43 = vadd.f32 %v1912_v5, %v1820_v55  ;;  %v2617_v11 = vmul.f32 -1.442695, %v1920_v41 }
 0x6e5   :  { %2973 = vpow2.f32 %v2615_v42  ;;  %v1922_v53 = vadd.f32 %v1872_v61, %v3581_v18  ;;  %v2614_v30 = vmul.f32 -1.442695, %v1921_v45 }
 0x6e6   :  { %v1924_v44 = vadd.f32 %v1915_v40, %v3587_v6  ;;  %v1923_v54 = vadd.f32 %v1913_v43, %v3589_v14 }
 0x6e7   :  { %v2616_v52 = vmul.f32 -1.442695, %v1922_v53  ;;  %2975 = vpow2.f32 %v2614_v30 }
 0x6e8   :  { %v2618_v45 = vmul.f32 -1.442695, %v1924_v44 }
 0x6e9   :  { %2977 = vpow2.f32 %v2616_v52 }
 0x6ea   :  { %2979 = vtanh.f32 %v1919_v58 }
 0x6f0   :  { %v2972_v29 = vpop.eup %2971 }
 0x6f1   :  { %v1931_v42 = vadd.f32 1.0, %v2972_v29 }
 0x6f2   :  { %v2974_v51 = vpop.eup %2973 }
 0x6f3   :  { %2981 = vrcp.f32 %v1931_v42  ;;  %v1943_v61 = vadd.f32 1.0, %v2974_v51 }
 0x6f4   :  { %2983 = vpow2.f32 %v2617_v11  ;;  %v2976_v52 = vpop.eup %2975 }
 0x6f5   :  { %2985 = vrcp.f32 %v1943_v61  ;;  %v1932_v37 = vadd.f32 1.0, %v2976_v52 }
 0x6f6   :  { %v2978_v39 = vpop.eup %2977  ;;  %2987 = vpow2.f32 %v2618_v45 }
 0x6f7   :  { %2989 = vtanh.f32 %v1923_v54  ;;  %v1944_v50 = vadd.f32 1.0, %v2978_v39  ;;  %v2980_v5 = vpop.eup %2979  ;;  %v4525_v39 = vld [vmem:[#allocation31_spill] sm:$0xff] }
 0x6f8   :  { %2991 = vrcp.f32 %v1932_v37  ;;  %v4526_v37 = vld [vmem:[#allocation32_spill] sm:$0xff] }
 0x6f9   :  { %2993 = vrcp.f32 %v1944_v50  ;;  %v4527_v50 = vld [vmem:[#allocation33_spill] sm:$0xff] }
 0x700   :  { %v2982_v55 = vpop.eup %2981 }
 0x701   :  { %v2984_v60 = vpop.eup %2983  ;;  %v1965_v30 = vmul.f32 %v2982_v55, %v2980_v5  ;;  %v4528_v5 = vld [vmem:[#allocation34_spill] sm:$0xff]  ;;  %v4529_v55 = vld [vmem:[#allocation35_spill] sm:$0xff] }
 0x702   :  { %v2986_v56 = vpop.eup %2985  ;;  %v1957_v57 = vadd.f32 1.0, %v2984_v60  ;;  %v4530_v60 = vld [vmem:[#allocation36_spill] sm:$0xff] }
 0x703   :  { %v2988_v53 = vpop.eup %2987  ;;  %v1963_v49 = vmul.f32 %v2986_v56, %v4060_v48  ;;  %v4531_v56 = vld [vmem:[#allocation37_spill] sm:$0xff] }
 0x704   :  { %v2990_v62 = vpop.eup %2989  ;;  %v1958_v44 = vadd.f32 1.0, %v2988_v53  ;;  %2995 = vrcp.f32 %v1957_v57  ;;  %v4532_v53 = vld [vmem:[#allocation38_spill] sm:$0xff]  ;;  %v4538_v57 = vld [vmem:[#allocation44_spill] sm:$0xff] }
 0x705   :  { %v2992_v40 = vpop.eup %2991  ;;  %v4144_v41 = vadd.f32 %v1965_v30, %v1963_v49  ;;  %v4533_v30 = vld [vmem:[#allocation39_spill] sm:$0xff]  ;;  %v4536_v49 = vld [vmem:[#allocation42_spill] sm:$0xff] }
 0x706   :  { %v2994_v58 = vpop.eup %2993  ;;  %v1966_v43 = vmul.f32 %v2992_v40, %v2990_v62  ;;  %v4537_v62 = vld [vmem:[#allocation43_spill] sm:$0xff] }
 0x707   :  { %v1964_v29 = vmul.f32 %v2994_v58, %v4063_v47  ;;  %2997 = vtanh.f32 %v4144_v41  ;;  %v3148_v47 = vld [vmem:[#allocation9 + $0x6c] ss:$16 sps:$4 sm:$0xff]  }
 0x708   :  { %2999 = vrcp.f32 %v1958_v44 }
 0x709   :  { %v4147_v11 = vadd.f32 %v1966_v43, %v1964_v29 }
 0x70b   :  { %3001 = vtanh.f32 %v4147_v11 }
 0x711   :  { %v2996_v42 = vpop.eup %2995 }
 0x714   :  { %v2998_v48 = vpop.eup %2997 }
 0x715   :  { %v3000_v51 = vpop.eup %2999  ;;  %v1971_v61 = vmul.f32 %v2998_v48, %v2996_v42 }
 0x718   :  { %v3002_v45 = vpop.eup %3001 }
 0x719   :  { %v1972_v54 = vmul.f32 %v3002_v45, %v3000_v51 }
 0x71b   :  { %v1973_v52 = vpack.c.bf16 %v1972_v54, %v1971_v61 }
 0x71d   :  { %2684 = vst [vmem:[#allocation12 + $0x28] sm:$0xff] %v1973_v52   ;;  %2020 = vmatmul.mubr.bf16.vlgmr.msra.gmra.mxu0 %v1973_v52  ;;  %2063 = vmatmul.mubr.bf16.vlgmr.msra.gmra.mxu1 %v1973_v52 }
 0x71e   :  { %2080 = vmatpush1.bf16.msra.mxu0 %v3807_v33  ;;  %2123 = vmatpush1.bf16.msra.mxu1 %v3810_v27  ;;  %v2809_v33 = vld [vmem:[#allocation4 + $0x30] sm:$0xff]  }
 0x71f   :  { %2081 = vmatprep.subr.bf16.mxu0 %v3813_v7  ;;  %2124 = vmatprep.subr.bf16.mxu1 %v3816_v3  ;;  %v3131_v27 = vld [vmem:[#allocation9 + $0xe4] ss:$16 sps:$4 sm:$0xff]   ;;  %v3132_v7 = vld [vmem:[#allocation9 + $0xec] ss:$16 sps:$4 sm:$0xff]   ;;  %v3133_v3 = vld [vmem:[#allocation9 + $0xe0] ss:$16 sps:$4 sm:$0xff]  }
 0x720   :  { %2111 = vmatprep.mubr.bf16.mxu0 %v4393_v0  ;;  %2154 = vmatprep.mubr.bf16.mxu1 %v4393_v0 }
 0x722   :  { %2082 = vmatpush1.bf16.msra.mxu0 %v3821_v9  ;;  %2125 = vmatpush1.bf16.msra.mxu1 %v3824_v31  ;;  %v3134_v9 = vld [vmem:[#allocation9 + $0xe8] ss:$16 sps:$4 sm:$0xff]   ;;  %v3135_v31 = vld [vmem:[#allocation9 + $0xc4] ss:$16 sps:$4 sm:$0xff]  }
 0x723   :  { %2083 = vmatprep.subr.bf16.mxu0 %v3827_v22  ;;  %2126 = vmatprep.subr.bf16.mxu1 %v3830_v35  ;;  %v3136_v22 = vld [vmem:[#allocation9 + $0xcc] ss:$16 sps:$4 sm:$0xff]   ;;  %v3137_v35 = vld [vmem:[#allocation9 + $0xc0] ss:$16 sps:$4 sm:$0xff]  }
 0x726   :  { %2084 = vmatpush1.bf16.msra.mxu0 %v3833_v19  ;;  %2127 = vmatpush1.bf16.msra.mxu1 %v3836_v24  ;;  %v3138_v19 = vld [vmem:[#allocation9 + $0xc8] ss:$16 sps:$4 sm:$0xff]   ;;  %v3139_v24 = vld [vmem:[#allocation9 + $0xa4] ss:$16 sps:$4 sm:$0xff]  }
 0x727   :  { %2085 = vmatprep.subr.bf16.mxu0 %v3839_v12  ;;  %2128 = vmatprep.subr.bf16.mxu1 %v3842_v26  ;;  %v3140_v12 = vld [vmem:[#allocation9 + $0xac] ss:$16 sps:$4 sm:$0xff]   ;;  %v3141_v26 = vld [vmem:[#allocation9 + $0xa0] ss:$16 sps:$4 sm:$0xff]  }
 0x72a   :  { %2086 = vmatpush1.bf16.msra.mxu0 %v3845_v15  ;;  %2129 = vmatpush1.bf16.msra.mxu1 %v3848_v23  ;;  %v3142_v15 = vld [vmem:[#allocation9 + $0xa8] ss:$16 sps:$4 sm:$0xff]   ;;  %v3143_v23 = vld [vmem:[#allocation9 + $0x84] ss:$16 sps:$4 sm:$0xff]  }
 0x72b   :  { %2087 = vmatprep.subr.bf16.mxu0 %v3851_v2  ;;  %2130 = vmatprep.subr.bf16.mxu1 %v3854_v28  ;;  %v3144_v2 = vld [vmem:[#allocation9 + $0x8c] ss:$16 sps:$4 sm:$0xff]   ;;  %v3145_v28 = vld [vmem:[#allocation9 + $0x80] ss:$16 sps:$4 sm:$0xff]  }
 0x72e   :  { %2088 = vmatpush1.bf16.msra.mxu0 %v3857_v36  ;;  %2131 = vmatpush1.bf16.msra.mxu1 %v3860_v21  ;;  %v3146_v36 = vld [vmem:[#allocation9 + $0x88] ss:$16 sps:$4 sm:$0xff]   ;;  %v3147_v21 = vld [vmem:[#allocation9 + $0x64] ss:$16 sps:$4 sm:$0xff]  }
 0x72f   :  { %2089 = vmatprep.subr.bf16.mxu0 %v3979_v13  ;;  %2132 = vmatprep.subr.bf16.mxu1 %v3982_v34 }
 0x732   :  { %2090 = vmatpush1.bf16.msra.mxu0 %v3985_v38  ;;  %2133 = vmatpush1.bf16.msra.mxu1 %v3988_v4 }
 0x733   :  { %2091 = vmatprep.subr.bf16.mxu0 %v3991_v16  ;;  %2134 = vmatprep.subr.bf16.mxu1 %v3994_v32 }
 0x736   :  { %2092 = vmatpush1.bf16.msra.mxu0 %v3997_v17  ;;  %2135 = vmatpush1.bf16.msra.mxu1 %v4000_v10 }
 0x737   :  { %2093 = vmatprep.subr.bf16.mxu0 %v4003_v25  ;;  %2136 = vmatprep.subr.bf16.mxu1 %v4006_v8 }
 0x73a   :  { %2094 = vmatpush1.bf16.msra.mxu0 %v4009_v1  ;;  %2137 = vmatpush1.bf16.msra.mxu1 %v4012_v63 }
 0x73b   :  { %2235 = vmatprep.subr.bf16.mxu0 %v3131_v27  ;;  %2278 = vmatprep.subr.bf16.mxu1 %v3132_v7 }
 0x73d   :  { %2112 = vmatmul.mubr.bf16.vlgmr.msra.gmra.mxu0 %v2809_v33  ;;  %2155 = vmatmul.mubr.bf16.vlgmr.msra.gmra.mxu1 %v2809_v33 }
 0x73e   :  { %2236 = vmatpush1.bf16.msra.mxu0 %v3133_v3  ;;  %2279 = vmatpush1.bf16.msra.mxu1 %v3134_v9 }
 0x73f   :  { %2237 = vmatprep.subr.bf16.mxu0 %v3135_v31  ;;  %2280 = vmatprep.subr.bf16.mxu1 %v3136_v22 }
 0x740   :  { %2267 = vmatprep.mubr.bf16.mxu0 %v4393_v0  ;;  %2310 = vmatprep.mubr.bf16.mxu1 %v4393_v0 }
 0x742   :  { %2238 = vmatpush1.bf16.msra.mxu0 %v3137_v35  ;;  %2281 = vmatpush1.bf16.msra.mxu1 %v3138_v19 }
 0x743   :  { %2239 = vmatprep.subr.bf16.mxu0 %v3139_v24  ;;  %2282 = vmatprep.subr.bf16.mxu1 %v3140_v12 }
 0x746   :  { %2240 = vmatpush1.bf16.msra.mxu0 %v3141_v26  ;;  %2283 = vmatpush1.bf16.msra.mxu1 %v3142_v15 }
 0x747   :  { %2241 = vmatprep.subr.bf16.mxu0 %v3143_v23  ;;  %2284 = vmatprep.subr.bf16.mxu1 %v3144_v2 }
 0x74a   :  { %2242 = vmatpush1.bf16.msra.mxu0 %v3145_v28  ;;  %2285 = vmatpush1.bf16.msra.mxu1 %v3146_v36 }
 0x74b   :  { %2243 = vmatprep.subr.bf16.mxu0 %v3147_v21  ;;  %2286 = vmatprep.subr.bf16.mxu1 %v3148_v47 }
 0x74e   :  { %2244 = vmatpush1.bf16.msra.mxu0 %v4509_v59  ;;  %2287 = vmatpush1.bf16.msra.mxu1 %v4510_v46  ;;  %v4534_v59 = vld [vmem:[#allocation40_spill] sm:$0xff]  ;;  %v4535_v46 = vld [vmem:[#allocation41_spill] sm:$0xff] }
 0x74f   :  { %2245 = vmatprep.subr.bf16.mxu0 %v4525_v39  ;;  %2288 = vmatprep.subr.bf16.mxu1 %v4526_v37 }
 0x752   :  { %2246 = vmatpush1.bf16.msra.mxu0 %v4527_v50  ;;  %2289 = vmatpush1.bf16.msra.mxu1 %v4528_v5 }
 0x753   :  { %2247 = vmatprep.subr.bf16.mxu0 %v4529_v55  ;;  %2290 = vmatprep.subr.bf16.mxu1 %v4530_v60 }
 0x756   :  { %2248 = vmatpush1.bf16.msra.mxu0 %v4531_v56  ;;  %2291 = vmatpush1.bf16.msra.mxu1 %v4532_v53 }
 0x757   :  { %2249 = vmatprep.subr.bf16.mxu0 %v4533_v30  ;;  %2292 = vmatprep.subr.bf16.mxu1 %v4534_v59 }
 0x75a   :  { %2250 = vmatpush1.bf16.msra.mxu0 %v4535_v46  ;;  %2293 = vmatpush1.bf16.msra.mxu1 %v4536_v49 }
 0x75b   :  { %2327 = vmatprep.subr.bf16.mxu0 %v4537_v62  ;;  %2370 = vmatprep.subr.bf16.mxu1 %v4538_v57 }
 0x7dd   :  { %v2021_v40 = vpop.f32.mrf.mxu0  ;;  %v2064_v58 = vpop.f32.mrf.mxu1 }
 0x7df   :  { %v2023_v44 = vpop.f32.mrf.mxu0  ;;  %v2066_v43 = vpop.f32.mrf.mxu1 }
 0x7e1   :  { %v2025_v29 = vpop.f32.mrf.mxu0  ;;  %v2068_v42 = vpop.f32.mrf.mxu1 }
 0x7e3   :  { %v2027_v48 = vpop.f32.mrf.mxu0  ;;  %v2070_v51 = vpop.f32.mrf.mxu1 }
 0x7fd   :  { %v2113_v45 = vpop.f32.mrf.mxu0  ;;  %v2156_v61 = vpop.f32.mrf.mxu1 }
 0x7fe   :  { %v2114_v54 = vadd.f32 %v2113_v45, %v2021_v40  ;;  %v2157_v21 = vadd.f32 %v2156_v61, %v2064_v58 }
 0x7ff   :  { %v2115_v52 = vpop.f32.mrf.mxu0  ;;  %v2158_v7 = vpop.f32.mrf.mxu1 }
 0x800   :  { %v2165_v33 = vadd.f32 %v2114_v54, %v3579_v20  ;;  %v2116_v27 = vadd.f32 %v2115_v52, %v2023_v44  ;;  %v2159_v36 = vadd.f32 %v2158_v7, %v2066_v43  ;;  %v2167_v37 = vadd.f32 %v2157_v21, %v3589_v14  ;;  %v3156_v21 = vld [vmem:[#allocation7 + $0xac] ss:$16 sps:$4 sm:$0xff]  }
 0x801   :  { %v2117_v3 = vpop.f32.mrf.mxu0  ;;  %v2160_v24 = vpop.f32.mrf.mxu1 }
 0x802   :  { %v2622_v9 = vmul.f32 -1.442695, %v2165_v33  ;;  %v2166_v31 = vadd.f32 %v2116_v27, %v3581_v18  ;;  %v2118_v22 = vadd.f32 %v2117_v3, %v2025_v29  ;;  %v2168_v39 = vadd.f32 %v2159_v36, %v3587_v6  ;;  %v3155_v36 = vld [vmem:[#allocation7 + $0xa4] ss:$16 sps:$4 sm:$0xff]  }
 0x803   :  { %v2119_v35 = vpop.f32.mrf.mxu0  ;;  %v2162_v28 = vpop.f32.mrf.mxu1  ;;  %v2161_v5 = vadd.f32 %v2160_v24, %v2068_v42 }
 0x804   :  { %3003 = vpow2.f32 %v2622_v9  ;;  %v2624_v19 = vmul.f32 -1.442695, %v2166_v31  ;;  %v2120_v12 = vadd.f32 %v2119_v35, %v2027_v48  ;;  %v2169_v26 = vadd.f32 %v2118_v22, %v3579_v20 }
 0x805   :  { %v2163_v47 = vadd.f32 %v2162_v28, %v2070_v51  ;;  %v2626_v60 = vmul.f32 -1.442695, %v2168_v39  ;;  %v2171_v46 = vadd.f32 %v2161_v5, %v3589_v14  ;;  %v3154_v28 = vld [vmem:[#allocation7 + $0xc8] ss:$16 sps:$4 sm:$0xff]   ;;  %v3161_v5 = vld [vmem:[#allocation7 + $0x80] ss:$16 sps:$4 sm:$0xff]  }
 0x806   :  { %3005 = vpow2.f32 %v2624_v19  ;;  %v2170_v15 = vadd.f32 %v2120_v12, %v3581_v18  ;;  %v2623_v23 = vmul.f32 -1.442695, %v2169_v26  ;;  %v3149_v26 = vld [vmem:[#allocation7 + $0xe0] ss:$16 sps:$4 sm:$0xff]   ;;  %v3158_v39 = vld [vmem:[#allocation7 + $0xa8] ss:$16 sps:$4 sm:$0xff]  }
 0x807   :  { %v2172_v50 = vadd.f32 %v2163_v47, %v3587_v6  ;;  %v3157_v47 = vld [vmem:[#allocation7 + $0xa0] ss:$16 sps:$4 sm:$0xff]  }
 0x808   :  { %v2625_v2 = vmul.f32 -1.442695, %v2170_v15  ;;  %3007 = vpow2.f32 %v2623_v23  ;;  %v3151_v15 = vld [vmem:[#allocation7 + $0xc4] ss:$16 sps:$4 sm:$0xff]   ;;  %v3152_v23 = vld [vmem:[#allocation7 + $0xcc] ss:$16 sps:$4 sm:$0xff]  }
 0x809   :  { %v2627_v30 = vmul.f32 -1.442695, %v2172_v50  ;;  %v3160_v50 = vld [vmem:[#allocation7 + $0x8c] ss:$16 sps:$4 sm:$0xff]  }
 0x80a   :  { %3009 = vpow2.f32 %v2625_v2  ;;  %v3153_v2 = vld [vmem:[#allocation7 + $0xc0] ss:$16 sps:$4 sm:$0xff]  }
 0x80b   :  { %3011 = vtanh.f32 %v2167_v37  ;;  %v3159_v37 = vld [vmem:[#allocation7 + $0x84] ss:$16 sps:$4 sm:$0xff]  }
 0x811   :  { %v3004_v55 = vpop.eup %3003 }
 0x812   :  { %v2179_v56 = vadd.f32 1.0, %v3004_v55  ;;  %v3162_v55 = vld [vmem:[#allocation7 + $0x88] ss:$16 sps:$4 sm:$0xff]  }
 0x813   :  { %v3006_v53 = vpop.eup %3005 }
 0x814   :  { %3013 = vrcp.f32 %v2179_v56  ;;  %v2191_v59 = vadd.f32 1.0, %v3006_v53  ;;  %v3165_v56 = vld [vmem:[#allocation7 + $0x60] ss:$16 sps:$4 sm:$0xff]   ;;  %v3166_v53 = vld [vmem:[#allocation7 + $0x68] ss:$16 sps:$4 sm:$0xff]  }
 0x815   :  { %3015 = vpow2.f32 %v2626_v60  ;;  %v3008_v49 = vpop.eup %3007  ;;  %v3164_v60 = vld [vmem:[#allocation7 + $0x6c] ss:$16 sps:$4 sm:$0xff]  }
 0x816   :  { %3017 = vrcp.f32 %v2191_v59  ;;  %v2180_v57 = vadd.f32 1.0, %v3008_v49 }
 0x817   :  { %v3010_v62 = vpop.eup %3009  ;;  %3019 = vpow2.f32 %v2627_v30  ;;  %v2810_v30 = vld [vmem:[#allocation4 + $0x38] sm:$0xff]  }
 0x818   :  { %3021 = vtanh.f32 %v2171_v46  ;;  %v2192_v40 = vadd.f32 1.0, %v3010_v62  ;;  %v3012_v58 = vpop.eup %3011 }
 0x819   :  { %3023 = vrcp.f32 %v2180_v57 }
 0x81a   :  { %3025 = vrcp.f32 %v2192_v40 }
 0x821   :  { %v3014_v44 = vpop.eup %3013 }
 0x822   :  { %v3016_v43 = vpop.eup %3015  ;;  %v2213_v48 = vmul.f32 %v3014_v44, %v3012_v58 }
 0x823   :  { %v3018_v29 = vpop.eup %3017  ;;  %v2205_v61 = vadd.f32 1.0, %v3016_v43 }
 0x824   :  { %v3020_v42 = vpop.eup %3019  ;;  %v2211_v51 = vmul.f32 %v3018_v29, %v4144_v41 }
 0x825   :  { %v3022_v45 = vpop.eup %3021  ;;  %v2206_v27 = vadd.f32 1.0, %v3020_v42  ;;  %3027 = vrcp.f32 %v2205_v61 }
 0x826   :  { %v3024_v54 = vpop.eup %3023  ;;  %v4210_v52 = vadd.f32 %v2213_v48, %v2211_v51 }
 0x827   :  { %v3026_v33 = vpop.eup %3025  ;;  %v2214_v7 = vmul.f32 %v3024_v54, %v3022_v45 }
 0x828   :  { %v2212_v3 = vmul.f32 %v3026_v33, %v4147_v11  ;;  %3029 = vtanh.f32 %v4210_v52  ;;  %v3150_v11 = vld [vmem:[#allocation7 + $0xe8] ss:$16 sps:$4 sm:$0xff]  }
 0x829   :  { %3031 = vrcp.f32 %v2206_v27 }
 0x82a   :  { %v4213_v9 = vadd.f32 %v2214_v7, %v2212_v3 }
 0x82c   :  { %3033 = vtanh.f32 %v4213_v9 }
 0x832   :  { %v3028_v31 = vpop.eup %3027 }
 0x835   :  { %v3030_v41 = vpop.eup %3029 }
 0x836   :  { %v3032_v22 = vpop.eup %3031  ;;  %v2219_v19 = vmul.f32 %v3030_v41, %v3028_v31 }
 0x839   :  { %v3034_v35 = vpop.eup %3033 }
 0x83a   :  { %v2220_v24 = vmul.f32 %v3034_v35, %v3032_v22 }
 0x83c   :  { %v2221_v12 = vpack.c.bf16 %v2220_v24, %v2219_v19 }
 0x83e   :  { %2689 = vst [vmem:[#allocation12 + $0x30] sm:$0xff] %v2221_v12   ;;  %2268 = vmatmul.mubr.bf16.vlgmr.msra.gmra.mxu0 %v2221_v12  ;;  %2311 = vmatmul.mubr.bf16.vlgmr.msra.gmra.mxu1 %v2221_v12 }
 0x83f   :  { %2328 = vmatpush1.bf16.msra.mxu0 %v3149_v26  ;;  %2371 = vmatpush1.bf16.msra.mxu1 %v3150_v11 }
 0x840   :  { %2329 = vmatprep.subr.bf16.mxu0 %v3151_v15  ;;  %2372 = vmatprep.subr.bf16.mxu1 %v3152_v23 }
 0x841   :  { %2359 = vmatprep.mubr.bf16.mxu0 %v4393_v0  ;;  %2402 = vmatprep.mubr.bf16.mxu1 %v4393_v0  ;;  %v3163_v0 = vld [vmem:[#allocation7 + $0x64] ss:$16 sps:$4 sm:$0xff]  }
 0x843   :  { %2330 = vmatpush1.bf16.msra.mxu0 %v3153_v2  ;;  %2373 = vmatpush1.bf16.msra.mxu1 %v3154_v28 }
 0x844   :  { %2331 = vmatprep.subr.bf16.mxu0 %v3155_v36  ;;  %2374 = vmatprep.subr.bf16.mxu1 %v3156_v21 }
 0x847   :  { %2332 = vmatpush1.bf16.msra.mxu0 %v3157_v47  ;;  %2375 = vmatpush1.bf16.msra.mxu1 %v3158_v39 }
 0x848   :  { %2333 = vmatprep.subr.bf16.mxu0 %v3159_v37  ;;  %2376 = vmatprep.subr.bf16.mxu1 %v3160_v50 }
 0x84b   :  { %2334 = vmatpush1.bf16.msra.mxu0 %v3161_v5  ;;  %2377 = vmatpush1.bf16.msra.mxu1 %v3162_v55 }
 0x84c   :  { %2335 = vmatprep.subr.bf16.mxu0 %v3163_v0  ;;  %2378 = vmatprep.subr.bf16.mxu1 %v3164_v60 }
 0x84f   :  { %2336 = vmatpush1.bf16.msra.mxu0 %v3165_v56  ;;  %2379 = vmatpush1.bf16.msra.mxu1 %v3166_v53 }
 0x850   :  { %2337 = vmatprep.subr.bf16.mxu0 %v3979_v13  ;;  %2380 = vmatprep.subr.bf16.mxu1 %v3982_v34 }
 0x853   :  { %2338 = vmatpush1.bf16.msra.mxu0 %v3985_v38  ;;  %2381 = vmatpush1.bf16.msra.mxu1 %v3988_v4 }
 0x854   :  { %2339 = vmatprep.subr.bf16.mxu0 %v3991_v16  ;;  %2382 = vmatprep.subr.bf16.mxu1 %v3994_v32 }
 0x857   :  { %2340 = vmatpush1.bf16.msra.mxu0 %v3997_v17  ;;  %2383 = vmatpush1.bf16.msra.mxu1 %v4000_v10 }
 0x858   :  { %2341 = vmatprep.subr.bf16.mxu0 %v4003_v25  ;;  %2384 = vmatprep.subr.bf16.mxu1 %v4006_v8 }
 0x85b   :  { %2342 = vmatpush1.bf16.msra.mxu0 %v4009_v1  ;;  %2385 = vmatpush1.bf16.msra.mxu1 %v4012_v63 }
 0x85e   :  { %2360 = vmatmul.mubr.bf16.vlgmr.msra.gmra.mxu0 %v2810_v30  ;;  %2403 = vmatmul.mubr.bf16.vlgmr.msra.gmra.mxu1 %v2810_v30 }
 0x8fe   :  { %v2269_v13 = vpop.f32.mrf.mxu0  ;;  %v2312_v34 = vpop.f32.mrf.mxu1 }
 0x900   :  { %v2271_v38 = vpop.f32.mrf.mxu0  ;;  %v2314_v4 = vpop.f32.mrf.mxu1 }
 0x902   :  { %v2273_v16 = vpop.f32.mrf.mxu0  ;;  %v2316_v32 = vpop.f32.mrf.mxu1 }
 0x904   :  { %v2275_v17 = vpop.f32.mrf.mxu0  ;;  %v2318_v59 = vpop.f32.mrf.mxu1 }
 0x91e   :  { %v2361_v10 = vpop.f32.mrf.mxu0  ;;  %v2404_v46 = vpop.f32.mrf.mxu1 }
 0x91f   :  { %v2362_v25 = vadd.f32 %v2361_v10, %v2269_v13  ;;  %v2405_v27 = vadd.f32 %v2404_v46, %v2312_v34 }
 0x920   :  { %v2363_v49 = vpop.f32.mrf.mxu0  ;;  %v2406_v1 = vpop.f32.mrf.mxu1 }
 0x921   :  { %v2413_v8 = vadd.f32 %v2362_v25, %v3579_v20  ;;  %v2364_v62 = vadd.f32 %v2363_v49, %v2271_v38  ;;  %v2407_v33 = vadd.f32 %v2406_v1, %v2314_v4  ;;  %v2415_v31 = vadd.f32 %v2405_v27, %v3589_v14 }
 0x922   :  { %v2365_v57 = vpop.f32.mrf.mxu0  ;;  %v2408_v29 = vpop.f32.mrf.mxu1 }
 0x923   :  { %v2631_v63 = vmul.f32 -1.442695, %v2413_v8  ;;  %v2414_v40 = vadd.f32 %v2364_v62, %v3581_v18  ;;  %v2366_v58 = vadd.f32 %v2365_v57, %v2273_v16  ;;  %v2416_v3 = vadd.f32 %v2407_v33, %v3587_v6 }
 0x924   :  { %v2367_v44 = vpop.f32.mrf.mxu0  ;;  %v2410_v54 = vpop.f32.mrf.mxu1  ;;  %v2409_v22 = vadd.f32 %v2408_v29, %v2316_v32 }
 0x925   :  { %3035 = vpow2.f32 %v2631_v63  ;;  %v2633_v43 = vmul.f32 -1.442695, %v2414_v40  ;;  %v2368_v42 = vadd.f32 %v2367_v44, %v2275_v17  ;;  %v2417_v48 = vadd.f32 %v2366_v58, %v3579_v20 }
 0x926   :  { %v2411_v7 = vadd.f32 %v2410_v54, %v2318_v59  ;;  %v2635_v20 = vmul.f32 -1.442695, %v2416_v3  ;;  %v2419_v26 = vadd.f32 %v2409_v22, %v3589_v14 }
 0x927   :  { %3037 = vpow2.f32 %v2633_v43  ;;  %v2418_v51 = vadd.f32 %v2368_v42, %v3581_v18  ;;  %v2632_v45 = vmul.f32 -1.442695, %v2417_v48 }
 0x928   :  { %v2420_v41 = vadd.f32 %v2411_v7, %v3587_v6 }
 0x929   :  { %v2634_v61 = vmul.f32 -1.442695, %v2418_v51  ;;  %3039 = vpow2.f32 %v2632_v45 }
 0x92a   :  { %v2636_v18 = vmul.f32 -1.442695, %v2420_v41 }
 0x92b   :  { %3041 = vpow2.f32 %v2634_v61 }
 0x92c   :  { %3043 = vtanh.f32 %v2415_v31 }
 0x932   :  { %v3036_v35 = vpop.eup %3035 }
 0x933   :  { %v2427_v19 = vadd.f32 1.0, %v3036_v35 }
 0x934   :  { %v3038_v24 = vpop.eup %3037 }
 0x935   :  { %3045 = vrcp.f32 %v2427_v19  ;;  %v2439_v12 = vadd.f32 1.0, %v3038_v24 }
 0x936   :  { %3047 = vpow2.f32 %v2635_v20  ;;  %v3040_v11 = vpop.eup %3039 }
 0x937   :  { %3049 = vrcp.f32 %v2439_v12  ;;  %v2428_v23 = vadd.f32 1.0, %v3040_v11 }
 0x938   :  { %v3042_v15 = vpop.eup %3041  ;;  %3051 = vpow2.f32 %v2636_v18 }
 0x939   :  { %3053 = vtanh.f32 %v2419_v26  ;;  %v2440_v2 = vadd.f32 1.0, %v3042_v15  ;;  %v3044_v6 = vpop.eup %3043 }
 0x93a   :  { %3055 = vrcp.f32 %v2428_v23 }
 0x93b   :  { %3057 = vrcp.f32 %v2440_v2 }
 0x942   :  { %v3046_v28 = vpop.eup %3045 }
 0x943   :  { %v3048_v36 = vpop.eup %3047  ;;  %v2461_v39 = vmul.f32 %v3046_v28, %v3044_v6 }
 0x944   :  { %v3050_v21 = vpop.eup %3049  ;;  %v2453_v14 = vadd.f32 1.0, %v3048_v36 }
 0x945   :  { %v3052_v47 = vpop.eup %3051  ;;  %v2459_v37 = vmul.f32 %v3050_v21, %v4210_v52 }
 0x946   :  { %v3054_v50 = vpop.eup %3053  ;;  %v2454_v60 = vadd.f32 1.0, %v3052_v47  ;;  %3059 = vrcp.f32 %v2453_v14 }
 0x947   :  { %v3056_v5 = vpop.eup %3055  ;;  %v2463_v55 = vadd.f32 %v2461_v39, %v2459_v37 }
 0x948   :  { %v3058_v0 = vpop.eup %3057  ;;  %v2462_v56 = vmul.f32 %v3056_v5, %v3054_v50 }
 0x949   :  { %v2460_v53 = vmul.f32 %v3058_v0, %v4213_v9  ;;  %3061 = vtanh.f32 %v2463_v55 }
 0x94a   :  { %3063 = vrcp.f32 %v2454_v60 }
 0x94b   :  { %v2464_v30 = vadd.f32 %v2462_v56, %v2460_v53 }
 0x94d   :  { %3065 = vtanh.f32 %v2464_v30 }
 0x953   :  { %v3060_v13 = vpop.eup %3059 }
 0x956   :  { %v3062_v34 = vpop.eup %3061 }
 0x957   :  { %v3064_v38 = vpop.eup %3063  ;;  %v2467_v52 = vmul.f32 %v3062_v34, %v3060_v13 }
 0x95a   :  { %v3066_v4 = vpop.eup %3065 }
 0x95b   :  { %v2468_v16 = vmul.f32 %v3066_v4, %v3064_v38 }
 0x95d   :  { %v2693_v32 = vpack.c.bf16 %v2468_v16, %v2467_v52 }
 0x95f   :  { %2694 = vst [vmem:[#allocation12 + $0x38] sm:$0xff] %v2693_v32  }
 0x960   :  { %3258 = shalt.err (!%p3255_p10)
}
 0x961   :  { %2495 = dma.vmem_to_hbm [thread:$0]  %s2490_s17, 1024, %s4252_s5, [#allocation6], %s3279_s28, %s3279_s28, %s3280_s29  }
 0x962   :  { %3273 = dma.done.wait [#allocation6], 1024  }
 0x963   :  { %3274 = vsyncadd [#allocation6], 4294966272 }
 0x964   :  { %2499 = vsyncpa [#allocation5], 1 }
 0x965   :  { %2500 = vsyncpa [#allocation8], 1 }
 0x966   :  { %2501 = vsyncpa [#allocation11], 1 }
 0x967   :  { %2502 = vsyncpa [#allocation6], 1 }

</bundles_post_ra>
